<compile_context>
chip_gen: v7x
topology: tpu7x:2x2x1
jax: 0.10.0
libtpu: 0.0.40
codegen_flags: <defaults>
</compile_context>

<pallas_src>
import jax
import jax.numpy as jnp
from jax import lax
from jax.experimental import pallas as pl
from jax.experimental.pallas import tpu as pltpu

# ---- module hyperparameters (globals of the PyTorch script) ----
N_A = 32            # pre-attention bi-LSTM hidden size
N_S = 64            # post-attention LSTM hidden size
TX = 30             # input sequence length
TY = 10             # output sequence length
VOCAB = 11          # len(machine_vocab): not defined in the snippet; classic date-task vocab = 11
VOCAB_PAD = 128     # output lanes padded to 128 for an unmasked, lane-dense store

_GATE_ORDER = (0, 1, 3, 2)   # PyTorch column-block order is (i, f, g, o); we pack as (i, f, o, g)


def _pack_encoder(wih_f, whh_f, b_f, wih_b, whh_b, b_b):
    """Gate-interleave the two encoder directions with packed gate order [i|f|o|g].

    With h packed as [h_fwd | h_bwd] (m, 64):
        gates = x_fwd * wf_row + x_bwd * wb_row + b_enc + h @ whh_enc
    has lane layout [i_f|i_b | f_f|f_b | o_f|o_b | g_f|g_b] (each block 32 wide), so the
    LSTM cell update runs on packed (m, 64) slices for both directions at once and the
    three sigmoids cover one contiguous 192-lane region.
    """
    zc = jnp.zeros((N_A, N_A), jnp.float32)
    zr = jnp.zeros((1, N_A), jnp.float32)
    hh_blocks, wf_blocks, wb_blocks, b_blocks = [], [], [], []
    for g in _GATE_ORDER:
        sl = slice(g * N_A, (g + 1) * N_A)
        top = jnp.concatenate([whh_f[:, sl], zc], axis=1)     # h_fwd rows
        bot = jnp.concatenate([zc, whh_b[:, sl]], axis=1)     # h_bwd rows
        hh_blocks.append(jnp.concatenate([top, bot], axis=0))
        wf_blocks.append(jnp.concatenate([wih_f[:, sl], zr], axis=1))
        wb_blocks.append(jnp.concatenate([zr, wih_b[:, sl]], axis=1))
        b_blocks.append(jnp.concatenate([b_f[:, sl], b_b[:, sl]], axis=1))
    whh_enc = jnp.concatenate(hh_blocks, axis=1)   # (2*N_A, 8*N_A) = (64, 256)
    wf_row = jnp.concatenate(wf_blocks, axis=1)    # (1, 256)
    wb_row = jnp.concatenate(wb_blocks, axis=1)    # (1, 256)
    b_enc = jnp.concatenate(b_blocks, axis=1)      # (1, 256)
    return whh_enc, wf_row, wb_row, b_enc


def _reorder_gates_ifog(w, h):
    """Reorder gate column blocks from PyTorch (i,f,g,o) to packed (i,f,o,g)."""
    return jnp.concatenate(
        [w[..., :2 * h], w[..., 3 * h:4 * h], w[..., 2 * h:3 * h]], axis=-1)


def nmt_attention_kernel(
    x_ref,                                   # (Tx, m, 1) input, time-major, f32
    whh_enc_ref,                             # (64, 256) bf16, gate-interleaved bi-LSTM recurrent weights
    wf_ref, wb_ref, benc_ref,                # (1, 256) f32 each
    wihp_ref, whhp_ref,                      # (64, 256) bf16 each, post-attention LSTM
    bp_ref,                                  # (1, 256) f32
    wout_ref,                                # (64, 128) bf16, padded output projection
    bout_ref,                                # (1, 128) f32
    y_ref,                                   # (Ty*m, 128) f32 output
    xg_scr,                                  # VMEM scratch (Tx, m, 256) f32: hoisted input-gate terms
):
    Tx, m, _ = x_ref.shape

    wf_row = wf_ref[...]
    wb_row = wb_ref[...]
    b_enc = benc_ref[...]

    # -------- hoisted encoder input-gate terms (independent of the recurrence) --------
    # Forward direction consumes x[t], backward consumes x[Tx-1-t]; both terms are
    # h-independent, so they are computed once, outside the serial chain.
    for t in range(Tx):                                       # static indices
        xg_scr[t] = x_ref[t] * wf_row + x_ref[Tx - 1 - t] * wb_row + b_enc

    whh_enc = whh_enc_ref[...]                                # bf16 (64, 256)

    def lstm_cell(gates, c):
        """Gate layout [i | f | o | g]; works for both the packed bi-cell and the decoder cell."""
        H = gates.shape[-1] // 4
        sig = jax.nn.sigmoid(gates[:, :3 * H])                # one contiguous sigmoid region
        i = sig[:, 0 * H:1 * H]
        f = sig[:, 1 * H:2 * H]
        o = sig[:, 2 * H:3 * H]
        g = jnp.tanh(gates[:, 3 * H:])
        c_new = f * c + i * g
        h_new = o * jnp.tanh(c_new)
        return h_new, c_new

    # -------- fused bidirectional encoder + context accumulation --------
    # Softmax over the size-1 score axis is identically 1, so the attention context is
    # exactly sum_t [h_fwd_t | h_bwd_t]; the sum is order-independent, so it is
    # accumulated while both directions run in a single loop.
    def enc_step(i, carry):
        h, c, ctx = carry                                     # each (m, 64), packed [fwd | bwd]
        gates = xg_scr[i] + jnp.dot(h.astype(jnp.bfloat16), whh_enc,
                                    preferred_element_type=jnp.float32)   # (m, 256) f32
        h, c = lstm_cell(gates, c)
        return h, c, ctx + h

    z2 = jnp.zeros((m, 2 * N_A), jnp.float32)
    _, _, context = lax.fori_loop(0, Tx, enc_step, (z2, z2, z2), unroll=True)

    # -------- decoder: Ty post-attention LSTM steps, state & outputs in registers --------
    whh_p = whhp_ref[...]                                     # bf16 (64, 256)
    # Context is decode-step-invariant -> its gate projection is hoisted out of the loop.
    xg_dec = (jnp.dot(context.astype(jnp.bfloat16), wihp_ref[...],
                      preferred_element_type=jnp.float32) + bp_ref[...])  # (m, 256) f32

    s = jnp.zeros((m, N_S), jnp.float32)
    c = jnp.zeros((m, N_S), jnp.float32)
    s_steps = []
    for _ in range(TY):                                       # fully unrolled, tiny live state
        gates = xg_dec + jnp.dot(s.astype(jnp.bfloat16), whh_p,
                                 preferred_element_type=jnp.float32)
        s, c = lstm_cell(gates, c)
        s_steps.append(s)
    s_all = jnp.concatenate(s_steps, axis=0)                  # (Ty*m, 64)

    # -------- deferred, lane-dense output projection (single unmasked store) --------
    y_ref[...] = (jnp.dot(s_all.astype(jnp.bfloat16), wout_ref[...],
                          preferred_element_type=jnp.float32) + bout_ref[...])


def init_params(key):
    """Deterministic parameter init with PyTorch-like uniform ranges (values arbitrary).

    The attention-MLP weights of the PyTorch module are intentionally absent: they are
    re-randomized on every forward there and, because the softmax is over a size-1 axis,
    they provably never affect the output.
    """
    ks = iter(jax.random.split(key, 16))

    def u(shape, scale):
        return jax.random.uniform(next(ks), shape, jnp.float32, -scale, scale)

    k_pre = 1.0 / (N_A ** 0.5)
    k_post = 1.0 / (N_S ** 0.5)

    # pre-attention bi-LSTM (PyTorch stores (4H, in)/(4H, H); we store the transpose)
    wih_f = u((1, 4 * N_A), k_pre)
    whh_f = u((N_A, 4 * N_A), k_pre)
    b_f = u((1, 4 * N_A), k_pre) + u((1, 4 * N_A), k_pre)       # bias_ih + bias_hh
    wih_b = u((1, 4 * N_A), k_pre)
    whh_b = u((N_A, 4 * N_A), k_pre)
    b_b = u((1, 4 * N_A), k_pre) + u((1, 4 * N_A), k_pre)

    # post-attention LSTM
    wih_p = u((2 * N_A, 4 * N_S), k_post)
    whh_p = u((N_S, 4 * N_S), k_post)
    b_p = u((1, 4 * N_S), k_post) + u((1, 4 * N_S), k_post)

    # output layer
    wout = u((N_S, VOCAB), k_post)
    bout = u((1, VOCAB), k_post)

    return (wih_f, whh_f, b_f, wih_b, whh_b, b_b, wih_p, whh_p, b_p, wout, bout)


@jax.jit
def nmt_attention_forward(x, params):
    """x: (m, Tx, 1) float32  ->  y_pred: (m, Ty, VOCAB) float32 (logits, no softmax)."""
    (wih_f, whh_f, b_f, wih_b, whh_b, b_b, wih_p, whh_p, b_p, wout, bout) = params
    m = x.shape[0]
    x_tm = jnp.transpose(x, (1, 0, 2))                              # time-major (Tx, m, 1)

    # One-time weight plumbing (layout + precision only, no per-step compute).
    whh_enc, wf_row, wb_row, b_enc = _pack_encoder(wih_f, whh_f, b_f, wih_b, whh_b, b_b)
    whh_enc_bf = whh_enc.astype(jnp.bfloat16)
    wih_p_k = _reorder_gates_ifog(wih_p, N_S).astype(jnp.bfloat16)
    whh_p_k = _reorder_gates_ifog(whh_p, N_S).astype(jnp.bfloat16)
    b_p_k = _reorder_gates_ifog(b_p, N_S)                            # bias stays f32
    wout_pad = jnp.pad(wout, ((0, 0), (0, VOCAB_PAD - VOCAB))).astype(jnp.bfloat16)
    bout_pad = jnp.pad(bout, ((0, 0), (0, VOCAB_PAD - VOCAB)))

    vmem = pl.BlockSpec(memory_space=pltpu.MemorySpace.VMEM)
    y_flat = pl.pallas_call(
        nmt_attention_kernel,
        out_shape=jax.ShapeDtypeStruct((TY * m, VOCAB_PAD), jnp.float32),
        in_specs=[vmem] * 10,
        out_specs=vmem,
        scratch_shapes=[
            pltpu.VMEM((TX, m, 8 * N_A), jnp.float32),   # hoisted input-gate terms
        ],
    )(x_tm, whh_enc_bf, wf_row, wb_row, b_enc,
      wih_p_k, whh_p_k, b_p_k, wout_pad, bout_pad)

    y = y_flat.reshape(TY, m, VOCAB_PAD)[:, :, :VOCAB]
    return jnp.transpose(y, (1, 0, 2))                              # (m, Ty, VOCAB)


def nmt_attention_reference(x, params, mat_dtype=jnp.float32):
    """Pure-JAX port of the PyTorch forward.

    With mat_dtype=float32 it is the exact f32 reference; with mat_dtype=bfloat16 it
    mirrors the kernel's mixed precision (bf16 matmul operands, f32 accumulate,
    f32 cell math) so the structural correctness of the kernel can be checked tightly.
    """
    (wih_f, whh_f, b_f, wih_b, whh_b, b_b, wih_p, whh_p, b_p, wout, bout) = params
    m = x.shape[0]
    x_tm = jnp.transpose(x, (1, 0, 2))

    def run_lstm(xs, wih, whh, b, hidden):
        whh_c = whh.astype(mat_dtype)

        def step(carry, xt):
            h, c = carry
            gates = xt * wih + jnp.dot(h.astype(mat_dtype), whh_c,
                                       preferred_element_type=jnp.float32) + b
            i = jax.nn.sigmoid(gates[:, :hidden])
            f = jax.nn.sigmoid(gates[:, hidden:2 * hidden])
            g = jnp.tanh(gates[:, 2 * hidden:3 * hidden])
            o = jax.nn.sigmoid(gates[:, 3 * hidden:])
            c = f * c + i * g
            h = o * jnp.tanh(c)
            return (h, c), h

        init = (jnp.zeros((m, hidden), jnp.float32), jnp.zeros((m, hidden), jnp.float32))
        _, hs = lax.scan(step, init, xs)
        return hs

    a_f = run_lstm(x_tm, wih_f, whh_f, b_f, N_A)                              # (Tx, m, 32)
    a_b = jnp.flip(run_lstm(jnp.flip(x_tm, 0), wih_b, whh_b, b_b, N_A), 0)    # (Tx, m, 32)
    a = jnp.concatenate([a_f, a_b], axis=-1)                                  # (Tx, m, 64)
    # Softmax over a size-1 axis == 1, so the attention context is the plain time-sum.
    context = jnp.sum(a, axis=0)                                              # (m, 64)

    wih_p_c = wih_p.astype(mat_dtype)
    whh_p_c = whh_p.astype(mat_dtype)
    wout_c = wout.astype(mat_dtype)
    ctx_gates = jnp.dot(context.astype(mat_dtype), wih_p_c,
                        preferred_element_type=jnp.float32) + b_p

    def dec(carry, _):
        s, c = carry
        gates = ctx_gates + jnp.dot(s.astype(mat_dtype), whh_p_c,
                                    preferred_element_type=jnp.float32)
        i = jax.nn.sigmoid(gates[:, :N_S])
        f = jax.nn.sigmoid(gates[:, N_S:2 * N_S])
        g = jnp.tanh(gates[:, 2 * N_S:3 * N_S])
        o = jax.nn.sigmoid(gates[:, 3 * N_S:])
        c = f * c + i * g
        s = o * jnp.tanh(c)
        y_t = jnp.dot(s.astype(mat_dtype), wout_c, preferred_element_type=jnp.float32) + bout
        return (s, c), y_t

    init = (jnp.zeros((m, N_S), jnp.float32), jnp.zeros((m, N_S), jnp.float32))
    _, ys = lax.scan(dec, init, None, length=TY)                              # (Ty, m, VOCAB)
    return jnp.transpose(ys, (1, 0, 2))


if __name__ == "__main__":
    key = jax.random.PRNGKey(0)
    k_x, k_p = jax.random.split(key)
    m = 8                         # batch = 8 fills the vreg sublanes; costs the same as m=2
    X = jax.random.normal(k_x, (m, TX, 1), jnp.float32)
    params = init_params(k_p)

    y = jax.block_until_ready(nmt_attention_forward(X, params))
    assert y.shape == (m, TY, VOCAB)
    assert bool(jnp.all(jnp.isfinite(y)))

    # Structural correctness: compare against a pure-JAX reference that uses the SAME
    # mixed precision (bf16 matmul operands, f32 accumulate).  Any packing / gate-order /
    # semantics bug would produce O(0.1+) errors; remaining differences are only
    # summation-order / transcendental-approximation noise.
    ref_bf16 = jax.jit(lambda xx, pp: nmt_attention_reference(xx, pp, jnp.bfloat16))
    y_ref_bf16 = jax.block_until_ready(ref_bf16(X, params))
    err_struct = float(jnp.max(jnp.abs(y - y_ref_bf16)))
    assert err_struct < 3e-2, f"structural mismatch: {err_struct}"

    # Precision sanity: bound the bf16 drift over the 40-step recurrence against the
    # exact f32 reference (loose bound; structural bugs are already caught above).
    ref_f32 = jax.jit(lambda xx, pp: nmt_attention_reference(xx, pp, jnp.float32))
    y_ref_f32 = jax.block_until_ready(ref_f32(X, params))
    err_f32 = float(jnp.max(jnp.abs(y - y_ref_f32)))
    assert err_f32 < 3e-1, f"bf16 drift too large: {err_f32}"

    print("KERNEL_OK")
</pallas_src>

<mosaic_0001>
module attributes {stable_mosaic.version = 11 : i64} {
  func.func @nmt_attention_kernel(%arg0: memref<30x8x1xf32, #tpu.memory_space<vmem>>, %arg1: memref<64x256xbf16, #tpu.memory_space<vmem>>, %arg2: memref<1x256xf32, #tpu.memory_space<vmem>>, %arg3: memref<1x256xf32, #tpu.memory_space<vmem>>, %arg4: memref<1x256xf32, #tpu.memory_space<vmem>>, %arg5: memref<64x256xbf16, #tpu.memory_space<vmem>>, %arg6: memref<64x256xbf16, #tpu.memory_space<vmem>>, %arg7: memref<1x256xf32, #tpu.memory_space<vmem>>, %arg8: memref<64x128xbf16, #tpu.memory_space<vmem>>, %arg9: memref<1x128xf32, #tpu.memory_space<vmem>>, %arg10: memref<80x128xf32, #tpu.memory_space<vmem>>, %arg11: memref<30x8x256xf32, #tpu.memory_space<vmem>>) attributes {dimension_semantics = [], scalar_prefetch = 0 : i64, scratch_operands = 1 : i64, tpu.core_type = #tpu.core_type<tc>} {
    %c0 = arith.constant 0 : index
    %c0_0 = arith.constant 0 : index
    %0 = vector.load %arg2[%c0, %c0_0] : memref<1x256xf32, #tpu.memory_space<vmem>>, vector<1x256xf32>
    %c0_1 = arith.constant 0 : index
    %c0_2 = arith.constant 0 : index
    %1 = vector.load %arg3[%c0_1, %c0_2] : memref<1x256xf32, #tpu.memory_space<vmem>>, vector<1x256xf32>
    %c0_3 = arith.constant 0 : index
    %c0_4 = arith.constant 0 : index
    %2 = vector.load %arg4[%c0_3, %c0_4] : memref<1x256xf32, #tpu.memory_space<vmem>>, vector<1x256xf32>
    %c0_5 = arith.constant 0 : index
    %c0_6 = arith.constant 0 : index
    %c0_7 = arith.constant 0 : index
    %3 = vector.load %arg0[%c0_5, %c0_6, %c0_7] : memref<30x8x1xf32, #tpu.memory_space<vmem>>, vector<1x8x1xf32>
    %4 = vector.shape_cast %3 : vector<1x8x1xf32> to vector<8x1xf32>
    %5 = vector.broadcast %4 : vector<8x1xf32> to vector<8x256xf32>
    %6 = vector.broadcast %0 : vector<1x256xf32> to vector<8x256xf32>
    %7 = arith.mulf %5, %6 : vector<8x256xf32>
    %c29 = arith.constant 29 : index
    %c0_8 = arith.constant 0 : index
    %c0_9 = arith.constant 0 : index
    %8 = vector.load %arg0[%c29, %c0_8, %c0_9] : memref<30x8x1xf32, #tpu.memory_space<vmem>>, vector<1x8x1xf32>
    %9 = vector.shape_cast %8 : vector<1x8x1xf32> to vector<8x1xf32>
    %10 = vector.broadcast %9 : vector<8x1xf32> to vector<8x256xf32>
    %11 = vector.broadcast %1 : vector<1x256xf32> to vector<8x256xf32>
    %12 = arith.mulf %10, %11 : vector<8x256xf32>
    %13 = arith.addf %7, %12 : vector<8x256xf32>
    %14 = vector.broadcast %2 : vector<1x256xf32> to vector<8x256xf32>
    %15 = arith.addf %13, %14 : vector<8x256xf32>
    %c0_10 = arith.constant 0 : index
    %c0_11 = arith.constant 0 : index
    %c0_12 = arith.constant 0 : index
    %16 = vector.load %arg11[%c0_10, %c0_11, %c0_12] : memref<30x8x256xf32, #tpu.memory_space<vmem>>, vector<1x8x256xf32>
    %17 = vector.shape_cast %16 : vector<1x8x256xf32> to vector<8x256xf32>
    %18 = vector.shape_cast %15 : vector<8x256xf32> to vector<1x8x256xf32>
    tpu.vector_store %arg11[%c0_10, %c0_11, %c0_12], %18 {strides = array<i32>} : memref<30x8x256xf32, #tpu.memory_space<vmem>>, vector<1x8x256xf32>,
    %c1 = arith.constant 1 : index
    %c0_13 = arith.constant 0 : index
    %c0_14 = arith.constant 0 : index
    %19 = vector.load %arg0[%c1, %c0_13, %c0_14] : memref<30x8x1xf32, #tpu.memory_space<vmem>>, vector<1x8x1xf32>
    %20 = vector.shape_cast %19 : vector<1x8x1xf32> to vector<8x1xf32>
    %21 = vector.broadcast %20 : vector<8x1xf32> to vector<8x256xf32>
    %22 = vector.broadcast %0 : vector<1x256xf32> to vector<8x256xf32>
    %23 = arith.mulf %21, %22 : vector<8x256xf32>
    %c28 = arith.constant 28 : index
    %c0_15 = arith.constant 0 : index
    %c0_16 = arith.constant 0 : index
    %24 = vector.load %arg0[%c28, %c0_15, %c0_16] : memref<30x8x1xf32, #tpu.memory_space<vmem>>, vector<1x8x1xf32>
    %25 = vector.shape_cast %24 : vector<1x8x1xf32> to vector<8x1xf32>
    %26 = vector.broadcast %25 : vector<8x1xf32> to vector<8x256xf32>
    %27 = vector.broadcast %1 : vector<1x256xf32> to vector<8x256xf32>
    %28 = arith.mulf %26, %27 : vector<8x256xf32>
    %29 = arith.addf %23, %28 : vector<8x256xf32>
    %30 = vector.broadcast %2 : vector<1x256xf32> to vector<8x256xf32>
    %31 = arith.addf %29, %30 : vector<8x256xf32>
    %c1_17 = arith.constant 1 : index
    %c0_18 = arith.constant 0 : index
    %c0_19 = arith.constant 0 : index
    %32 = vector.load %arg11[%c1_17, %c0_18, %c0_19] : memref<30x8x256xf32, #tpu.memory_space<vmem>>, vector<1x8x256xf32>
    %33 = vector.shape_cast %32 : vector<1x8x256xf32> to vector<8x256xf32>
    %34 = vector.shape_cast %31 : vector<8x256xf32> to vector<1x8x256xf32>
    tpu.vector_store %arg11[%c1_17, %c0_18, %c0_19], %34 {strides = array<i32>} : memref<30x8x256xf32, #tpu.memory_space<vmem>>, vector<1x8x256xf32>,
    %c2 = arith.constant 2 : index
    %c0_20 = arith.constant 0 : index
    %c0_21 = arith.constant 0 : index
    %35 = vector.load %arg0[%c2, %c0_20, %c0_21] : memref<30x8x1xf32, #tpu.memory_space<vmem>>, vector<1x8x1xf32>
    %36 = vector.shape_cast %35 : vector<1x8x1xf32> to vector<8x1xf32>
    %37 = vector.broadcast %36 : vector<8x1xf32> to vector<8x256xf32>
    %38 = vector.broadcast %0 : vector<1x256xf32> to vector<8x256xf32>
    %39 = arith.mulf %37, %38 : vector<8x256xf32>
    %c27 = arith.constant 27 : index
    %c0_22 = arith.constant 0 : index
    %c0_23 = arith.constant 0 : index
    %40 = vector.load %arg0[%c27, %c0_22, %c0_23] : memref<30x8x1xf32, #tpu.memory_space<vmem>>, vector<1x8x1xf32>
    %41 = vector.shape_cast %40 : vector<1x8x1xf32> to vector<8x1xf32>
    %42 = vector.broadcast %41 : vector<8x1xf32> to vector<8x256xf32>
    %43 = vector.broadcast %1 : vector<1x256xf32> to vector<8x256xf32>
    %44 = arith.mulf %42, %43 : vector<8x256xf32>
    %45 = arith.addf %39, %44 : vector<8x256xf32>
    %46 = vector.broadcast %2 : vector<1x256xf32> to vector<8x256xf32>
    %47 = arith.addf %45, %46 : vector<8x256xf32>
    %c2_24 = arith.constant 2 : index
    %c0_25 = arith.constant 0 : index
    %c0_26 = arith.constant 0 : index
    %48 = vector.load %arg11[%c2_24, %c0_25, %c0_26] : memref<30x8x256xf32, #tpu.memory_space<vmem>>, vector<1x8x256xf32>
    %49 = vector.shape_cast %48 : vector<1x8x256xf32> to vector<8x256xf32>
    %50 = vector.shape_cast %47 : vector<8x256xf32> to vector<1x8x256xf32>
    tpu.vector_store %arg11[%c2_24, %c0_25, %c0_26], %50 {strides = array<i32>} : memref<30x8x256xf32, #tpu.memory_space<vmem>>, vector<1x8x256xf32>,
    %c3 = arith.constant 3 : index
    %c0_27 = arith.constant 0 : index
    %c0_28 = arith.constant 0 : index
    %51 = vector.load %arg0[%c3, %c0_27, %c0_28] : memref<30x8x1xf32, #tpu.memory_space<vmem>>, vector<1x8x1xf32>
    %52 = vector.shape_cast %51 : vector<1x8x1xf32> to vector<8x1xf32>
    %53 = vector.broadcast %52 : vector<8x1xf32> to vector<8x256xf32>
    %54 = vector.broadcast %0 : vector<1x256xf32> to vector<8x256xf32>
    %55 = arith.mulf %53, %54 : vector<8x256xf32>
    %c26 = arith.constant 26 : index
    %c0_29 = arith.constant 0 : index
    %c0_30 = arith.constant 0 : index
    %56 = vector.load %arg0[%c26, %c0_29, %c0_30] : memref<30x8x1xf32, #tpu.memory_space<vmem>>, vector<1x8x1xf32>
    %57 = vector.shape_cast %56 : vector<1x8x1xf32> to vector<8x1xf32>
    %58 = vector.broadcast %57 : vector<8x1xf32> to vector<8x256xf32>
    %59 = vector.broadcast %1 : vector<1x256xf32> to vector<8x256xf32>
    %60 = arith.mulf %58, %59 : vector<8x256xf32>
    %61 = arith.addf %55, %60 : vector<8x256xf32>
    %62 = vector.broadcast %2 : vector<1x256xf32> to vector<8x256xf32>
    %63 = arith.addf %61, %62 : vector<8x256xf32>
    %c3_31 = arith.constant 3 : index
    %c0_32 = arith.constant 0 : index
    %c0_33 = arith.constant 0 : index
    %64 = vector.load %arg11[%c3_31, %c0_32, %c0_33] : memref<30x8x256xf32, #tpu.memory_space<vmem>>, vector<1x8x256xf32>
    %65 = vector.shape_cast %64 : vector<1x8x256xf32> to vector<8x256xf32>
    %66 = vector.shape_cast %63 : vector<8x256xf32> to vector<1x8x256xf32>
    tpu.vector_store %arg11[%c3_31, %c0_32, %c0_33], %66 {strides = array<i32>} : memref<30x8x256xf32, #tpu.memory_space<vmem>>, vector<1x8x256xf32>,
    %c4 = arith.constant 4 : index
    %c0_34 = arith.constant 0 : index
    %c0_35 = arith.constant 0 : index
    %67 = vector.load %arg0[%c4, %c0_34, %c0_35] : memref<30x8x1xf32, #tpu.memory_space<vmem>>, vector<1x8x1xf32>
    %68 = vector.shape_cast %67 : vector<1x8x1xf32> to vector<8x1xf32>
    %69 = vector.broadcast %68 : vector<8x1xf32> to vector<8x256xf32>
    %70 = vector.broadcast %0 : vector<1x256xf32> to vector<8x256xf32>
    %71 = arith.mulf %69, %70 : vector<8x256xf32>
    %c25 = arith.constant 25 : index
    %c0_36 = arith.constant 0 : index
    %c0_37 = arith.constant 0 : index
    %72 = vector.load %arg0[%c25, %c0_36, %c0_37] : memref<30x8x1xf32, #tpu.memory_space<vmem>>, vector<1x8x1xf32>
    %73 = vector.shape_cast %72 : vector<1x8x1xf32> to vector<8x1xf32>
    %74 = vector.broadcast %73 : vector<8x1xf32> to vector<8x256xf32>
    %75 = vector.broadcast %1 : vector<1x256xf32> to vector<8x256xf32>
    %76 = arith.mulf %74, %75 : vector<8x256xf32>
    %77 = arith.addf %71, %76 : vector<8x256xf32>
    %78 = vector.broadcast %2 : vector<1x256xf32> to vector<8x256xf32>
    %79 = arith.addf %77, %78 : vector<8x256xf32>
    %c4_38 = arith.constant 4 : index
    %c0_39 = arith.constant 0 : index
    %c0_40 = arith.constant 0 : index
    %80 = vector.load %arg11[%c4_38, %c0_39, %c0_40] : memref<30x8x256xf32, #tpu.memory_space<vmem>>, vector<1x8x256xf32>
    %81 = vector.shape_cast %80 : vector<1x8x256xf32> to vector<8x256xf32>
    %82 = vector.shape_cast %79 : vector<8x256xf32> to vector<1x8x256xf32>
    tpu.vector_store %arg11[%c4_38, %c0_39, %c0_40], %82 {strides = array<i32>} : memref<30x8x256xf32, #tpu.memory_space<vmem>>, vector<1x8x256xf32>,
    %c5 = arith.constant 5 : index
    %c0_41 = arith.constant 0 : index
    %c0_42 = arith.constant 0 : index
    %83 = vector.load %arg0[%c5, %c0_41, %c0_42] : memref<30x8x1xf32, #tpu.memory_space<vmem>>, vector<1x8x1xf32>
    %84 = vector.shape_cast %83 : vector<1x8x1xf32> to vector<8x1xf32>
    %85 = vector.broadcast %84 : vector<8x1xf32> to vector<8x256xf32>
    %86 = vector.broadcast %0 : vector<1x256xf32> to vector<8x256xf32>
    %87 = arith.mulf %85, %86 : vector<8x256xf32>
    %c24 = arith.constant 24 : index
    %c0_43 = arith.constant 0 : index
    %c0_44 = arith.constant 0 : index
    %88 = vector.load %arg0[%c24, %c0_43, %c0_44] : memref<30x8x1xf32, #tpu.memory_space<vmem>>, vector<1x8x1xf32>
    %89 = vector.shape_cast %88 : vector<1x8x1xf32> to vector<8x1xf32>
    %90 = vector.broadcast %89 : vector<8x1xf32> to vector<8x256xf32>
    %91 = vector.broadcast %1 : vector<1x256xf32> to vector<8x256xf32>
    %92 = arith.mulf %90, %91 : vector<8x256xf32>
    %93 = arith.addf %87, %92 : vector<8x256xf32>
    %94 = vector.broadcast %2 : vector<1x256xf32> to vector<8x256xf32>
    %95 = arith.addf %93, %94 : vector<8x256xf32>
    %c5_45 = arith.constant 5 : index
    %c0_46 = arith.constant 0 : index
    %c0_47 = arith.constant 0 : index
    %96 = vector.load %arg11[%c5_45, %c0_46, %c0_47] : memref<30x8x256xf32, #tpu.memory_space<vmem>>, vector<1x8x256xf32>
    %97 = vector.shape_cast %96 : vector<1x8x256xf32> to vector<8x256xf32>
    %98 = vector.shape_cast %95 : vector<8x256xf32> to vector<1x8x256xf32>
    tpu.vector_store %arg11[%c5_45, %c0_46, %c0_47], %98 {strides = array<i32>} : memref<30x8x256xf32, #tpu.memory_space<vmem>>, vector<1x8x256xf32>,
    %c6 = arith.constant 6 : index
    %c0_48 = arith.constant 0 : index
    %c0_49 = arith.constant 0 : index
    %99 = vector.load %arg0[%c6, %c0_48, %c0_49] : memref<30x8x1xf32, #tpu.memory_space<vmem>>, vector<1x8x1xf32>
    %100 = vector.shape_cast %99 : vector<1x8x1xf32> to vector<8x1xf32>
    %101 = vector.broadcast %100 : vector<8x1xf32> to vector<8x256xf32>
    %102 = vector.broadcast %0 : vector<1x256xf32> to vector<8x256xf32>
    %103 = arith.mulf %101, %102 : vector<8x256xf32>
    %c23 = arith.constant 23 : index
    %c0_50 = arith.constant 0 : index
    %c0_51 = arith.constant 0 : index
    %104 = vector.load %arg0[%c23, %c0_50, %c0_51] : memref<30x8x1xf32, #tpu.memory_space<vmem>>, vector<1x8x1xf32>
    %105 = vector.shape_cast %104 : vector<1x8x1xf32> to vector<8x1xf32>
    %106 = vector.broadcast %105 : vector<8x1xf32> to vector<8x256xf32>
    %107 = vector.broadcast %1 : vector<1x256xf32> to vector<8x256xf32>
    %108 = arith.mulf %106, %107 : vector<8x256xf32>
    %109 = arith.addf %103, %108 : vector<8x256xf32>
    %110 = vector.broadcast %2 : vector<1x256xf32> to vector<8x256xf32>
    %111 = arith.addf %109, %110 : vector<8x256xf32>
    %c6_52 = arith.constant 6 : index
    %c0_53 = arith.constant 0 : index
    %c0_54 = arith.constant 0 : index
    %112 = vector.load %arg11[%c6_52, %c0_53, %c0_54] : memref<30x8x256xf32, #tpu.memory_space<vmem>>, vector<1x8x256xf32>
    %113 = vector.shape_cast %112 : vector<1x8x256xf32> to vector<8x256xf32>
    %114 = vector.shape_cast %111 : vector<8x256xf32> to vector<1x8x256xf32>
    tpu.vector_store %arg11[%c6_52, %c0_53, %c0_54], %114 {strides = array<i32>} : memref<30x8x256xf32, #tpu.memory_space<vmem>>, vector<1x8x256xf32>,
    %c7 = arith.constant 7 : index
    %c0_55 = arith.constant 0 : index
    %c0_56 = arith.constant 0 : index
    %115 = vector.load %arg0[%c7, %c0_55, %c0_56] : memref<30x8x1xf32, #tpu.memory_space<vmem>>, vector<1x8x1xf32>
    %116 = vector.shape_cast %115 : vector<1x8x1xf32> to vector<8x1xf32>
    %117 = vector.broadcast %116 : vector<8x1xf32> to vector<8x256xf32>
    %118 = vector.broadcast %0 : vector<1x256xf32> to vector<8x256xf32>
    %119 = arith.mulf %117, %118 : vector<8x256xf32>
    %c22 = arith.constant 22 : index
    %c0_57 = arith.constant 0 : index
    %c0_58 = arith.constant 0 : index
    %120 = vector.load %arg0[%c22, %c0_57, %c0_58] : memref<30x8x1xf32, #tpu.memory_space<vmem>>, vector<1x8x1xf32>
    %121 = vector.shape_cast %120 : vector<1x8x1xf32> to vector<8x1xf32>
    %122 = vector.broadcast %121 : vector<8x1xf32> to vector<8x256xf32>
    %123 = vector.broadcast %1 : vector<1x256xf32> to vector<8x256xf32>
    %124 = arith.mulf %122, %123 : vector<8x256xf32>
    %125 = arith.addf %119, %124 : vector<8x256xf32>
    %126 = vector.broadcast %2 : vector<1x256xf32> to vector<8x256xf32>
    %127 = arith.addf %125, %126 : vector<8x256xf32>
    %c7_59 = arith.constant 7 : index
    %c0_60 = arith.constant 0 : index
    %c0_61 = arith.constant 0 : index
    %128 = vector.load %arg11[%c7_59, %c0_60, %c0_61] : memref<30x8x256xf32, #tpu.memory_space<vmem>>, vector<1x8x256xf32>
    %129 = vector.shape_cast %128 : vector<1x8x256xf32> to vector<8x256xf32>
    %130 = vector.shape_cast %127 : vector<8x256xf32> to vector<1x8x256xf32>
    tpu.vector_store %arg11[%c7_59, %c0_60, %c0_61], %130 {strides = array<i32>} : memref<30x8x256xf32, #tpu.memory_space<vmem>>, vector<1x8x256xf32>,
    %c8 = arith.constant 8 : index
    %c0_62 = arith.constant 0 : index
    %c0_63 = arith.constant 0 : index
    %131 = vector.load %arg0[%c8, %c0_62, %c0_63] : memref<30x8x1xf32, #tpu.memory_space<vmem>>, vector<1x8x1xf32>
    %132 = vector.shape_cast %131 : vector<1x8x1xf32> to vector<8x1xf32>
    %133 = vector.broadcast %132 : vector<8x1xf32> to vector<8x256xf32>
    %134 = vector.broadcast %0 : vector<1x256xf32> to vector<8x256xf32>
    %135 = arith.mulf %133, %134 : vector<8x256xf32>
    %c21 = arith.constant 21 : index
    %c0_64 = arith.constant 0 : index
    %c0_65 = arith.constant 0 : index
    %136 = vector.load %arg0[%c21, %c0_64, %c0_65] : memref<30x8x1xf32, #tpu.memory_space<vmem>>, vector<1x8x1xf32>
    %137 = vector.shape_cast %136 : vector<1x8x1xf32> to vector<8x1xf32>
    %138 = vector.broadcast %137 : vector<8x1xf32> to vector<8x256xf32>
    %139 = vector.broadcast %1 : vector<1x256xf32> to vector<8x256xf32>
    %140 = arith.mulf %138, %139 : vector<8x256xf32>
    %141 = arith.addf %135, %140 : vector<8x256xf32>
    %142 = vector.broadcast %2 : vector<1x256xf32> to vector<8x256xf32>
    %143 = arith.addf %141, %142 : vector<8x256xf32>
    %c8_66 = arith.constant 8 : index
    %c0_67 = arith.constant 0 : index
    %c0_68 = arith.constant 0 : index
    %144 = vector.load %arg11[%c8_66, %c0_67, %c0_68] : memref<30x8x256xf32, #tpu.memory_space<vmem>>, vector<1x8x256xf32>
    %145 = vector.shape_cast %144 : vector<1x8x256xf32> to vector<8x256xf32>
    %146 = vector.shape_cast %143 : vector<8x256xf32> to vector<1x8x256xf32>
    tpu.vector_store %arg11[%c8_66, %c0_67, %c0_68], %146 {strides = array<i32>} : memref<30x8x256xf32, #tpu.memory_space<vmem>>, vector<1x8x256xf32>,
    %c9 = arith.constant 9 : index
    %c0_69 = arith.constant 0 : index
    %c0_70 = arith.constant 0 : index
    %147 = vector.load %arg0[%c9, %c0_69, %c0_70] : memref<30x8x1xf32, #tpu.memory_space<vmem>>, vector<1x8x1xf32>
    %148 = vector.shape_cast %147 : vector<1x8x1xf32> to vector<8x1xf32>
    %149 = vector.broadcast %148 : vector<8x1xf32> to vector<8x256xf32>
    %150 = vector.broadcast %0 : vector<1x256xf32> to vector<8x256xf32>
    %151 = arith.mulf %149, %150 : vector<8x256xf32>
    %c20 = arith.constant 20 : index
    %c0_71 = arith.constant 0 : index
    %c0_72 = arith.constant 0 : index
    %152 = vector.load %arg0[%c20, %c0_71, %c0_72] : memref<30x8x1xf32, #tpu.memory_space<vmem>>, vector<1x8x1xf32>
    %153 = vector.shape_cast %152 : vector<1x8x1xf32> to vector<8x1xf32>
    %154 = vector.broadcast %153 : vector<8x1xf32> to vector<8x256xf32>
    %155 = vector.broadcast %1 : vector<1x256xf32> to vector<8x256xf32>
    %156 = arith.mulf %154, %155 : vector<8x256xf32>
    %157 = arith.addf %151, %156 : vector<8x256xf32>
    %158 = vector.broadcast %2 : vector<1x256xf32> to vector<8x256xf32>
    %159 = arith.addf %157, %158 : vector<8x256xf32>
    %c9_73 = arith.constant 9 : index
    %c0_74 = arith.constant 0 : index
    %c0_75 = arith.constant 0 : index
    %160 = vector.load %arg11[%c9_73, %c0_74, %c0_75] : memref<30x8x256xf32, #tpu.memory_space<vmem>>, vector<1x8x256xf32>
    %161 = vector.shape_cast %160 : vector<1x8x256xf32> to vector<8x256xf32>
    %162 = vector.shape_cast %159 : vector<8x256xf32> to vector<1x8x256xf32>
    tpu.vector_store %arg11[%c9_73, %c0_74, %c0_75], %162 {strides = array<i32>} : memref<30x8x256xf32, #tpu.memory_space<vmem>>, vector<1x8x256xf32>,
    %c10 = arith.constant 10 : index
    %c0_76 = arith.constant 0 : index
    %c0_77 = arith.constant 0 : index
    %163 = vector.load %arg0[%c10, %c0_76, %c0_77] : memref<30x8x1xf32, #tpu.memory_space<vmem>>, vector<1x8x1xf32>
    %164 = vector.shape_cast %163 : vector<1x8x1xf32> to vector<8x1xf32>
    %165 = vector.broadcast %164 : vector<8x1xf32> to vector<8x256xf32>
    %166 = vector.broadcast %0 : vector<1x256xf32> to vector<8x256xf32>
    %167 = arith.mulf %165, %166 : vector<8x256xf32>
    %c19 = arith.constant 19 : index
    %c0_78 = arith.constant 0 : index
    %c0_79 = arith.constant 0 : index
    %168 = vector.load %arg0[%c19, %c0_78, %c0_79] : memref<30x8x1xf32, #tpu.memory_space<vmem>>, vector<1x8x1xf32>
    %169 = vector.shape_cast %168 : vector<1x8x1xf32> to vector<8x1xf32>
    %170 = vector.broadcast %169 : vector<8x1xf32> to vector<8x256xf32>
    %171 = vector.broadcast %1 : vector<1x256xf32> to vector<8x256xf32>
    %172 = arith.mulf %170, %171 : vector<8x256xf32>
    %173 = arith.addf %167, %172 : vector<8x256xf32>
    %174 = vector.broadcast %2 : vector<1x256xf32> to vector<8x256xf32>
    %175 = arith.addf %173, %174 : vector<8x256xf32>
    %c10_80 = arith.constant 10 : index
    %c0_81 = arith.constant 0 : index
    %c0_82 = arith.constant 0 : index
    %176 = vector.load %arg11[%c10_80, %c0_81, %c0_82] : memref<30x8x256xf32, #tpu.memory_space<vmem>>, vector<1x8x256xf32>
    %177 = vector.shape_cast %176 : vector<1x8x256xf32> to vector<8x256xf32>
    %178 = vector.shape_cast %175 : vector<8x256xf32> to vector<1x8x256xf32>
    tpu.vector_store %arg11[%c10_80, %c0_81, %c0_82], %178 {strides = array<i32>} : memref<30x8x256xf32, #tpu.memory_space<vmem>>, vector<1x8x256xf32>,
    %c11 = arith.constant 11 : index
    %c0_83 = arith.constant 0 : index
    %c0_84 = arith.constant 0 : index
    %179 = vector.load %arg0[%c11, %c0_83, %c0_84] : memref<30x8x1xf32, #tpu.memory_space<vmem>>, vector<1x8x1xf32>
    %180 = vector.shape_cast %179 : vector<1x8x1xf32> to vector<8x1xf32>
    %181 = vector.broadcast %180 : vector<8x1xf32> to vector<8x256xf32>
    %182 = vector.broadcast %0 : vector<1x256xf32> to vector<8x256xf32>
    %183 = arith.mulf %181, %182 : vector<8x256xf32>
    %c18 = arith.constant 18 : index
    %c0_85 = arith.constant 0 : index
    %c0_86 = arith.constant 0 : index
    %184 = vector.load %arg0[%c18, %c0_85, %c0_86] : memref<30x8x1xf32, #tpu.memory_space<vmem>>, vector<1x8x1xf32>
    %185 = vector.shape_cast %184 : vector<1x8x1xf32> to vector<8x1xf32>
    %186 = vector.broadcast %185 : vector<8x1xf32> to vector<8x256xf32>
    %187 = vector.broadcast %1 : vector<1x256xf32> to vector<8x256xf32>
    %188 = arith.mulf %186, %187 : vector<8x256xf32>
    %189 = arith.addf %183, %188 : vector<8x256xf32>
    %190 = vector.broadcast %2 : vector<1x256xf32> to vector<8x256xf32>
    %191 = arith.addf %189, %190 : vector<8x256xf32>
    %c11_87 = arith.constant 11 : index
    %c0_88 = arith.constant 0 : index
    %c0_89 = arith.constant 0 : index
    %192 = vector.load %arg11[%c11_87, %c0_88, %c0_89] : memref<30x8x256xf32, #tpu.memory_space<vmem>>, vector<1x8x256xf32>
    %193 = vector.shape_cast %192 : vector<1x8x256xf32> to vector<8x256xf32>
    %194 = vector.shape_cast %191 : vector<8x256xf32> to vector<1x8x256xf32>
    tpu.vector_store %arg11[%c11_87, %c0_88, %c0_89], %194 {strides = array<i32>} : memref<30x8x256xf32, #tpu.memory_space<vmem>>, vector<1x8x256xf32>,
    %c12 = arith.constant 12 : index
    %c0_90 = arith.constant 0 : index
    %c0_91 = arith.constant 0 : index
    %195 = vector.load %arg0[%c12, %c0_90, %c0_91] : memref<30x8x1xf32, #tpu.memory_space<vmem>>, vector<1x8x1xf32>
    %196 = vector.shape_cast %195 : vector<1x8x1xf32> to vector<8x1xf32>
    %197 = vector.broadcast %196 : vector<8x1xf32> to vector<8x256xf32>
    %198 = vector.broadcast %0 : vector<1x256xf32> to vector<8x256xf32>
    %199 = arith.mulf %197, %198 : vector<8x256xf32>
    %c17 = arith.constant 17 : index
    %c0_92 = arith.constant 0 : index
    %c0_93 = arith.constant 0 : index
    %200 = vector.load %arg0[%c17, %c0_92, %c0_93] : memref<30x8x1xf32, #tpu.memory_space<vmem>>, vector<1x8x1xf32>
    %201 = vector.shape_cast %200 : vector<1x8x1xf32> to vector<8x1xf32>
    %202 = vector.broadcast %201 : vector<8x1xf32> to vector<8x256xf32>
    %203 = vector.broadcast %1 : vector<1x256xf32> to vector<8x256xf32>
    %204 = arith.mulf %202, %203 : vector<8x256xf32>
    %205 = arith.addf %199, %204 : vector<8x256xf32>
    %206 = vector.broadcast %2 : vector<1x256xf32> to vector<8x256xf32>
    %207 = arith.addf %205, %206 : vector<8x256xf32>
    %c12_94 = arith.constant 12 : index
    %c0_95 = arith.constant 0 : index
    %c0_96 = arith.constant 0 : index
    %208 = vector.load %arg11[%c12_94, %c0_95, %c0_96] : memref<30x8x256xf32, #tpu.memory_space<vmem>>, vector<1x8x256xf32>
    %209 = vector.shape_cast %208 : vector<1x8x256xf32> to vector<8x256xf32>
    %210 = vector.shape_cast %207 : vector<8x256xf32> to vector<1x8x256xf32>
    tpu.vector_store %arg11[%c12_94, %c0_95, %c0_96], %210 {strides = array<i32>} : memref<30x8x256xf32, #tpu.memory_space<vmem>>, vector<1x8x256xf32>,
    %c13 = arith.constant 13 : index
    %c0_97 = arith.constant 0 : index
    %c0_98 = arith.constant 0 : index
    %211 = vector.load %arg0[%c13, %c0_97, %c0_98] : memref<30x8x1xf32, #tpu.memory_space<vmem>>, vector<1x8x1xf32>
    %212 = vector.shape_cast %211 : vector<1x8x1xf32> to vector<8x1xf32>
    %213 = vector.broadcast %212 : vector<8x1xf32> to vector<8x256xf32>
    %214 = vector.broadcast %0 : vector<1x256xf32> to vector<8x256xf32>
    %215 = arith.mulf %213, %214 : vector<8x256xf32>
    %c16 = arith.constant 16 : index
    %c0_99 = arith.constant 0 : index
    %c0_100 = arith.constant 0 : index
    %216 = vector.load %arg0[%c16, %c0_99, %c0_100] : memref<30x8x1xf32, #tpu.memory_space<vmem>>, vector<1x8x1xf32>
    %217 = vector.shape_cast %216 : vector<1x8x1xf32> to vector<8x1xf32>
    %218 = vector.broadcast %217 : vector<8x1xf32> to vector<8x256xf32>
    %219 = vector.broadcast %1 : vector<1x256xf32> to vector<8x256xf32>
    %220 = arith.mulf %218, %219 : vector<8x256xf32>
    %221 = arith.addf %215, %220 : vector<8x256xf32>
    %222 = vector.broadcast %2 : vector<1x256xf32> to vector<8x256xf32>
    %223 = arith.addf %221, %222 : vector<8x256xf32>
    %c13_101 = arith.constant 13 : index
    %c0_102 = arith.constant 0 : index
    %c0_103 = arith.constant 0 : index
    %224 = vector.load %arg11[%c13_101, %c0_102, %c0_103] : memref<30x8x256xf32, #tpu.memory_space<vmem>>, vector<1x8x256xf32>
    %225 = vector.shape_cast %224 : vector<1x8x256xf32> to vector<8x256xf32>
    %226 = vector.shape_cast %223 : vector<8x256xf32> to vector<1x8x256xf32>
    tpu.vector_store %arg11[%c13_101, %c0_102, %c0_103], %226 {strides = array<i32>} : memref<30x8x256xf32, #tpu.memory_space<vmem>>, vector<1x8x256xf32>,
    %c14 = arith.constant 14 : index
    %c0_104 = arith.constant 0 : index
    %c0_105 = arith.constant 0 : index
    %227 = vector.load %arg0[%c14, %c0_104, %c0_105] : memref<30x8x1xf32, #tpu.memory_space<vmem>>, vector<1x8x1xf32>
    %228 = vector.shape_cast %227 : vector<1x8x1xf32> to vector<8x1xf32>
    %229 = vector.broadcast %228 : vector<8x1xf32> to vector<8x256xf32>
    %230 = vector.broadcast %0 : vector<1x256xf32> to vector<8x256xf32>
    %231 = arith.mulf %229, %230 : vector<8x256xf32>
    %c15 = arith.constant 15 : index
    %c0_106 = arith.constant 0 : index
    %c0_107 = arith.constant 0 : index
    %232 = vector.load %arg0[%c15, %c0_106, %c0_107] : memref<30x8x1xf32, #tpu.memory_space<vmem>>, vector<1x8x1xf32>
    %233 = vector.shape_cast %232 : vector<1x8x1xf32> to vector<8x1xf32>
    %234 = vector.broadcast %233 : vector<8x1xf32> to vector<8x256xf32>
    %235 = vector.broadcast %1 : vector<1x256xf32> to vector<8x256xf32>
    %236 = arith.mulf %234, %235 : vector<8x256xf32>
    %237 = arith.addf %231, %236 : vector<8x256xf32>
    %238 = vector.broadcast %2 : vector<1x256xf32> to vector<8x256xf32>
    %239 = arith.addf %237, %238 : vector<8x256xf32>
    %c14_108 = arith.constant 14 : index
    %c0_109 = arith.constant 0 : index
    %c0_110 = arith.constant 0 : index
    %240 = vector.load %arg11[%c14_108, %c0_109, %c0_110] : memref<30x8x256xf32, #tpu.memory_space<vmem>>, vector<1x8x256xf32>
    %241 = vector.shape_cast %240 : vector<1x8x256xf32> to vector<8x256xf32>
    %242 = vector.shape_cast %239 : vector<8x256xf32> to vector<1x8x256xf32>
    tpu.vector_store %arg11[%c14_108, %c0_109, %c0_110], %242 {strides = array<i32>} : memref<30x8x256xf32, #tpu.memory_space<vmem>>, vector<1x8x256xf32>,
    %c15_111 = arith.constant 15 : index
    %c0_112 = arith.constant 0 : index
    %c0_113 = arith.constant 0 : index
    %243 = vector.load %arg0[%c15_111, %c0_112, %c0_113] : memref<30x8x1xf32, #tpu.memory_space<vmem>>, vector<1x8x1xf32>
    %244 = vector.shape_cast %243 : vector<1x8x1xf32> to vector<8x1xf32>
    %245 = vector.broadcast %244 : vector<8x1xf32> to vector<8x256xf32>
    %246 = vector.broadcast %0 : vector<1x256xf32> to vector<8x256xf32>
    %247 = arith.mulf %245, %246 : vector<8x256xf32>
    %c14_114 = arith.constant 14 : index
    %c0_115 = arith.constant 0 : index
    %c0_116 = arith.constant 0 : index
    %248 = vector.load %arg0[%c14_114, %c0_115, %c0_116] : memref<30x8x1xf32, #tpu.memory_space<vmem>>, vector<1x8x1xf32>
    %249 = vector.shape_cast %248 : vector<1x8x1xf32> to vector<8x1xf32>
    %250 = vector.broadcast %249 : vector<8x1xf32> to vector<8x256xf32>
    %251 = vector.broadcast %1 : vector<1x256xf32> to vector<8x256xf32>
    %252 = arith.mulf %250, %251 : vector<8x256xf32>
    %253 = arith.addf %247, %252 : vector<8x256xf32>
    %254 = vector.broadcast %2 : vector<1x256xf32> to vector<8x256xf32>
    %255 = arith.addf %253, %254 : vector<8x256xf32>
    %c15_117 = arith.constant 15 : index
    %c0_118 = arith.constant 0 : index
    %c0_119 = arith.constant 0 : index
    %256 = vector.load %arg11[%c15_117, %c0_118, %c0_119] : memref<30x8x256xf32, #tpu.memory_space<vmem>>, vector<1x8x256xf32>
    %257 = vector.shape_cast %256 : vector<1x8x256xf32> to vector<8x256xf32>
    %258 = vector.shape_cast %255 : vector<8x256xf32> to vector<1x8x256xf32>
    tpu.vector_store %arg11[%c15_117, %c0_118, %c0_119], %258 {strides = array<i32>} : memref<30x8x256xf32, #tpu.memory_space<vmem>>, vector<1x8x256xf32>,
    %c16_120 = arith.constant 16 : index
    %c0_121 = arith.constant 0 : index
    %c0_122 = arith.constant 0 : index
    %259 = vector.load %arg0[%c16_120, %c0_121, %c0_122] : memref<30x8x1xf32, #tpu.memory_space<vmem>>, vector<1x8x1xf32>
    %260 = vector.shape_cast %259 : vector<1x8x1xf32> to vector<8x1xf32>
    %261 = vector.broadcast %260 : vector<8x1xf32> to vector<8x256xf32>
    %262 = vector.broadcast %0 : vector<1x256xf32> to vector<8x256xf32>
    %263 = arith.mulf %261, %262 : vector<8x256xf32>
    %c13_123 = arith.constant 13 : index
    %c0_124 = arith.constant 0 : index
    %c0_125 = arith.constant 0 : index
    %264 = vector.load %arg0[%c13_123, %c0_124, %c0_125] : memref<30x8x1xf32, #tpu.memory_space<vmem>>, vector<1x8x1xf32>
    %265 = vector.shape_cast %264 : vector<1x8x1xf32> to vector<8x1xf32>
    %266 = vector.broadcast %265 : vector<8x1xf32> to vector<8x256xf32>
    %267 = vector.broadcast %1 : vector<1x256xf32> to vector<8x256xf32>
    %268 = arith.mulf %266, %267 : vector<8x256xf32>
    %269 = arith.addf %263, %268 : vector<8x256xf32>
    %270 = vector.broadcast %2 : vector<1x256xf32> to vector<8x256xf32>
    %271 = arith.addf %269, %270 : vector<8x256xf32>
    %c16_126 = arith.constant 16 : index
    %c0_127 = arith.constant 0 : index
    %c0_128 = arith.constant 0 : index
    %272 = vector.load %arg11[%c16_126, %c0_127, %c0_128] : memref<30x8x256xf32, #tpu.memory_space<vmem>>, vector<1x8x256xf32>
    %273 = vector.shape_cast %272 : vector<1x8x256xf32> to vector<8x256xf32>
    %274 = vector.shape_cast %271 : vector<8x256xf32> to vector<1x8x256xf32>
    tpu.vector_store %arg11[%c16_126, %c0_127, %c0_128], %274 {strides = array<i32>} : memref<30x8x256xf32, #tpu.memory_space<vmem>>, vector<1x8x256xf32>,
    %c17_129 = arith.constant 17 : index
    %c0_130 = arith.constant 0 : index
    %c0_131 = arith.constant 0 : index
    %275 = vector.load %arg0[%c17_129, %c0_130, %c0_131] : memref<30x8x1xf32, #tpu.memory_space<vmem>>, vector<1x8x1xf32>
    %276 = vector.shape_cast %275 : vector<1x8x1xf32> to vector<8x1xf32>
    %277 = vector.broadcast %276 : vector<8x1xf32> to vector<8x256xf32>
    %278 = vector.broadcast %0 : vector<1x256xf32> to vector<8x256xf32>
    %279 = arith.mulf %277, %278 : vector<8x256xf32>
    %c12_132 = arith.constant 12 : index
    %c0_133 = arith.constant 0 : index
    %c0_134 = arith.constant 0 : index
    %280 = vector.load %arg0[%c12_132, %c0_133, %c0_134] : memref<30x8x1xf32, #tpu.memory_space<vmem>>, vector<1x8x1xf32>
    %281 = vector.shape_cast %280 : vector<1x8x1xf32> to vector<8x1xf32>
    %282 = vector.broadcast %281 : vector<8x1xf32> to vector<8x256xf32>
    %283 = vector.broadcast %1 : vector<1x256xf32> to vector<8x256xf32>
    %284 = arith.mulf %282, %283 : vector<8x256xf32>
    %285 = arith.addf %279, %284 : vector<8x256xf32>
    %286 = vector.broadcast %2 : vector<1x256xf32> to vector<8x256xf32>
    %287 = arith.addf %285, %286 : vector<8x256xf32>
    %c17_135 = arith.constant 17 : index
    %c0_136 = arith.constant 0 : index
    %c0_137 = arith.constant 0 : index
    %288 = vector.load %arg11[%c17_135, %c0_136, %c0_137] : memref<30x8x256xf32, #tpu.memory_space<vmem>>, vector<1x8x256xf32>
    %289 = vector.shape_cast %288 : vector<1x8x256xf32> to vector<8x256xf32>
    %290 = vector.shape_cast %287 : vector<8x256xf32> to vector<1x8x256xf32>
    tpu.vector_store %arg11[%c17_135, %c0_136, %c0_137], %290 {strides = array<i32>} : memref<30x8x256xf32, #tpu.memory_space<vmem>>, vector<1x8x256xf32>,
    %c18_138 = arith.constant 18 : index
    %c0_139 = arith.constant 0 : index
    %c0_140 = arith.constant 0 : index
    %291 = vector.load %arg0[%c18_138, %c0_139, %c0_140] : memref<30x8x1xf32, #tpu.memory_space<vmem>>, vector<1x8x1xf32>
    %292 = vector.shape_cast %291 : vector<1x8x1xf32> to vector<8x1xf32>
    %293 = vector.broadcast %292 : vector<8x1xf32> to vector<8x256xf32>
    %294 = vector.broadcast %0 : vector<1x256xf32> to vector<8x256xf32>
    %295 = arith.mulf %293, %294 : vector<8x256xf32>
    %c11_141 = arith.constant 11 : index
    %c0_142 = arith.constant 0 : index
    %c0_143 = arith.constant 0 : index
    %296 = vector.load %arg0[%c11_141, %c0_142, %c0_143] : memref<30x8x1xf32, #tpu.memory_space<vmem>>, vector<1x8x1xf32>
    %297 = vector.shape_cast %296 : vector<1x8x1xf32> to vector<8x1xf32>
    %298 = vector.broadcast %297 : vector<8x1xf32> to vector<8x256xf32>
    %299 = vector.broadcast %1 : vector<1x256xf32> to vector<8x256xf32>
    %300 = arith.mulf %298, %299 : vector<8x256xf32>
    %301 = arith.addf %295, %300 : vector<8x256xf32>
    %302 = vector.broadcast %2 : vector<1x256xf32> to vector<8x256xf32>
    %303 = arith.addf %301, %302 : vector<8x256xf32>
    %c18_144 = arith.constant 18 : index
    %c0_145 = arith.constant 0 : index
    %c0_146 = arith.constant 0 : index
    %304 = vector.load %arg11[%c18_144, %c0_145, %c0_146] : memref<30x8x256xf32, #tpu.memory_space<vmem>>, vector<1x8x256xf32>
    %305 = vector.shape_cast %304 : vector<1x8x256xf32> to vector<8x256xf32>
    %306 = vector.shape_cast %303 : vector<8x256xf32> to vector<1x8x256xf32>
    tpu.vector_store %arg11[%c18_144, %c0_145, %c0_146], %306 {strides = array<i32>} : memref<30x8x256xf32, #tpu.memory_space<vmem>>, vector<1x8x256xf32>,
    %c19_147 = arith.constant 19 : index
    %c0_148 = arith.constant 0 : index
    %c0_149 = arith.constant 0 : index
    %307 = vector.load %arg0[%c19_147, %c0_148, %c0_149] : memref<30x8x1xf32, #tpu.memory_space<vmem>>, vector<1x8x1xf32>
    %308 = vector.shape_cast %307 : vector<1x8x1xf32> to vector<8x1xf32>
    %309 = vector.broadcast %308 : vector<8x1xf32> to vector<8x256xf32>
    %310 = vector.broadcast %0 : vector<1x256xf32> to vector<8x256xf32>
    %311 = arith.mulf %309, %310 : vector<8x256xf32>
    %c10_150 = arith.constant 10 : index
    %c0_151 = arith.constant 0 : index
    %c0_152 = arith.constant 0 : index
    %312 = vector.load %arg0[%c10_150, %c0_151, %c0_152] : memref<30x8x1xf32, #tpu.memory_space<vmem>>, vector<1x8x1xf32>
    %313 = vector.shape_cast %312 : vector<1x8x1xf32> to vector<8x1xf32>
    %314 = vector.broadcast %313 : vector<8x1xf32> to vector<8x256xf32>
    %315 = vector.broadcast %1 : vector<1x256xf32> to vector<8x256xf32>
    %316 = arith.mulf %314, %315 : vector<8x256xf32>
    %317 = arith.addf %311, %316 : vector<8x256xf32>
    %318 = vector.broadcast %2 : vector<1x256xf32> to vector<8x256xf32>
    %319 = arith.addf %317, %318 : vector<8x256xf32>
    %c19_153 = arith.constant 19 : index
    %c0_154 = arith.constant 0 : index
    %c0_155 = arith.constant 0 : index
    %320 = vector.load %arg11[%c19_153, %c0_154, %c0_155] : memref<30x8x256xf32, #tpu.memory_space<vmem>>, vector<1x8x256xf32>
    %321 = vector.shape_cast %320 : vector<1x8x256xf32> to vector<8x256xf32>
    %322 = vector.shape_cast %319 : vector<8x256xf32> to vector<1x8x256xf32>
    tpu.vector_store %arg11[%c19_153, %c0_154, %c0_155], %322 {strides = array<i32>} : memref<30x8x256xf32, #tpu.memory_space<vmem>>, vector<1x8x256xf32>,
    %c20_156 = arith.constant 20 : index
    %c0_157 = arith.constant 0 : index
    %c0_158 = arith.constant 0 : index
    %323 = vector.load %arg0[%c20_156, %c0_157, %c0_158] : memref<30x8x1xf32, #tpu.memory_space<vmem>>, vector<1x8x1xf32>
    %324 = vector.shape_cast %323 : vector<1x8x1xf32> to vector<8x1xf32>
    %325 = vector.broadcast %324 : vector<8x1xf32> to vector<8x256xf32>
    %326 = vector.broadcast %0 : vector<1x256xf32> to vector<8x256xf32>
    %327 = arith.mulf %325, %326 : vector<8x256xf32>
    %c9_159 = arith.constant 9 : index
    %c0_160 = arith.constant 0 : index
    %c0_161 = arith.constant 0 : index
    %328 = vector.load %arg0[%c9_159, %c0_160, %c0_161] : memref<30x8x1xf32, #tpu.memory_space<vmem>>, vector<1x8x1xf32>
    %329 = vector.shape_cast %328 : vector<1x8x1xf32> to vector<8x1xf32>
    %330 = vector.broadcast %329 : vector<8x1xf32> to vector<8x256xf32>
    %331 = vector.broadcast %1 : vector<1x256xf32> to vector<8x256xf32>
    %332 = arith.mulf %330, %331 : vector<8x256xf32>
    %333 = arith.addf %327, %332 : vector<8x256xf32>
    %334 = vector.broadcast %2 : vector<1x256xf32> to vector<8x256xf32>
    %335 = arith.addf %333, %334 : vector<8x256xf32>
    %c20_162 = arith.constant 20 : index
    %c0_163 = arith.constant 0 : index
    %c0_164 = arith.constant 0 : index
    %336 = vector.load %arg11[%c20_162, %c0_163, %c0_164] : memref<30x8x256xf32, #tpu.memory_space<vmem>>, vector<1x8x256xf32>
    %337 = vector.shape_cast %336 : vector<1x8x256xf32> to vector<8x256xf32>
    %338 = vector.shape_cast %335 : vector<8x256xf32> to vector<1x8x256xf32>
    tpu.vector_store %arg11[%c20_162, %c0_163, %c0_164], %338 {strides = array<i32>} : memref<30x8x256xf32, #tpu.memory_space<vmem>>, vector<1x8x256xf32>,
    %c21_165 = arith.constant 21 : index
    %c0_166 = arith.constant 0 : index
    %c0_167 = arith.constant 0 : index
    %339 = vector.load %arg0[%c21_165, %c0_166, %c0_167] : memref<30x8x1xf32, #tpu.memory_space<vmem>>, vector<1x8x1xf32>
    %340 = vector.shape_cast %339 : vector<1x8x1xf32> to vector<8x1xf32>
    %341 = vector.broadcast %340 : vector<8x1xf32> to vector<8x256xf32>
    %342 = vector.broadcast %0 : vector<1x256xf32> to vector<8x256xf32>
    %343 = arith.mulf %341, %342 : vector<8x256xf32>
    %c8_168 = arith.constant 8 : index
    %c0_169 = arith.constant 0 : index
    %c0_170 = arith.constant 0 : index
    %344 = vector.load %arg0[%c8_168, %c0_169, %c0_170] : memref<30x8x1xf32, #tpu.memory_space<vmem>>, vector<1x8x1xf32>
    %345 = vector.shape_cast %344 : vector<1x8x1xf32> to vector<8x1xf32>
    %346 = vector.broadcast %345 : vector<8x1xf32> to vector<8x256xf32>
    %347 = vector.broadcast %1 : vector<1x256xf32> to vector<8x256xf32>
    %348 = arith.mulf %346, %347 : vector<8x256xf32>
    %349 = arith.addf %343, %348 : vector<8x256xf32>
    %350 = vector.broadcast %2 : vector<1x256xf32> to vector<8x256xf32>
    %351 = arith.addf %349, %350 : vector<8x256xf32>
    %c21_171 = arith.constant 21 : index
    %c0_172 = arith.constant 0 : index
    %c0_173 = arith.constant 0 : index
    %352 = vector.load %arg11[%c21_171, %c0_172, %c0_173] : memref<30x8x256xf32, #tpu.memory_space<vmem>>, vector<1x8x256xf32>
    %353 = vector.shape_cast %352 : vector<1x8x256xf32> to vector<8x256xf32>
    %354 = vector.shape_cast %351 : vector<8x256xf32> to vector<1x8x256xf32>
    tpu.vector_store %arg11[%c21_171, %c0_172, %c0_173], %354 {strides = array<i32>} : memref<30x8x256xf32, #tpu.memory_space<vmem>>, vector<1x8x256xf32>,
    %c22_174 = arith.constant 22 : index
    %c0_175 = arith.constant 0 : index
    %c0_176 = arith.constant 0 : index
    %355 = vector.load %arg0[%c22_174, %c0_175, %c0_176] : memref<30x8x1xf32, #tpu.memory_space<vmem>>, vector<1x8x1xf32>
    %356 = vector.shape_cast %355 : vector<1x8x1xf32> to vector<8x1xf32>
    %357 = vector.broadcast %356 : vector<8x1xf32> to vector<8x256xf32>
    %358 = vector.broadcast %0 : vector<1x256xf32> to vector<8x256xf32>
    %359 = arith.mulf %357, %358 : vector<8x256xf32>
    %c7_177 = arith.constant 7 : index
    %c0_178 = arith.constant 0 : index
    %c0_179 = arith.constant 0 : index
    %360 = vector.load %arg0[%c7_177, %c0_178, %c0_179] : memref<30x8x1xf32, #tpu.memory_space<vmem>>, vector<1x8x1xf32>
    %361 = vector.shape_cast %360 : vector<1x8x1xf32> to vector<8x1xf32>
    %362 = vector.broadcast %361 : vector<8x1xf32> to vector<8x256xf32>
    %363 = vector.broadcast %1 : vector<1x256xf32> to vector<8x256xf32>
    %364 = arith.mulf %362, %363 : vector<8x256xf32>
    %365 = arith.addf %359, %364 : vector<8x256xf32>
    %366 = vector.broadcast %2 : vector<1x256xf32> to vector<8x256xf32>
    %367 = arith.addf %365, %366 : vector<8x256xf32>
    %c22_180 = arith.constant 22 : index
    %c0_181 = arith.constant 0 : index
    %c0_182 = arith.constant 0 : index
    %368 = vector.load %arg11[%c22_180, %c0_181, %c0_182] : memref<30x8x256xf32, #tpu.memory_space<vmem>>, vector<1x8x256xf32>
    %369 = vector.shape_cast %368 : vector<1x8x256xf32> to vector<8x256xf32>
    %370 = vector.shape_cast %367 : vector<8x256xf32> to vector<1x8x256xf32>
    tpu.vector_store %arg11[%c22_180, %c0_181, %c0_182], %370 {strides = array<i32>} : memref<30x8x256xf32, #tpu.memory_space<vmem>>, vector<1x8x256xf32>,
    %c23_183 = arith.constant 23 : index
    %c0_184 = arith.constant 0 : index
    %c0_185 = arith.constant 0 : index
    %371 = vector.load %arg0[%c23_183, %c0_184, %c0_185] : memref<30x8x1xf32, #tpu.memory_space<vmem>>, vector<1x8x1xf32>
    %372 = vector.shape_cast %371 : vector<1x8x1xf32> to vector<8x1xf32>
    %373 = vector.broadcast %372 : vector<8x1xf32> to vector<8x256xf32>
    %374 = vector.broadcast %0 : vector<1x256xf32> to vector<8x256xf32>
    %375 = arith.mulf %373, %374 : vector<8x256xf32>
    %c6_186 = arith.constant 6 : index
    %c0_187 = arith.constant 0 : index
    %c0_188 = arith.constant 0 : index
    %376 = vector.load %arg0[%c6_186, %c0_187, %c0_188] : memref<30x8x1xf32, #tpu.memory_space<vmem>>, vector<1x8x1xf32>
    %377 = vector.shape_cast %376 : vector<1x8x1xf32> to vector<8x1xf32>
    %378 = vector.broadcast %377 : vector<8x1xf32> to vector<8x256xf32>
    %379 = vector.broadcast %1 : vector<1x256xf32> to vector<8x256xf32>
    %380 = arith.mulf %378, %379 : vector<8x256xf32>
    %381 = arith.addf %375, %380 : vector<8x256xf32>
    %382 = vector.broadcast %2 : vector<1x256xf32> to vector<8x256xf32>
    %383 = arith.addf %381, %382 : vector<8x256xf32>
    %c23_189 = arith.constant 23 : index
    %c0_190 = arith.constant 0 : index
    %c0_191 = arith.constant 0 : index
    %384 = vector.load %arg11[%c23_189, %c0_190, %c0_191] : memref<30x8x256xf32, #tpu.memory_space<vmem>>, vector<1x8x256xf32>
    %385 = vector.shape_cast %384 : vector<1x8x256xf32> to vector<8x256xf32>
    %386 = vector.shape_cast %383 : vector<8x256xf32> to vector<1x8x256xf32>
    tpu.vector_store %arg11[%c23_189, %c0_190, %c0_191], %386 {strides = array<i32>} : memref<30x8x256xf32, #tpu.memory_space<vmem>>, vector<1x8x256xf32>,
    %c24_192 = arith.constant 24 : index
    %c0_193 = arith.constant 0 : index
    %c0_194 = arith.constant 0 : index
    %387 = vector.load %arg0[%c24_192, %c0_193, %c0_194] : memref<30x8x1xf32, #tpu.memory_space<vmem>>, vector<1x8x1xf32>
    %388 = vector.shape_cast %387 : vector<1x8x1xf32> to vector<8x1xf32>
    %389 = vector.broadcast %388 : vector<8x1xf32> to vector<8x256xf32>
    %390 = vector.broadcast %0 : vector<1x256xf32> to vector<8x256xf32>
    %391 = arith.mulf %389, %390 : vector<8x256xf32>
    %c5_195 = arith.constant 5 : index
    %c0_196 = arith.constant 0 : index
    %c0_197 = arith.constant 0 : index
    %392 = vector.load %arg0[%c5_195, %c0_196, %c0_197] : memref<30x8x1xf32, #tpu.memory_space<vmem>>, vector<1x8x1xf32>
    %393 = vector.shape_cast %392 : vector<1x8x1xf32> to vector<8x1xf32>
    %394 = vector.broadcast %393 : vector<8x1xf32> to vector<8x256xf32>
    %395 = vector.broadcast %1 : vector<1x256xf32> to vector<8x256xf32>
    %396 = arith.mulf %394, %395 : vector<8x256xf32>
    %397 = arith.addf %391, %396 : vector<8x256xf32>
    %398 = vector.broadcast %2 : vector<1x256xf32> to vector<8x256xf32>
    %399 = arith.addf %397, %398 : vector<8x256xf32>
    %c24_198 = arith.constant 24 : index
    %c0_199 = arith.constant 0 : index
    %c0_200 = arith.constant 0 : index
    %400 = vector.load %arg11[%c24_198, %c0_199, %c0_200] : memref<30x8x256xf32, #tpu.memory_space<vmem>>, vector<1x8x256xf32>
    %401 = vector.shape_cast %400 : vector<1x8x256xf32> to vector<8x256xf32>
    %402 = vector.shape_cast %399 : vector<8x256xf32> to vector<1x8x256xf32>
    tpu.vector_store %arg11[%c24_198, %c0_199, %c0_200], %402 {strides = array<i32>} : memref<30x8x256xf32, #tpu.memory_space<vmem>>, vector<1x8x256xf32>,
    %c25_201 = arith.constant 25 : index
    %c0_202 = arith.constant 0 : index
    %c0_203 = arith.constant 0 : index
    %403 = vector.load %arg0[%c25_201, %c0_202, %c0_203] : memref<30x8x1xf32, #tpu.memory_space<vmem>>, vector<1x8x1xf32>
    %404 = vector.shape_cast %403 : vector<1x8x1xf32> to vector<8x1xf32>
    %405 = vector.broadcast %404 : vector<8x1xf32> to vector<8x256xf32>
    %406 = vector.broadcast %0 : vector<1x256xf32> to vector<8x256xf32>
    %407 = arith.mulf %405, %406 : vector<8x256xf32>
    %c4_204 = arith.constant 4 : index
    %c0_205 = arith.constant 0 : index
    %c0_206 = arith.constant 0 : index
    %408 = vector.load %arg0[%c4_204, %c0_205, %c0_206] : memref<30x8x1xf32, #tpu.memory_space<vmem>>, vector<1x8x1xf32>
    %409 = vector.shape_cast %408 : vector<1x8x1xf32> to vector<8x1xf32>
    %410 = vector.broadcast %409 : vector<8x1xf32> to vector<8x256xf32>
    %411 = vector.broadcast %1 : vector<1x256xf32> to vector<8x256xf32>
    %412 = arith.mulf %410, %411 : vector<8x256xf32>
    %413 = arith.addf %407, %412 : vector<8x256xf32>
    %414 = vector.broadcast %2 : vector<1x256xf32> to vector<8x256xf32>
    %415 = arith.addf %413, %414 : vector<8x256xf32>
    %c25_207 = arith.constant 25 : index
    %c0_208 = arith.constant 0 : index
    %c0_209 = arith.constant 0 : index
    %416 = vector.load %arg11[%c25_207, %c0_208, %c0_209] : memref<30x8x256xf32, #tpu.memory_space<vmem>>, vector<1x8x256xf32>
    %417 = vector.shape_cast %416 : vector<1x8x256xf32> to vector<8x256xf32>
    %418 = vector.shape_cast %415 : vector<8x256xf32> to vector<1x8x256xf32>
    tpu.vector_store %arg11[%c25_207, %c0_208, %c0_209], %418 {strides = array<i32>} : memref<30x8x256xf32, #tpu.memory_space<vmem>>, vector<1x8x256xf32>,
    %c26_210 = arith.constant 26 : index
    %c0_211 = arith.constant 0 : index
    %c0_212 = arith.constant 0 : index
    %419 = vector.load %arg0[%c26_210, %c0_211, %c0_212] : memref<30x8x1xf32, #tpu.memory_space<vmem>>, vector<1x8x1xf32>
    %420 = vector.shape_cast %419 : vector<1x8x1xf32> to vector<8x1xf32>
    %421 = vector.broadcast %420 : vector<8x1xf32> to vector<8x256xf32>
    %422 = vector.broadcast %0 : vector<1x256xf32> to vector<8x256xf32>
    %423 = arith.mulf %421, %422 : vector<8x256xf32>
    %c3_213 = arith.constant 3 : index
    %c0_214 = arith.constant 0 : index
    %c0_215 = arith.constant 0 : index
    %424 = vector.load %arg0[%c3_213, %c0_214, %c0_215] : memref<30x8x1xf32, #tpu.memory_space<vmem>>, vector<1x8x1xf32>
    %425 = vector.shape_cast %424 : vector<1x8x1xf32> to vector<8x1xf32>
    %426 = vector.broadcast %425 : vector<8x1xf32> to vector<8x256xf32>
    %427 = vector.broadcast %1 : vector<1x256xf32> to vector<8x256xf32>
    %428 = arith.mulf %426, %427 : vector<8x256xf32>
    %429 = arith.addf %423, %428 : vector<8x256xf32>
    %430 = vector.broadcast %2 : vector<1x256xf32> to vector<8x256xf32>
    %431 = arith.addf %429, %430 : vector<8x256xf32>
    %c26_216 = arith.constant 26 : index
    %c0_217 = arith.constant 0 : index
    %c0_218 = arith.constant 0 : index
    %432 = vector.load %arg11[%c26_216, %c0_217, %c0_218] : memref<30x8x256xf32, #tpu.memory_space<vmem>>, vector<1x8x256xf32>
    %433 = vector.shape_cast %432 : vector<1x8x256xf32> to vector<8x256xf32>
    %434 = vector.shape_cast %431 : vector<8x256xf32> to vector<1x8x256xf32>
    tpu.vector_store %arg11[%c26_216, %c0_217, %c0_218], %434 {strides = array<i32>} : memref<30x8x256xf32, #tpu.memory_space<vmem>>, vector<1x8x256xf32>,
    %c27_219 = arith.constant 27 : index
    %c0_220 = arith.constant 0 : index
    %c0_221 = arith.constant 0 : index
    %435 = vector.load %arg0[%c27_219, %c0_220, %c0_221] : memref<30x8x1xf32, #tpu.memory_space<vmem>>, vector<1x8x1xf32>
    %436 = vector.shape_cast %435 : vector<1x8x1xf32> to vector<8x1xf32>
    %437 = vector.broadcast %436 : vector<8x1xf32> to vector<8x256xf32>
    %438 = vector.broadcast %0 : vector<1x256xf32> to vector<8x256xf32>
    %439 = arith.mulf %437, %438 : vector<8x256xf32>
    %c2_222 = arith.constant 2 : index
    %c0_223 = arith.constant 0 : index
    %c0_224 = arith.constant 0 : index
    %440 = vector.load %arg0[%c2_222, %c0_223, %c0_224] : memref<30x8x1xf32, #tpu.memory_space<vmem>>, vector<1x8x1xf32>
    %441 = vector.shape_cast %440 : vector<1x8x1xf32> to vector<8x1xf32>
    %442 = vector.broadcast %441 : vector<8x1xf32> to vector<8x256xf32>
    %443 = vector.broadcast %1 : vector<1x256xf32> to vector<8x256xf32>
    %444 = arith.mulf %442, %443 : vector<8x256xf32>
    %445 = arith.addf %439, %444 : vector<8x256xf32>
    %446 = vector.broadcast %2 : vector<1x256xf32> to vector<8x256xf32>
    %447 = arith.addf %445, %446 : vector<8x256xf32>
    %c27_225 = arith.constant 27 : index
    %c0_226 = arith.constant 0 : index
    %c0_227 = arith.constant 0 : index
    %448 = vector.load %arg11[%c27_225, %c0_226, %c0_227] : memref<30x8x256xf32, #tpu.memory_space<vmem>>, vector<1x8x256xf32>
    %449 = vector.shape_cast %448 : vector<1x8x256xf32> to vector<8x256xf32>
    %450 = vector.shape_cast %447 : vector<8x256xf32> to vector<1x8x256xf32>
    tpu.vector_store %arg11[%c27_225, %c0_226, %c0_227], %450 {strides = array<i32>} : memref<30x8x256xf32, #tpu.memory_space<vmem>>, vector<1x8x256xf32>,
    %c28_228 = arith.constant 28 : index
    %c0_229 = arith.constant 0 : index
    %c0_230 = arith.constant 0 : index
    %451 = vector.load %arg0[%c28_228, %c0_229, %c0_230] : memref<30x8x1xf32, #tpu.memory_space<vmem>>, vector<1x8x1xf32>
    %452 = vector.shape_cast %451 : vector<1x8x1xf32> to vector<8x1xf32>
    %453 = vector.broadcast %452 : vector<8x1xf32> to vector<8x256xf32>
    %454 = vector.broadcast %0 : vector<1x256xf32> to vector<8x256xf32>
    %455 = arith.mulf %453, %454 : vector<8x256xf32>
    %c1_231 = arith.constant 1 : index
    %c0_232 = arith.constant 0 : index
    %c0_233 = arith.constant 0 : index
    %456 = vector.load %arg0[%c1_231, %c0_232, %c0_233] : memref<30x8x1xf32, #tpu.memory_space<vmem>>, vector<1x8x1xf32>
    %457 = vector.shape_cast %456 : vector<1x8x1xf32> to vector<8x1xf32>
    %458 = vector.broadcast %457 : vector<8x1xf32> to vector<8x256xf32>
    %459 = vector.broadcast %1 : vector<1x256xf32> to vector<8x256xf32>
    %460 = arith.mulf %458, %459 : vector<8x256xf32>
    %461 = arith.addf %455, %460 : vector<8x256xf32>
    %462 = vector.broadcast %2 : vector<1x256xf32> to vector<8x256xf32>
    %463 = arith.addf %461, %462 : vector<8x256xf32>
    %c28_234 = arith.constant 28 : index
    %c0_235 = arith.constant 0 : index
    %c0_236 = arith.constant 0 : index
    %464 = vector.load %arg11[%c28_234, %c0_235, %c0_236] : memref<30x8x256xf32, #tpu.memory_space<vmem>>, vector<1x8x256xf32>
    %465 = vector.shape_cast %464 : vector<1x8x256xf32> to vector<8x256xf32>
    %466 = vector.shape_cast %463 : vector<8x256xf32> to vector<1x8x256xf32>
    tpu.vector_store %arg11[%c28_234, %c0_235, %c0_236], %466 {strides = array<i32>} : memref<30x8x256xf32, #tpu.memory_space<vmem>>, vector<1x8x256xf32>,
    %c29_237 = arith.constant 29 : index
    %c0_238 = arith.constant 0 : index
    %c0_239 = arith.constant 0 : index
    %467 = vector.load %arg0[%c29_237, %c0_238, %c0_239] : memref<30x8x1xf32, #tpu.memory_space<vmem>>, vector<1x8x1xf32>
    %468 = vector.shape_cast %467 : vector<1x8x1xf32> to vector<8x1xf32>
    %469 = vector.broadcast %468 : vector<8x1xf32> to vector<8x256xf32>
    %470 = vector.broadcast %0 : vector<1x256xf32> to vector<8x256xf32>
    %471 = arith.mulf %469, %470 : vector<8x256xf32>
    %c0_240 = arith.constant 0 : index
    %c0_241 = arith.constant 0 : index
    %c0_242 = arith.constant 0 : index
    %472 = vector.load %arg0[%c0_240, %c0_241, %c0_242] : memref<30x8x1xf32, #tpu.memory_space<vmem>>, vector<1x8x1xf32>
    %473 = vector.shape_cast %472 : vector<1x8x1xf32> to vector<8x1xf32>
    %474 = vector.broadcast %473 : vector<8x1xf32> to vector<8x256xf32>
    %475 = vector.broadcast %1 : vector<1x256xf32> to vector<8x256xf32>
    %476 = arith.mulf %474, %475 : vector<8x256xf32>
    %477 = arith.addf %471, %476 : vector<8x256xf32>
    %478 = vector.broadcast %2 : vector<1x256xf32> to vector<8x256xf32>
    %479 = arith.addf %477, %478 : vector<8x256xf32>
    %c29_243 = arith.constant 29 : index
    %c0_244 = arith.constant 0 : index
    %c0_245 = arith.constant 0 : index
    %480 = vector.load %arg11[%c29_243, %c0_244, %c0_245] : memref<30x8x256xf32, #tpu.memory_space<vmem>>, vector<1x8x256xf32>
    %481 = vector.shape_cast %480 : vector<1x8x256xf32> to vector<8x256xf32>
    %482 = vector.shape_cast %479 : vector<8x256xf32> to vector<1x8x256xf32>
    tpu.vector_store %arg11[%c29_243, %c0_244, %c0_245], %482 {strides = array<i32>} : memref<30x8x256xf32, #tpu.memory_space<vmem>>, vector<1x8x256xf32>,
    %c0_246 = arith.constant 0 : index
    %c0_247 = arith.constant 0 : index
    %483 = vector.load %arg1[%c0_246, %c0_247] : memref<64x256xbf16, #tpu.memory_space<vmem>>, vector<64x256xbf16>
    %cst = arith.constant 0.000000e+00 : f32
    %484 = vector.broadcast %cst : f32 to vector<8x64xf32>
    %c0_i32 = arith.constant 0 : i32
    %485 = arith.index_cast %c0_i32 : i32 to index
    %c0_248 = arith.constant 0 : index
    %c0_249 = arith.constant 0 : index
    %486 = vector.load %arg11[%485, %c0_248, %c0_249] : memref<30x8x256xf32, #tpu.memory_space<vmem>>, vector<1x8x256xf32>
    %487 = vector.shape_cast %486 : vector<1x8x256xf32> to vector<8x256xf32>
    %488 = arith.truncf %484 : vector<8x64xf32> to vector<8x64xbf16>
    %cst_250 = arith.constant dense<0.000000e+00> : vector<8x256xf32>
    %489 = tpu.matmul %488, %483, %cst_250 {dimension_numbers = #tpu.dot_dimension_numbers<[1], [0], [0], [1], [0, 0, 1, 1], [], []>} : vector<8x64xbf16>, vector<64x256xbf16>, vector<8x256xf32> -> vector<8x256xf32>
    %490 = arith.addf %487, %489 : vector<8x256xf32>
    %491 = vector.extract_strided_slice %490 {offsets = [0, 0], sizes = [8, 192], strides = [1, 1]} : vector<8x256xf32> to vector<8x192xf32>
    %492 = arith.negf %491 : vector<8x192xf32>
    %493 = math.exp %492 : vector<8x192xf32>
    %cst_251 = arith.constant 1.000000e+00 : f32
    %494 = vector.broadcast %cst_251 : f32 to vector<8x192xf32>
    %495 = arith.addf %494, %493 : vector<8x192xf32>
    %496 = arith.divf %494, %495 : vector<8x192xf32>
    %497 = vector.extract_strided_slice %496 {offsets = [0, 0], sizes = [8, 64], strides = [1, 1]} : vector<8x192xf32> to vector<8x64xf32>
    %498 = vector.extract_strided_slice %496 {offsets = [0, 64], sizes = [8, 64], strides = [1, 1]} : vector<8x192xf32> to vector<8x64xf32>
    %499 = vector.extract_strided_slice %496 {offsets = [0, 128], sizes = [8, 64], strides = [1, 1]} : vector<8x192xf32> to vector<8x64xf32>
    %500 = vector.extract_strided_slice %490 {offsets = [0, 192], sizes = [8, 64], strides = [1, 1]} : vector<8x256xf32> to vector<8x64xf32>
    %501 = math.tanh %500 : vector<8x64xf32>
    %502 = arith.mulf %498, %484 : vector<8x64xf32>
    %503 = arith.mulf %497, %501 : vector<8x64xf32>
    %504 = arith.addf %502, %503 : vector<8x64xf32>
    %505 = math.tanh %504 : vector<8x64xf32>
    %506 = arith.mulf %499, %505 : vector<8x64xf32>
    %507 = arith.addf %484, %506 : vector<8x64xf32>
    %c1_i32 = arith.constant 1 : i32
    %508 = arith.index_cast %c1_i32 : i32 to index
    %c0_252 = arith.constant 0 : index
    %c0_253 = arith.constant 0 : index
    %509 = vector.load %arg11[%508, %c0_252, %c0_253] : memref<30x8x256xf32, #tpu.memory_space<vmem>>, vector<1x8x256xf32>
    %510 = vector.shape_cast %509 : vector<1x8x256xf32> to vector<8x256xf32>
    %511 = arith.truncf %506 : vector<8x64xf32> to vector<8x64xbf16>
    %cst_254 = arith.constant dense<0.000000e+00> : vector<8x256xf32>
    %512 = tpu.matmul %511, %483, %cst_254 {dimension_numbers = #tpu.dot_dimension_numbers<[1], [0], [0], [1], [0, 0, 1, 1], [], []>} : vector<8x64xbf16>, vector<64x256xbf16>, vector<8x256xf32> -> vector<8x256xf32>
    %513 = arith.addf %510, %512 : vector<8x256xf32>
    %514 = vector.extract_strided_slice %513 {offsets = [0, 0], sizes = [8, 192], strides = [1, 1]} : vector<8x256xf32> to vector<8x192xf32>
    %515 = arith.negf %514 : vector<8x192xf32>
    %516 = math.exp %515 : vector<8x192xf32>
    %cst_255 = arith.constant 1.000000e+00 : f32
    %517 = vector.broadcast %cst_255 : f32 to vector<8x192xf32>
    %518 = arith.addf %517, %516 : vector<8x192xf32>
    %519 = arith.divf %517, %518 : vector<8x192xf32>
    %520 = vector.extract_strided_slice %519 {offsets = [0, 0], sizes = [8, 64], strides = [1, 1]} : vector<8x192xf32> to vector<8x64xf32>
    %521 = vector.extract_strided_slice %519 {offsets = [0, 64], sizes = [8, 64], strides = [1, 1]} : vector<8x192xf32> to vector<8x64xf32>
    %522 = vector.extract_strided_slice %519 {offsets = [0, 128], sizes = [8, 64], strides = [1, 1]} : vector<8x192xf32> to vector<8x64xf32>
    %523 = vector.extract_strided_slice %513 {offsets = [0, 192], sizes = [8, 64], strides = [1, 1]} : vector<8x256xf32> to vector<8x64xf32>
    %524 = math.tanh %523 : vector<8x64xf32>
    %525 = arith.mulf %521, %504 : vector<8x64xf32>
    %526 = arith.mulf %520, %524 : vector<8x64xf32>
    %527 = arith.addf %525, %526 : vector<8x64xf32>
    %528 = math.tanh %527 : vector<8x64xf32>
    %529 = arith.mulf %522, %528 : vector<8x64xf32>
    %530 = arith.addf %507, %529 : vector<8x64xf32>
    %c2_i32 = arith.constant 2 : i32
    %531 = arith.index_cast %c2_i32 : i32 to index
    %c0_256 = arith.constant 0 : index
    %c0_257 = arith.constant 0 : index
    %532 = vector.load %arg11[%531, %c0_256, %c0_257] : memref<30x8x256xf32, #tpu.memory_space<vmem>>, vector<1x8x256xf32>
    %533 = vector.shape_cast %532 : vector<1x8x256xf32> to vector<8x256xf32>
    %534 = arith.truncf %529 : vector<8x64xf32> to vector<8x64xbf16>
    %cst_258 = arith.constant dense<0.000000e+00> : vector<8x256xf32>
    %535 = tpu.matmul %534, %483, %cst_258 {dimension_numbers = #tpu.dot_dimension_numbers<[1], [0], [0], [1], [0, 0, 1, 1], [], []>} : vector<8x64xbf16>, vector<64x256xbf16>, vector<8x256xf32> -> vector<8x256xf32>
    %536 = arith.addf %533, %535 : vector<8x256xf32>
    %537 = vector.extract_strided_slice %536 {offsets = [0, 0], sizes = [8, 192], strides = [1, 1]} : vector<8x256xf32> to vector<8x192xf32>
    %538 = arith.negf %537 : vector<8x192xf32>
    %539 = math.exp %538 : vector<8x192xf32>
    %cst_259 = arith.constant 1.000000e+00 : f32
    %540 = vector.broadcast %cst_259 : f32 to vector<8x192xf32>
    %541 = arith.addf %540, %539 : vector<8x192xf32>
    %542 = arith.divf %540, %541 : vector<8x192xf32>
    %543 = vector.extract_strided_slice %542 {offsets = [0, 0], sizes = [8, 64], strides = [1, 1]} : vector<8x192xf32> to vector<8x64xf32>
    %544 = vector.extract_strided_slice %542 {offsets = [0, 64], sizes = [8, 64], strides = [1, 1]} : vector<8x192xf32> to vector<8x64xf32>
    %545 = vector.extract_strided_slice %542 {offsets = [0, 128], sizes = [8, 64], strides = [1, 1]} : vector<8x192xf32> to vector<8x64xf32>
    %546 = vector.extract_strided_slice %536 {offsets = [0, 192], sizes = [8, 64], strides = [1, 1]} : vector<8x256xf32> to vector<8x64xf32>
    %547 = math.tanh %546 : vector<8x64xf32>
    %548 = arith.mulf %544, %527 : vector<8x64xf32>
    %549 = arith.mulf %543, %547 : vector<8x64xf32>
    %550 = arith.addf %548, %549 : vector<8x64xf32>
    %551 = math.tanh %550 : vector<8x64xf32>
    %552 = arith.mulf %545, %551 : vector<8x64xf32>
    %553 = arith.addf %530, %552 : vector<8x64xf32>
    %c3_i32 = arith.constant 3 : i32
    %554 = arith.index_cast %c3_i32 : i32 to index
    %c0_260 = arith.constant 0 : index
    %c0_261 = arith.constant 0 : index
    %555 = vector.load %arg11[%554, %c0_260, %c0_261] : memref<30x8x256xf32, #tpu.memory_space<vmem>>, vector<1x8x256xf32>
    %556 = vector.shape_cast %555 : vector<1x8x256xf32> to vector<8x256xf32>
    %557 = arith.truncf %552 : vector<8x64xf32> to vector<8x64xbf16>
    %cst_262 = arith.constant dense<0.000000e+00> : vector<8x256xf32>
    %558 = tpu.matmul %557, %483, %cst_262 {dimension_numbers = #tpu.dot_dimension_numbers<[1], [0], [0], [1], [0, 0, 1, 1], [], []>} : vector<8x64xbf16>, vector<64x256xbf16>, vector<8x256xf32> -> vector<8x256xf32>
    %559 = arith.addf %556, %558 : vector<8x256xf32>
    %560 = vector.extract_strided_slice %559 {offsets = [0, 0], sizes = [8, 192], strides = [1, 1]} : vector<8x256xf32> to vector<8x192xf32>
    %561 = arith.negf %560 : vector<8x192xf32>
    %562 = math.exp %561 : vector<8x192xf32>
    %cst_263 = arith.constant 1.000000e+00 : f32
    %563 = vector.broadcast %cst_263 : f32 to vector<8x192xf32>
    %564 = arith.addf %563, %562 : vector<8x192xf32>
    %565 = arith.divf %563, %564 : vector<8x192xf32>
    %566 = vector.extract_strided_slice %565 {offsets = [0, 0], sizes = [8, 64], strides = [1, 1]} : vector<8x192xf32> to vector<8x64xf32>
    %567 = vector.extract_strided_slice %565 {offsets = [0, 64], sizes = [8, 64], strides = [1, 1]} : vector<8x192xf32> to vector<8x64xf32>
    %568 = vector.extract_strided_slice %565 {offsets = [0, 128], sizes = [8, 64], strides = [1, 1]} : vector<8x192xf32> to vector<8x64xf32>
    %569 = vector.extract_strided_slice %559 {offsets = [0, 192], sizes = [8, 64], strides = [1, 1]} : vector<8x256xf32> to vector<8x64xf32>
    %570 = math.tanh %569 : vector<8x64xf32>
    %571 = arith.mulf %567, %550 : vector<8x64xf32>
    %572 = arith.mulf %566, %570 : vector<8x64xf32>
    %573 = arith.addf %571, %572 : vector<8x64xf32>
    %574 = math.tanh %573 : vector<8x64xf32>
    %575 = arith.mulf %568, %574 : vector<8x64xf32>
    %576 = arith.addf %553, %575 : vector<8x64xf32>
    %c4_i32 = arith.constant 4 : i32
    %577 = arith.index_cast %c4_i32 : i32 to index
    %c0_264 = arith.constant 0 : index
    %c0_265 = arith.constant 0 : index
    %578 = vector.load %arg11[%577, %c0_264, %c0_265] : memref<30x8x256xf32, #tpu.memory_space<vmem>>, vector<1x8x256xf32>
    %579 = vector.shape_cast %578 : vector<1x8x256xf32> to vector<8x256xf32>
    %580 = arith.truncf %575 : vector<8x64xf32> to vector<8x64xbf16>
    %cst_266 = arith.constant dense<0.000000e+00> : vector<8x256xf32>
    %581 = tpu.matmul %580, %483, %cst_266 {dimension_numbers = #tpu.dot_dimension_numbers<[1], [0], [0], [1], [0, 0, 1, 1], [], []>} : vector<8x64xbf16>, vector<64x256xbf16>, vector<8x256xf32> -> vector<8x256xf32>
    %582 = arith.addf %579, %581 : vector<8x256xf32>
    %583 = vector.extract_strided_slice %582 {offsets = [0, 0], sizes = [8, 192], strides = [1, 1]} : vector<8x256xf32> to vector<8x192xf32>
    %584 = arith.negf %583 : vector<8x192xf32>
    %585 = math.exp %584 : vector<8x192xf32>
    %cst_267 = arith.constant 1.000000e+00 : f32
    %586 = vector.broadcast %cst_267 : f32 to vector<8x192xf32>
    %587 = arith.addf %586, %585 : vector<8x192xf32>
    %588 = arith.divf %586, %587 : vector<8x192xf32>
    %589 = vector.extract_strided_slice %588 {offsets = [0, 0], sizes = [8, 64], strides = [1, 1]} : vector<8x192xf32> to vector<8x64xf32>
    %590 = vector.extract_strided_slice %588 {offsets = [0, 64], sizes = [8, 64], strides = [1, 1]} : vector<8x192xf32> to vector<8x64xf32>
    %591 = vector.extract_strided_slice %588 {offsets = [0, 128], sizes = [8, 64], strides = [1, 1]} : vector<8x192xf32> to vector<8x64xf32>
    %592 = vector.extract_strided_slice %582 {offsets = [0, 192], sizes = [8, 64], strides = [1, 1]} : vector<8x256xf32> to vector<8x64xf32>
    %593 = math.tanh %592 : vector<8x64xf32>
    %594 = arith.mulf %590, %573 : vector<8x64xf32>
    %595 = arith.mulf %589, %593 : vector<8x64xf32>
    %596 = arith.addf %594, %595 : vector<8x64xf32>
    %597 = math.tanh %596 : vector<8x64xf32>
    %598 = arith.mulf %591, %597 : vector<8x64xf32>
    %599 = arith.addf %576, %598 : vector<8x64xf32>
    %c5_i32 = arith.constant 5 : i32
    %600 = arith.index_cast %c5_i32 : i32 to index
    %c0_268 = arith.constant 0 : index
    %c0_269 = arith.constant 0 : index
    %601 = vector.load %arg11[%600, %c0_268, %c0_269] : memref<30x8x256xf32, #tpu.memory_space<vmem>>, vector<1x8x256xf32>
    %602 = vector.shape_cast %601 : vector<1x8x256xf32> to vector<8x256xf32>
    %603 = arith.truncf %598 : vector<8x64xf32> to vector<8x64xbf16>
    %cst_270 = arith.constant dense<0.000000e+00> : vector<8x256xf32>
    %604 = tpu.matmul %603, %483, %cst_270 {dimension_numbers = #tpu.dot_dimension_numbers<[1], [0], [0], [1], [0, 0, 1, 1], [], []>} : vector<8x64xbf16>, vector<64x256xbf16>, vector<8x256xf32> -> vector<8x256xf32>
    %605 = arith.addf %602, %604 : vector<8x256xf32>
    %606 = vector.extract_strided_slice %605 {offsets = [0, 0], sizes = [8, 192], strides = [1, 1]} : vector<8x256xf32> to vector<8x192xf32>
    %607 = arith.negf %606 : vector<8x192xf32>
    %608 = math.exp %607 : vector<8x192xf32>
    %cst_271 = arith.constant 1.000000e+00 : f32
    %609 = vector.broadcast %cst_271 : f32 to vector<8x192xf32>
    %610 = arith.addf %609, %608 : vector<8x192xf32>
    %611 = arith.divf %609, %610 : vector<8x192xf32>
    %612 = vector.extract_strided_slice %611 {offsets = [0, 0], sizes = [8, 64], strides = [1, 1]} : vector<8x192xf32> to vector<8x64xf32>
    %613 = vector.extract_strided_slice %611 {offsets = [0, 64], sizes = [8, 64], strides = [1, 1]} : vector<8x192xf32> to vector<8x64xf32>
    %614 = vector.extract_strided_slice %611 {offsets = [0, 128], sizes = [8, 64], strides = [1, 1]} : vector<8x192xf32> to vector<8x64xf32>
    %615 = vector.extract_strided_slice %605 {offsets = [0, 192], sizes = [8, 64], strides = [1, 1]} : vector<8x256xf32> to vector<8x64xf32>
    %616 = math.tanh %615 : vector<8x64xf32>
    %617 = arith.mulf %613, %596 : vector<8x64xf32>
    %618 = arith.mulf %612, %616 : vector<8x64xf32>
    %619 = arith.addf %617, %618 : vector<8x64xf32>
    %620 = math.tanh %619 : vector<8x64xf32>
    %621 = arith.mulf %614, %620 : vector<8x64xf32>
    %622 = arith.addf %599, %621 : vector<8x64xf32>
    %c6_i32 = arith.constant 6 : i32
    %623 = arith.index_cast %c6_i32 : i32 to index
    %c0_272 = arith.constant 0 : index
    %c0_273 = arith.constant 0 : index
    %624 = vector.load %arg11[%623, %c0_272, %c0_273] : memref<30x8x256xf32, #tpu.memory_space<vmem>>, vector<1x8x256xf32>
    %625 = vector.shape_cast %624 : vector<1x8x256xf32> to vector<8x256xf32>
    %626 = arith.truncf %621 : vector<8x64xf32> to vector<8x64xbf16>
    %cst_274 = arith.constant dense<0.000000e+00> : vector<8x256xf32>
    %627 = tpu.matmul %626, %483, %cst_274 {dimension_numbers = #tpu.dot_dimension_numbers<[1], [0], [0], [1], [0, 0, 1, 1], [], []>} : vector<8x64xbf16>, vector<64x256xbf16>, vector<8x256xf32> -> vector<8x256xf32>
    %628 = arith.addf %625, %627 : vector<8x256xf32>
    %629 = vector.extract_strided_slice %628 {offsets = [0, 0], sizes = [8, 192], strides = [1, 1]} : vector<8x256xf32> to vector<8x192xf32>
    %630 = arith.negf %629 : vector<8x192xf32>
    %631 = math.exp %630 : vector<8x192xf32>
    %cst_275 = arith.constant 1.000000e+00 : f32
    %632 = vector.broadcast %cst_275 : f32 to vector<8x192xf32>
    %633 = arith.addf %632, %631 : vector<8x192xf32>
    %634 = arith.divf %632, %633 : vector<8x192xf32>
    %635 = vector.extract_strided_slice %634 {offsets = [0, 0], sizes = [8, 64], strides = [1, 1]} : vector<8x192xf32> to vector<8x64xf32>
    %636 = vector.extract_strided_slice %634 {offsets = [0, 64], sizes = [8, 64], strides = [1, 1]} : vector<8x192xf32> to vector<8x64xf32>
    %637 = vector.extract_strided_slice %634 {offsets = [0, 128], sizes = [8, 64], strides = [1, 1]} : vector<8x192xf32> to vector<8x64xf32>
    %638 = vector.extract_strided_slice %628 {offsets = [0, 192], sizes = [8, 64], strides = [1, 1]} : vector<8x256xf32> to vector<8x64xf32>
    %639 = math.tanh %638 : vector<8x64xf32>
    %640 = arith.mulf %636, %619 : vector<8x64xf32>
    %641 = arith.mulf %635, %639 : vector<8x64xf32>
    %642 = arith.addf %640, %641 : vector<8x64xf32>
    %643 = math.tanh %642 : vector<8x64xf32>
    %644 = arith.mulf %637, %643 : vector<8x64xf32>
    %645 = arith.addf %622, %644 : vector<8x64xf32>
    %c7_i32 = arith.constant 7 : i32
    %646 = arith.index_cast %c7_i32 : i32 to index
    %c0_276 = arith.constant 0 : index
    %c0_277 = arith.constant 0 : index
    %647 = vector.load %arg11[%646, %c0_276, %c0_277] : memref<30x8x256xf32, #tpu.memory_space<vmem>>, vector<1x8x256xf32>
    %648 = vector.shape_cast %647 : vector<1x8x256xf32> to vector<8x256xf32>
    %649 = arith.truncf %644 : vector<8x64xf32> to vector<8x64xbf16>
    %cst_278 = arith.constant dense<0.000000e+00> : vector<8x256xf32>
    %650 = tpu.matmul %649, %483, %cst_278 {dimension_numbers = #tpu.dot_dimension_numbers<[1], [0], [0], [1], [0, 0, 1, 1], [], []>} : vector<8x64xbf16>, vector<64x256xbf16>, vector<8x256xf32> -> vector<8x256xf32>
    %651 = arith.addf %648, %650 : vector<8x256xf32>
    %652 = vector.extract_strided_slice %651 {offsets = [0, 0], sizes = [8, 192], strides = [1, 1]} : vector<8x256xf32> to vector<8x192xf32>
    %653 = arith.negf %652 : vector<8x192xf32>
    %654 = math.exp %653 : vector<8x192xf32>
    %cst_279 = arith.constant 1.000000e+00 : f32
    %655 = vector.broadcast %cst_279 : f32 to vector<8x192xf32>
    %656 = arith.addf %655, %654 : vector<8x192xf32>
    %657 = arith.divf %655, %656 : vector<8x192xf32>
    %658 = vector.extract_strided_slice %657 {offsets = [0, 0], sizes = [8, 64], strides = [1, 1]} : vector<8x192xf32> to vector<8x64xf32>
    %659 = vector.extract_strided_slice %657 {offsets = [0, 64], sizes = [8, 64], strides = [1, 1]} : vector<8x192xf32> to vector<8x64xf32>
    %660 = vector.extract_strided_slice %657 {offsets = [0, 128], sizes = [8, 64], strides = [1, 1]} : vector<8x192xf32> to vector<8x64xf32>
    %661 = vector.extract_strided_slice %651 {offsets = [0, 192], sizes = [8, 64], strides = [1, 1]} : vector<8x256xf32> to vector<8x64xf32>
    %662 = math.tanh %661 : vector<8x64xf32>
    %663 = arith.mulf %659, %642 : vector<8x64xf32>
    %664 = arith.mulf %658, %662 : vector<8x64xf32>
    %665 = arith.addf %663, %664 : vector<8x64xf32>
    %666 = math.tanh %665 : vector<8x64xf32>
    %667 = arith.mulf %660, %666 : vector<8x64xf32>
    %668 = arith.addf %645, %667 : vector<8x64xf32>
    %c8_i32 = arith.constant 8 : i32
    %669 = arith.index_cast %c8_i32 : i32 to index
    %c0_280 = arith.constant 0 : index
    %c0_281 = arith.constant 0 : index
    %670 = vector.load %arg11[%669, %c0_280, %c0_281] : memref<30x8x256xf32, #tpu.memory_space<vmem>>, vector<1x8x256xf32>
    %671 = vector.shape_cast %670 : vector<1x8x256xf32> to vector<8x256xf32>
    %672 = arith.truncf %667 : vector<8x64xf32> to vector<8x64xbf16>
    %cst_282 = arith.constant dense<0.000000e+00> : vector<8x256xf32>
    %673 = tpu.matmul %672, %483, %cst_282 {dimension_numbers = #tpu.dot_dimension_numbers<[1], [0], [0], [1], [0, 0, 1, 1], [], []>} : vector<8x64xbf16>, vector<64x256xbf16>, vector<8x256xf32> -> vector<8x256xf32>
    %674 = arith.addf %671, %673 : vector<8x256xf32>
    %675 = vector.extract_strided_slice %674 {offsets = [0, 0], sizes = [8, 192], strides = [1, 1]} : vector<8x256xf32> to vector<8x192xf32>
    %676 = arith.negf %675 : vector<8x192xf32>
    %677 = math.exp %676 : vector<8x192xf32>
    %cst_283 = arith.constant 1.000000e+00 : f32
    %678 = vector.broadcast %cst_283 : f32 to vector<8x192xf32>
    %679 = arith.addf %678, %677 : vector<8x192xf32>
    %680 = arith.divf %678, %679 : vector<8x192xf32>
    %681 = vector.extract_strided_slice %680 {offsets = [0, 0], sizes = [8, 64], strides = [1, 1]} : vector<8x192xf32> to vector<8x64xf32>
    %682 = vector.extract_strided_slice %680 {offsets = [0, 64], sizes = [8, 64], strides = [1, 1]} : vector<8x192xf32> to vector<8x64xf32>
    %683 = vector.extract_strided_slice %680 {offsets = [0, 128], sizes = [8, 64], strides = [1, 1]} : vector<8x192xf32> to vector<8x64xf32>
    %684 = vector.extract_strided_slice %674 {offsets = [0, 192], sizes = [8, 64], strides = [1, 1]} : vector<8x256xf32> to vector<8x64xf32>
    %685 = math.tanh %684 : vector<8x64xf32>
    %686 = arith.mulf %682, %665 : vector<8x64xf32>
    %687 = arith.mulf %681, %685 : vector<8x64xf32>
    %688 = arith.addf %686, %687 : vector<8x64xf32>
    %689 = math.tanh %688 : vector<8x64xf32>
    %690 = arith.mulf %683, %689 : vector<8x64xf32>
    %691 = arith.addf %668, %690 : vector<8x64xf32>
    %c9_i32 = arith.constant 9 : i32
    %692 = arith.index_cast %c9_i32 : i32 to index
    %c0_284 = arith.constant 0 : index
    %c0_285 = arith.constant 0 : index
    %693 = vector.load %arg11[%692, %c0_284, %c0_285] : memref<30x8x256xf32, #tpu.memory_space<vmem>>, vector<1x8x256xf32>
    %694 = vector.shape_cast %693 : vector<1x8x256xf32> to vector<8x256xf32>
    %695 = arith.truncf %690 : vector<8x64xf32> to vector<8x64xbf16>
    %cst_286 = arith.constant dense<0.000000e+00> : vector<8x256xf32>
    %696 = tpu.matmul %695, %483, %cst_286 {dimension_numbers = #tpu.dot_dimension_numbers<[1], [0], [0], [1], [0, 0, 1, 1], [], []>} : vector<8x64xbf16>, vector<64x256xbf16>, vector<8x256xf32> -> vector<8x256xf32>
    %697 = arith.addf %694, %696 : vector<8x256xf32>
    %698 = vector.extract_strided_slice %697 {offsets = [0, 0], sizes = [8, 192], strides = [1, 1]} : vector<8x256xf32> to vector<8x192xf32>
    %699 = arith.negf %698 : vector<8x192xf32>
    %700 = math.exp %699 : vector<8x192xf32>
    %cst_287 = arith.constant 1.000000e+00 : f32
    %701 = vector.broadcast %cst_287 : f32 to vector<8x192xf32>
    %702 = arith.addf %701, %700 : vector<8x192xf32>
    %703 = arith.divf %701, %702 : vector<8x192xf32>
    %704 = vector.extract_strided_slice %703 {offsets = [0, 0], sizes = [8, 64], strides = [1, 1]} : vector<8x192xf32> to vector<8x64xf32>
    %705 = vector.extract_strided_slice %703 {offsets = [0, 64], sizes = [8, 64], strides = [1, 1]} : vector<8x192xf32> to vector<8x64xf32>
    %706 = vector.extract_strided_slice %703 {offsets = [0, 128], sizes = [8, 64], strides = [1, 1]} : vector<8x192xf32> to vector<8x64xf32>
    %707 = vector.extract_strided_slice %697 {offsets = [0, 192], sizes = [8, 64], strides = [1, 1]} : vector<8x256xf32> to vector<8x64xf32>
    %708 = math.tanh %707 : vector<8x64xf32>
    %709 = arith.mulf %705, %688 : vector<8x64xf32>
    %710 = arith.mulf %704, %708 : vector<8x64xf32>
    %711 = arith.addf %709, %710 : vector<8x64xf32>
    %712 = math.tanh %711 : vector<8x64xf32>
    %713 = arith.mulf %706, %712 : vector<8x64xf32>
    %714 = arith.addf %691, %713 : vector<8x64xf32>
    %c10_i32 = arith.constant 10 : i32
    %715 = arith.index_cast %c10_i32 : i32 to index
    %c0_288 = arith.constant 0 : index
    %c0_289 = arith.constant 0 : index
    %716 = vector.load %arg11[%715, %c0_288, %c0_289] : memref<30x8x256xf32, #tpu.memory_space<vmem>>, vector<1x8x256xf32>
    %717 = vector.shape_cast %716 : vector<1x8x256xf32> to vector<8x256xf32>
    %718 = arith.truncf %713 : vector<8x64xf32> to vector<8x64xbf16>
    %cst_290 = arith.constant dense<0.000000e+00> : vector<8x256xf32>
    %719 = tpu.matmul %718, %483, %cst_290 {dimension_numbers = #tpu.dot_dimension_numbers<[1], [0], [0], [1], [0, 0, 1, 1], [], []>} : vector<8x64xbf16>, vector<64x256xbf16>, vector<8x256xf32> -> vector<8x256xf32>
    %720 = arith.addf %717, %719 : vector<8x256xf32>
    %721 = vector.extract_strided_slice %720 {offsets = [0, 0], sizes = [8, 192], strides = [1, 1]} : vector<8x256xf32> to vector<8x192xf32>
    %722 = arith.negf %721 : vector<8x192xf32>
    %723 = math.exp %722 : vector<8x192xf32>
    %cst_291 = arith.constant 1.000000e+00 : f32
    %724 = vector.broadcast %cst_291 : f32 to vector<8x192xf32>
    %725 = arith.addf %724, %723 : vector<8x192xf32>
    %726 = arith.divf %724, %725 : vector<8x192xf32>
    %727 = vector.extract_strided_slice %726 {offsets = [0, 0], sizes = [8, 64], strides = [1, 1]} : vector<8x192xf32> to vector<8x64xf32>
    %728 = vector.extract_strided_slice %726 {offsets = [0, 64], sizes = [8, 64], strides = [1, 1]} : vector<8x192xf32> to vector<8x64xf32>
    %729 = vector.extract_strided_slice %726 {offsets = [0, 128], sizes = [8, 64], strides = [1, 1]} : vector<8x192xf32> to vector<8x64xf32>
    %730 = vector.extract_strided_slice %720 {offsets = [0, 192], sizes = [8, 64], strides = [1, 1]} : vector<8x256xf32> to vector<8x64xf32>
    %731 = math.tanh %730 : vector<8x64xf32>
    %732 = arith.mulf %728, %711 : vector<8x64xf32>
    %733 = arith.mulf %727, %731 : vector<8x64xf32>
    %734 = arith.addf %732, %733 : vector<8x64xf32>
    %735 = math.tanh %734 : vector<8x64xf32>
    %736 = arith.mulf %729, %735 : vector<8x64xf32>
    %737 = arith.addf %714, %736 : vector<8x64xf32>
    %c11_i32 = arith.constant 11 : i32
    %738 = arith.index_cast %c11_i32 : i32 to index
    %c0_292 = arith.constant 0 : index
    %c0_293 = arith.constant 0 : index
    %739 = vector.load %arg11[%738, %c0_292, %c0_293] : memref<30x8x256xf32, #tpu.memory_space<vmem>>, vector<1x8x256xf32>
    %740 = vector.shape_cast %739 : vector<1x8x256xf32> to vector<8x256xf32>
    %741 = arith.truncf %736 : vector<8x64xf32> to vector<8x64xbf16>
    %cst_294 = arith.constant dense<0.000000e+00> : vector<8x256xf32>
    %742 = tpu.matmul %741, %483, %cst_294 {dimension_numbers = #tpu.dot_dimension_numbers<[1], [0], [0], [1], [0, 0, 1, 1], [], []>} : vector<8x64xbf16>, vector<64x256xbf16>, vector<8x256xf32> -> vector<8x256xf32>
    %743 = arith.addf %740, %742 : vector<8x256xf32>
    %744 = vector.extract_strided_slice %743 {offsets = [0, 0], sizes = [8, 192], strides = [1, 1]} : vector<8x256xf32> to vector<8x192xf32>
    %745 = arith.negf %744 : vector<8x192xf32>
    %746 = math.exp %745 : vector<8x192xf32>
    %cst_295 = arith.constant 1.000000e+00 : f32
    %747 = vector.broadcast %cst_295 : f32 to vector<8x192xf32>
    %748 = arith.addf %747, %746 : vector<8x192xf32>
    %749 = arith.divf %747, %748 : vector<8x192xf32>
    %750 = vector.extract_strided_slice %749 {offsets = [0, 0], sizes = [8, 64], strides = [1, 1]} : vector<8x192xf32> to vector<8x64xf32>
    %751 = vector.extract_strided_slice %749 {offsets = [0, 64], sizes = [8, 64], strides = [1, 1]} : vector<8x192xf32> to vector<8x64xf32>
    %752 = vector.extract_strided_slice %749 {offsets = [0, 128], sizes = [8, 64], strides = [1, 1]} : vector<8x192xf32> to vector<8x64xf32>
    %753 = vector.extract_strided_slice %743 {offsets = [0, 192], sizes = [8, 64], strides = [1, 1]} : vector<8x256xf32> to vector<8x64xf32>
    %754 = math.tanh %753 : vector<8x64xf32>
    %755 = arith.mulf %751, %734 : vector<8x64xf32>
    %756 = arith.mulf %750, %754 : vector<8x64xf32>
    %757 = arith.addf %755, %756 : vector<8x64xf32>
    %758 = math.tanh %757 : vector<8x64xf32>
    %759 = arith.mulf %752, %758 : vector<8x64xf32>
    %760 = arith.addf %737, %759 : vector<8x64xf32>
    %c12_i32 = arith.constant 12 : i32
    %761 = arith.index_cast %c12_i32 : i32 to index
    %c0_296 = arith.constant 0 : index
    %c0_297 = arith.constant 0 : index
    %762 = vector.load %arg11[%761, %c0_296, %c0_297] : memref<30x8x256xf32, #tpu.memory_space<vmem>>, vector<1x8x256xf32>
    %763 = vector.shape_cast %762 : vector<1x8x256xf32> to vector<8x256xf32>
    %764 = arith.truncf %759 : vector<8x64xf32> to vector<8x64xbf16>
    %cst_298 = arith.constant dense<0.000000e+00> : vector<8x256xf32>
    %765 = tpu.matmul %764, %483, %cst_298 {dimension_numbers = #tpu.dot_dimension_numbers<[1], [0], [0], [1], [0, 0, 1, 1], [], []>} : vector<8x64xbf16>, vector<64x256xbf16>, vector<8x256xf32> -> vector<8x256xf32>
    %766 = arith.addf %763, %765 : vector<8x256xf32>
    %767 = vector.extract_strided_slice %766 {offsets = [0, 0], sizes = [8, 192], strides = [1, 1]} : vector<8x256xf32> to vector<8x192xf32>
    %768 = arith.negf %767 : vector<8x192xf32>
    %769 = math.exp %768 : vector<8x192xf32>
    %cst_299 = arith.constant 1.000000e+00 : f32
    %770 = vector.broadcast %cst_299 : f32 to vector<8x192xf32>
    %771 = arith.addf %770, %769 : vector<8x192xf32>
    %772 = arith.divf %770, %771 : vector<8x192xf32>
    %773 = vector.extract_strided_slice %772 {offsets = [0, 0], sizes = [8, 64], strides = [1, 1]} : vector<8x192xf32> to vector<8x64xf32>
    %774 = vector.extract_strided_slice %772 {offsets = [0, 64], sizes = [8, 64], strides = [1, 1]} : vector<8x192xf32> to vector<8x64xf32>
    %775 = vector.extract_strided_slice %772 {offsets = [0, 128], sizes = [8, 64], strides = [1, 1]} : vector<8x192xf32> to vector<8x64xf32>
    %776 = vector.extract_strided_slice %766 {offsets = [0, 192], sizes = [8, 64], strides = [1, 1]} : vector<8x256xf32> to vector<8x64xf32>
    %777 = math.tanh %776 : vector<8x64xf32>
    %778 = arith.mulf %774, %757 : vector<8x64xf32>
    %779 = arith.mulf %773, %777 : vector<8x64xf32>
    %780 = arith.addf %778, %779 : vector<8x64xf32>
    %781 = math.tanh %780 : vector<8x64xf32>
    %782 = arith.mulf %775, %781 : vector<8x64xf32>
    %783 = arith.addf %760, %782 : vector<8x64xf32>
    %c13_i32 = arith.constant 13 : i32
    %784 = arith.index_cast %c13_i32 : i32 to index
    %c0_300 = arith.constant 0 : index
    %c0_301 = arith.constant 0 : index
    %785 = vector.load %arg11[%784, %c0_300, %c0_301] : memref<30x8x256xf32, #tpu.memory_space<vmem>>, vector<1x8x256xf32>
    %786 = vector.shape_cast %785 : vector<1x8x256xf32> to vector<8x256xf32>
    %787 = arith.truncf %782 : vector<8x64xf32> to vector<8x64xbf16>
    %cst_302 = arith.constant dense<0.000000e+00> : vector<8x256xf32>
    %788 = tpu.matmul %787, %483, %cst_302 {dimension_numbers = #tpu.dot_dimension_numbers<[1], [0], [0], [1], [0, 0, 1, 1], [], []>} : vector<8x64xbf16>, vector<64x256xbf16>, vector<8x256xf32> -> vector<8x256xf32>
    %789 = arith.addf %786, %788 : vector<8x256xf32>
    %790 = vector.extract_strided_slice %789 {offsets = [0, 0], sizes = [8, 192], strides = [1, 1]} : vector<8x256xf32> to vector<8x192xf32>
    %791 = arith.negf %790 : vector<8x192xf32>
    %792 = math.exp %791 : vector<8x192xf32>
    %cst_303 = arith.constant 1.000000e+00 : f32
    %793 = vector.broadcast %cst_303 : f32 to vector<8x192xf32>
    %794 = arith.addf %793, %792 : vector<8x192xf32>
    %795 = arith.divf %793, %794 : vector<8x192xf32>
    %796 = vector.extract_strided_slice %795 {offsets = [0, 0], sizes = [8, 64], strides = [1, 1]} : vector<8x192xf32> to vector<8x64xf32>
    %797 = vector.extract_strided_slice %795 {offsets = [0, 64], sizes = [8, 64], strides = [1, 1]} : vector<8x192xf32> to vector<8x64xf32>
    %798 = vector.extract_strided_slice %795 {offsets = [0, 128], sizes = [8, 64], strides = [1, 1]} : vector<8x192xf32> to vector<8x64xf32>
    %799 = vector.extract_strided_slice %789 {offsets = [0, 192], sizes = [8, 64], strides = [1, 1]} : vector<8x256xf32> to vector<8x64xf32>
    %800 = math.tanh %799 : vector<8x64xf32>
    %801 = arith.mulf %797, %780 : vector<8x64xf32>
    %802 = arith.mulf %796, %800 : vector<8x64xf32>
    %803 = arith.addf %801, %802 : vector<8x64xf32>
    %804 = math.tanh %803 : vector<8x64xf32>
    %805 = arith.mulf %798, %804 : vector<8x64xf32>
    %806 = arith.addf %783, %805 : vector<8x64xf32>
    %c14_i32 = arith.constant 14 : i32
    %807 = arith.index_cast %c14_i32 : i32 to index
    %c0_304 = arith.constant 0 : index
    %c0_305 = arith.constant 0 : index
    %808 = vector.load %arg11[%807, %c0_304, %c0_305] : memref<30x8x256xf32, #tpu.memory_space<vmem>>, vector<1x8x256xf32>
    %809 = vector.shape_cast %808 : vector<1x8x256xf32> to vector<8x256xf32>
    %810 = arith.truncf %805 : vector<8x64xf32> to vector<8x64xbf16>
    %cst_306 = arith.constant dense<0.000000e+00> : vector<8x256xf32>
    %811 = tpu.matmul %810, %483, %cst_306 {dimension_numbers = #tpu.dot_dimension_numbers<[1], [0], [0], [1], [0, 0, 1, 1], [], []>} : vector<8x64xbf16>, vector<64x256xbf16>, vector<8x256xf32> -> vector<8x256xf32>
    %812 = arith.addf %809, %811 : vector<8x256xf32>
    %813 = vector.extract_strided_slice %812 {offsets = [0, 0], sizes = [8, 192], strides = [1, 1]} : vector<8x256xf32> to vector<8x192xf32>
    %814 = arith.negf %813 : vector<8x192xf32>
    %815 = math.exp %814 : vector<8x192xf32>
    %cst_307 = arith.constant 1.000000e+00 : f32
    %816 = vector.broadcast %cst_307 : f32 to vector<8x192xf32>
    %817 = arith.addf %816, %815 : vector<8x192xf32>
    %818 = arith.divf %816, %817 : vector<8x192xf32>
    %819 = vector.extract_strided_slice %818 {offsets = [0, 0], sizes = [8, 64], strides = [1, 1]} : vector<8x192xf32> to vector<8x64xf32>
    %820 = vector.extract_strided_slice %818 {offsets = [0, 64], sizes = [8, 64], strides = [1, 1]} : vector<8x192xf32> to vector<8x64xf32>
    %821 = vector.extract_strided_slice %818 {offsets = [0, 128], sizes = [8, 64], strides = [1, 1]} : vector<8x192xf32> to vector<8x64xf32>
    %822 = vector.extract_strided_slice %812 {offsets = [0, 192], sizes = [8, 64], strides = [1, 1]} : vector<8x256xf32> to vector<8x64xf32>
    %823 = math.tanh %822 : vector<8x64xf32>
    %824 = arith.mulf %820, %803 : vector<8x64xf32>
    %825 = arith.mulf %819, %823 : vector<8x64xf32>
    %826 = arith.addf %824, %825 : vector<8x64xf32>
    %827 = math.tanh %826 : vector<8x64xf32>
    %828 = arith.mulf %821, %827 : vector<8x64xf32>
    %829 = arith.addf %806, %828 : vector<8x64xf32>
    %c15_i32 = arith.constant 15 : i32
    %830 = arith.index_cast %c15_i32 : i32 to index
    %c0_308 = arith.constant 0 : index
    %c0_309 = arith.constant 0 : index
    %831 = vector.load %arg11[%830, %c0_308, %c0_309] : memref<30x8x256xf32, #tpu.memory_space<vmem>>, vector<1x8x256xf32>
    %832 = vector.shape_cast %831 : vector<1x8x256xf32> to vector<8x256xf32>
    %833 = arith.truncf %828 : vector<8x64xf32> to vector<8x64xbf16>
    %cst_310 = arith.constant dense<0.000000e+00> : vector<8x256xf32>
    %834 = tpu.matmul %833, %483, %cst_310 {dimension_numbers = #tpu.dot_dimension_numbers<[1], [0], [0], [1], [0, 0, 1, 1], [], []>} : vector<8x64xbf16>, vector<64x256xbf16>, vector<8x256xf32> -> vector<8x256xf32>
    %835 = arith.addf %832, %834 : vector<8x256xf32>
    %836 = vector.extract_strided_slice %835 {offsets = [0, 0], sizes = [8, 192], strides = [1, 1]} : vector<8x256xf32> to vector<8x192xf32>
    %837 = arith.negf %836 : vector<8x192xf32>
    %838 = math.exp %837 : vector<8x192xf32>
    %cst_311 = arith.constant 1.000000e+00 : f32
    %839 = vector.broadcast %cst_311 : f32 to vector<8x192xf32>
    %840 = arith.addf %839, %838 : vector<8x192xf32>
    %841 = arith.divf %839, %840 : vector<8x192xf32>
    %842 = vector.extract_strided_slice %841 {offsets = [0, 0], sizes = [8, 64], strides = [1, 1]} : vector<8x192xf32> to vector<8x64xf32>
    %843 = vector.extract_strided_slice %841 {offsets = [0, 64], sizes = [8, 64], strides = [1, 1]} : vector<8x192xf32> to vector<8x64xf32>
    %844 = vector.extract_strided_slice %841 {offsets = [0, 128], sizes = [8, 64], strides = [1, 1]} : vector<8x192xf32> to vector<8x64xf32>
    %845 = vector.extract_strided_slice %835 {offsets = [0, 192], sizes = [8, 64], strides = [1, 1]} : vector<8x256xf32> to vector<8x64xf32>
    %846 = math.tanh %845 : vector<8x64xf32>
    %847 = arith.mulf %843, %826 : vector<8x64xf32>
    %848 = arith.mulf %842, %846 : vector<8x64xf32>
    %849 = arith.addf %847, %848 : vector<8x64xf32>
    %850 = math.tanh %849 : vector<8x64xf32>
    %851 = arith.mulf %844, %850 : vector<8x64xf32>
    %852 = arith.addf %829, %851 : vector<8x64xf32>
    %c16_i32 = arith.constant 16 : i32
    %853 = arith.index_cast %c16_i32 : i32 to index
    %c0_312 = arith.constant 0 : index
    %c0_313 = arith.constant 0 : index
    %854 = vector.load %arg11[%853, %c0_312, %c0_313] : memref<30x8x256xf32, #tpu.memory_space<vmem>>, vector<1x8x256xf32>
    %855 = vector.shape_cast %854 : vector<1x8x256xf32> to vector<8x256xf32>
    %856 = arith.truncf %851 : vector<8x64xf32> to vector<8x64xbf16>
    %cst_314 = arith.constant dense<0.000000e+00> : vector<8x256xf32>
    %857 = tpu.matmul %856, %483, %cst_314 {dimension_numbers = #tpu.dot_dimension_numbers<[1], [0], [0], [1], [0, 0, 1, 1], [], []>} : vector<8x64xbf16>, vector<64x256xbf16>, vector<8x256xf32> -> vector<8x256xf32>
    %858 = arith.addf %855, %857 : vector<8x256xf32>
    %859 = vector.extract_strided_slice %858 {offsets = [0, 0], sizes = [8, 192], strides = [1, 1]} : vector<8x256xf32> to vector<8x192xf32>
    %860 = arith.negf %859 : vector<8x192xf32>
    %861 = math.exp %860 : vector<8x192xf32>
    %cst_315 = arith.constant 1.000000e+00 : f32
    %862 = vector.broadcast %cst_315 : f32 to vector<8x192xf32>
    %863 = arith.addf %862, %861 : vector<8x192xf32>
    %864 = arith.divf %862, %863 : vector<8x192xf32>
    %865 = vector.extract_strided_slice %864 {offsets = [0, 0], sizes = [8, 64], strides = [1, 1]} : vector<8x192xf32> to vector<8x64xf32>
    %866 = vector.extract_strided_slice %864 {offsets = [0, 64], sizes = [8, 64], strides = [1, 1]} : vector<8x192xf32> to vector<8x64xf32>
    %867 = vector.extract_strided_slice %864 {offsets = [0, 128], sizes = [8, 64], strides = [1, 1]} : vector<8x192xf32> to vector<8x64xf32>
    %868 = vector.extract_strided_slice %858 {offsets = [0, 192], sizes = [8, 64], strides = [1, 1]} : vector<8x256xf32> to vector<8x64xf32>
    %869 = math.tanh %868 : vector<8x64xf32>
    %870 = arith.mulf %866, %849 : vector<8x64xf32>
    %871 = arith.mulf %865, %869 : vector<8x64xf32>
    %872 = arith.addf %870, %871 : vector<8x64xf32>
    %873 = math.tanh %872 : vector<8x64xf32>
    %874 = arith.mulf %867, %873 : vector<8x64xf32>
    %875 = arith.addf %852, %874 : vector<8x64xf32>
    %c17_i32 = arith.constant 17 : i32
    %876 = arith.index_cast %c17_i32 : i32 to index
    %c0_316 = arith.constant 0 : index
    %c0_317 = arith.constant 0 : index
    %877 = vector.load %arg11[%876, %c0_316, %c0_317] : memref<30x8x256xf32, #tpu.memory_space<vmem>>, vector<1x8x256xf32>
    %878 = vector.shape_cast %877 : vector<1x8x256xf32> to vector<8x256xf32>
    %879 = arith.truncf %874 : vector<8x64xf32> to vector<8x64xbf16>
    %cst_318 = arith.constant dense<0.000000e+00> : vector<8x256xf32>
    %880 = tpu.matmul %879, %483, %cst_318 {dimension_numbers = #tpu.dot_dimension_numbers<[1], [0], [0], [1], [0, 0, 1, 1], [], []>} : vector<8x64xbf16>, vector<64x256xbf16>, vector<8x256xf32> -> vector<8x256xf32>
    %881 = arith.addf %878, %880 : vector<8x256xf32>
    %882 = vector.extract_strided_slice %881 {offsets = [0, 0], sizes = [8, 192], strides = [1, 1]} : vector<8x256xf32> to vector<8x192xf32>
    %883 = arith.negf %882 : vector<8x192xf32>
    %884 = math.exp %883 : vector<8x192xf32>
    %cst_319 = arith.constant 1.000000e+00 : f32
    %885 = vector.broadcast %cst_319 : f32 to vector<8x192xf32>
    %886 = arith.addf %885, %884 : vector<8x192xf32>
    %887 = arith.divf %885, %886 : vector<8x192xf32>
    %888 = vector.extract_strided_slice %887 {offsets = [0, 0], sizes = [8, 64], strides = [1, 1]} : vector<8x192xf32> to vector<8x64xf32>
    %889 = vector.extract_strided_slice %887 {offsets = [0, 64], sizes = [8, 64], strides = [1, 1]} : vector<8x192xf32> to vector<8x64xf32>
    %890 = vector.extract_strided_slice %887 {offsets = [0, 128], sizes = [8, 64], strides = [1, 1]} : vector<8x192xf32> to vector<8x64xf32>
    %891 = vector.extract_strided_slice %881 {offsets = [0, 192], sizes = [8, 64], strides = [1, 1]} : vector<8x256xf32> to vector<8x64xf32>
    %892 = math.tanh %891 : vector<8x64xf32>
    %893 = arith.mulf %889, %872 : vector<8x64xf32>
    %894 = arith.mulf %888, %892 : vector<8x64xf32>
    %895 = arith.addf %893, %894 : vector<8x64xf32>
    %896 = math.tanh %895 : vector<8x64xf32>
    %897 = arith.mulf %890, %896 : vector<8x64xf32>
    %898 = arith.addf %875, %897 : vector<8x64xf32>
    %c18_i32 = arith.constant 18 : i32
    %899 = arith.index_cast %c18_i32 : i32 to index
    %c0_320 = arith.constant 0 : index
    %c0_321 = arith.constant 0 : index
    %900 = vector.load %arg11[%899, %c0_320, %c0_321] : memref<30x8x256xf32, #tpu.memory_space<vmem>>, vector<1x8x256xf32>
    %901 = vector.shape_cast %900 : vector<1x8x256xf32> to vector<8x256xf32>
    %902 = arith.truncf %897 : vector<8x64xf32> to vector<8x64xbf16>
    %cst_322 = arith.constant dense<0.000000e+00> : vector<8x256xf32>
    %903 = tpu.matmul %902, %483, %cst_322 {dimension_numbers = #tpu.dot_dimension_numbers<[1], [0], [0], [1], [0, 0, 1, 1], [], []>} : vector<8x64xbf16>, vector<64x256xbf16>, vector<8x256xf32> -> vector<8x256xf32>
    %904 = arith.addf %901, %903 : vector<8x256xf32>
    %905 = vector.extract_strided_slice %904 {offsets = [0, 0], sizes = [8, 192], strides = [1, 1]} : vector<8x256xf32> to vector<8x192xf32>
    %906 = arith.negf %905 : vector<8x192xf32>
    %907 = math.exp %906 : vector<8x192xf32>
    %cst_323 = arith.constant 1.000000e+00 : f32
    %908 = vector.broadcast %cst_323 : f32 to vector<8x192xf32>
    %909 = arith.addf %908, %907 : vector<8x192xf32>
    %910 = arith.divf %908, %909 : vector<8x192xf32>
    %911 = vector.extract_strided_slice %910 {offsets = [0, 0], sizes = [8, 64], strides = [1, 1]} : vector<8x192xf32> to vector<8x64xf32>
    %912 = vector.extract_strided_slice %910 {offsets = [0, 64], sizes = [8, 64], strides = [1, 1]} : vector<8x192xf32> to vector<8x64xf32>
    %913 = vector.extract_strided_slice %910 {offsets = [0, 128], sizes = [8, 64], strides = [1, 1]} : vector<8x192xf32> to vector<8x64xf32>
    %914 = vector.extract_strided_slice %904 {offsets = [0, 192], sizes = [8, 64], strides = [1, 1]} : vector<8x256xf32> to vector<8x64xf32>
    %915 = math.tanh %914 : vector<8x64xf32>
    %916 = arith.mulf %912, %895 : vector<8x64xf32>
    %917 = arith.mulf %911, %915 : vector<8x64xf32>
    %918 = arith.addf %916, %917 : vector<8x64xf32>
    %919 = math.tanh %918 : vector<8x64xf32>
    %920 = arith.mulf %913, %919 : vector<8x64xf32>
    %921 = arith.addf %898, %920 : vector<8x64xf32>
    %c19_i32 = arith.constant 19 : i32
    %922 = arith.index_cast %c19_i32 : i32 to index
    %c0_324 = arith.constant 0 : index
    %c0_325 = arith.constant 0 : index
    %923 = vector.load %arg11[%922, %c0_324, %c0_325] : memref<30x8x256xf32, #tpu.memory_space<vmem>>, vector<1x8x256xf32>
    %924 = vector.shape_cast %923 : vector<1x8x256xf32> to vector<8x256xf32>
    %925 = arith.truncf %920 : vector<8x64xf32> to vector<8x64xbf16>
    %cst_326 = arith.constant dense<0.000000e+00> : vector<8x256xf32>
    %926 = tpu.matmul %925, %483, %cst_326 {dimension_numbers = #tpu.dot_dimension_numbers<[1], [0], [0], [1], [0, 0, 1, 1], [], []>} : vector<8x64xbf16>, vector<64x256xbf16>, vector<8x256xf32> -> vector<8x256xf32>
    %927 = arith.addf %924, %926 : vector<8x256xf32>
    %928 = vector.extract_strided_slice %927 {offsets = [0, 0], sizes = [8, 192], strides = [1, 1]} : vector<8x256xf32> to vector<8x192xf32>
    %929 = arith.negf %928 : vector<8x192xf32>
    %930 = math.exp %929 : vector<8x192xf32>
    %cst_327 = arith.constant 1.000000e+00 : f32
    %931 = vector.broadcast %cst_327 : f32 to vector<8x192xf32>
    %932 = arith.addf %931, %930 : vector<8x192xf32>
    %933 = arith.divf %931, %932 : vector<8x192xf32>
    %934 = vector.extract_strided_slice %933 {offsets = [0, 0], sizes = [8, 64], strides = [1, 1]} : vector<8x192xf32> to vector<8x64xf32>
    %935 = vector.extract_strided_slice %933 {offsets = [0, 64], sizes = [8, 64], strides = [1, 1]} : vector<8x192xf32> to vector<8x64xf32>
    %936 = vector.extract_strided_slice %933 {offsets = [0, 128], sizes = [8, 64], strides = [1, 1]} : vector<8x192xf32> to vector<8x64xf32>
    %937 = vector.extract_strided_slice %927 {offsets = [0, 192], sizes = [8, 64], strides = [1, 1]} : vector<8x256xf32> to vector<8x64xf32>
    %938 = math.tanh %937 : vector<8x64xf32>
    %939 = arith.mulf %935, %918 : vector<8x64xf32>
    %940 = arith.mulf %934, %938 : vector<8x64xf32>
    %941 = arith.addf %939, %940 : vector<8x64xf32>
    %942 = math.tanh %941 : vector<8x64xf32>
    %943 = arith.mulf %936, %942 : vector<8x64xf32>
    %944 = arith.addf %921, %943 : vector<8x64xf32>
    %c20_i32 = arith.constant 20 : i32
    %945 = arith.index_cast %c20_i32 : i32 to index
    %c0_328 = arith.constant 0 : index
    %c0_329 = arith.constant 0 : index
    %946 = vector.load %arg11[%945, %c0_328, %c0_329] : memref<30x8x256xf32, #tpu.memory_space<vmem>>, vector<1x8x256xf32>
    %947 = vector.shape_cast %946 : vector<1x8x256xf32> to vector<8x256xf32>
    %948 = arith.truncf %943 : vector<8x64xf32> to vector<8x64xbf16>
    %cst_330 = arith.constant dense<0.000000e+00> : vector<8x256xf32>
    %949 = tpu.matmul %948, %483, %cst_330 {dimension_numbers = #tpu.dot_dimension_numbers<[1], [0], [0], [1], [0, 0, 1, 1], [], []>} : vector<8x64xbf16>, vector<64x256xbf16>, vector<8x256xf32> -> vector<8x256xf32>
    %950 = arith.addf %947, %949 : vector<8x256xf32>
    %951 = vector.extract_strided_slice %950 {offsets = [0, 0], sizes = [8, 192], strides = [1, 1]} : vector<8x256xf32> to vector<8x192xf32>
    %952 = arith.negf %951 : vector<8x192xf32>
    %953 = math.exp %952 : vector<8x192xf32>
    %cst_331 = arith.constant 1.000000e+00 : f32
    %954 = vector.broadcast %cst_331 : f32 to vector<8x192xf32>
    %955 = arith.addf %954, %953 : vector<8x192xf32>
    %956 = arith.divf %954, %955 : vector<8x192xf32>
    %957 = vector.extract_strided_slice %956 {offsets = [0, 0], sizes = [8, 64], strides = [1, 1]} : vector<8x192xf32> to vector<8x64xf32>
    %958 = vector.extract_strided_slice %956 {offsets = [0, 64], sizes = [8, 64], strides = [1, 1]} : vector<8x192xf32> to vector<8x64xf32>
    %959 = vector.extract_strided_slice %956 {offsets = [0, 128], sizes = [8, 64], strides = [1, 1]} : vector<8x192xf32> to vector<8x64xf32>
    %960 = vector.extract_strided_slice %950 {offsets = [0, 192], sizes = [8, 64], strides = [1, 1]} : vector<8x256xf32> to vector<8x64xf32>
    %961 = math.tanh %960 : vector<8x64xf32>
    %962 = arith.mulf %958, %941 : vector<8x64xf32>
    %963 = arith.mulf %957, %961 : vector<8x64xf32>
    %964 = arith.addf %962, %963 : vector<8x64xf32>
    %965 = math.tanh %964 : vector<8x64xf32>
    %966 = arith.mulf %959, %965 : vector<8x64xf32>
    %967 = arith.addf %944, %966 : vector<8x64xf32>
    %c21_i32 = arith.constant 21 : i32
    %968 = arith.index_cast %c21_i32 : i32 to index
    %c0_332 = arith.constant 0 : index
    %c0_333 = arith.constant 0 : index
    %969 = vector.load %arg11[%968, %c0_332, %c0_333] : memref<30x8x256xf32, #tpu.memory_space<vmem>>, vector<1x8x256xf32>
    %970 = vector.shape_cast %969 : vector<1x8x256xf32> to vector<8x256xf32>
    %971 = arith.truncf %966 : vector<8x64xf32> to vector<8x64xbf16>
    %cst_334 = arith.constant dense<0.000000e+00> : vector<8x256xf32>
    %972 = tpu.matmul %971, %483, %cst_334 {dimension_numbers = #tpu.dot_dimension_numbers<[1], [0], [0], [1], [0, 0, 1, 1], [], []>} : vector<8x64xbf16>, vector<64x256xbf16>, vector<8x256xf32> -> vector<8x256xf32>
    %973 = arith.addf %970, %972 : vector<8x256xf32>
    %974 = vector.extract_strided_slice %973 {offsets = [0, 0], sizes = [8, 192], strides = [1, 1]} : vector<8x256xf32> to vector<8x192xf32>
    %975 = arith.negf %974 : vector<8x192xf32>
    %976 = math.exp %975 : vector<8x192xf32>
    %cst_335 = arith.constant 1.000000e+00 : f32
    %977 = vector.broadcast %cst_335 : f32 to vector<8x192xf32>
    %978 = arith.addf %977, %976 : vector<8x192xf32>
    %979 = arith.divf %977, %978 : vector<8x192xf32>
    %980 = vector.extract_strided_slice %979 {offsets = [0, 0], sizes = [8, 64], strides = [1, 1]} : vector<8x192xf32> to vector<8x64xf32>
    %981 = vector.extract_strided_slice %979 {offsets = [0, 64], sizes = [8, 64], strides = [1, 1]} : vector<8x192xf32> to vector<8x64xf32>
    %982 = vector.extract_strided_slice %979 {offsets = [0, 128], sizes = [8, 64], strides = [1, 1]} : vector<8x192xf32> to vector<8x64xf32>
    %983 = vector.extract_strided_slice %973 {offsets = [0, 192], sizes = [8, 64], strides = [1, 1]} : vector<8x256xf32> to vector<8x64xf32>
    %984 = math.tanh %983 : vector<8x64xf32>
    %985 = arith.mulf %981, %964 : vector<8x64xf32>
    %986 = arith.mulf %980, %984 : vector<8x64xf32>
    %987 = arith.addf %985, %986 : vector<8x64xf32>
    %988 = math.tanh %987 : vector<8x64xf32>
    %989 = arith.mulf %982, %988 : vector<8x64xf32>
    %990 = arith.addf %967, %989 : vector<8x64xf32>
    %c22_i32 = arith.constant 22 : i32
    %991 = arith.index_cast %c22_i32 : i32 to index
    %c0_336 = arith.constant 0 : index
    %c0_337 = arith.constant 0 : index
    %992 = vector.load %arg11[%991, %c0_336, %c0_337] : memref<30x8x256xf32, #tpu.memory_space<vmem>>, vector<1x8x256xf32>
    %993 = vector.shape_cast %992 : vector<1x8x256xf32> to vector<8x256xf32>
    %994 = arith.truncf %989 : vector<8x64xf32> to vector<8x64xbf16>
    %cst_338 = arith.constant dense<0.000000e+00> : vector<8x256xf32>
    %995 = tpu.matmul %994, %483, %cst_338 {dimension_numbers = #tpu.dot_dimension_numbers<[1], [0], [0], [1], [0, 0, 1, 1], [], []>} : vector<8x64xbf16>, vector<64x256xbf16>, vector<8x256xf32> -> vector<8x256xf32>
    %996 = arith.addf %993, %995 : vector<8x256xf32>
    %997 = vector.extract_strided_slice %996 {offsets = [0, 0], sizes = [8, 192], strides = [1, 1]} : vector<8x256xf32> to vector<8x192xf32>
    %998 = arith.negf %997 : vector<8x192xf32>
    %999 = math.exp %998 : vector<8x192xf32>
    %cst_339 = arith.constant 1.000000e+00 : f32
    %1000 = vector.broadcast %cst_339 : f32 to vector<8x192xf32>
    %1001 = arith.addf %1000, %999 : vector<8x192xf32>
    %1002 = arith.divf %1000, %1001 : vector<8x192xf32>
    %1003 = vector.extract_strided_slice %1002 {offsets = [0, 0], sizes = [8, 64], strides = [1, 1]} : vector<8x192xf32> to vector<8x64xf32>
    %1004 = vector.extract_strided_slice %1002 {offsets = [0, 64], sizes = [8, 64], strides = [1, 1]} : vector<8x192xf32> to vector<8x64xf32>
    %1005 = vector.extract_strided_slice %1002 {offsets = [0, 128], sizes = [8, 64], strides = [1, 1]} : vector<8x192xf32> to vector<8x64xf32>
    %1006 = vector.extract_strided_slice %996 {offsets = [0, 192], sizes = [8, 64], strides = [1, 1]} : vector<8x256xf32> to vector<8x64xf32>
    %1007 = math.tanh %1006 : vector<8x64xf32>
    %1008 = arith.mulf %1004, %987 : vector<8x64xf32>
    %1009 = arith.mulf %1003, %1007 : vector<8x64xf32>
    %1010 = arith.addf %1008, %1009 : vector<8x64xf32>
    %1011 = math.tanh %1010 : vector<8x64xf32>
    %1012 = arith.mulf %1005, %1011 : vector<8x64xf32>
    %1013 = arith.addf %990, %1012 : vector<8x64xf32>
    %c23_i32 = arith.constant 23 : i32
    %1014 = arith.index_cast %c23_i32 : i32 to index
    %c0_340 = arith.constant 0 : index
    %c0_341 = arith.constant 0 : index
    %1015 = vector.load %arg11[%1014, %c0_340, %c0_341] : memref<30x8x256xf32, #tpu.memory_space<vmem>>, vector<1x8x256xf32>
    %1016 = vector.shape_cast %1015 : vector<1x8x256xf32> to vector<8x256xf32>
    %1017 = arith.truncf %1012 : vector<8x64xf32> to vector<8x64xbf16>
    %cst_342 = arith.constant dense<0.000000e+00> : vector<8x256xf32>
    %1018 = tpu.matmul %1017, %483, %cst_342 {dimension_numbers = #tpu.dot_dimension_numbers<[1], [0], [0], [1], [0, 0, 1, 1], [], []>} : vector<8x64xbf16>, vector<64x256xbf16>, vector<8x256xf32> -> vector<8x256xf32>
    %1019 = arith.addf %1016, %1018 : vector<8x256xf32>
    %1020 = vector.extract_strided_slice %1019 {offsets = [0, 0], sizes = [8, 192], strides = [1, 1]} : vector<8x256xf32> to vector<8x192xf32>
    %1021 = arith.negf %1020 : vector<8x192xf32>
    %1022 = math.exp %1021 : vector<8x192xf32>
    %cst_343 = arith.constant 1.000000e+00 : f32
    %1023 = vector.broadcast %cst_343 : f32 to vector<8x192xf32>
    %1024 = arith.addf %1023, %1022 : vector<8x192xf32>
    %1025 = arith.divf %1023, %1024 : vector<8x192xf32>
    %1026 = vector.extract_strided_slice %1025 {offsets = [0, 0], sizes = [8, 64], strides = [1, 1]} : vector<8x192xf32> to vector<8x64xf32>
    %1027 = vector.extract_strided_slice %1025 {offsets = [0, 64], sizes = [8, 64], strides = [1, 1]} : vector<8x192xf32> to vector<8x64xf32>
    %1028 = vector.extract_strided_slice %1025 {offsets = [0, 128], sizes = [8, 64], strides = [1, 1]} : vector<8x192xf32> to vector<8x64xf32>
    %1029 = vector.extract_strided_slice %1019 {offsets = [0, 192], sizes = [8, 64], strides = [1, 1]} : vector<8x256xf32> to vector<8x64xf32>
    %1030 = math.tanh %1029 : vector<8x64xf32>
    %1031 = arith.mulf %1027, %1010 : vector<8x64xf32>
    %1032 = arith.mulf %1026, %1030 : vector<8x64xf32>
    %1033 = arith.addf %1031, %1032 : vector<8x64xf32>
    %1034 = math.tanh %1033 : vector<8x64xf32>
    %1035 = arith.mulf %1028, %1034 : vector<8x64xf32>
    %1036 = arith.addf %1013, %1035 : vector<8x64xf32>
    %c24_i32 = arith.constant 24 : i32
    %1037 = arith.index_cast %c24_i32 : i32 to index
    %c0_344 = arith.constant 0 : index
    %c0_345 = arith.constant 0 : index
    %1038 = vector.load %arg11[%1037, %c0_344, %c0_345] : memref<30x8x256xf32, #tpu.memory_space<vmem>>, vector<1x8x256xf32>
    %1039 = vector.shape_cast %1038 : vector<1x8x256xf32> to vector<8x256xf32>
    %1040 = arith.truncf %1035 : vector<8x64xf32> to vector<8x64xbf16>
    %cst_346 = arith.constant dense<0.000000e+00> : vector<8x256xf32>
    %1041 = tpu.matmul %1040, %483, %cst_346 {dimension_numbers = #tpu.dot_dimension_numbers<[1], [0], [0], [1], [0, 0, 1, 1], [], []>} : vector<8x64xbf16>, vector<64x256xbf16>, vector<8x256xf32> -> vector<8x256xf32>
    %1042 = arith.addf %1039, %1041 : vector<8x256xf32>
    %1043 = vector.extract_strided_slice %1042 {offsets = [0, 0], sizes = [8, 192], strides = [1, 1]} : vector<8x256xf32> to vector<8x192xf32>
    %1044 = arith.negf %1043 : vector<8x192xf32>
    %1045 = math.exp %1044 : vector<8x192xf32>
    %cst_347 = arith.constant 1.000000e+00 : f32
    %1046 = vector.broadcast %cst_347 : f32 to vector<8x192xf32>
    %1047 = arith.addf %1046, %1045 : vector<8x192xf32>
    %1048 = arith.divf %1046, %1047 : vector<8x192xf32>
    %1049 = vector.extract_strided_slice %1048 {offsets = [0, 0], sizes = [8, 64], strides = [1, 1]} : vector<8x192xf32> to vector<8x64xf32>
    %1050 = vector.extract_strided_slice %1048 {offsets = [0, 64], sizes = [8, 64], strides = [1, 1]} : vector<8x192xf32> to vector<8x64xf32>
    %1051 = vector.extract_strided_slice %1048 {offsets = [0, 128], sizes = [8, 64], strides = [1, 1]} : vector<8x192xf32> to vector<8x64xf32>
    %1052 = vector.extract_strided_slice %1042 {offsets = [0, 192], sizes = [8, 64], strides = [1, 1]} : vector<8x256xf32> to vector<8x64xf32>
    %1053 = math.tanh %1052 : vector<8x64xf32>
    %1054 = arith.mulf %1050, %1033 : vector<8x64xf32>
    %1055 = arith.mulf %1049, %1053 : vector<8x64xf32>
    %1056 = arith.addf %1054, %1055 : vector<8x64xf32>
    %1057 = math.tanh %1056 : vector<8x64xf32>
    %1058 = arith.mulf %1051, %1057 : vector<8x64xf32>
    %1059 = arith.addf %1036, %1058 : vector<8x64xf32>
    %c25_i32 = arith.constant 25 : i32
    %1060 = arith.index_cast %c25_i32 : i32 to index
    %c0_348 = arith.constant 0 : index
    %c0_349 = arith.constant 0 : index
    %1061 = vector.load %arg11[%1060, %c0_348, %c0_349] : memref<30x8x256xf32, #tpu.memory_space<vmem>>, vector<1x8x256xf32>
    %1062 = vector.shape_cast %1061 : vector<1x8x256xf32> to vector<8x256xf32>
    %1063 = arith.truncf %1058 : vector<8x64xf32> to vector<8x64xbf16>
    %cst_350 = arith.constant dense<0.000000e+00> : vector<8x256xf32>
    %1064 = tpu.matmul %1063, %483, %cst_350 {dimension_numbers = #tpu.dot_dimension_numbers<[1], [0], [0], [1], [0, 0, 1, 1], [], []>} : vector<8x64xbf16>, vector<64x256xbf16>, vector<8x256xf32> -> vector<8x256xf32>
    %1065 = arith.addf %1062, %1064 : vector<8x256xf32>
    %1066 = vector.extract_strided_slice %1065 {offsets = [0, 0], sizes = [8, 192], strides = [1, 1]} : vector<8x256xf32> to vector<8x192xf32>
    %1067 = arith.negf %1066 : vector<8x192xf32>
    %1068 = math.exp %1067 : vector<8x192xf32>
    %cst_351 = arith.constant 1.000000e+00 : f32
    %1069 = vector.broadcast %cst_351 : f32 to vector<8x192xf32>
    %1070 = arith.addf %1069, %1068 : vector<8x192xf32>
    %1071 = arith.divf %1069, %1070 : vector<8x192xf32>
    %1072 = vector.extract_strided_slice %1071 {offsets = [0, 0], sizes = [8, 64], strides = [1, 1]} : vector<8x192xf32> to vector<8x64xf32>
    %1073 = vector.extract_strided_slice %1071 {offsets = [0, 64], sizes = [8, 64], strides = [1, 1]} : vector<8x192xf32> to vector<8x64xf32>
    %1074 = vector.extract_strided_slice %1071 {offsets = [0, 128], sizes = [8, 64], strides = [1, 1]} : vector<8x192xf32> to vector<8x64xf32>
    %1075 = vector.extract_strided_slice %1065 {offsets = [0, 192], sizes = [8, 64], strides = [1, 1]} : vector<8x256xf32> to vector<8x64xf32>
    %1076 = math.tanh %1075 : vector<8x64xf32>
    %1077 = arith.mulf %1073, %1056 : vector<8x64xf32>
    %1078 = arith.mulf %1072, %1076 : vector<8x64xf32>
    %1079 = arith.addf %1077, %1078 : vector<8x64xf32>
    %1080 = math.tanh %1079 : vector<8x64xf32>
    %1081 = arith.mulf %1074, %1080 : vector<8x64xf32>
    %1082 = arith.addf %1059, %1081 : vector<8x64xf32>
    %c26_i32 = arith.constant 26 : i32
    %1083 = arith.index_cast %c26_i32 : i32 to index
    %c0_352 = arith.constant 0 : index
    %c0_353 = arith.constant 0 : index
    %1084 = vector.load %arg11[%1083, %c0_352, %c0_353] : memref<30x8x256xf32, #tpu.memory_space<vmem>>, vector<1x8x256xf32>
    %1085 = vector.shape_cast %1084 : vector<1x8x256xf32> to vector<8x256xf32>
    %1086 = arith.truncf %1081 : vector<8x64xf32> to vector<8x64xbf16>
    %cst_354 = arith.constant dense<0.000000e+00> : vector<8x256xf32>
    %1087 = tpu.matmul %1086, %483, %cst_354 {dimension_numbers = #tpu.dot_dimension_numbers<[1], [0], [0], [1], [0, 0, 1, 1], [], []>} : vector<8x64xbf16>, vector<64x256xbf16>, vector<8x256xf32> -> vector<8x256xf32>
    %1088 = arith.addf %1085, %1087 : vector<8x256xf32>
    %1089 = vector.extract_strided_slice %1088 {offsets = [0, 0], sizes = [8, 192], strides = [1, 1]} : vector<8x256xf32> to vector<8x192xf32>
    %1090 = arith.negf %1089 : vector<8x192xf32>
    %1091 = math.exp %1090 : vector<8x192xf32>
    %cst_355 = arith.constant 1.000000e+00 : f32
    %1092 = vector.broadcast %cst_355 : f32 to vector<8x192xf32>
    %1093 = arith.addf %1092, %1091 : vector<8x192xf32>
    %1094 = arith.divf %1092, %1093 : vector<8x192xf32>
    %1095 = vector.extract_strided_slice %1094 {offsets = [0, 0], sizes = [8, 64], strides = [1, 1]} : vector<8x192xf32> to vector<8x64xf32>
    %1096 = vector.extract_strided_slice %1094 {offsets = [0, 64], sizes = [8, 64], strides = [1, 1]} : vector<8x192xf32> to vector<8x64xf32>
    %1097 = vector.extract_strided_slice %1094 {offsets = [0, 128], sizes = [8, 64], strides = [1, 1]} : vector<8x192xf32> to vector<8x64xf32>
    %1098 = vector.extract_strided_slice %1088 {offsets = [0, 192], sizes = [8, 64], strides = [1, 1]} : vector<8x256xf32> to vector<8x64xf32>
    %1099 = math.tanh %1098 : vector<8x64xf32>
    %1100 = arith.mulf %1096, %1079 : vector<8x64xf32>
    %1101 = arith.mulf %1095, %1099 : vector<8x64xf32>
    %1102 = arith.addf %1100, %1101 : vector<8x64xf32>
    %1103 = math.tanh %1102 : vector<8x64xf32>
    %1104 = arith.mulf %1097, %1103 : vector<8x64xf32>
    %1105 = arith.addf %1082, %1104 : vector<8x64xf32>
    %c27_i32 = arith.constant 27 : i32
    %1106 = arith.index_cast %c27_i32 : i32 to index
    %c0_356 = arith.constant 0 : index
    %c0_357 = arith.constant 0 : index
    %1107 = vector.load %arg11[%1106, %c0_356, %c0_357] : memref<30x8x256xf32, #tpu.memory_space<vmem>>, vector<1x8x256xf32>
    %1108 = vector.shape_cast %1107 : vector<1x8x256xf32> to vector<8x256xf32>
    %1109 = arith.truncf %1104 : vector<8x64xf32> to vector<8x64xbf16>
    %cst_358 = arith.constant dense<0.000000e+00> : vector<8x256xf32>
    %1110 = tpu.matmul %1109, %483, %cst_358 {dimension_numbers = #tpu.dot_dimension_numbers<[1], [0], [0], [1], [0, 0, 1, 1], [], []>} : vector<8x64xbf16>, vector<64x256xbf16>, vector<8x256xf32> -> vector<8x256xf32>
    %1111 = arith.addf %1108, %1110 : vector<8x256xf32>
    %1112 = vector.extract_strided_slice %1111 {offsets = [0, 0], sizes = [8, 192], strides = [1, 1]} : vector<8x256xf32> to vector<8x192xf32>
    %1113 = arith.negf %1112 : vector<8x192xf32>
    %1114 = math.exp %1113 : vector<8x192xf32>
    %cst_359 = arith.constant 1.000000e+00 : f32
    %1115 = vector.broadcast %cst_359 : f32 to vector<8x192xf32>
    %1116 = arith.addf %1115, %1114 : vector<8x192xf32>
    %1117 = arith.divf %1115, %1116 : vector<8x192xf32>
    %1118 = vector.extract_strided_slice %1117 {offsets = [0, 0], sizes = [8, 64], strides = [1, 1]} : vector<8x192xf32> to vector<8x64xf32>
    %1119 = vector.extract_strided_slice %1117 {offsets = [0, 64], sizes = [8, 64], strides = [1, 1]} : vector<8x192xf32> to vector<8x64xf32>
    %1120 = vector.extract_strided_slice %1117 {offsets = [0, 128], sizes = [8, 64], strides = [1, 1]} : vector<8x192xf32> to vector<8x64xf32>
    %1121 = vector.extract_strided_slice %1111 {offsets = [0, 192], sizes = [8, 64], strides = [1, 1]} : vector<8x256xf32> to vector<8x64xf32>
    %1122 = math.tanh %1121 : vector<8x64xf32>
    %1123 = arith.mulf %1119, %1102 : vector<8x64xf32>
    %1124 = arith.mulf %1118, %1122 : vector<8x64xf32>
    %1125 = arith.addf %1123, %1124 : vector<8x64xf32>
    %1126 = math.tanh %1125 : vector<8x64xf32>
    %1127 = arith.mulf %1120, %1126 : vector<8x64xf32>
    %1128 = arith.addf %1105, %1127 : vector<8x64xf32>
    %c28_i32 = arith.constant 28 : i32
    %1129 = arith.index_cast %c28_i32 : i32 to index
    %c0_360 = arith.constant 0 : index
    %c0_361 = arith.constant 0 : index
    %1130 = vector.load %arg11[%1129, %c0_360, %c0_361] : memref<30x8x256xf32, #tpu.memory_space<vmem>>, vector<1x8x256xf32>
    %1131 = vector.shape_cast %1130 : vector<1x8x256xf32> to vector<8x256xf32>
    %1132 = arith.truncf %1127 : vector<8x64xf32> to vector<8x64xbf16>
    %cst_362 = arith.constant dense<0.000000e+00> : vector<8x256xf32>
    %1133 = tpu.matmul %1132, %483, %cst_362 {dimension_numbers = #tpu.dot_dimension_numbers<[1], [0], [0], [1], [0, 0, 1, 1], [], []>} : vector<8x64xbf16>, vector<64x256xbf16>, vector<8x256xf32> -> vector<8x256xf32>
    %1134 = arith.addf %1131, %1133 : vector<8x256xf32>
    %1135 = vector.extract_strided_slice %1134 {offsets = [0, 0], sizes = [8, 192], strides = [1, 1]} : vector<8x256xf32> to vector<8x192xf32>
    %1136 = arith.negf %1135 : vector<8x192xf32>
    %1137 = math.exp %1136 : vector<8x192xf32>
    %cst_363 = arith.constant 1.000000e+00 : f32
    %1138 = vector.broadcast %cst_363 : f32 to vector<8x192xf32>
    %1139 = arith.addf %1138, %1137 : vector<8x192xf32>
    %1140 = arith.divf %1138, %1139 : vector<8x192xf32>
    %1141 = vector.extract_strided_slice %1140 {offsets = [0, 0], sizes = [8, 64], strides = [1, 1]} : vector<8x192xf32> to vector<8x64xf32>
    %1142 = vector.extract_strided_slice %1140 {offsets = [0, 64], sizes = [8, 64], strides = [1, 1]} : vector<8x192xf32> to vector<8x64xf32>
    %1143 = vector.extract_strided_slice %1140 {offsets = [0, 128], sizes = [8, 64], strides = [1, 1]} : vector<8x192xf32> to vector<8x64xf32>
    %1144 = vector.extract_strided_slice %1134 {offsets = [0, 192], sizes = [8, 64], strides = [1, 1]} : vector<8x256xf32> to vector<8x64xf32>
    %1145 = math.tanh %1144 : vector<8x64xf32>
    %1146 = arith.mulf %1142, %1125 : vector<8x64xf32>
    %1147 = arith.mulf %1141, %1145 : vector<8x64xf32>
    %1148 = arith.addf %1146, %1147 : vector<8x64xf32>
    %1149 = math.tanh %1148 : vector<8x64xf32>
    %1150 = arith.mulf %1143, %1149 : vector<8x64xf32>
    %1151 = arith.addf %1128, %1150 : vector<8x64xf32>
    %c29_i32 = arith.constant 29 : i32
    %1152 = arith.index_cast %c29_i32 : i32 to index
    %c0_364 = arith.constant 0 : index
    %c0_365 = arith.constant 0 : index
    %1153 = vector.load %arg11[%1152, %c0_364, %c0_365] : memref<30x8x256xf32, #tpu.memory_space<vmem>>, vector<1x8x256xf32>
    %1154 = vector.shape_cast %1153 : vector<1x8x256xf32> to vector<8x256xf32>
    %1155 = arith.truncf %1150 : vector<8x64xf32> to vector<8x64xbf16>
    %cst_366 = arith.constant dense<0.000000e+00> : vector<8x256xf32>
    %1156 = tpu.matmul %1155, %483, %cst_366 {dimension_numbers = #tpu.dot_dimension_numbers<[1], [0], [0], [1], [0, 0, 1, 1], [], []>} : vector<8x64xbf16>, vector<64x256xbf16>, vector<8x256xf32> -> vector<8x256xf32>
    %1157 = arith.addf %1154, %1156 : vector<8x256xf32>
    %1158 = vector.extract_strided_slice %1157 {offsets = [0, 0], sizes = [8, 192], strides = [1, 1]} : vector<8x256xf32> to vector<8x192xf32>
    %1159 = arith.negf %1158 : vector<8x192xf32>
    %1160 = math.exp %1159 : vector<8x192xf32>
    %cst_367 = arith.constant 1.000000e+00 : f32
    %1161 = vector.broadcast %cst_367 : f32 to vector<8x192xf32>
    %1162 = arith.addf %1161, %1160 : vector<8x192xf32>
    %1163 = arith.divf %1161, %1162 : vector<8x192xf32>
    %1164 = vector.extract_strided_slice %1163 {offsets = [0, 0], sizes = [8, 64], strides = [1, 1]} : vector<8x192xf32> to vector<8x64xf32>
    %1165 = vector.extract_strided_slice %1163 {offsets = [0, 64], sizes = [8, 64], strides = [1, 1]} : vector<8x192xf32> to vector<8x64xf32>
    %1166 = vector.extract_strided_slice %1163 {offsets = [0, 128], sizes = [8, 64], strides = [1, 1]} : vector<8x192xf32> to vector<8x64xf32>
    %1167 = vector.extract_strided_slice %1157 {offsets = [0, 192], sizes = [8, 64], strides = [1, 1]} : vector<8x256xf32> to vector<8x64xf32>
    %1168 = math.tanh %1167 : vector<8x64xf32>
    %1169 = arith.mulf %1165, %1148 : vector<8x64xf32>
    %1170 = arith.mulf %1164, %1168 : vector<8x64xf32>
    %1171 = arith.addf %1169, %1170 : vector<8x64xf32>
    %1172 = math.tanh %1171 : vector<8x64xf32>
    %1173 = arith.mulf %1166, %1172 : vector<8x64xf32>
    %1174 = arith.addf %1151, %1173 : vector<8x64xf32>
    %c30_i32 = arith.constant 30 : i32
    %c0_368 = arith.constant 0 : index
    %c0_369 = arith.constant 0 : index
    %1175 = vector.load %arg6[%c0_368, %c0_369] : memref<64x256xbf16, #tpu.memory_space<vmem>>, vector<64x256xbf16>
    %1176 = arith.truncf %1174 : vector<8x64xf32> to vector<8x64xbf16>
    %c0_370 = arith.constant 0 : index
    %c0_371 = arith.constant 0 : index
    %1177 = vector.load %arg5[%c0_370, %c0_371] : memref<64x256xbf16, #tpu.memory_space<vmem>>, vector<64x256xbf16>
    %cst_372 = arith.constant dense<0.000000e+00> : vector<8x256xf32>
    %1178 = tpu.matmul %1176, %1177, %cst_372 {dimension_numbers = #tpu.dot_dimension_numbers<[1], [0], [0], [1], [0, 0, 1, 1], [], []>} : vector<8x64xbf16>, vector<64x256xbf16>, vector<8x256xf32> -> vector<8x256xf32>
    %c0_373 = arith.constant 0 : index
    %c0_374 = arith.constant 0 : index
    %1179 = vector.load %arg7[%c0_373, %c0_374] : memref<1x256xf32, #tpu.memory_space<vmem>>, vector<1x256xf32>
    %1180 = vector.broadcast %1179 : vector<1x256xf32> to vector<8x256xf32>
    %1181 = arith.addf %1178, %1180 : vector<8x256xf32>
    %cst_375 = arith.constant 0.000000e+00 : f32
    %1182 = vector.broadcast %cst_375 : f32 to vector<8x64xf32>
    %cst_376 = arith.constant 0.000000e+00 : f32
    %1183 = vector.broadcast %cst_376 : f32 to vector<8x64xf32>
    %1184 = arith.truncf %1182 : vector<8x64xf32> to vector<8x64xbf16>
    %cst_377 = arith.constant dense<0.000000e+00> : vector<8x256xf32>
    %1185 = tpu.matmul %1184, %1175, %cst_377 {dimension_numbers = #tpu.dot_dimension_numbers<[1], [0], [0], [1], [0, 0, 1, 1], [], []>} : vector<8x64xbf16>, vector<64x256xbf16>, vector<8x256xf32> -> vector<8x256xf32>
    %1186 = arith.addf %1181, %1185 : vector<8x256xf32>
    %1187 = vector.extract_strided_slice %1186 {offsets = [0, 0], sizes = [8, 192], strides = [1, 1]} : vector<8x256xf32> to vector<8x192xf32>
    %1188 = arith.negf %1187 : vector<8x192xf32>
    %1189 = math.exp %1188 : vector<8x192xf32>
    %cst_378 = arith.constant 1.000000e+00 : f32
    %1190 = vector.broadcast %cst_378 : f32 to vector<8x192xf32>
    %1191 = arith.addf %1190, %1189 : vector<8x192xf32>
    %1192 = arith.divf %1190, %1191 : vector<8x192xf32>
    %1193 = vector.extract_strided_slice %1192 {offsets = [0, 0], sizes = [8, 64], strides = [1, 1]} : vector<8x192xf32> to vector<8x64xf32>
    %1194 = vector.extract_strided_slice %1192 {offsets = [0, 64], sizes = [8, 64], strides = [1, 1]} : vector<8x192xf32> to vector<8x64xf32>
    %1195 = vector.extract_strided_slice %1192 {offsets = [0, 128], sizes = [8, 64], strides = [1, 1]} : vector<8x192xf32> to vector<8x64xf32>
    %1196 = vector.extract_strided_slice %1186 {offsets = [0, 192], sizes = [8, 64], strides = [1, 1]} : vector<8x256xf32> to vector<8x64xf32>
    %1197 = math.tanh %1196 : vector<8x64xf32>
    %1198 = arith.mulf %1194, %1183 : vector<8x64xf32>
    %1199 = arith.mulf %1193, %1197 : vector<8x64xf32>
    %1200 = arith.addf %1198, %1199 : vector<8x64xf32>
    %1201 = math.tanh %1200 : vector<8x64xf32>
    %1202 = arith.mulf %1195, %1201 : vector<8x64xf32>
    %1203 = arith.truncf %1202 : vector<8x64xf32> to vector<8x64xbf16>
    %cst_379 = arith.constant dense<0.000000e+00> : vector<8x256xf32>
    %1204 = tpu.matmul %1203, %1175, %cst_379 {dimension_numbers = #tpu.dot_dimension_numbers<[1], [0], [0], [1], [0, 0, 1, 1], [], []>} : vector<8x64xbf16>, vector<64x256xbf16>, vector<8x256xf32> -> vector<8x256xf32>
    %1205 = arith.addf %1181, %1204 : vector<8x256xf32>
    %1206 = vector.extract_strided_slice %1205 {offsets = [0, 0], sizes = [8, 192], strides = [1, 1]} : vector<8x256xf32> to vector<8x192xf32>
    %1207 = arith.negf %1206 : vector<8x192xf32>
    %1208 = math.exp %1207 : vector<8x192xf32>
    %cst_380 = arith.constant 1.000000e+00 : f32
    %1209 = vector.broadcast %cst_380 : f32 to vector<8x192xf32>
    %1210 = arith.addf %1209, %1208 : vector<8x192xf32>
    %1211 = arith.divf %1209, %1210 : vector<8x192xf32>
    %1212 = vector.extract_strided_slice %1211 {offsets = [0, 0], sizes = [8, 64], strides = [1, 1]} : vector<8x192xf32> to vector<8x64xf32>
    %1213 = vector.extract_strided_slice %1211 {offsets = [0, 64], sizes = [8, 64], strides = [1, 1]} : vector<8x192xf32> to vector<8x64xf32>
    %1214 = vector.extract_strided_slice %1211 {offsets = [0, 128], sizes = [8, 64], strides = [1, 1]} : vector<8x192xf32> to vector<8x64xf32>
    %1215 = vector.extract_strided_slice %1205 {offsets = [0, 192], sizes = [8, 64], strides = [1, 1]} : vector<8x256xf32> to vector<8x64xf32>
    %1216 = math.tanh %1215 : vector<8x64xf32>
    %1217 = arith.mulf %1213, %1200 : vector<8x64xf32>
    %1218 = arith.mulf %1212, %1216 : vector<8x64xf32>
    %1219 = arith.addf %1217, %1218 : vector<8x64xf32>
    %1220 = math.tanh %1219 : vector<8x64xf32>
    %1221 = arith.mulf %1214, %1220 : vector<8x64xf32>
    %1222 = arith.truncf %1221 : vector<8x64xf32> to vector<8x64xbf16>
    %cst_381 = arith.constant dense<0.000000e+00> : vector<8x256xf32>
    %1223 = tpu.matmul %1222, %1175, %cst_381 {dimension_numbers = #tpu.dot_dimension_numbers<[1], [0], [0], [1], [0, 0, 1, 1], [], []>} : vector<8x64xbf16>, vector<64x256xbf16>, vector<8x256xf32> -> vector<8x256xf32>
    %1224 = arith.addf %1181, %1223 : vector<8x256xf32>
    %1225 = vector.extract_strided_slice %1224 {offsets = [0, 0], sizes = [8, 192], strides = [1, 1]} : vector<8x256xf32> to vector<8x192xf32>
    %1226 = arith.negf %1225 : vector<8x192xf32>
    %1227 = math.exp %1226 : vector<8x192xf32>
    %cst_382 = arith.constant 1.000000e+00 : f32
    %1228 = vector.broadcast %cst_382 : f32 to vector<8x192xf32>
    %1229 = arith.addf %1228, %1227 : vector<8x192xf32>
    %1230 = arith.divf %1228, %1229 : vector<8x192xf32>
    %1231 = vector.extract_strided_slice %1230 {offsets = [0, 0], sizes = [8, 64], strides = [1, 1]} : vector<8x192xf32> to vector<8x64xf32>
    %1232 = vector.extract_strided_slice %1230 {offsets = [0, 64], sizes = [8, 64], strides = [1, 1]} : vector<8x192xf32> to vector<8x64xf32>
    %1233 = vector.extract_strided_slice %1230 {offsets = [0, 128], sizes = [8, 64], strides = [1, 1]} : vector<8x192xf32> to vector<8x64xf32>
    %1234 = vector.extract_strided_slice %1224 {offsets = [0, 192], sizes = [8, 64], strides = [1, 1]} : vector<8x256xf32> to vector<8x64xf32>
    %1235 = math.tanh %1234 : vector<8x64xf32>
    %1236 = arith.mulf %1232, %1219 : vector<8x64xf32>
    %1237 = arith.mulf %1231, %1235 : vector<8x64xf32>
    %1238 = arith.addf %1236, %1237 : vector<8x64xf32>
    %1239 = math.tanh %1238 : vector<8x64xf32>
    %1240 = arith.mulf %1233, %1239 : vector<8x64xf32>
    %1241 = arith.truncf %1240 : vector<8x64xf32> to vector<8x64xbf16>
    %cst_383 = arith.constant dense<0.000000e+00> : vector<8x256xf32>
    %1242 = tpu.matmul %1241, %1175, %cst_383 {dimension_numbers = #tpu.dot_dimension_numbers<[1], [0], [0], [1], [0, 0, 1, 1], [], []>} : vector<8x64xbf16>, vector<64x256xbf16>, vector<8x256xf32> -> vector<8x256xf32>
    %1243 = arith.addf %1181, %1242 : vector<8x256xf32>
    %1244 = vector.extract_strided_slice %1243 {offsets = [0, 0], sizes = [8, 192], strides = [1, 1]} : vector<8x256xf32> to vector<8x192xf32>
    %1245 = arith.negf %1244 : vector<8x192xf32>
    %1246 = math.exp %1245 : vector<8x192xf32>
    %cst_384 = arith.constant 1.000000e+00 : f32
    %1247 = vector.broadcast %cst_384 : f32 to vector<8x192xf32>
    %1248 = arith.addf %1247, %1246 : vector<8x192xf32>
    %1249 = arith.divf %1247, %1248 : vector<8x192xf32>
    %1250 = vector.extract_strided_slice %1249 {offsets = [0, 0], sizes = [8, 64], strides = [1, 1]} : vector<8x192xf32> to vector<8x64xf32>
    %1251 = vector.extract_strided_slice %1249 {offsets = [0, 64], sizes = [8, 64], strides = [1, 1]} : vector<8x192xf32> to vector<8x64xf32>
    %1252 = vector.extract_strided_slice %1249 {offsets = [0, 128], sizes = [8, 64], strides = [1, 1]} : vector<8x192xf32> to vector<8x64xf32>
    %1253 = vector.extract_strided_slice %1243 {offsets = [0, 192], sizes = [8, 64], strides = [1, 1]} : vector<8x256xf32> to vector<8x64xf32>
    %1254 = math.tanh %1253 : vector<8x64xf32>
    %1255 = arith.mulf %1251, %1238 : vector<8x64xf32>
    %1256 = arith.mulf %1250, %1254 : vector<8x64xf32>
    %1257 = arith.addf %1255, %1256 : vector<8x64xf32>
    %1258 = math.tanh %1257 : vector<8x64xf32>
    %1259 = arith.mulf %1252, %1258 : vector<8x64xf32>
    %1260 = arith.truncf %1259 : vector<8x64xf32> to vector<8x64xbf16>
    %cst_385 = arith.constant dense<0.000000e+00> : vector<8x256xf32>
    %1261 = tpu.matmul %1260, %1175, %cst_385 {dimension_numbers = #tpu.dot_dimension_numbers<[1], [0], [0], [1], [0, 0, 1, 1], [], []>} : vector<8x64xbf16>, vector<64x256xbf16>, vector<8x256xf32> -> vector<8x256xf32>
    %1262 = arith.addf %1181, %1261 : vector<8x256xf32>
    %1263 = vector.extract_strided_slice %1262 {offsets = [0, 0], sizes = [8, 192], strides = [1, 1]} : vector<8x256xf32> to vector<8x192xf32>
    %1264 = arith.negf %1263 : vector<8x192xf32>
    %1265 = math.exp %1264 : vector<8x192xf32>
    %cst_386 = arith.constant 1.000000e+00 : f32
    %1266 = vector.broadcast %cst_386 : f32 to vector<8x192xf32>
    %1267 = arith.addf %1266, %1265 : vector<8x192xf32>
    %1268 = arith.divf %1266, %1267 : vector<8x192xf32>
    %1269 = vector.extract_strided_slice %1268 {offsets = [0, 0], sizes = [8, 64], strides = [1, 1]} : vector<8x192xf32> to vector<8x64xf32>
    %1270 = vector.extract_strided_slice %1268 {offsets = [0, 64], sizes = [8, 64], strides = [1, 1]} : vector<8x192xf32> to vector<8x64xf32>
    %1271 = vector.extract_strided_slice %1268 {offsets = [0, 128], sizes = [8, 64], strides = [1, 1]} : vector<8x192xf32> to vector<8x64xf32>
    %1272 = vector.extract_strided_slice %1262 {offsets = [0, 192], sizes = [8, 64], strides = [1, 1]} : vector<8x256xf32> to vector<8x64xf32>
    %1273 = math.tanh %1272 : vector<8x64xf32>
    %1274 = arith.mulf %1270, %1257 : vector<8x64xf32>
    %1275 = arith.mulf %1269, %1273 : vector<8x64xf32>
    %1276 = arith.addf %1274, %1275 : vector<8x64xf32>
    %1277 = math.tanh %1276 : vector<8x64xf32>
    %1278 = arith.mulf %1271, %1277 : vector<8x64xf32>
    %1279 = arith.truncf %1278 : vector<8x64xf32> to vector<8x64xbf16>
    %cst_387 = arith.constant dense<0.000000e+00> : vector<8x256xf32>
    %1280 = tpu.matmul %1279, %1175, %cst_387 {dimension_numbers = #tpu.dot_dimension_numbers<[1], [0], [0], [1], [0, 0, 1, 1], [], []>} : vector<8x64xbf16>, vector<64x256xbf16>, vector<8x256xf32> -> vector<8x256xf32>
    %1281 = arith.addf %1181, %1280 : vector<8x256xf32>
    %1282 = vector.extract_strided_slice %1281 {offsets = [0, 0], sizes = [8, 192], strides = [1, 1]} : vector<8x256xf32> to vector<8x192xf32>
    %1283 = arith.negf %1282 : vector<8x192xf32>
    %1284 = math.exp %1283 : vector<8x192xf32>
    %cst_388 = arith.constant 1.000000e+00 : f32
    %1285 = vector.broadcast %cst_388 : f32 to vector<8x192xf32>
    %1286 = arith.addf %1285, %1284 : vector<8x192xf32>
    %1287 = arith.divf %1285, %1286 : vector<8x192xf32>
    %1288 = vector.extract_strided_slice %1287 {offsets = [0, 0], sizes = [8, 64], strides = [1, 1]} : vector<8x192xf32> to vector<8x64xf32>
    %1289 = vector.extract_strided_slice %1287 {offsets = [0, 64], sizes = [8, 64], strides = [1, 1]} : vector<8x192xf32> to vector<8x64xf32>
    %1290 = vector.extract_strided_slice %1287 {offsets = [0, 128], sizes = [8, 64], strides = [1, 1]} : vector<8x192xf32> to vector<8x64xf32>
    %1291 = vector.extract_strided_slice %1281 {offsets = [0, 192], sizes = [8, 64], strides = [1, 1]} : vector<8x256xf32> to vector<8x64xf32>
    %1292 = math.tanh %1291 : vector<8x64xf32>
    %1293 = arith.mulf %1289, %1276 : vector<8x64xf32>
    %1294 = arith.mulf %1288, %1292 : vector<8x64xf32>
    %1295 = arith.addf %1293, %1294 : vector<8x64xf32>
    %1296 = math.tanh %1295 : vector<8x64xf32>
    %1297 = arith.mulf %1290, %1296 : vector<8x64xf32>
    %1298 = arith.truncf %1297 : vector<8x64xf32> to vector<8x64xbf16>
    %cst_389 = arith.constant dense<0.000000e+00> : vector<8x256xf32>
    %1299 = tpu.matmul %1298, %1175, %cst_389 {dimension_numbers = #tpu.dot_dimension_numbers<[1], [0], [0], [1], [0, 0, 1, 1], [], []>} : vector<8x64xbf16>, vector<64x256xbf16>, vector<8x256xf32> -> vector<8x256xf32>
    %1300 = arith.addf %1181, %1299 : vector<8x256xf32>
    %1301 = vector.extract_strided_slice %1300 {offsets = [0, 0], sizes = [8, 192], strides = [1, 1]} : vector<8x256xf32> to vector<8x192xf32>
    %1302 = arith.negf %1301 : vector<8x192xf32>
    %1303 = math.exp %1302 : vector<8x192xf32>
    %cst_390 = arith.constant 1.000000e+00 : f32
    %1304 = vector.broadcast %cst_390 : f32 to vector<8x192xf32>
    %1305 = arith.addf %1304, %1303 : vector<8x192xf32>
    %1306 = arith.divf %1304, %1305 : vector<8x192xf32>
    %1307 = vector.extract_strided_slice %1306 {offsets = [0, 0], sizes = [8, 64], strides = [1, 1]} : vector<8x192xf32> to vector<8x64xf32>
    %1308 = vector.extract_strided_slice %1306 {offsets = [0, 64], sizes = [8, 64], strides = [1, 1]} : vector<8x192xf32> to vector<8x64xf32>
    %1309 = vector.extract_strided_slice %1306 {offsets = [0, 128], sizes = [8, 64], strides = [1, 1]} : vector<8x192xf32> to vector<8x64xf32>
    %1310 = vector.extract_strided_slice %1300 {offsets = [0, 192], sizes = [8, 64], strides = [1, 1]} : vector<8x256xf32> to vector<8x64xf32>
    %1311 = math.tanh %1310 : vector<8x64xf32>
    %1312 = arith.mulf %1308, %1295 : vector<8x64xf32>
    %1313 = arith.mulf %1307, %1311 : vector<8x64xf32>
    %1314 = arith.addf %1312, %1313 : vector<8x64xf32>
    %1315 = math.tanh %1314 : vector<8x64xf32>
    %1316 = arith.mulf %1309, %1315 : vector<8x64xf32>
    %1317 = arith.truncf %1316 : vector<8x64xf32> to vector<8x64xbf16>
    %cst_391 = arith.constant dense<0.000000e+00> : vector<8x256xf32>
    %1318 = tpu.matmul %1317, %1175, %cst_391 {dimension_numbers = #tpu.dot_dimension_numbers<[1], [0], [0], [1], [0, 0, 1, 1], [], []>} : vector<8x64xbf16>, vector<64x256xbf16>, vector<8x256xf32> -> vector<8x256xf32>
    %1319 = arith.addf %1181, %1318 : vector<8x256xf32>
    %1320 = vector.extract_strided_slice %1319 {offsets = [0, 0], sizes = [8, 192], strides = [1, 1]} : vector<8x256xf32> to vector<8x192xf32>
    %1321 = arith.negf %1320 : vector<8x192xf32>
    %1322 = math.exp %1321 : vector<8x192xf32>
    %cst_392 = arith.constant 1.000000e+00 : f32
    %1323 = vector.broadcast %cst_392 : f32 to vector<8x192xf32>
    %1324 = arith.addf %1323, %1322 : vector<8x192xf32>
    %1325 = arith.divf %1323, %1324 : vector<8x192xf32>
    %1326 = vector.extract_strided_slice %1325 {offsets = [0, 0], sizes = [8, 64], strides = [1, 1]} : vector<8x192xf32> to vector<8x64xf32>
    %1327 = vector.extract_strided_slice %1325 {offsets = [0, 64], sizes = [8, 64], strides = [1, 1]} : vector<8x192xf32> to vector<8x64xf32>
    %1328 = vector.extract_strided_slice %1325 {offsets = [0, 128], sizes = [8, 64], strides = [1, 1]} : vector<8x192xf32> to vector<8x64xf32>
    %1329 = vector.extract_strided_slice %1319 {offsets = [0, 192], sizes = [8, 64], strides = [1, 1]} : vector<8x256xf32> to vector<8x64xf32>
    %1330 = math.tanh %1329 : vector<8x64xf32>
    %1331 = arith.mulf %1327, %1314 : vector<8x64xf32>
    %1332 = arith.mulf %1326, %1330 : vector<8x64xf32>
    %1333 = arith.addf %1331, %1332 : vector<8x64xf32>
    %1334 = math.tanh %1333 : vector<8x64xf32>
    %1335 = arith.mulf %1328, %1334 : vector<8x64xf32>
    %1336 = arith.truncf %1335 : vector<8x64xf32> to vector<8x64xbf16>
    %cst_393 = arith.constant dense<0.000000e+00> : vector<8x256xf32>
    %1337 = tpu.matmul %1336, %1175, %cst_393 {dimension_numbers = #tpu.dot_dimension_numbers<[1], [0], [0], [1], [0, 0, 1, 1], [], []>} : vector<8x64xbf16>, vector<64x256xbf16>, vector<8x256xf32> -> vector<8x256xf32>
    %1338 = arith.addf %1181, %1337 : vector<8x256xf32>
    %1339 = vector.extract_strided_slice %1338 {offsets = [0, 0], sizes = [8, 192], strides = [1, 1]} : vector<8x256xf32> to vector<8x192xf32>
    %1340 = arith.negf %1339 : vector<8x192xf32>
    %1341 = math.exp %1340 : vector<8x192xf32>
    %cst_394 = arith.constant 1.000000e+00 : f32
    %1342 = vector.broadcast %cst_394 : f32 to vector<8x192xf32>
    %1343 = arith.addf %1342, %1341 : vector<8x192xf32>
    %1344 = arith.divf %1342, %1343 : vector<8x192xf32>
    %1345 = vector.extract_strided_slice %1344 {offsets = [0, 0], sizes = [8, 64], strides = [1, 1]} : vector<8x192xf32> to vector<8x64xf32>
    %1346 = vector.extract_strided_slice %1344 {offsets = [0, 64], sizes = [8, 64], strides = [1, 1]} : vector<8x192xf32> to vector<8x64xf32>
    %1347 = vector.extract_strided_slice %1344 {offsets = [0, 128], sizes = [8, 64], strides = [1, 1]} : vector<8x192xf32> to vector<8x64xf32>
    %1348 = vector.extract_strided_slice %1338 {offsets = [0, 192], sizes = [8, 64], strides = [1, 1]} : vector<8x256xf32> to vector<8x64xf32>
    %1349 = math.tanh %1348 : vector<8x64xf32>
    %1350 = arith.mulf %1346, %1333 : vector<8x64xf32>
    %1351 = arith.mulf %1345, %1349 : vector<8x64xf32>
    %1352 = arith.addf %1350, %1351 : vector<8x64xf32>
    %1353 = math.tanh %1352 : vector<8x64xf32>
    %1354 = arith.mulf %1347, %1353 : vector<8x64xf32>
    %1355 = arith.truncf %1354 : vector<8x64xf32> to vector<8x64xbf16>
    %cst_395 = arith.constant dense<0.000000e+00> : vector<8x256xf32>
    %1356 = tpu.matmul %1355, %1175, %cst_395 {dimension_numbers = #tpu.dot_dimension_numbers<[1], [0], [0], [1], [0, 0, 1, 1], [], []>} : vector<8x64xbf16>, vector<64x256xbf16>, vector<8x256xf32> -> vector<8x256xf32>
    %1357 = arith.addf %1181, %1356 : vector<8x256xf32>
    %1358 = vector.extract_strided_slice %1357 {offsets = [0, 0], sizes = [8, 192], strides = [1, 1]} : vector<8x256xf32> to vector<8x192xf32>
    %1359 = arith.negf %1358 : vector<8x192xf32>
    %1360 = math.exp %1359 : vector<8x192xf32>
    %cst_396 = arith.constant 1.000000e+00 : f32
    %1361 = vector.broadcast %cst_396 : f32 to vector<8x192xf32>
    %1362 = arith.addf %1361, %1360 : vector<8x192xf32>
    %1363 = arith.divf %1361, %1362 : vector<8x192xf32>
    %1364 = vector.extract_strided_slice %1363 {offsets = [0, 0], sizes = [8, 64], strides = [1, 1]} : vector<8x192xf32> to vector<8x64xf32>
    %1365 = vector.extract_strided_slice %1363 {offsets = [0, 64], sizes = [8, 64], strides = [1, 1]} : vector<8x192xf32> to vector<8x64xf32>
    %1366 = vector.extract_strided_slice %1363 {offsets = [0, 128], sizes = [8, 64], strides = [1, 1]} : vector<8x192xf32> to vector<8x64xf32>
    %1367 = vector.extract_strided_slice %1357 {offsets = [0, 192], sizes = [8, 64], strides = [1, 1]} : vector<8x256xf32> to vector<8x64xf32>
    %1368 = math.tanh %1367 : vector<8x64xf32>
    %1369 = arith.mulf %1365, %1352 : vector<8x64xf32>
    %1370 = arith.mulf %1364, %1368 : vector<8x64xf32>
    %1371 = arith.addf %1369, %1370 : vector<8x64xf32>
    %1372 = math.tanh %1371 : vector<8x64xf32>
    %1373 = arith.mulf %1366, %1372 : vector<8x64xf32>
    %1374 = tpu.concatenate %1202, %1221, %1240, %1259, %1278, %1297, %1316, %1335, %1354, %1373 in 0 : vector<8x64xf32>, vector<8x64xf32>, vector<8x64xf32>, vector<8x64xf32>, vector<8x64xf32>, vector<8x64xf32>, vector<8x64xf32>, vector<8x64xf32>, vector<8x64xf32>, vector<8x64xf32> -> vector<80x64xf32>
    %1375 = arith.truncf %1374 : vector<80x64xf32> to vector<80x64xbf16>
    %c0_397 = arith.constant 0 : index
    %c0_398 = arith.constant 0 : index
    %1376 = vector.load %arg8[%c0_397, %c0_398] : memref<64x128xbf16, #tpu.memory_space<vmem>>, vector<64x128xbf16>
    %cst_399 = arith.constant dense<0.000000e+00> : vector<80x128xf32>
    %1377 = tpu.matmul %1375, %1376, %cst_399 {dimension_numbers = #tpu.dot_dimension_numbers<[1], [0], [0], [1], [0, 0, 1, 1], [], []>} : vector<80x64xbf16>, vector<64x128xbf16>, vector<80x128xf32> -> vector<80x128xf32>
    %c0_400 = arith.constant 0 : index
    %c0_401 = arith.constant 0 : index
    %1378 = vector.load %arg9[%c0_400, %c0_401] : memref<1x128xf32, #tpu.memory_space<vmem>>, vector<1x128xf32>
    %1379 = vector.broadcast %1378 : vector<1x128xf32> to vector<80x128xf32>
    %1380 = arith.addf %1377, %1379 : vector<80x128xf32>
    %c0_402 = arith.constant 0 : index
    %c0_403 = arith.constant 0 : index
    %1381 = vector.load %arg10[%c0_402, %c0_403] : memref<80x128xf32, #tpu.memory_space<vmem>>, vector<80x128xf32>
    tpu.vector_store %arg10[%c0_402, %c0_403], %1380 {strides = array<i32>} : memref<80x128xf32, #tpu.memory_space<vmem>>, vector<80x128xf32>,
    return
  }
}

</mosaic_0001>

<bundles_post_ra>
// kernel: nmt_attention_forward.1
= control target key start
LH: loop header
LB: loop body
LE: loop exit
PB: predicated region body
PF: predicated region fallthrough
CT: control target
= control target key end

     0   :  { %v5101_v1 = vmov 0   ;;  %v46_v11 = vlaneseq  ;;  %vm840_vm0 = vcmask 523264   ;;  %vm5104_vm1 = vmmov 0   ;;  %s6426_s1 = inlined_call_operand.vmem [shape: bf16[64,256], index: 1, kind: input, shape index: {}]   ;;  %s6427_s0 = inlined_call_operand.vmem [shape: f32[30,8,1], index: 0, kind: input, shape index: {}]   ;;  %s6428_s2 = inlined_call_operand.vmem [shape: f32[1,256], index: 2, kind: input, shape index: {}]   ;;  %s6429_s3 = inlined_call_operand.vmem [shape: f32[1,256], index: 3, kind: input, shape index: {}]   ;;  %s6430_s4 = inlined_call_operand.vmem [shape: f32[1,256], index: 4, kind: input, shape index: {}]   ;;  %s6431_s6 = inlined_call_operand.vmem [shape: bf16[64,256], index: 6, kind: input, shape index: {}]   ;;  %s6432_s5 = inlined_call_operand.vmem [shape: bf16[64,256], index: 5, kind: input, shape index: {}]   ;;  %s6433_s7 = inlined_call_operand.vmem [shape: f32[1,256], index: 7, kind: input, shape index: {}]   ;;  %s6434_s8 = inlined_call_operand.vmem [shape: bf16[64,128], index: 8, kind: input, shape index: {}]   ;;  %s6435_s9 = inlined_call_operand.vmem [shape: f32[1,128], index: 9, kind: input, shape index: {}]   ;;  %s6436_s10 = inlined_call_operand.vmem [shape: f32[80,128], index: 10, kind: output, shape index: {}]  }
   0x1   :  { %v5163_v0 = vld [vmem:[%s6426_s1 + $0x4] ss:$8 sps:$4 sm:$0xff]   ;;  %876 = vmatprep.mubr.bf16.mxu0 %v5101_v1  ;;  %4555 = vset.pattern.permute.xlu0 %v5101_v1  ;;  %v5170_v2 = vld [vmem:[%s6426_s1] ss:$8 sps:$4 sm:$0xff]   ;;  %v5178_v3 = vld [vmem:[%s6426_s1 + $0x14] ss:$8 sps:$4 sm:$0xff]  }
   0x2   :  { %4556 = vset.pattern.permute.xlu1 %v5101_v1  ;;  %1116 = vmatprep.mubr.bf16.mxu1 %v5101_v1  ;;  %v5185_v4 = vld [vmem:[%s6426_s1 + $0x10] ss:$8 sps:$4 sm:$0xff]   ;;  %v5192_v5 = vld [vmem:[%s6426_s1 + $0x24] ss:$8 sps:$4 sm:$0xff]   ;;  %v5202_v7 = vld [vmem:[%s6426_s1 + $0x20] ss:$8 sps:$4 sm:$0xff]  }
   0x3   :  { %844 = vmatprep.subr.bf16.mxu0 %v5163_v0  ;;  %1084 = vmatprep.subr.bf16.mxu1 %v5163_v0  ;;  %v39_v6 = vld [vmem:[%s6427_s0] sm:$0xff]  ;;  %v4303_v8 = vld [vmem:[%s6427_s0 + $0xe8] sm:$0xff]  ;;  %v5212_v9 = vld [vmem:[%s6426_s1 + $0x34] ss:$8 sps:$4 sm:$0xff]   ;;  %v47_v12 = vshrl.u32 %v46_v11, 7 }
   0x4   :  { %845 = vmatpush1.bf16.msra.mxu0 %v5170_v2  ;;  %1085 = vmatpush1.bf16.msra.mxu1 %v5170_v2  ;;  %v5219_v10 = vld [vmem:[%s6426_s1 + $0x30] ss:$8 sps:$4 sm:$0xff]   ;;  %v36_v15 = vld [vmem:[%s6428_s2] sm:$0x3]  ;;  %s5102_s2 = smov 64   ;;  %v4304_v47 = vld [vmem:[%s6427_s0 + $0x8] sm:$0xff] }
   0x5   :  { %846 = vmatprep.subr.bf16.mxu0 %v5178_v3  ;;  %1086 = vmatprep.subr.bf16.mxu1 %v5178_v3  ;;  %v5238_v14 = vsub.s32 1, %v47_v12  ;;  %v37_v16 = vld [vmem:[%s6429_s3] sm:$0x3]  ;;  %v5262_v32 = vsub.s32 0, %v47_v12 }
   0x6   :  { %42 = vperm.xlu0 %4555, %v39_v6   ;;  %v38_v22 = vld [vmem:[%s6430_s4] sm:$0x3] }
   0x7   :  { %v5247_v17 = vrot.slane %v36_v15, %v5238_v14  ;;  %v5250_v18 = vrot.slane %v37_v16, %v5238_v14  ;;  %v5258_v24 = vrot.slane %v38_v22, %v5238_v14  ;;  %v5265_v33 = vrot.slane %v36_v15, %v5262_v32  ;;  %v4305_v52 = vld [vmem:[%s6427_s0 + $0xe0] sm:$0xff] }
   0x8   :  { %847 = vmatpush1.bf16.msra.mxu0 %v5185_v4  ;;  %1087 = vmatpush1.bf16.msra.mxu1 %v5185_v4  ;;  %v5268_v34 = vrot.slane %v37_v16, %v5262_v32  ;;  %v5273_v38 = vrot.slane %v38_v22, %v5262_v32 }
   0x9   :  { %848 = vmatprep.subr.bf16.mxu0 %v5192_v5  ;;  %1088 = vmatprep.subr.bf16.mxu1 %v5192_v5 }
   0xa   :  { %62 = vperm.xlu0 %4555, %v4303_v8  }
   0xc   :  { %849 = vmatpush1.bf16.msra.mxu0 %v5202_v7  ;;  %1089 = vmatpush1.bf16.msra.mxu1 %v5202_v7 }
   0xd   :  { %850 = vmatprep.subr.bf16.mxu0 %v5212_v9  ;;  %1090 = vmatprep.subr.bf16.mxu1 %v5212_v9 }
  0x10   :  { %851 = vmatpush1.bf16.msra.mxu0 %v5219_v10  ;;  %1091 = vmatpush1.bf16.msra.mxu1 %v5219_v10 }
  0x11   :  { %924 = vmatprep.subr.bf16.mxu0 %v5163_v0  ;;  %1244 = vmatprep.subr.bf16.mxu1 %v5163_v0 }
  0x13   :  { %877 = vmatmul.mubr.bf16.vlgmr.msra.gmra.mrb[0].mxu0 %v5101_v1 }
  0x14   :  { %925 = vmatpush1.bf16.msra.mxu0 %v5170_v2  ;;  %956 = vmatprep.mubr.bf16.mxu0 %v5101_v1 }
  0x15   :  { %926 = vmatprep.subr.bf16.mxu0 %v5178_v3 }
  0x18   :  { %927 = vmatpush1.bf16.msra.mxu0 %v5185_v4 }
  0x19   :  { %928 = vmatprep.subr.bf16.mxu0 %v5192_v5 }
  0x1c   :  { %929 = vmatpush1.bf16.msra.mxu0 %v5202_v7 }
  0x1d   :  { %930 = vmatprep.subr.bf16.mxu0 %v5212_v9 }
  0x20   :  { %931 = vmatpush1.bf16.msra.mxu0 %v5219_v10 }
  0x21   :  { %1004 = vmatprep.subr.bf16.mxu0 %v5163_v0 }
  0x85   :  { %v43_v13 = vpop.permute.xlu0 %42 }
  0x86   :  { %v57_v20 = vmul.f32 %v5247_v17, %v43_v13  ;;  %v56_v35 = vmul.f32 %v5265_v33, %v43_v13 }
  0x89   :  { %v63_v19 = vpop.permute.xlu0 %62 }
  0x8a   :  { %v77_v21 = vmul.f32 %v5250_v18, %v63_v19  ;;  %v76_v36 = vmul.f32 %v5268_v34, %v63_v19 }
  0x8c   :  { %v79_v23 = vadd.f32 %v77_v21, %v57_v20  ;;  %v78_v37 = vadd.f32 %v76_v36, %v56_v35  ;;  %v4306_v35 = vld [vmem:[%s6427_s0 + $0x10] sm:$0xff] }
  0x8e   :  { %v92_v26 = vadd.f32 %v5258_v24, %v79_v23  ;;  %v91_v39 = vadd.f32 %v5273_v38, %v78_v37 }
  0xe6   :  { %v878_v25 = vpop.f32.mrb[0].mxu0 }
  0xe7   :  { %v880_v27 = vpop.f32.mrb[1].mxu0  ;;  %v885_v40 = vadd.f32 %v878_v25, %v91_v39 }
  0xe8   :  { %v886_v28 = vadd.f32 %v880_v27, %v92_v26  ;;  %v882_v29 = vpop.f32.mrb[2].mxu0 }
  0xe9   :  { %v883_v30 = vpop.f32.mrb[3].mxu0  ;;  %v4369_v41 = vmul.f32 -1.442695, %v885_v40 }
  0xea   :  { %4597 = vtanh.f32 %v886_v28  ;;  %v4370_v53 = vmul.f32 -1.442695, %v886_v28 }
  0xeb   :  { %4599 = vpow2.f32 %v4369_v41  ;;  %v4307_v41 = vld [vmem:[%s6427_s0 + $0xd8] sm:$0xff] }
  0xf4   :  { %v4598_v31 = vpop.eup %4597 }
  0xf5   :  { %902 = vrot.lane.b32.xlu1 %v4598_v31, %s5102_s2  ;;  %v4600_v42 = vpop.eup %4599 }
  0xf6   :  { %v893_v43 = vadd.f32 1.0, %v4600_v42 }
  0xf8   :  { %4601 = vrcp.f32 %v893_v43 }
 0x102   :  { %v4602_v44 = vpop.eup %4601 }
 0x103   :  { %v900_v48 = vmul.f32 0.0, %v4602_v44 }
 0x167   :  { %v903_v45 = vpop.permute.xlu1 %902 }
 0x168   :  { %v905_v46 = vmul.f32 %v4602_v44, %v903_v45 }
 0x16a   :  { %907 = vrot.lane.b32.xlu1 %v905_v46, %s5102_s2 }
 0x16e   :  { %99 = vperm.xlu1 %4556, %v4304_v47  }
 0x1dc   :  { %v908_v49 = vpop.permute.xlu1 %907 }
 0x1dd   :  { %v910_v50 = vadd.f32 %v908_v49, %v900_v48 }
 0x1df   :  { %4603 = vtanh.f32 %v910_v50 }
 0x1e0   :  { %4605 = vpow2.f32 %v4370_v53 }
 0x1e9   :  { %v4604_v51 = vpop.eup %4603 }
 0x1ea   :  { %913 = vrot.lane.b32.xlu0 %v4604_v51, %s5102_s2  ;;  %v4606_v54 = vpop.eup %4605 }
 0x1eb   :  { %v894_v55 = vadd.f32 1.0, %v4606_v54 }
 0x1ed   :  { %4607 = vrcp.f32 %v894_v55  ;;  %v100_v60 = vpop.permute.xlu1 %99 }
 0x1ee   :  { %108 = vperm.xlu0 %4555, %v4305_v52   ;;  %v103_v62 = vmul.f32 %v100_v60, %v5247_v17  ;;  %v102_v20 = vmul.f32 %v100_v60, %v5265_v33 }
 0x1f7   :  { %v4608_v56 = vpop.eup %4607 }
 0x25c   :  { %v914_v57 = vpop.permute.xlu0 %913 }
 0x25d   :  { %v5284_v58 = vmul.f32 %v4608_v56, %v914_v57 }
 0x25f   :  { %v920_v59 = vpack.c.bf16 %v5284_v58, %v5284_v58 }
 0x261   :  { %4371 = vmatmul.mubr.msk.bf16.vlgmr.msra.gmra.mrb[4].mxu0 %vm840_vm0, %v920_v59 }
 0x262   :  { %1005 = vmatpush1.bf16.msra.mxu0 %v5170_v2  ;;  %1036 = vmatprep.mubr.bf16.mxu0 %v5101_v1 }
 0x263   :  { %1006 = vmatprep.subr.bf16.mxu0 %v5178_v3 }
 0x266   :  { %1007 = vmatpush1.bf16.msra.mxu0 %v5185_v4 }
 0x267   :  { %1008 = vmatprep.subr.bf16.mxu0 %v5192_v5 }
 0x26a   :  { %1009 = vmatpush1.bf16.msra.mxu0 %v5202_v7 }
 0x26b   :  { %1010 = vmatprep.subr.bf16.mxu0 %v5212_v9 }
 0x26d   :  { %v109_v61 = vpop.permute.xlu0 %108 }
 0x26e   :  { %1011 = vmatpush1.bf16.msra.mxu0 %v5219_v10  ;;  %v112_v63 = vmul.f32 %v109_v61, %v5250_v18  ;;  %v111_v21 = vmul.f32 %v109_v61, %v5268_v34 }
 0x26f   :  { %1164 = vmatprep.subr.bf16.mxu0 %v5163_v0 }
 0x270   :  { %v114_v6 = vadd.f32 %v112_v63, %v103_v62  ;;  %v113_v22 = vadd.f32 %v111_v21, %v102_v20  ;;  %v4308_v21 = vld [vmem:[%s6427_s0 + $0x18] sm:$0xff] }
 0x272   :  { %v116_v11 = vadd.f32 %v114_v6, %v5258_v24  ;;  %v115_v23 = vadd.f32 %v113_v22, %v5273_v38 }
 0x334   :  { %v958_v8 = vpop.f32.mrb[4].mxu0 }
 0x335   :  { %v960_v12 = vpop.f32.mrb[5].mxu0  ;;  %v965_v25 = vadd.f32 %v958_v8, %v115_v23 }
 0x336   :  { %v966_v13 = vadd.f32 %v960_v12, %v116_v11  ;;  %v962_v15 = vpop.f32.mrb[6].mxu0 }
 0x337   :  { %v963_v16 = vpop.f32.mrb[7].mxu0  ;;  %v4372_v26 = vmul.f32 -1.442695, %v965_v25 }
 0x338   :  { %4609 = vtanh.f32 %v966_v13  ;;  %v4373_v42 = vmul.f32 -1.442695, %v966_v13 }
 0x339   :  { %4611 = vpow2.f32 %v4372_v26 }
 0x342   :  { %v4610_v19 = vpop.eup %4609 }
 0x343   :  { %982 = vrot.lane.b32.xlu1 %v4610_v19, %s5102_s2  ;;  %v4612_v27 = vpop.eup %4611 }
 0x344   :  { %v973_v28 = vadd.f32 1.0, %v4612_v27  ;;  %v4309_v27 = vld [vmem:[%s6427_s0 + $0xd0] sm:$0xff] }
 0x346   :  { %4613 = vrcp.f32 %v973_v28 }
 0x350   :  { %v4614_v29 = vpop.eup %4613 }
 0x351   :  { %v980_v36 = vmul.f32 %v4614_v29, %v910_v50 }
 0x3b5   :  { %v983_v30 = vpop.permute.xlu1 %982 }
 0x3b6   :  { %v985_v31 = vmul.f32 %v4614_v29, %v983_v30 }
 0x3b8   :  { %987 = vrot.lane.b32.xlu0 %v985_v31, %s5102_s2 }
 0x3bc   :  { %124 = vperm.xlu0 %4555, %v4306_v35  }
 0x42a   :  { %v988_v37 = vpop.permute.xlu0 %987 }
 0x42b   :  { %v990_v39 = vadd.f32 %v988_v37, %v980_v36 }
 0x42d   :  { %4615 = vtanh.f32 %v990_v39 }
 0x42e   :  { %4617 = vpow2.f32 %v4373_v42 }
 0x437   :  { %v4616_v40 = vpop.eup %4615 }
 0x438   :  { %993 = vrot.lane.b32.xlu1 %v4616_v40, %s5102_s2  ;;  %v4618_v43 = vpop.eup %4617 }
 0x439   :  { %v974_v44 = vadd.f32 1.0, %v4618_v43 }
 0x43b   :  { %4619 = vrcp.f32 %v974_v44  ;;  %v125_v50 = vpop.permute.xlu0 %124 }
 0x43c   :  { %133 = vperm.xlu1 %4556, %v4307_v41   ;;  %v128_v52 = vmul.f32 %v125_v50, %v5247_v17  ;;  %v127_v63 = vmul.f32 %v125_v50, %v5265_v33 }
 0x445   :  { %v4620_v45 = vpop.eup %4619 }
 0x4aa   :  { %v994_v46 = vpop.permute.xlu1 %993 }
 0x4ab   :  { %v996_v47 = vmul.f32 %v4620_v45, %v994_v46 }
 0x4ad   :  { %v1000_v48 = vpack.c.bf16 %v996_v47, %v996_v47  ;;  %v997_v36 = vadd.f32 %v996_v47, %v5284_v58 }
 0x4af   :  { %4374 = vmatmul.mubr.msk.bf16.vlgmr.msra.gmra.mrb[8].mxu0 %vm840_vm0, %v1000_v48 }
 0x4b0   :  { %1165 = vmatpush1.bf16.msra.mxu0 %v5170_v2  ;;  %1196 = vmatprep.mubr.bf16.mxu0 %v5101_v1 }
 0x4b1   :  { %1166 = vmatprep.subr.bf16.mxu0 %v5178_v3 }
 0x4b4   :  { %1167 = vmatpush1.bf16.msra.mxu0 %v5185_v4 }
 0x4b5   :  { %1168 = vmatprep.subr.bf16.mxu0 %v5192_v5 }
 0x4b8   :  { %1169 = vmatpush1.bf16.msra.mxu0 %v5202_v7 }
 0x4b9   :  { %1170 = vmatprep.subr.bf16.mxu0 %v5212_v9 }
 0x4bb   :  { %v134_v49 = vpop.permute.xlu1 %133 }
 0x4bc   :  { %1171 = vmatpush1.bf16.msra.mxu0 %v5219_v10  ;;  %v137_v51 = vmul.f32 %v134_v49, %v5250_v18  ;;  %v136_v62 = vmul.f32 %v134_v49, %v5268_v34 }
 0x4bd   :  { %1324 = vmatprep.subr.bf16.mxu0 %v5163_v0 }
 0x4be   :  { %v139_v53 = vadd.f32 %v137_v51, %v128_v52  ;;  %v138_v6 = vadd.f32 %v136_v62, %v127_v63 }
 0x4c0   :  { %v141_v55 = vadd.f32 %v139_v53, %v5258_v24  ;;  %v140_v8 = vadd.f32 %v138_v6, %v5273_v38  ;;  %v4310_v6 = vld [vmem:[%s6427_s0 + $0x20] sm:$0xff] }
 0x582   :  { %v1038_v54 = vpop.f32.mrb[8].mxu0 }
 0x583   :  { %v1040_v56 = vpop.f32.mrb[9].mxu0  ;;  %v1045_v11 = vadd.f32 %v1038_v54, %v140_v8 }
 0x584   :  { %v1046_v57 = vadd.f32 %v1040_v56, %v141_v55  ;;  %v1042_v59 = vpop.f32.mrb[10].mxu0 }
 0x585   :  { %v1043_v60 = vpop.f32.mrb[11].mxu0  ;;  %v4375_v12 = vmul.f32 -1.442695, %v1045_v11 }
 0x586   :  { %4621 = vtanh.f32 %v1046_v57  ;;  %v4376_v28 = vmul.f32 -1.442695, %v1046_v57 }
 0x587   :  { %4623 = vpow2.f32 %v4375_v12 }
 0x590   :  { %v4622_v61 = vpop.eup %4621 }
 0x591   :  { %1062 = vrot.lane.b32.xlu0 %v4622_v61, %s5102_s2  ;;  %v4624_v13 = vpop.eup %4623 }
 0x592   :  { %v1053_v15 = vadd.f32 1.0, %v4624_v13 }
 0x594   :  { %4625 = vrcp.f32 %v1053_v15  ;;  %v4311_v15 = vld [vmem:[%s6427_s0 + $0xc8] sm:$0xff] }
 0x59e   :  { %v4626_v16 = vpop.eup %4625 }
 0x59f   :  { %v1060_v22 = vmul.f32 %v4626_v16, %v990_v39 }
 0x603   :  { %v1063_v19 = vpop.permute.xlu0 %1062 }
 0x604   :  { %v1065_v20 = vmul.f32 %v4626_v16, %v1063_v19 }
 0x606   :  { %1067 = vrot.lane.b32.xlu1 %v1065_v20, %s5102_s2 }
 0x60a   :  { %149 = vperm.xlu1 %4556, %v4308_v21  }
 0x678   :  { %v1068_v23 = vpop.permute.xlu1 %1067 }
 0x679   :  { %v1070_v25 = vadd.f32 %v1068_v23, %v1060_v22 }
 0x67b   :  { %4627 = vtanh.f32 %v1070_v25 }
 0x67c   :  { %4629 = vpow2.f32 %v4376_v28 }
 0x685   :  { %v4628_v26 = vpop.eup %4627 }
 0x686   :  { %1073 = vrot.lane.b32.xlu0 %v4628_v26, %s5102_s2  ;;  %v4630_v29 = vpop.eup %4629 }
 0x687   :  { %v1054_v30 = vadd.f32 1.0, %v4630_v29 }
 0x689   :  { %4631 = vrcp.f32 %v1054_v30  ;;  %v150_v41 = vpop.permute.xlu1 %149 }
 0x68a   :  { %158 = vperm.xlu0 %4555, %v4309_v27   ;;  %v153_v43 = vmul.f32 %v150_v41, %v5247_v17  ;;  %v152_v53 = vmul.f32 %v150_v41, %v5265_v33 }
 0x693   :  { %v4632_v31 = vpop.eup %4631 }
 0x6f8   :  { %v1074_v35 = vpop.permute.xlu0 %1073 }
 0x6f9   :  { %v1076_v37 = vmul.f32 %v4632_v31, %v1074_v35 }
 0x6fb   :  { %v1077_v39 = vadd.f32 %v1076_v37, %v997_v36  ;;  %v1080_v40 = vpack.c.bf16 %v1076_v37, %v1076_v37 }
 0x6fd   :  { %4377 = vmatmul.mubr.msk.bf16.vlgmr.msra.gmra.mrb[0].mxu1 %vm840_vm0, %v1080_v40 }
 0x6fe   :  { %1245 = vmatpush1.bf16.msra.mxu1 %v5170_v2  ;;  %1276 = vmatprep.mubr.bf16.mxu1 %v5101_v1 }
 0x6ff   :  { %1246 = vmatprep.subr.bf16.mxu1 %v5178_v3 }
 0x702   :  { %1247 = vmatpush1.bf16.msra.mxu1 %v5185_v4 }
 0x703   :  { %1248 = vmatprep.subr.bf16.mxu1 %v5192_v5 }
 0x706   :  { %1249 = vmatpush1.bf16.msra.mxu1 %v5202_v7 }
 0x707   :  { %1250 = vmatprep.subr.bf16.mxu1 %v5212_v9 }
 0x709   :  { %v159_v58 = vpop.permute.xlu0 %158 }
 0x70a   :  { %1251 = vmatpush1.bf16.msra.mxu1 %v5219_v10  ;;  %v162_v42 = vmul.f32 %v159_v58, %v5250_v18  ;;  %v161_v52 = vmul.f32 %v159_v58, %v5268_v34 }
 0x70b   :  { %1404 = vmatprep.subr.bf16.mxu1 %v5163_v0 }
 0x70c   :  { %v164_v44 = vadd.f32 %v162_v42, %v153_v43  ;;  %v163_v54 = vadd.f32 %v161_v52, %v152_v53  ;;  %v4312_v53 = vld [vmem:[%s6427_s0 + $0x28] sm:$0xff] }
 0x70e   :  { %v166_v46 = vadd.f32 %v164_v44, %v5258_v24  ;;  %v165_v55 = vadd.f32 %v163_v54, %v5273_v38 }
 0x7d0   :  { %v1118_v45 = vpop.f32.mrb[0].mxu1 }
 0x7d1   :  { %v1120_v47 = vpop.f32.mrb[1].mxu1  ;;  %v1125_v56 = vadd.f32 %v1118_v45, %v165_v55 }
 0x7d2   :  { %v1126_v48 = vadd.f32 %v1120_v47, %v166_v46  ;;  %v1122_v49 = vpop.f32.mrb[2].mxu1 }
 0x7d3   :  { %v1123_v50 = vpop.f32.mrb[3].mxu1  ;;  %v4378_v57 = vmul.f32 -1.442695, %v1125_v56 }
 0x7d4   :  { %4633 = vtanh.f32 %v1126_v48  ;;  %v4379_v16 = vmul.f32 -1.442695, %v1126_v48 }
 0x7d5   :  { %4635 = vpow2.f32 %v4378_v57 }
 0x7de   :  { %v4634_v51 = vpop.eup %4633 }
 0x7df   :  { %1142 = vrot.lane.b32.xlu1 %v4634_v51, %s5102_s2  ;;  %v4636_v59 = vpop.eup %4635 }
 0x7e0   :  { %v1133_v60 = vadd.f32 1.0, %v4636_v59  ;;  %v4313_v59 = vld [vmem:[%s6427_s0 + $0xc0] sm:$0xff] }
 0x7e2   :  { %4637 = vrcp.f32 %v1133_v60 }
 0x7ec   :  { %v4638_v61 = vpop.eup %4637 }
 0x7ed   :  { %v1140_v8 = vmul.f32 %v4638_v61, %v1070_v25 }
 0x851   :  { %v1143_v62 = vpop.permute.xlu1 %1142 }
 0x852   :  { %v1145_v63 = vmul.f32 %v4638_v61, %v1143_v62 }
 0x854   :  { %1147 = vrot.lane.b32.xlu0 %v1145_v63, %s5102_s2 }
 0x858   :  { %174 = vperm.xlu0 %4555, %v4310_v6  }
 0x8c6   :  { %v1148_v11 = vpop.permute.xlu0 %1147 }
 0x8c7   :  { %v1150_v12 = vadd.f32 %v1148_v11, %v1140_v8 }
 0x8c9   :  { %4639 = vtanh.f32 %v1150_v12 }
 0x8ca   :  { %4641 = vpow2.f32 %v4379_v16 }
 0x8d3   :  { %v4640_v13 = vpop.eup %4639 }
 0x8d4   :  { %1153 = vrot.lane.b32.xlu1 %v4640_v13, %s5102_s2  ;;  %v4642_v19 = vpop.eup %4641 }
 0x8d5   :  { %v1134_v20 = vadd.f32 1.0, %v4642_v19 }
 0x8d7   :  { %4643 = vrcp.f32 %v1134_v20  ;;  %v175_v28 = vpop.permute.xlu0 %174 }
 0x8d8   :  { %183 = vperm.xlu1 %4556, %v4311_v15   ;;  %v178_v30 = vmul.f32 %v175_v28, %v5247_v17  ;;  %v177_v43 = vmul.f32 %v175_v28, %v5265_v33 }
 0x8e1   :  { %v4644_v21 = vpop.eup %4643 }
 0x946   :  { %v1154_v22 = vpop.permute.xlu1 %1153 }
 0x947   :  { %v1156_v23 = vmul.f32 %v4644_v21, %v1154_v22 }
 0x949   :  { %v1157_v25 = vadd.f32 %v1156_v23, %v1077_v39  ;;  %v1160_v26 = vpack.c.bf16 %v1156_v23, %v1156_v23 }
 0x94b   :  { %4380 = vmatmul.mubr.msk.bf16.vlgmr.msra.gmra.mrb[12].mxu0 %vm840_vm0, %v1160_v26 }
 0x94c   :  { %1325 = vmatpush1.bf16.msra.mxu0 %v5170_v2  ;;  %1356 = vmatprep.mubr.bf16.mxu0 %v5101_v1 }
 0x94d   :  { %1326 = vmatprep.subr.bf16.mxu0 %v5178_v3 }
 0x950   :  { %1327 = vmatpush1.bf16.msra.mxu0 %v5185_v4 }
 0x951   :  { %1328 = vmatprep.subr.bf16.mxu0 %v5192_v5 }
 0x954   :  { %1329 = vmatpush1.bf16.msra.mxu0 %v5202_v7 }
 0x955   :  { %1330 = vmatprep.subr.bf16.mxu0 %v5212_v9 }
 0x957   :  { %v184_v27 = vpop.permute.xlu1 %183 }
 0x958   :  { %1331 = vmatpush1.bf16.msra.mxu0 %v5219_v10  ;;  %v187_v29 = vmul.f32 %v184_v27, %v5250_v18  ;;  %v186_v42 = vmul.f32 %v184_v27, %v5268_v34 }
 0x959   :  { %1484 = vmatprep.subr.bf16.mxu0 %v5163_v0 }
 0x95a   :  { %v189_v31 = vadd.f32 %v187_v29, %v178_v30  ;;  %v188_v44 = vadd.f32 %v186_v42, %v177_v43  ;;  %v4314_v43 = vld [vmem:[%s6427_s0 + $0x30] sm:$0xff] }
 0x95c   :  { %v191_v36 = vadd.f32 %v189_v31, %v5258_v24  ;;  %v190_v45 = vadd.f32 %v188_v44, %v5273_v38 }
 0xa1e   :  { %v1198_v35 = vpop.f32.mrb[12].mxu0 }
 0xa1f   :  { %v1200_v37 = vpop.f32.mrb[13].mxu0  ;;  %v1205_v46 = vadd.f32 %v1198_v35, %v190_v45 }
 0xa20   :  { %v1206_v39 = vadd.f32 %v1200_v37, %v191_v36  ;;  %v1202_v40 = vpop.f32.mrb[14].mxu0 }
 0xa21   :  { %v1203_v58 = vpop.f32.mrb[15].mxu0  ;;  %v4381_v47 = vmul.f32 -1.442695, %v1205_v46 }
 0xa22   :  { %4645 = vtanh.f32 %v1206_v39  ;;  %v4382_v60 = vmul.f32 -1.442695, %v1206_v39 }
 0xa23   :  { %4647 = vpow2.f32 %v4381_v47 }
 0xa2c   :  { %v4646_v41 = vpop.eup %4645 }
 0xa2d   :  { %1222 = vrot.lane.b32.xlu0 %v4646_v41, %s5102_s2  ;;  %v4648_v48 = vpop.eup %4647 }
 0xa2e   :  { %v1213_v49 = vadd.f32 1.0, %v4648_v48  ;;  %v4315_v48 = vld [vmem:[%s6427_s0 + $0xb8] sm:$0xff] }
 0xa30   :  { %4649 = vrcp.f32 %v1213_v49 }
 0xa3a   :  { %v4650_v50 = vpop.eup %4649 }
 0xa3b   :  { %v1220_v54 = vmul.f32 %v4650_v50, %v1150_v12 }
 0xa9f   :  { %v1223_v51 = vpop.permute.xlu0 %1222 }
 0xaa0   :  { %v1225_v52 = vmul.f32 %v4650_v50, %v1223_v51 }
 0xaa2   :  { %1227 = vrot.lane.b32.xlu1 %v1225_v52, %s5102_s2 }
 0xaa6   :  { %199 = vperm.xlu1 %4556, %v4312_v53  }
 0xb14   :  { %v1228_v55 = vpop.permute.xlu1 %1227 }
 0xb15   :  { %v1230_v56 = vadd.f32 %v1228_v55, %v1220_v54 }
 0xb17   :  { %4651 = vtanh.f32 %v1230_v56 }
 0xb18   :  { %4653 = vpow2.f32 %v4382_v60 }
 0xb21   :  { %v4652_v57 = vpop.eup %4651 }
 0xb22   :  { %1233 = vrot.lane.b32.xlu0 %v4652_v57, %s5102_s2  ;;  %v4654_v61 = vpop.eup %4653 }
 0xb23   :  { %v1214_v62 = vadd.f32 1.0, %v4654_v61 }
 0xb25   :  { %4655 = vrcp.f32 %v1214_v62  ;;  %v200_v15 = vpop.permute.xlu1 %199 }
 0xb26   :  { %208 = vperm.xlu0 %4555, %v4313_v59   ;;  %v203_v19 = vmul.f32 %v200_v15, %v5247_v17  ;;  %v202_v30 = vmul.f32 %v200_v15, %v5265_v33 }
 0xb2f   :  { %v4656_v63 = vpop.eup %4655 }
 0xb94   :  { %v1234_v6 = vpop.permute.xlu0 %1233 }
 0xb95   :  { %v1236_v8 = vmul.f32 %v4656_v63, %v1234_v6 }
 0xb97   :  { %v1237_v11 = vadd.f32 %v1236_v8, %v1157_v25  ;;  %v1240_v12 = vpack.c.bf16 %v1236_v8, %v1236_v8 }
 0xb99   :  { %4383 = vmatmul.mubr.msk.bf16.vlgmr.msra.gmra.mrb[4].mxu1 %vm840_vm0, %v1240_v12 }
 0xb9a   :  { %1405 = vmatpush1.bf16.msra.mxu1 %v5170_v2  ;;  %1436 = vmatprep.mubr.bf16.mxu1 %v5101_v1 }
 0xb9b   :  { %1406 = vmatprep.subr.bf16.mxu1 %v5178_v3 }
 0xb9e   :  { %1407 = vmatpush1.bf16.msra.mxu1 %v5185_v4 }
 0xb9f   :  { %1408 = vmatprep.subr.bf16.mxu1 %v5192_v5 }
 0xba2   :  { %1409 = vmatpush1.bf16.msra.mxu1 %v5202_v7 }
 0xba3   :  { %1410 = vmatprep.subr.bf16.mxu1 %v5212_v9 }
 0xba5   :  { %v209_v13 = vpop.permute.xlu0 %208 }
 0xba6   :  { %1411 = vmatpush1.bf16.msra.mxu1 %v5219_v10  ;;  %v212_v16 = vmul.f32 %v209_v13, %v5250_v18  ;;  %v211_v29 = vmul.f32 %v209_v13, %v5268_v34 }
 0xba7   :  { %1564 = vmatprep.subr.bf16.mxu1 %v5163_v0 }
 0xba8   :  { %v214_v20 = vadd.f32 %v212_v16, %v203_v19  ;;  %v213_v31 = vadd.f32 %v211_v29, %v202_v30  ;;  %v4316_v30 = vld [vmem:[%s6427_s0 + $0x38] sm:$0xff] }
 0xbaa   :  { %v216_v22 = vadd.f32 %v214_v20, %v5258_v24  ;;  %v215_v35 = vadd.f32 %v213_v31, %v5273_v38 }
 0xc6c   :  { %v1278_v21 = vpop.f32.mrb[4].mxu1 }
 0xc6d   :  { %v1280_v23 = vpop.f32.mrb[5].mxu1  ;;  %v1285_v36 = vadd.f32 %v1278_v21, %v215_v35 }
 0xc6e   :  { %v1286_v25 = vadd.f32 %v1280_v23, %v216_v22  ;;  %v1282_v26 = vpop.f32.mrb[6].mxu1 }
 0xc6f   :  { %v1283_v27 = vpop.f32.mrb[7].mxu1  ;;  %v4384_v37 = vmul.f32 -1.442695, %v1285_v36 }
 0xc70   :  { %4657 = vtanh.f32 %v1286_v25  ;;  %v4385_v49 = vmul.f32 -1.442695, %v1286_v25 }
 0xc71   :  { %4659 = vpow2.f32 %v4384_v37 }
 0xc7a   :  { %v4658_v28 = vpop.eup %4657 }
 0xc7b   :  { %1302 = vrot.lane.b32.xlu1 %v4658_v28, %s5102_s2  ;;  %v4660_v39 = vpop.eup %4659 }
 0xc7c   :  { %v1293_v40 = vadd.f32 1.0, %v4660_v39  ;;  %v4317_v39 = vld [vmem:[%s6427_s0 + $0xb0] sm:$0xff] }
 0xc7e   :  { %4661 = vrcp.f32 %v1293_v40 }
 0xc88   :  { %v4662_v58 = vpop.eup %4661 }
 0xc89   :  { %v1300_v44 = vmul.f32 %v4662_v58, %v1230_v56 }
 0xced   :  { %v1303_v41 = vpop.permute.xlu1 %1302 }
 0xcee   :  { %v1305_v42 = vmul.f32 %v4662_v58, %v1303_v41 }
 0xcf0   :  { %1307 = vrot.lane.b32.xlu0 %v1305_v42, %s5102_s2 }
 0xcf4   :  { %224 = vperm.xlu0 %4555, %v4314_v43  }
 0xd62   :  { %v1308_v45 = vpop.permute.xlu0 %1307 }
 0xd63   :  { %v1310_v46 = vadd.f32 %v1308_v45, %v1300_v44 }
 0xd65   :  { %4663 = vtanh.f32 %v1310_v46 }
 0xd66   :  { %4665 = vpow2.f32 %v4385_v49 }
 0xd6f   :  { %v4664_v47 = vpop.eup %4663 }
 0xd70   :  { %1313 = vrot.lane.b32.xlu1 %v4664_v47, %s5102_s2  ;;  %v4666_v50 = vpop.eup %4665 }
 0xd71   :  { %v1294_v51 = vadd.f32 1.0, %v4666_v50 }
 0xd73   :  { %4667 = vrcp.f32 %v1294_v51  ;;  %v225_v59 = vpop.permute.xlu0 %224 }
 0xd74   :  { %233 = vperm.xlu1 %4556, %v4315_v48   ;;  %v228_v61 = vmul.f32 %v225_v59, %v5247_v17  ;;  %v227_v19 = vmul.f32 %v225_v59, %v5265_v33 }
 0xd7d   :  { %v4668_v52 = vpop.eup %4667 }
 0xde2   :  { %v1314_v53 = vpop.permute.xlu1 %1313 }
 0xde3   :  { %v1316_v54 = vmul.f32 %v4668_v52, %v1314_v53 }
 0xde5   :  { %v1317_v55 = vadd.f32 %v1316_v54, %v1237_v11  ;;  %v1320_v56 = vpack.c.bf16 %v1316_v54, %v1316_v54 }
 0xde7   :  { %4386 = vmatmul.mubr.msk.bf16.vlgmr.msra.gmra.mrb[16].mxu0 %vm840_vm0, %v1320_v56 }
 0xde8   :  { %1485 = vmatpush1.bf16.msra.mxu0 %v5170_v2  ;;  %1516 = vmatprep.mubr.bf16.mxu0 %v5101_v1 }
 0xde9   :  { %1486 = vmatprep.subr.bf16.mxu0 %v5178_v3 }
 0xdec   :  { %1487 = vmatpush1.bf16.msra.mxu0 %v5185_v4 }
 0xded   :  { %1488 = vmatprep.subr.bf16.mxu0 %v5192_v5 }
 0xdf0   :  { %1489 = vmatpush1.bf16.msra.mxu0 %v5202_v7 }
 0xdf1   :  { %1490 = vmatprep.subr.bf16.mxu0 %v5212_v9 }
 0xdf3   :  { %v234_v57 = vpop.permute.xlu1 %233 }
 0xdf4   :  { %1491 = vmatpush1.bf16.msra.mxu0 %v5219_v10  ;;  %v237_v60 = vmul.f32 %v234_v57, %v5250_v18  ;;  %v236_v16 = vmul.f32 %v234_v57, %v5268_v34 }
 0xdf5   :  { %1644 = vmatprep.subr.bf16.mxu0 %v5163_v0 }
 0xdf6   :  { %v239_v62 = vadd.f32 %v237_v60, %v228_v61  ;;  %v238_v20 = vadd.f32 %v236_v16, %v227_v19 }
 0xdf8   :  { %v241_v6 = vadd.f32 %v239_v62, %v5258_v24  ;;  %v240_v21 = vadd.f32 %v238_v20, %v5273_v38  ;;  %v4319_v20 = vld [vmem:[%s6427_s0 + $0xa8] sm:$0xff] }
 0xeba   :  { %v1358_v63 = vpop.f32.mrb[16].mxu0 }
 0xebb   :  { %v1360_v8 = vpop.f32.mrb[17].mxu0  ;;  %v1365_v22 = vadd.f32 %v1358_v63, %v240_v21 }
 0xebc   :  { %v1366_v11 = vadd.f32 %v1360_v8, %v241_v6  ;;  %v1362_v12 = vpop.f32.mrb[18].mxu0 }
 0xebd   :  { %v1363_v13 = vpop.f32.mrb[19].mxu0  ;;  %v4387_v23 = vmul.f32 -1.442695, %v1365_v22  ;;  %v4318_v12 = vld [vmem:[%s6427_s0 + $0x40] sm:$0xff] }
 0xebe   :  { %4669 = vtanh.f32 %v1366_v11  ;;  %v4388_v40 = vmul.f32 -1.442695, %v1366_v11 }
 0xebf   :  { %4671 = vpow2.f32 %v4387_v23 }
 0xec8   :  { %v4670_v15 = vpop.eup %4669 }
 0xec9   :  { %1382 = vrot.lane.b32.xlu0 %v4670_v15, %s5102_s2  ;;  %v4672_v25 = vpop.eup %4671 }
 0xeca   :  { %v1373_v26 = vadd.f32 1.0, %v4672_v25 }
 0xecc   :  { %4673 = vrcp.f32 %v1373_v26 }
 0xed6   :  { %v4674_v27 = vpop.eup %4673 }
 0xed7   :  { %v1380_v31 = vmul.f32 %v4674_v27, %v1310_v46 }
 0xf3b   :  { %v1383_v28 = vpop.permute.xlu0 %1382 }
 0xf3c   :  { %v1385_v29 = vmul.f32 %v4674_v27, %v1383_v28 }
 0xf3e   :  { %1387 = vrot.lane.b32.xlu1 %v1385_v29, %s5102_s2 }
 0xf42   :  { %249 = vperm.xlu1 %4556, %v4316_v30   ;;  %v5468_v30 = vld [vmem:[%s6426_s1] ss:$8 sps:$4 sm:$0xff]  }
 0xfb0   :  { %v1388_v35 = vpop.permute.xlu1 %1387 }
 0xfb1   :  { %v1390_v36 = vadd.f32 %v1388_v35, %v1380_v31  ;;  %v5475_v31 = vld [vmem:[%s6426_s1 + $0x14] ss:$8 sps:$4 sm:$0xff]   ;;  %v5481_v35 = vld [vmem:[%s6426_s1 + $0x10] ss:$8 sps:$4 sm:$0xff]  }
 0xfb3   :  { %4675 = vtanh.f32 %v1390_v36 }
 0xfb4   :  { %4677 = vpow2.f32 %v4388_v40 }
 0xfbd   :  { %v4676_v37 = vpop.eup %4675 }
 0xfbe   :  { %1393 = vrot.lane.b32.xlu0 %v4676_v37, %s5102_s2  ;;  %v4678_v58 = vpop.eup %4677 }
 0xfbf   :  { %v1374_v41 = vadd.f32 1.0, %v4678_v58 }
 0xfc1   :  { %4679 = vrcp.f32 %v1374_v41  ;;  %v250_v48 = vpop.permute.xlu1 %249 }
 0xfc2   :  { %258 = vperm.xlu0 %4555, %v4317_v39   ;;  %v253_v49 = vmul.f32 %v250_v48, %v5247_v17  ;;  %v252_v56 = vmul.f32 %v250_v48, %v5265_v33 }
 0xfcb   :  { %v4680_v42 = vpop.eup %4679 }
0x1030   :  { %v1394_v43 = vpop.permute.xlu0 %1393 }
0x1031   :  { %v1396_v44 = vmul.f32 %v4680_v42, %v1394_v43 }
0x1033   :  { %v1397_v45 = vadd.f32 %v1396_v44, %v1317_v55  ;;  %v1400_v46 = vpack.c.bf16 %v1396_v44, %v1396_v44 }
0x1035   :  { %4389 = vmatmul.mubr.msk.bf16.vlgmr.msra.gmra.mrb[8].mxu1 %vm840_vm0, %v1400_v46 }
0x1036   :  { %1565 = vmatpush1.bf16.msra.mxu1 %v5170_v2  ;;  %1596 = vmatprep.mubr.bf16.mxu1 %v5101_v1 }
0x1037   :  { %1566 = vmatprep.subr.bf16.mxu1 %v5178_v3 }
0x103a   :  { %1567 = vmatpush1.bf16.msra.mxu1 %v5185_v4 }
0x103b   :  { %1568 = vmatprep.subr.bf16.mxu1 %v5192_v5 }
0x103e   :  { %1569 = vmatpush1.bf16.msra.mxu1 %v5202_v7 }
0x103f   :  { %1570 = vmatprep.subr.bf16.mxu1 %v5212_v9 }
0x1041   :  { %v259_v47 = vpop.permute.xlu0 %258 }
0x1042   :  { %1571 = vmatpush1.bf16.msra.mxu1 %v5219_v10  ;;  %v262_v2 = vmul.f32 %v259_v47, %v5250_v18 }
0x1043   :  { %1724 = vmatprep.subr.bf16.mxu1 %v5163_v0  ;;  %v261_v0 = vmul.f32 %v259_v47, %v5268_v34 }
0x1044   :  { %v264_v50 = vadd.f32 %v262_v2, %v253_v49 }
0x1045   :  { %v263_v57 = vadd.f32 %v261_v0, %v252_v56 }
0x1046   :  { %v266_v4 = vadd.f32 %v264_v50, %v5258_v24 }
0x1047   :  { %v265_v59 = vadd.f32 %v263_v57, %v5273_v38  ;;  %v4321_v57 = vld [vmem:[%s6427_s0 + $0xa0] sm:$0xff] }
0x1108   :  { %v1438_v3 = vpop.f32.mrb[8].mxu1 }
0x1109   :  { %v1440_v51 = vpop.f32.mrb[9].mxu1  ;;  %v1445_v60 = vadd.f32 %v1438_v3, %v265_v59 }
0x110a   :  { %v1446_v52 = vadd.f32 %v1440_v51, %v266_v4  ;;  %v1442_v53 = vpop.f32.mrb[10].mxu1 }
0x110b   :  { %v1443_v54 = vpop.f32.mrb[11].mxu1  ;;  %v4390_v61 = vmul.f32 -1.442695, %v1445_v60  ;;  %v4320_v53 = vld [vmem:[%s6427_s0 + $0x48] sm:$0xff] }
0x110c   :  { %4681 = vtanh.f32 %v1446_v52  ;;  %v4391_v21 = vmul.f32 -1.442695, %v1446_v52 }
0x110d   :  { %4683 = vpow2.f32 %v4390_v61 }
0x1116   :  { %v4682_v55 = vpop.eup %4681 }
0x1117   :  { %1462 = vrot.lane.b32.xlu1 %v4682_v55, %s5102_s2  ;;  %v4684_v62 = vpop.eup %4683 }
0x1118   :  { %v1453_v63 = vadd.f32 1.0, %v4684_v62 }
0x111a   :  { %4685 = vrcp.f32 %v1453_v63 }
0x1124   :  { %v4686_v6 = vpop.eup %4685 }
0x1125   :  { %v1460_v13 = vmul.f32 %v4686_v6, %v1390_v36  ;;  %v5491_v36 = vld [vmem:[%s6426_s1 + $0x4] ss:$8 sps:$4 sm:$0xff]  }
0x1189   :  { %v1463_v8 = vpop.permute.xlu1 %1462 }
0x118a   :  { %v1465_v11 = vmul.f32 %v4686_v6, %v1463_v8 }
0x118c   :  { %1467 = vrot.lane.b32.xlu0 %v1465_v11, %s5102_s2 }
0x1190   :  { %274 = vperm.xlu0 %4555, %v4318_v12   ;;  %v5517_v12 = vld [vmem:[%s6426_s1 + $0x24] ss:$8 sps:$4 sm:$0xff]  }
0x11fe   :  { %v1468_v15 = vpop.permute.xlu0 %1467 }
0x11ff   :  { %v1470_v16 = vadd.f32 %v1468_v15, %v1460_v13  ;;  %v5523_v13 = vld [vmem:[%s6426_s1 + $0x20] ss:$8 sps:$4 sm:$0xff]   ;;  %v5529_v15 = vld [vmem:[%s6426_s1 + $0x34] ss:$8 sps:$4 sm:$0xff]  }
0x1201   :  { %4687 = vtanh.f32 %v1470_v16 }
0x1202   :  { %4689 = vpow2.f32 %v4391_v21 }
0x120b   :  { %v4688_v19 = vpop.eup %4687 }
0x120c   :  { %1473 = vrot.lane.b32.xlu1 %v4688_v19, %s5102_s2  ;;  %v4690_v22 = vpop.eup %4689 }
0x120d   :  { %v1454_v23 = vadd.f32 1.0, %v4690_v22 }
0x120f   :  { %4691 = vrcp.f32 %v1454_v23  ;;  %v275_v39 = vpop.permute.xlu0 %274 }
0x1210   :  { %283 = vperm.xlu1 %4556, %v4319_v20   ;;  %v278_v58 = vmul.f32 %v275_v39, %v5247_v17  ;;  %v277_v46 = vmul.f32 %v275_v39, %v5265_v33 }
0x1219   :  { %v4692_v25 = vpop.eup %4691 }
0x127e   :  { %v1474_v26 = vpop.permute.xlu1 %1473 }
0x127f   :  { %v1476_v27 = vmul.f32 %v4692_v25, %v1474_v26 }
0x1281   :  { %v1477_v28 = vadd.f32 %v1476_v27, %v1397_v45  ;;  %v1480_v29 = vpack.c.bf16 %v1476_v27, %v1476_v27 }
0x1283   :  { %4392 = vmatmul.mubr.msk.bf16.vlgmr.msra.gmra.mrb[20].mxu0 %vm840_vm0, %v1480_v29 }
0x1284   :  { %1645 = vmatpush1.bf16.msra.mxu0 %v5468_v30  ;;  %1676 = vmatprep.mubr.bf16.mxu0 %v5101_v1 }
0x1285   :  { %1646 = vmatprep.subr.bf16.mxu0 %v5475_v31 }
0x1288   :  { %1647 = vmatpush1.bf16.msra.mxu0 %v5481_v35 }
0x1289   :  { %1648 = vmatprep.subr.bf16.mxu0 %v5192_v5 }
0x128c   :  { %1649 = vmatpush1.bf16.msra.mxu0 %v5202_v7 }
0x128d   :  { %1650 = vmatprep.subr.bf16.mxu0 %v5212_v9 }
0x128f   :  { %v284_v37 = vpop.permute.xlu1 %283 }
0x1290   :  { %1651 = vmatpush1.bf16.msra.mxu0 %v5219_v10  ;;  %v287_v40 = vmul.f32 %v284_v37, %v5250_v18  ;;  %v286_v45 = vmul.f32 %v284_v37, %v5268_v34 }
0x1291   :  { %1804 = vmatprep.subr.bf16.mxu0 %v5491_v36 }
0x1292   :  { %v289_v5 = vadd.f32 %v287_v40, %v278_v58  ;;  %v288_v47 = vadd.f32 %v286_v45, %v277_v46  ;;  %v4322_v46 = vld [vmem:[%s6427_s0 + $0x50] sm:$0xff] }
0x1294   :  { %v291_v7 = vadd.f32 %v289_v5, %v5258_v24  ;;  %v290_v48 = vadd.f32 %v288_v47, %v5273_v38 }
0x1356   :  { %v1518_v41 = vpop.f32.mrb[20].mxu0 }
0x1357   :  { %v1520_v9 = vpop.f32.mrb[21].mxu0  ;;  %v1525_v2 = vadd.f32 %v1518_v41, %v290_v48 }
0x1358   :  { %v1526_v42 = vadd.f32 %v1520_v9, %v291_v7  ;;  %v1522_v10 = vpop.f32.mrb[22].mxu0 }
0x1359   :  { %v1523_v43 = vpop.f32.mrb[23].mxu0  ;;  %v4393_v49 = vmul.f32 -1.442695, %v1525_v2 }
0x135a   :  { %4693 = vtanh.f32 %v1526_v42  ;;  %v4394_v59 = vmul.f32 -1.442695, %v1526_v42 }
0x135b   :  { %4695 = vpow2.f32 %v4393_v49 }
0x1364   :  { %v4694_v44 = vpop.eup %4693 }
0x1365   :  { %1542 = vrot.lane.b32.xlu0 %v4694_v44, %s5102_s2  ;;  %v4696_v50 = vpop.eup %4695 }
0x1366   :  { %v1533_v3 = vadd.f32 1.0, %v4696_v50  ;;  %v5554_v50 = vld [vmem:[%s6427_s0 + $0x98] sm:$0xff] }
0x1368   :  { %4697 = vrcp.f32 %v1533_v3 }
0x1372   :  { %v4698_v4 = vpop.eup %4697 }
0x1373   :  { %v1540_v54 = vmul.f32 %v4698_v4, %v1470_v16  ;;  %v5535_v16 = vld [vmem:[%s6426_s1 + $0x30] ss:$8 sps:$4 sm:$0xff]  }
0x13d7   :  { %v1543_v51 = vpop.permute.xlu0 %1542 }
0x13d8   :  { %v1545_v52 = vmul.f32 %v4698_v4, %v1543_v51 }
0x13da   :  { %1547 = vrot.lane.b32.xlu1 %v1545_v52, %s5102_s2 }
0x13de   :  { %299 = vperm.xlu1 %4556, %v4320_v53  }
0x144c   :  { %v1548_v55 = vpop.permute.xlu1 %1547 }
0x144d   :  { %v1550_v0 = vadd.f32 %v1548_v55, %v1540_v54 }
0x144f   :  { %4699 = vtanh.f32 %v1550_v0 }
0x1450   :  { %4701 = vpow2.f32 %v4394_v59 }
0x1459   :  { %v4700_v56 = vpop.eup %4699 }
0x145a   :  { %1553 = vrot.lane.b32.xlu0 %v4700_v56, %s5102_s2  ;;  %v4702_v60 = vpop.eup %4701 }
0x145b   :  { %v1534_v61 = vadd.f32 1.0, %v4702_v60 }
0x145d   :  { %4703 = vrcp.f32 %v1534_v61  ;;  %v300_v20 = vpop.permute.xlu1 %299 }
0x145e   :  { %308 = vperm.xlu0 %4555, %v4321_v57   ;;  %v303_v22 = vmul.f32 %v300_v20, %v5247_v17  ;;  %v302_v58 = vmul.f32 %v300_v20, %v5265_v33 }
0x1467   :  { %v4704_v62 = vpop.eup %4703 }
0x14cc   :  { %v1554_v63 = vpop.permute.xlu0 %1553 }
0x14cd   :  { %v1556_v6 = vmul.f32 %v4704_v62, %v1554_v63 }
0x14cf   :  { %v1557_v8 = vadd.f32 %v1556_v6, %v1477_v28  ;;  %v1560_v11 = vpack.c.bf16 %v1556_v6, %v1556_v6 }
0x14d1   :  { %4395 = vmatmul.mubr.msk.bf16.vlgmr.msra.gmra.mrb[12].mxu1 %vm840_vm0, %v1560_v11 }
0x14d2   :  { %1725 = vmatpush1.bf16.msra.mxu1 %v5468_v30  ;;  %1756 = vmatprep.mubr.bf16.mxu1 %v5101_v1 }
0x14d3   :  { %1726 = vmatprep.subr.bf16.mxu1 %v5475_v31 }
0x14d6   :  { %1727 = vmatpush1.bf16.msra.mxu1 %v5481_v35 }
0x14d7   :  { %1728 = vmatprep.subr.bf16.mxu1 %v5517_v12 }
0x14da   :  { %1729 = vmatpush1.bf16.msra.mxu1 %v5523_v13 }
0x14db   :  { %1730 = vmatprep.subr.bf16.mxu1 %v5529_v15 }
0x14dd   :  { %v309_v19 = vpop.permute.xlu0 %308 }
0x14de   :  { %1731 = vmatpush1.bf16.msra.mxu1 %v5535_v16  ;;  %v312_v21 = vmul.f32 %v309_v19, %v5250_v18  ;;  %v311_v40 = vmul.f32 %v309_v19, %v5268_v34 }
0x14df   :  { %1884 = vmatprep.subr.bf16.mxu1 %v5491_v36 }
0x14e0   :  { %v314_v23 = vadd.f32 %v312_v21, %v303_v22  ;;  %v313_v5 = vadd.f32 %v311_v40, %v302_v58  ;;  %v5578_v58 = vld [vmem:[%s6427_s0 + $0x58] sm:$0xff] }
0x14e2   :  { %v316_v26 = vadd.f32 %v314_v23, %v5258_v24  ;;  %v315_v41 = vadd.f32 %v313_v5, %v5273_v38 }
0x15a4   :  { %v1598_v25 = vpop.f32.mrb[12].mxu1 }
0x15a5   :  { %v1600_v27 = vpop.f32.mrb[13].mxu1  ;;  %v1605_v7 = vadd.f32 %v1598_v25, %v315_v41 }
0x15a6   :  { %v1606_v28 = vadd.f32 %v1600_v27, %v316_v26  ;;  %v1602_v29 = vpop.f32.mrb[14].mxu1 }
0x15a7   :  { %v1603_v37 = vpop.f32.mrb[15].mxu1  ;;  %v4396_v9 = vmul.f32 -1.442695, %v1605_v7 }
0x15a8   :  { %4705 = vtanh.f32 %v1606_v28  ;;  %v4397_v3 = vmul.f32 -1.442695, %v1606_v28 }
0x15a9   :  { %4707 = vpow2.f32 %v4396_v9 }
0x15b2   :  { %v4706_v39 = vpop.eup %4705 }
0x15b3   :  { %1622 = vrot.lane.b32.xlu1 %v4706_v39, %s5102_s2  ;;  %v4708_v42 = vpop.eup %4707 }
0x15b4   :  { %v1613_v10 = vadd.f32 1.0, %v4708_v42  ;;  %v5585_v42 = vld [vmem:[%s6427_s0 + $0x90] sm:$0xff] }
0x15b6   :  { %4709 = vrcp.f32 %v1613_v10 }
0x15c0   :  { %v4710_v43 = vpop.eup %4709 }
0x15c1   :  { %v1620_v47 = vmul.f32 %v4710_v43, %v1550_v0 }
0x1625   :  { %v1623_v44 = vpop.permute.xlu1 %1622 }
0x1626   :  { %v1625_v45 = vmul.f32 %v4710_v43, %v1623_v44 }
0x1628   :  { %1627 = vrot.lane.b32.xlu0 %v1625_v45, %s5102_s2 }
0x162c   :  { %324 = vperm.xlu0 %4555, %v4322_v46  }
0x169a   :  { %v1628_v48 = vpop.permute.xlu0 %1627 }
0x169b   :  { %v1630_v2 = vadd.f32 %v1628_v48, %v1620_v47 }
0x169d   :  { %4711 = vtanh.f32 %v1630_v2 }
0x169e   :  { %4713 = vpow2.f32 %v4397_v3 }
0x16a7   :  { %v4712_v49 = vpop.eup %4711 }
0x16a8   :  { %1633 = vrot.lane.b32.xlu1 %v4712_v49, %s5102_s2  ;;  %v4714_v4 = vpop.eup %4713 }
0x16a9   :  { %v1614_v51 = vadd.f32 1.0, %v4714_v4 }
0x16ab   :  { %4715 = vrcp.f32 %v1614_v51  ;;  %v325_v57 = vpop.permute.xlu0 %324 }
0x16ac   :  { %333 = vperm.xlu1 %4556, %v5554_v50   ;;  %v328_v60 = vmul.f32 %v325_v57, %v5247_v17  ;;  %v327_v22 = vmul.f32 %v325_v57, %v5265_v33 }
0x16b5   :  { %v4716_v52 = vpop.eup %4715 }
0x171a   :  { %v1634_v53 = vpop.permute.xlu1 %1633 }
0x171b   :  { %v1636_v54 = vmul.f32 %v4716_v52, %v1634_v53 }
0x171d   :  { %v1637_v55 = vadd.f32 %v1636_v54, %v1557_v8  ;;  %v1640_v0 = vpack.c.bf16 %v1636_v54, %v1636_v54 }
0x171f   :  { %4398 = vmatmul.mubr.msk.bf16.vlgmr.msra.gmra.mrb[24].mxu0 %vm840_vm0, %v1640_v0 }
0x1720   :  { %1805 = vmatpush1.bf16.msra.mxu0 %v5468_v30  ;;  %1836 = vmatprep.mubr.bf16.mxu0 %v5101_v1 }
0x1721   :  { %1806 = vmatprep.subr.bf16.mxu0 %v5475_v31 }
0x1724   :  { %1807 = vmatpush1.bf16.msra.mxu0 %v5481_v35 }
0x1725   :  { %1808 = vmatprep.subr.bf16.mxu0 %v5517_v12 }
0x1728   :  { %1809 = vmatpush1.bf16.msra.mxu0 %v5523_v13 }
0x1729   :  { %1810 = vmatprep.subr.bf16.mxu0 %v5529_v15 }
0x172b   :  { %v334_v56 = vpop.permute.xlu1 %333 }
0x172c   :  { %1811 = vmatpush1.bf16.msra.mxu0 %v5535_v16  ;;  %v337_v59 = vmul.f32 %v334_v56, %v5250_v18  ;;  %v336_v21 = vmul.f32 %v334_v56, %v5268_v34 }
0x172d   :  { %1964 = vmatprep.subr.bf16.mxu0 %v5491_v36 }
0x172e   :  { %v339_v61 = vadd.f32 %v337_v59, %v328_v60  ;;  %v338_v23 = vadd.f32 %v336_v21, %v327_v22 }
0x1730   :  { %v341_v63 = vadd.f32 %v339_v61, %v5258_v24  ;;  %v340_v25 = vadd.f32 %v338_v23, %v5273_v38  ;;  %v5609_v23 = vld [vmem:[%s6427_s0 + $0x60] sm:$0xff] }
0x17f2   :  { %v1678_v62 = vpop.f32.mrb[24].mxu0 }
0x17f3   :  { %v1680_v6 = vpop.f32.mrb[25].mxu0  ;;  %v1685_v26 = vadd.f32 %v1678_v62, %v340_v25 }
0x17f4   :  { %v1686_v8 = vadd.f32 %v1680_v6, %v341_v63  ;;  %v1682_v11 = vpop.f32.mrb[26].mxu0 }
0x17f5   :  { %v1683_v19 = vpop.f32.mrb[27].mxu0  ;;  %v4399_v27 = vmul.f32 -1.442695, %v1685_v26 }
0x17f6   :  { %4717 = vtanh.f32 %v1686_v8  ;;  %v4400_v10 = vmul.f32 -1.442695, %v1686_v8 }
0x17f7   :  { %4719 = vpow2.f32 %v4399_v27 }
0x1800   :  { %v4718_v20 = vpop.eup %4717 }
0x1801   :  { %1702 = vrot.lane.b32.xlu0 %v4718_v20, %s5102_s2  ;;  %v4720_v28 = vpop.eup %4719 }
0x1802   :  { %v1693_v29 = vadd.f32 1.0, %v4720_v28 }
0x1804   :  { %4721 = vrcp.f32 %v1693_v29  ;;  %v5616_v29 = vld [vmem:[%s6427_s0 + $0x88] sm:$0xff] }
0x180e   :  { %v4722_v37 = vpop.eup %4721 }
0x180f   :  { %v1700_v5 = vmul.f32 %v4722_v37, %v1630_v2 }
0x1873   :  { %v1703_v39 = vpop.permute.xlu0 %1702 }
0x1874   :  { %v1705_v40 = vmul.f32 %v4722_v37, %v1703_v39 }
0x1876   :  { %1707 = vrot.lane.b32.xlu1 %v1705_v40, %s5102_s2 }
0x187a   :  { %349 = vperm.xlu1 %4556, %v5578_v58  }
0x18e8   :  { %v1708_v41 = vpop.permute.xlu1 %1707 }
0x18e9   :  { %v1710_v7 = vadd.f32 %v1708_v41, %v1700_v5 }
0x18eb   :  { %4723 = vtanh.f32 %v1710_v7 }
0x18ec   :  { %4725 = vpow2.f32 %v4400_v10 }
0x18f5   :  { %v4724_v9 = vpop.eup %4723 }
0x18f6   :  { %1713 = vrot.lane.b32.xlu0 %v4724_v9, %s5102_s2  ;;  %v4726_v43 = vpop.eup %4725 }
0x18f7   :  { %v1694_v44 = vadd.f32 1.0, %v4726_v43 }
0x18f9   :  { %4727 = vrcp.f32 %v1694_v44  ;;  %v350_v3 = vpop.permute.xlu1 %349 }
0x18fa   :  { %358 = vperm.xlu0 %4555, %v5585_v42   ;;  %v353_v51 = vmul.f32 %v350_v3, %v5247_v17  ;;  %v352_v61 = vmul.f32 %v350_v3, %v5265_v33 }
0x1903   :  { %v4728_v45 = vpop.eup %4727 }
0x1968   :  { %v1714_v46 = vpop.permute.xlu0 %1713 }
0x1969   :  { %v1716_v47 = vmul.f32 %v4728_v45, %v1714_v46 }
0x196b   :  { %v1717_v48 = vadd.f32 %v1716_v47, %v1637_v55  ;;  %v1720_v2 = vpack.c.bf16 %v1716_v47, %v1716_v47 }
0x196d   :  { %4401 = vmatmul.mubr.msk.bf16.vlgmr.msra.gmra.mrb[16].mxu1 %vm840_vm0, %v1720_v2 }
0x196e   :  { %1885 = vmatpush1.bf16.msra.mxu1 %v5468_v30  ;;  %1916 = vmatprep.mubr.bf16.mxu1 %v5101_v1 }
0x196f   :  { %1886 = vmatprep.subr.bf16.mxu1 %v5475_v31 }
0x1972   :  { %1887 = vmatpush1.bf16.msra.mxu1 %v5481_v35 }
0x1973   :  { %1888 = vmatprep.subr.bf16.mxu1 %v5517_v12 }
0x1976   :  { %1889 = vmatpush1.bf16.msra.mxu1 %v5523_v13 }
0x1977   :  { %1890 = vmatprep.subr.bf16.mxu1 %v5529_v15 }
0x1979   :  { %v359_v49 = vpop.permute.xlu0 %358 }
0x197a   :  { %1891 = vmatpush1.bf16.msra.mxu1 %v5535_v16  ;;  %v362_v4 = vmul.f32 %v359_v49, %v5250_v18  ;;  %v361_v60 = vmul.f32 %v359_v49, %v5268_v34 }
0x197b   :  { %2044 = vmatprep.subr.bf16.mxu1 %v5491_v36 }
0x197c   :  { %v364_v52 = vadd.f32 %v362_v4, %v353_v51  ;;  %v363_v62 = vadd.f32 %v361_v60, %v352_v61 }
0x197e   :  { %v366_v54 = vadd.f32 %v364_v52, %v5258_v24  ;;  %v365_v63 = vadd.f32 %v363_v62, %v5273_v38 }
0x1a40   :  { %v1758_v53 = vpop.f32.mrb[16].mxu1 }
0x1a41   :  { %v1760_v55 = vpop.f32.mrb[17].mxu1  ;;  %v1765_v6 = vadd.f32 %v1758_v53, %v365_v63 }
0x1a42   :  { %v1766_v0 = vadd.f32 %v1760_v55, %v366_v54  ;;  %v1762_v56 = vpop.f32.mrb[18].mxu1 }
0x1a43   :  { %v1763_v57 = vpop.f32.mrb[19].mxu1  ;;  %v4402_v8 = vmul.f32 -1.442695, %v1765_v6  ;;  %v5640_v6 = vld [vmem:[%s6427_s0 + $0x68] sm:$0xff] }
0x1a44   :  { %4729 = vtanh.f32 %v1766_v0  ;;  %v4403_v37 = vmul.f32 -1.442695, %v1766_v0 }
0x1a45   :  { %4731 = vpow2.f32 %v4402_v8 }
0x1a4e   :  { %v4730_v59 = vpop.eup %4729 }
0x1a4f   :  { %1782 = vrot.lane.b32.xlu1 %v4730_v59, %s5102_s2  ;;  %v4732_v11 = vpop.eup %4731 }
0x1a50   :  { %v1773_v19 = vadd.f32 1.0, %v4732_v11 }
0x1a52   :  { %4733 = vrcp.f32 %v1773_v19 }
0x1a5c   :  { %v4734_v20 = vpop.eup %4733 }
0x1a5d   :  { %v1780_v25 = vmul.f32 %v4734_v20, %v1710_v7 }
0x1ac1   :  { %v1783_v21 = vpop.permute.xlu1 %1782 }
0x1ac2   :  { %v1785_v22 = vmul.f32 %v4734_v20, %v1783_v21  ;;  %v5647_v21 = vld [vmem:[%s6427_s0 + $0x80] sm:$0xff] }
0x1ac4   :  { %1787 = vrot.lane.b32.xlu0 %v1785_v22, %s5102_s2 }
0x1ac8   :  { %374 = vperm.xlu0 %4555, %v5609_v23  }
0x1b36   :  { %v1788_v26 = vpop.permute.xlu0 %1787 }
0x1b37   :  { %v1790_v27 = vadd.f32 %v1788_v26, %v1780_v25 }
0x1b39   :  { %4735 = vtanh.f32 %v1790_v27 }
0x1b3a   :  { %4737 = vpow2.f32 %v4403_v37 }
0x1b43   :  { %v4736_v28 = vpop.eup %4735 }
0x1b44   :  { %1793 = vrot.lane.b32.xlu1 %v4736_v28, %s5102_s2  ;;  %v4738_v39 = vpop.eup %4737 }
0x1b45   :  { %v1774_v40 = vadd.f32 1.0, %v4738_v39 }
0x1b47   :  { %4739 = vrcp.f32 %v1774_v40  ;;  %v375_v44 = vpop.permute.xlu0 %374 }
0x1b48   :  { %383 = vperm.xlu1 %4556, %v5616_v29   ;;  %v378_v46 = vmul.f32 %v375_v44, %v5247_v17  ;;  %v377_v54 = vmul.f32 %v375_v44, %v5265_v33 }
0x1b51   :  { %v4740_v5 = vpop.eup %4739 }
0x1bb6   :  { %v1794_v41 = vpop.permute.xlu1 %1793 }
0x1bb7   :  { %v1796_v7 = vmul.f32 %v4740_v5, %v1794_v41 }
0x1bb9   :  { %v1797_v9 = vadd.f32 %v1796_v7, %v1717_v48  ;;  %v1800_v10 = vpack.c.bf16 %v1796_v7, %v1796_v7 }
0x1bbb   :  { %4404 = vmatmul.mubr.msk.bf16.vlgmr.msra.gmra.mrb[28].mxu0 %vm840_vm0, %v1800_v10 }
0x1bbc   :  { %1965 = vmatpush1.bf16.msra.mxu0 %v5468_v30  ;;  %1996 = vmatprep.mubr.bf16.mxu0 %v5101_v1 }
0x1bbd   :  { %1966 = vmatprep.subr.bf16.mxu0 %v5475_v31 }
0x1bc0   :  { %1967 = vmatpush1.bf16.msra.mxu0 %v5481_v35 }
0x1bc1   :  { %1968 = vmatprep.subr.bf16.mxu0 %v5517_v12 }
0x1bc4   :  { %1969 = vmatpush1.bf16.msra.mxu0 %v5523_v13 }
0x1bc5   :  { %1970 = vmatprep.subr.bf16.mxu0 %v5529_v15 }
0x1bc7   :  { %v384_v43 = vpop.permute.xlu1 %383 }
0x1bc8   :  { %1971 = vmatpush1.bf16.msra.mxu0 %v5535_v16  ;;  %v387_v45 = vmul.f32 %v384_v43, %v5250_v18  ;;  %v386_v53 = vmul.f32 %v384_v43, %v5268_v34 }
0x1bc9   :  { %2124 = vmatprep.subr.bf16.mxu0 %v5491_v36 }
0x1bca   :  { %v389_v47 = vadd.f32 %v387_v45, %v378_v46  ;;  %v388_v55 = vadd.f32 %v386_v53, %v377_v54 }
0x1bcc   :  { %v391_v2 = vadd.f32 %v389_v47, %v5258_v24  ;;  %v390_v0 = vadd.f32 %v388_v55, %v5273_v38 }
0x1c8e   :  { %v1838_v48 = vpop.f32.mrb[28].mxu0 }
0x1c8f   :  { %v1840_v49 = vpop.f32.mrb[29].mxu0  ;;  %v1845_v56 = vadd.f32 %v1838_v48, %v390_v0 }
0x1c90   :  { %v1846_v3 = vadd.f32 %v1840_v49, %v391_v2  ;;  %v1842_v4 = vpop.f32.mrb[30].mxu0 }
0x1c91   :  { %v1843_v51 = vpop.f32.mrb[31].mxu0  ;;  %v4405_v57 = vmul.f32 -1.442695, %v1845_v56 }
0x1c92   :  { %4741 = vtanh.f32 %v1846_v3  ;;  %v4406_v22 = vmul.f32 -1.442695, %v1846_v3 }
0x1c93   :  { %4743 = vpow2.f32 %v4405_v57 }
0x1c9c   :  { %v4742_v52 = vpop.eup %4741 }
0x1c9d   :  { %1862 = vrot.lane.b32.xlu0 %v4742_v52, %s5102_s2  ;;  %v4744_v59 = vpop.eup %4743 }
0x1c9e   :  { %v1853_v60 = vadd.f32 1.0, %v4744_v59  ;;  %v5671_v59 = vld [vmem:[%s6427_s0 + $0x70] sm:$0xff] }
0x1ca0   :  { %4745 = vrcp.f32 %v1853_v60 }
0x1caa   :  { %v4746_v61 = vpop.eup %4745 }
0x1cab   :  { %v1860_v8 = vmul.f32 %v4746_v61, %v1790_v27 }
0x1d0f   :  { %v1863_v62 = vpop.permute.xlu0 %1862 }
0x1d10   :  { %v1865_v63 = vmul.f32 %v4746_v61, %v1863_v62 }
0x1d12   :  { %1867 = vrot.lane.b32.xlu1 %v1865_v63, %s5102_s2 }
0x1d16   :  { %399 = vperm.xlu1 %4556, %v5640_v6  }
0x1d84   :  { %v1868_v11 = vpop.permute.xlu1 %1867 }
0x1d85   :  { %v1870_v19 = vadd.f32 %v1868_v11, %v1860_v8  ;;  %v4331_v8 = vld [vmem:[%s6427_s0 + $0x78] sm:$0xff] }
0x1d87   :  { %4747 = vtanh.f32 %v1870_v19 }
0x1d88   :  { %4749 = vpow2.f32 %v4406_v22 }
0x1d91   :  { %v4748_v20 = vpop.eup %4747 }
0x1d92   :  { %1873 = vrot.lane.b32.xlu0 %v4748_v20, %s5102_s2  ;;  %v4750_v25 = vpop.eup %4749 }
0x1d93   :  { %v1854_v26 = vadd.f32 1.0, %v4750_v25 }
0x1d95   :  { %4751 = vrcp.f32 %v1854_v26  ;;  %v400_v41 = vpop.permute.xlu1 %399 }
0x1d96   :  { %408 = vperm.xlu0 %4555, %v5647_v21   ;;  %v402_v3 = vmul.f32 %v400_v41, %v5265_v33 }
0x1d9f   :  { %v4752_v28 = vpop.eup %4751 }
0x1e04   :  { %v1874_v27 = vpop.permute.xlu0 %1873 }
0x1e05   :  { %v1876_v37 = vmul.f32 %v4752_v28, %v1874_v27 }
0x1e07   :  { %v1877_v39 = vadd.f32 %v1876_v37, %v1797_v9  ;;  %v1880_v40 = vpack.c.bf16 %v1876_v37, %v1876_v37  ;;  %v403_v9 = vmul.f32 %v400_v41, %v5247_v17 }
0x1e09   :  { %4407 = vmatmul.mubr.msk.bf16.vlgmr.msra.gmra.mrb[20].mxu1 %vm840_vm0, %v1880_v40 }
0x1e0a   :  { %2045 = vmatpush1.bf16.msra.mxu1 %v5468_v30  ;;  %2076 = vmatprep.mubr.bf16.mxu1 %v5101_v1 }
0x1e0b   :  { %2046 = vmatprep.subr.bf16.mxu1 %v5475_v31 }
0x1e0e   :  { %2047 = vmatpush1.bf16.msra.mxu1 %v5481_v35 }
0x1e0f   :  { %2048 = vmatprep.subr.bf16.mxu1 %v5517_v12 }
0x1e12   :  { %2049 = vmatpush1.bf16.msra.mxu1 %v5523_v13 }
0x1e13   :  { %2050 = vmatprep.subr.bf16.mxu1 %v5529_v15 }
0x1e15   :  { %v409_v5 = vpop.permute.xlu0 %408 }
0x1e16   :  { %2051 = vmatpush1.bf16.msra.mxu1 %v5535_v16  ;;  %v412_v7 = vmul.f32 %v409_v5, %v5250_v18  ;;  %v411_v49 = vmul.f32 %v409_v5, %v5268_v34 }
0x1e17   :  { %2204 = vmatprep.subr.bf16.mxu1 %v5491_v36 }
0x1e18   :  { %v414_v10 = vadd.f32 %v412_v7, %v403_v9  ;;  %v413_v4 = vadd.f32 %v411_v49, %v402_v3 }
0x1e1a   :  { %v416_v44 = vadd.f32 %v414_v10, %v5258_v24  ;;  %v415_v51 = vadd.f32 %v413_v4, %v5273_v38 }
0x1edc   :  { %v1918_v43 = vpop.f32.mrb[20].mxu1 }
0x1edd   :  { %v1920_v45 = vpop.f32.mrb[21].mxu1  ;;  %v1925_v52 = vadd.f32 %v1918_v43, %v415_v51 }
0x1ede   :  { %v1926_v46 = vadd.f32 %v1920_v45, %v416_v44  ;;  %v1922_v47 = vpop.f32.mrb[22].mxu1 }
0x1edf   :  { %v1923_v48 = vpop.f32.mrb[23].mxu1  ;;  %v4408_v53 = vmul.f32 -1.442695, %v1925_v52 }
0x1ee0   :  { %4753 = vtanh.f32 %v1926_v46  ;;  %v4409_v11 = vmul.f32 -1.442695, %v1926_v46 }
0x1ee1   :  { %4755 = vpow2.f32 %v4408_v53 }
0x1eea   :  { %v4754_v2 = vpop.eup %4753 }
0x1eeb   :  { %1942 = vrot.lane.b32.xlu1 %v4754_v2, %s5102_s2  ;;  %v4756_v54 = vpop.eup %4755 }
0x1eec   :  { %v1933_v55 = vadd.f32 1.0, %v4756_v54 }
0x1eee   :  { %4757 = vrcp.f32 %v1933_v55 }
0x1ef8   :  { %v4758_v0 = vpop.eup %4757 }
0x1ef9   :  { %v1940_v60 = vmul.f32 %v4758_v0, %v1870_v19 }
0x1f5d   :  { %v1943_v56 = vpop.permute.xlu1 %1942 }
0x1f5e   :  { %v1945_v57 = vmul.f32 %v4758_v0, %v1943_v56 }
0x1f60   :  { %1947 = vrot.lane.b32.xlu0 %v1945_v57, %s5102_s2 }
0x1f64   :  { %424 = vperm.xlu0 %4555, %v5671_v59  }
0x1fd2   :  { %v1948_v61 = vpop.permute.xlu0 %1947 }
0x1fd3   :  { %v1950_v62 = vadd.f32 %v1948_v61, %v1940_v60 }
0x1fd5   :  { %4759 = vtanh.f32 %v1950_v62 }
0x1fd6   :  { %4761 = vpow2.f32 %v4409_v11 }
0x1fdf   :  { %v4760_v63 = vpop.eup %4759 }
0x1fe0   :  { %1953 = vrot.lane.b32.xlu1 %v4760_v63, %s5102_s2  ;;  %v4762_v20 = vpop.eup %4761 }
0x1fe1   :  { %v1934_v22 = vadd.f32 1.0, %v4762_v20 }
0x1fe3   :  { %4763 = vrcp.f32 %v1934_v22 }
0x1fe4   :  { %433 = vperm.xlu1 %4556, %v4331_v8  }
0x1fed   :  { %v4764_v25 = vpop.eup %4763 }
0x2052   :  { %v1954_v26 = vpop.permute.xlu1 %1953 }
0x2053   :  { %v1956_v28 = vmul.f32 %v4764_v25, %v1954_v26 }
0x2055   :  { %v1957_v19 = vadd.f32 %v1956_v28, %v1877_v39  ;;  %v1960_v27 = vpack.c.bf16 %v1956_v28, %v1956_v28  ;;  %v425_v39 = vpop.permute.xlu0 %424 }
0x2056   :  { %v428_v5 = vmul.f32 %v425_v39, %v5247_v17  ;;  %v427_v48 = vmul.f32 %v425_v39, %v5265_v33 }
0x2057   :  { %4410 = vmatmul.mubr.msk.bf16.vlgmr.msra.gmra.mrb[32].mxu0 %vm840_vm0, %v1960_v27 }
0x2058   :  { %2125 = vmatpush1.bf16.msra.mxu0 %v5468_v30  ;;  %2156 = vmatprep.mubr.bf16.mxu0 %v5101_v1 }
0x2059   :  { %2126 = vmatprep.subr.bf16.mxu0 %v5475_v31 }
0x205c   :  { %2127 = vmatpush1.bf16.msra.mxu0 %v5481_v35 }
0x205d   :  { %2128 = vmatprep.subr.bf16.mxu0 %v5517_v12 }
0x2060   :  { %2129 = vmatpush1.bf16.msra.mxu0 %v5523_v13 }
0x2061   :  { %2130 = vmatprep.subr.bf16.mxu0 %v5529_v15 }
0x2063   :  { %v434_v37 = vpop.permute.xlu1 %433 }
0x2064   :  { %2131 = vmatpush1.bf16.msra.mxu0 %v5535_v16  ;;  %v437_v40 = vmul.f32 %v434_v37, %v5250_v18  ;;  %v436_v47 = vmul.f32 %v434_v37, %v5268_v34 }
0x2065   :  { %2284 = vmatprep.subr.bf16.mxu0 %v5491_v36 }
0x2066   :  { %v439_v41 = vadd.f32 %v437_v40, %v428_v5  ;;  %v438_v2 = vadd.f32 %v436_v47, %v427_v48 }
0x2068   :  { %v441_v9 = vadd.f32 %v439_v41, %v5258_v24  ;;  %v440_v49 = vadd.f32 %v438_v2, %v5273_v38 }
0x212a   :  { %v1998_v7 = vpop.f32.mrb[32].mxu0 }
0x212b   :  { %v2000_v10 = vpop.f32.mrb[33].mxu0  ;;  %v2005_v3 = vadd.f32 %v1998_v7, %v440_v49 }
0x212c   :  { %v2006_v43 = vadd.f32 %v2000_v10, %v441_v9  ;;  %v2002_v44 = vpop.f32.mrb[34].mxu0 }
0x212d   :  { %v2003_v45 = vpop.f32.mrb[35].mxu0  ;;  %v4411_v4 = vmul.f32 -1.442695, %v2005_v3 }
0x212e   :  { %4765 = vtanh.f32 %v2006_v43  ;;  %v4412_v61 = vmul.f32 -1.442695, %v2006_v43 }
0x212f   :  { %4767 = vpow2.f32 %v4411_v4 }
0x2138   :  { %v4766_v46 = vpop.eup %4765 }
0x2139   :  { %2022 = vrot.lane.b32.xlu0 %v4766_v46, %s5102_s2  ;;  %v4768_v51 = vpop.eup %4767 }
0x213a   :  { %v2013_v52 = vadd.f32 1.0, %v4768_v51 }
0x213c   :  { %4769 = vrcp.f32 %v2013_v52 }
0x2146   :  { %v4770_v53 = vpop.eup %4769 }
0x2147   :  { %v2020_v0 = vmul.f32 %v4770_v53, %v1950_v62 }
0x21ab   :  { %v2023_v54 = vpop.permute.xlu0 %2022 }
0x21ac   :  { %v2025_v55 = vmul.f32 %v4770_v53, %v2023_v54 }
0x21ae   :  { %2027 = vrot.lane.b32.xlu1 %v2025_v55, %s5102_s2 }
0x21b2   :  { %448 = vperm.xlu1 %4556, %v4331_v8  }
0x2220   :  { %v2028_v56 = vpop.permute.xlu1 %2027 }
0x2221   :  { %v2030_v57 = vadd.f32 %v2028_v56, %v2020_v0 }
0x2223   :  { %4771 = vtanh.f32 %v2030_v57 }
0x2224   :  { %4773 = vpow2.f32 %v4412_v61 }
0x222d   :  { %v4772_v60 = vpop.eup %4771 }
0x222e   :  { %2033 = vrot.lane.b32.xlu0 %v4772_v60, %s5102_s2  ;;  %v4774_v63 = vpop.eup %4773 }
0x222f   :  { %v2014_v11 = vadd.f32 1.0, %v4774_v63 }
0x2231   :  { %4775 = vrcp.f32 %v2014_v11  ;;  %v449_v62 = vpop.permute.xlu1 %448 }
0x2232   :  { %456 = vperm.xlu0 %4555, %v5671_v59   ;;  %v451_v43 = vmul.f32 %v449_v62, %v5265_v33 }
0x223b   :  { %v4776_v20 = vpop.eup %4775 }
0x22a0   :  { %v2034_v22 = vpop.permute.xlu0 %2033 }
0x22a1   :  { %v2036_v25 = vmul.f32 %v4776_v20, %v2034_v22 }
0x22a3   :  { %v2037_v26 = vadd.f32 %v2036_v25, %v1957_v19  ;;  %v2040_v28 = vpack.c.bf16 %v2036_v25, %v2036_v25  ;;  %v452_v19 = vmul.f32 %v449_v62, %v5247_v17 }
0x22a5   :  { %4413 = vmatmul.mubr.msk.bf16.vlgmr.msra.gmra.mrb[24].mxu1 %vm840_vm0, %v2040_v28 }
0x22a6   :  { %2205 = vmatpush1.bf16.msra.mxu1 %v5468_v30  ;;  %2236 = vmatprep.mubr.bf16.mxu1 %v5101_v1 }
0x22a7   :  { %2206 = vmatprep.subr.bf16.mxu1 %v5475_v31 }
0x22aa   :  { %2207 = vmatpush1.bf16.msra.mxu1 %v5481_v35 }
0x22ab   :  { %2208 = vmatprep.subr.bf16.mxu1 %v5517_v12 }
0x22ae   :  { %2209 = vmatpush1.bf16.msra.mxu1 %v5523_v13 }
0x22af   :  { %2210 = vmatprep.subr.bf16.mxu1 %v5529_v15 }
0x22b1   :  { %v457_v59 = vpop.permute.xlu0 %456 }
0x22b2   :  { %2211 = vmatpush1.bf16.msra.mxu1 %v5535_v16  ;;  %v460_v8 = vmul.f32 %v457_v59, %v5250_v18  ;;  %v459_v10 = vmul.f32 %v457_v59, %v5268_v34 }
0x22b3   :  { %2364 = vmatprep.subr.bf16.mxu1 %v5491_v36 }
0x22b4   :  { %v462_v27 = vadd.f32 %v460_v8, %v452_v19  ;;  %v461_v44 = vadd.f32 %v459_v10, %v451_v43 }
0x22b6   :  { %v464_v39 = vadd.f32 %v462_v27, %v5258_v24  ;;  %v463_v45 = vadd.f32 %v461_v44, %v5273_v38 }
0x2378   :  { %v2078_v37 = vpop.f32.mrb[24].mxu1 }
0x2379   :  { %v2080_v40 = vpop.f32.mrb[25].mxu1  ;;  %v2085_v46 = vadd.f32 %v2078_v37, %v463_v45 }
0x237a   :  { %v2086_v5 = vadd.f32 %v2080_v40, %v464_v39  ;;  %v2082_v41 = vpop.f32.mrb[26].mxu1 }
0x237b   :  { %v2083_v7 = vpop.f32.mrb[27].mxu1  ;;  %v4414_v47 = vmul.f32 -1.442695, %v2085_v46 }
0x237c   :  { %4777 = vtanh.f32 %v2086_v5  ;;  %v4415_v55 = vmul.f32 -1.442695, %v2086_v5 }
0x237d   :  { %4779 = vpow2.f32 %v4414_v47 }
0x2386   :  { %v4778_v9 = vpop.eup %4777 }
0x2387   :  { %2102 = vrot.lane.b32.xlu1 %v4778_v9, %s5102_s2  ;;  %v4780_v48 = vpop.eup %4779 }
0x2388   :  { %v2093_v2 = vadd.f32 1.0, %v4780_v48 }
0x238a   :  { %4781 = vrcp.f32 %v2093_v2 }
0x2394   :  { %v4782_v49 = vpop.eup %4781 }
0x2395   :  { %v2100_v51 = vmul.f32 %v4782_v49, %v2030_v57 }
0x23f9   :  { %v2103_v3 = vpop.permute.xlu1 %2102 }
0x23fa   :  { %v2105_v4 = vmul.f32 %v4782_v49, %v2103_v3 }
0x23fc   :  { %2107 = vrot.lane.b32.xlu0 %v2105_v4, %s5102_s2 }
0x2400   :  { %471 = vperm.xlu0 %4555, %v5647_v21  }
0x246e   :  { %v2108_v52 = vpop.permute.xlu0 %2107 }
0x246f   :  { %v2110_v53 = vadd.f32 %v2108_v52, %v2100_v51  ;;  %v5757_v52 = vld [vmem:[%s6426_s1 + $0x10] ss:$8 sps:$4 sm:$0xff]  }
0x2471   :  { %4783 = vtanh.f32 %v2110_v53 }
0x2472   :  { %4785 = vpow2.f32 %v4415_v55 }
0x247b   :  { %v4784_v54 = vpop.eup %4783 }
0x247c   :  { %2113 = vrot.lane.b32.xlu1 %v4784_v54, %s5102_s2  ;;  %v4786_v0 = vpop.eup %4785 }
0x247d   :  { %v2094_v56 = vadd.f32 1.0, %v4786_v0 }
0x247f   :  { %4787 = vrcp.f32 %v2094_v56  ;;  %v472_v21 = vpop.permute.xlu0 %471 }
0x2480   :  { %479 = vperm.xlu1 %4556, %v5640_v6   ;;  %v475_v57 = vmul.f32 %v472_v21, %v5247_v17  ;;  %v474_v8 = vmul.f32 %v472_v21, %v5265_v33 }
0x2489   :  { %v4788_v60 = vpop.eup %4787 }
0x24ee   :  { %v2114_v61 = vpop.permute.xlu1 %2113 }
0x24ef   :  { %v2116_v63 = vmul.f32 %v4788_v60, %v2114_v61 }
0x24f1   :  { %v2117_v11 = vadd.f32 %v2116_v63, %v2037_v26  ;;  %v2120_v20 = vpack.c.bf16 %v2116_v63, %v2116_v63 }
0x24f3   :  { %4416 = vmatmul.mubr.msk.bf16.vlgmr.msra.gmra.mrb[36].mxu0 %vm840_vm0, %v2120_v20 }
0x24f4   :  { %2285 = vmatpush1.bf16.msra.mxu0 %v5468_v30  ;;  %2316 = vmatprep.mubr.bf16.mxu0 %v5101_v1 }
0x24f5   :  { %2286 = vmatprep.subr.bf16.mxu0 %v5475_v31 }
0x24f8   :  { %2287 = vmatpush1.bf16.msra.mxu0 %v5481_v35 }
0x24f9   :  { %2288 = vmatprep.subr.bf16.mxu0 %v5517_v12 }
0x24fc   :  { %2289 = vmatpush1.bf16.msra.mxu0 %v5523_v13 }
0x24fd   :  { %2290 = vmatprep.subr.bf16.mxu0 %v5529_v15 }
0x24ff   :  { %v480_v6 = vpop.permute.xlu1 %479 }
0x2500   :  { %2291 = vmatpush1.bf16.msra.mxu0 %v5535_v16  ;;  %v483_v30 = vmul.f32 %v480_v6, %v5250_v18 }
0x2501   :  { %2444 = vmatprep.subr.bf16.mxu0 %v5491_v36  ;;  %v482_v36 = vmul.f32 %v480_v6, %v5268_v34 }
0x2502   :  { %v485_v22 = vadd.f32 %v483_v30, %v475_v57 }
0x2503   :  { %v484_v19 = vadd.f32 %v482_v36, %v474_v8 }
0x2504   :  { %v487_v35 = vadd.f32 %v485_v22, %v5258_v24 }
0x2505   :  { %v486_v27 = vadd.f32 %v484_v19, %v5273_v38 }
0x25c6   :  { %v2158_v31 = vpop.f32.mrb[36].mxu0 }
0x25c7   :  { %v2160_v25 = vpop.f32.mrb[37].mxu0  ;;  %v2165_v37 = vadd.f32 %v2158_v31, %v486_v27 }
0x25c8   :  { %v2166_v26 = vadd.f32 %v2160_v25, %v487_v35  ;;  %v2162_v28 = vpop.f32.mrb[38].mxu0 }
0x25c9   :  { %v2163_v59 = vpop.f32.mrb[39].mxu0  ;;  %v4417_v39 = vmul.f32 -1.442695, %v2165_v37 }
0x25ca   :  { %4789 = vtanh.f32 %v2166_v26  ;;  %v4418_v46 = vmul.f32 -1.442695, %v2166_v26 }
0x25cb   :  { %4791 = vpow2.f32 %v4417_v39 }
0x25d4   :  { %v4790_v62 = vpop.eup %4789 }
0x25d5   :  { %2182 = vrot.lane.b32.xlu0 %v4790_v62, %s5102_s2  ;;  %v4792_v40 = vpop.eup %4791 }
0x25d6   :  { %v2173_v5 = vadd.f32 1.0, %v4792_v40 }
0x25d8   :  { %4793 = vrcp.f32 %v2173_v5 }
0x25e2   :  { %v4794_v41 = vpop.eup %4793 }
0x25e3   :  { %v2180_v10 = vmul.f32 %v4794_v41, %v2110_v53  ;;  %v5767_v53 = vld [vmem:[%s6426_s1 + $0x4] ss:$8 sps:$4 sm:$0xff]  }
0x2647   :  { %v2183_v7 = vpop.permute.xlu0 %2182 }
0x2648   :  { %v2185_v9 = vmul.f32 %v4794_v41, %v2183_v7 }
0x264a   :  { %2187 = vrot.lane.b32.xlu1 %v2185_v9, %s5102_s2  ;;  %v5801_v9 = vld [vmem:[%s6426_s1 + $0x34] ss:$8 sps:$4 sm:$0xff]  }
0x264e   :  { %494 = vperm.xlu1 %4556, %v5616_v29   ;;  %v5744_v29 = vld [vmem:[%s6426_s1] ss:$8 sps:$4 sm:$0xff]  }
0x26bc   :  { %v2188_v43 = vpop.permute.xlu1 %2187 }
0x26bd   :  { %v2190_v44 = vadd.f32 %v2188_v43, %v2180_v10  ;;  %v5807_v10 = vld [vmem:[%s6426_s1 + $0x30] ss:$8 sps:$4 sm:$0xff]  }
0x26bf   :  { %4795 = vtanh.f32 %v2190_v44 }
0x26c0   :  { %4797 = vpow2.f32 %v4418_v46 }
0x26c9   :  { %v4796_v45 = vpop.eup %4795 }
0x26ca   :  { %2193 = vrot.lane.b32.xlu0 %v4796_v45, %s5102_s2  ;;  %v4798_v47 = vpop.eup %4797 }
0x26cb   :  { %v2174_v48 = vadd.f32 1.0, %v4798_v47 }
0x26cd   :  { %4799 = vrcp.f32 %v2174_v48  ;;  %v495_v55 = vpop.permute.xlu1 %494 }
0x26ce   :  { %502 = vperm.xlu0 %4555, %v5609_v23   ;;  %v5751_v23 = vld [vmem:[%s6426_s1 + $0x14] ss:$8 sps:$4 sm:$0xff]   ;;  %v498_v56 = vmul.f32 %v495_v55, %v5247_v17  ;;  %v497_v6 = vmul.f32 %v495_v55, %v5265_v33 }
0x26d7   :  { %v4800_v2 = vpop.eup %4799 }
0x273c   :  { %v2194_v49 = vpop.permute.xlu0 %2193 }
0x273d   :  { %v2196_v3 = vmul.f32 %v4800_v2, %v2194_v49 }
0x273f   :  { %v2197_v4 = vadd.f32 %v2196_v3, %v2117_v11  ;;  %v2200_v51 = vpack.c.bf16 %v2196_v3, %v2196_v3 }
0x2741   :  { %4419 = vmatmul.mubr.msk.bf16.vlgmr.msra.gmra.mrb[28].mxu1 %vm840_vm0, %v2200_v51 }
0x2742   :  { %2365 = vmatpush1.bf16.msra.mxu1 %v5744_v29  ;;  %2396 = vmatprep.mubr.bf16.mxu1 %v5101_v1 }
0x2743   :  { %2366 = vmatprep.subr.bf16.mxu1 %v5751_v23 }
0x2746   :  { %2367 = vmatpush1.bf16.msra.mxu1 %v5757_v52 }
0x2747   :  { %2368 = vmatprep.subr.bf16.mxu1 %v5517_v12 }
0x274a   :  { %2369 = vmatpush1.bf16.msra.mxu1 %v5523_v13 }
0x274b   :  { %2370 = vmatprep.subr.bf16.mxu1 %v5529_v15 }
0x274d   :  { %v503_v54 = vpop.permute.xlu0 %502 }
0x274e   :  { %2371 = vmatpush1.bf16.msra.mxu1 %v5535_v16  ;;  %v506_v0 = vmul.f32 %v503_v54, %v5250_v18  ;;  %v505_v20 = vmul.f32 %v503_v54, %v5268_v34 }
0x274f   :  { %2524 = vmatprep.subr.bf16.mxu1 %v5767_v53 }
0x2750   :  { %v508_v12 = vadd.f32 %v506_v0, %v498_v56  ;;  %v507_v21 = vadd.f32 %v505_v20, %v497_v6 }
0x2752   :  { %v510_v13 = vadd.f32 %v508_v12, %v5258_v24  ;;  %v509_v30 = vadd.f32 %v507_v21, %v5273_v38 }
0x2814   :  { %v2238_v60 = vpop.f32.mrb[28].mxu1 }
0x2815   :  { %v2240_v15 = vpop.f32.mrb[29].mxu1  ;;  %v2245_v57 = vadd.f32 %v2238_v60, %v509_v30 }
0x2816   :  { %v2246_v61 = vadd.f32 %v2240_v15, %v510_v13  ;;  %v2242_v16 = vpop.f32.mrb[30].mxu1 }
0x2817   :  { %v2243_v63 = vpop.f32.mrb[31].mxu1  ;;  %v4420_v22 = vmul.f32 -1.442695, %v2245_v57  ;;  %v5093_v57 = vld [vmem:[%s6427_s0 + $0x50] sm:$0xff] }
0x2818   :  { %4801 = vtanh.f32 %v2246_v61  ;;  %v4421_v19 = vmul.f32 -1.442695, %v2246_v61 }
0x2819   :  { %4803 = vpow2.f32 %v4420_v22 }
0x2822   :  { %v4802_v11 = vpop.eup %4801 }
0x2823   :  { %2262 = vrot.lane.b32.xlu1 %v4802_v11, %s5102_s2  ;;  %v4804_v31 = vpop.eup %4803 }
0x2824   :  { %v2253_v35 = vadd.f32 1.0, %v4804_v31 }
0x2826   :  { %4805 = vrcp.f32 %v2253_v35 }
0x2830   :  { %v4806_v25 = vpop.eup %4805 }
0x2831   :  { %v2260_v59 = vmul.f32 %v4806_v25, %v2190_v44 }
0x2895   :  { %v2263_v26 = vpop.permute.xlu1 %2262 }
0x2896   :  { %v2265_v28 = vmul.f32 %v4806_v25, %v2263_v26 }
0x2898   :  { %2267 = vrot.lane.b32.xlu0 %v2265_v28, %s5102_s2 }
0x289c   :  { %517 = vperm.xlu0 %4555, %v5585_v42   ;;  %v5795_v42 = vld [vmem:[%s6426_s1 + $0x20] ss:$8 sps:$4 sm:$0xff]  }
0x290a   :  { %v2268_v62 = vpop.permute.xlu0 %2267 }
0x290b   :  { %v2270_v36 = vadd.f32 %v2268_v62, %v2260_v59 }
0x290d   :  { %4807 = vtanh.f32 %v2270_v36 }
0x290e   :  { %4809 = vpow2.f32 %v4421_v19 }
0x2917   :  { %v4808_v8 = vpop.eup %4807 }
0x2918   :  { %2273 = vrot.lane.b32.xlu1 %v4808_v8, %s5102_s2  ;;  %v4810_v27 = vpop.eup %4809 }
0x2919   :  { %v2254_v37 = vadd.f32 1.0, %v4810_v27 }
0x291b   :  { %4811 = vrcp.f32 %v2254_v37  ;;  %v518_v44 = vpop.permute.xlu0 %517 }
0x291c   :  { %525 = vperm.xlu1 %4556, %v5578_v58   ;;  %v5789_v58 = vld [vmem:[%s6426_s1 + $0x24] ss:$8 sps:$4 sm:$0xff]   ;;  %v521_v46 = vmul.f32 %v518_v44, %v5247_v17  ;;  %v520_v0 = vmul.f32 %v518_v44, %v5265_v33 }
0x2925   :  { %v4812_v39 = vpop.eup %4811 }
0x298a   :  { %v2274_v40 = vpop.permute.xlu1 %2273 }
0x298b   :  { %v2276_v5 = vmul.f32 %v4812_v39, %v2274_v40 }
0x298d   :  { %v2277_v41 = vadd.f32 %v2276_v5, %v2197_v4  ;;  %v2280_v7 = vpack.c.bf16 %v2276_v5, %v2276_v5 }
0x298f   :  { %4422 = vmatmul.mubr.msk.bf16.vlgmr.msra.gmra.mrb[40].mxu0 %vm840_vm0, %v2280_v7 }
0x2990   :  { %2445 = vmatpush1.bf16.msra.mxu0 %v5744_v29  ;;  %2476 = vmatprep.mubr.bf16.mxu0 %v5101_v1 }
0x2991   :  { %2446 = vmatprep.subr.bf16.mxu0 %v5751_v23 }
0x2994   :  { %2447 = vmatpush1.bf16.msra.mxu0 %v5757_v52 }
0x2995   :  { %2448 = vmatprep.subr.bf16.mxu0 %v5789_v58 }
0x2998   :  { %2449 = vmatpush1.bf16.msra.mxu0 %v5795_v42 }
0x2999   :  { %2450 = vmatprep.subr.bf16.mxu0 %v5801_v9 }
0x299b   :  { %v526_v43 = vpop.permute.xlu1 %525 }
0x299c   :  { %2451 = vmatpush1.bf16.msra.mxu0 %v5807_v10  ;;  %v529_v45 = vmul.f32 %v526_v43, %v5250_v18  ;;  %v528_v55 = vmul.f32 %v526_v43, %v5268_v34 }
0x299d   :  { %2604 = vmatprep.subr.bf16.mxu0 %v5767_v53 }
0x299e   :  { %v531_v47 = vadd.f32 %v529_v45, %v521_v46  ;;  %v530_v56 = vadd.f32 %v528_v55, %v520_v0  ;;  %v4342_v55 = vld [vmem:[%s6427_s0 + $0xa0] sm:$0xff] }
0x29a0   :  { %v533_v2 = vadd.f32 %v531_v47, %v5258_v24  ;;  %v532_v12 = vadd.f32 %v530_v56, %v5273_v38 }
0x2a62   :  { %v2318_v48 = vpop.f32.mrb[40].mxu0 }
0x2a63   :  { %v2320_v49 = vpop.f32.mrb[41].mxu0  ;;  %v2325_v60 = vadd.f32 %v2318_v48, %v532_v12 }
0x2a64   :  { %v2326_v3 = vadd.f32 %v2320_v49, %v533_v2  ;;  %v2322_v4 = vpop.f32.mrb[42].mxu0 }
0x2a65   :  { %v2323_v51 = vpop.f32.mrb[43].mxu0  ;;  %v4423_v13 = vmul.f32 -1.442695, %v2325_v60 }
0x2a66   :  { %4813 = vtanh.f32 %v2326_v3  ;;  %v4424_v22 = vmul.f32 -1.442695, %v2326_v3 }
0x2a67   :  { %4815 = vpow2.f32 %v4423_v13  ;;  %v4343_v13 = vld [vmem:[%s6427_s0 + $0x48] sm:$0xff] }
0x2a70   :  { %v4814_v54 = vpop.eup %4813 }
0x2a71   :  { %2342 = vrot.lane.b32.xlu0 %v4814_v54, %s5102_s2  ;;  %v4816_v15 = vpop.eup %4815 }
0x2a72   :  { %v2333_v61 = vadd.f32 1.0, %v4816_v15 }
0x2a74   :  { %4817 = vrcp.f32 %v2333_v61 }
0x2a7e   :  { %v4818_v16 = vpop.eup %4817 }
0x2a7f   :  { %v2340_v20 = vmul.f32 %v4818_v16, %v2270_v36 }
0x2ae3   :  { %v2343_v63 = vpop.permute.xlu0 %2342 }
0x2ae4   :  { %v2345_v11 = vmul.f32 %v4818_v16, %v2343_v63 }
0x2ae6   :  { %2347 = vrot.lane.b32.xlu1 %v2345_v11, %s5102_s2 }
0x2aea   :  { %540 = vperm.xlu1 %4556, %v5554_v50  }
0x2b58   :  { %v2348_v6 = vpop.permute.xlu1 %2347 }
0x2b59   :  { %v2350_v21 = vadd.f32 %v2348_v6, %v2340_v20 }
0x2b5b   :  { %4819 = vtanh.f32 %v2350_v21 }
0x2b5c   :  { %4821 = vpow2.f32 %v4424_v22 }
0x2b65   :  { %v4820_v30 = vpop.eup %4819 }
0x2b66   :  { %2353 = vrot.lane.b32.xlu0 %v4820_v30, %s5102_s2  ;;  %v4822_v31 = vpop.eup %4821 }
0x2b67   :  { %v2334_v35 = vadd.f32 1.0, %v4822_v31 }
0x2b69   :  { %4823 = vrcp.f32 %v2334_v35  ;;  %v541_v36 = vpop.permute.xlu1 %540 }
0x2b6a   :  { %548 = vperm.xlu0 %4555, %v5093_v57   ;;  %v544_v19 = vmul.f32 %v541_v36, %v5247_v17  ;;  %v543_v45 = vmul.f32 %v541_v36, %v5265_v33 }
0x2b73   :  { %v4824_v25 = vpop.eup %4823 }
0x2bd8   :  { %v2354_v26 = vpop.permute.xlu0 %2353 }
0x2bd9   :  { %v2356_v50 = vmul.f32 %v4824_v25, %v2354_v26 }
0x2bdb   :  { %v2357_v28 = vadd.f32 %v2356_v50, %v2277_v41  ;;  %v2360_v59 = vpack.c.bf16 %v2356_v50, %v2356_v50 }
0x2bdd   :  { %4425 = vmatmul.mubr.msk.bf16.vlgmr.msra.gmra.mrb[32].mxu1 %vm840_vm0, %v2360_v59 }
0x2bde   :  { %2525 = vmatpush1.bf16.msra.mxu1 %v5744_v29  ;;  %2556 = vmatprep.mubr.bf16.mxu1 %v5101_v1 }
0x2bdf   :  { %2526 = vmatprep.subr.bf16.mxu1 %v5751_v23 }
0x2be2   :  { %2527 = vmatpush1.bf16.msra.mxu1 %v5757_v52 }
0x2be3   :  { %2528 = vmatprep.subr.bf16.mxu1 %v5789_v58 }
0x2be6   :  { %2529 = vmatpush1.bf16.msra.mxu1 %v5795_v42 }
0x2be7   :  { %2530 = vmatprep.subr.bf16.mxu1 %v5801_v9 }
0x2be9   :  { %v549_v62 = vpop.permute.xlu0 %548 }
0x2bea   :  { %2531 = vmatpush1.bf16.msra.mxu1 %v5807_v10  ;;  %v552_v8 = vmul.f32 %v549_v62, %v5250_v18  ;;  %v551_v44 = vmul.f32 %v549_v62, %v5268_v34 }
0x2beb   :  { %2684 = vmatprep.subr.bf16.mxu1 %v5767_v53 }
0x2bec   :  { %v554_v27 = vadd.f32 %v552_v8, %v544_v19  ;;  %v553_v46 = vadd.f32 %v551_v44, %v543_v45  ;;  %v4344_v45 = vld [vmem:[%s6427_s0 + $0xa8] sm:$0xff] }
0x2bee   :  { %v556_v39 = vadd.f32 %v554_v27, %v5258_v24  ;;  %v555_v47 = vadd.f32 %v553_v46, %v5273_v38 }
0x2cb0   :  { %v2398_v37 = vpop.f32.mrb[32].mxu1 }
0x2cb1   :  { %v2400_v40 = vpop.f32.mrb[33].mxu1  ;;  %v2405_v48 = vadd.f32 %v2398_v37, %v555_v47 }
0x2cb2   :  { %v2406_v5 = vadd.f32 %v2400_v40, %v556_v39  ;;  %v2402_v41 = vpop.f32.mrb[34].mxu1 }
0x2cb3   :  { %v2403_v7 = vpop.f32.mrb[35].mxu1  ;;  %v4426_v2 = vmul.f32 -1.442695, %v2405_v48 }
0x2cb4   :  { %4825 = vtanh.f32 %v2406_v5  ;;  %v4427_v15 = vmul.f32 -1.442695, %v2406_v5 }
0x2cb5   :  { %4827 = vpow2.f32 %v4426_v2 }
0x2cbe   :  { %v4826_v43 = vpop.eup %4825 }
0x2cbf   :  { %2422 = vrot.lane.b32.xlu1 %v4826_v43, %s5102_s2  ;;  %v4828_v49 = vpop.eup %4827 }
0x2cc0   :  { %v2413_v3 = vadd.f32 1.0, %v4828_v49  ;;  %v4345_v49 = vld [vmem:[%s6427_s0 + $0x40] sm:$0xff] }
0x2cc2   :  { %4829 = vrcp.f32 %v2413_v3 }
0x2ccc   :  { %v4830_v4 = vpop.eup %4829 }
0x2ccd   :  { %v2420_v0 = vmul.f32 %v4830_v4, %v2350_v21 }
0x2d31   :  { %v2423_v51 = vpop.permute.xlu1 %2422 }
0x2d32   :  { %v2425_v54 = vmul.f32 %v4830_v4, %v2423_v51 }
0x2d34   :  { %2427 = vrot.lane.b32.xlu0 %v2425_v54, %s5102_s2 }
0x2d38   :  { %563 = vperm.xlu0 %4555, %v4342_v55  }
0x2da6   :  { %v2428_v56 = vpop.permute.xlu0 %2427 }
0x2da7   :  { %v2430_v12 = vadd.f32 %v2428_v56, %v2420_v0 }
0x2da9   :  { %4831 = vtanh.f32 %v2430_v12 }
0x2daa   :  { %4833 = vpow2.f32 %v4427_v15 }
0x2db3   :  { %v4832_v60 = vpop.eup %4831 }
0x2db4   :  { %2433 = vrot.lane.b32.xlu1 %v4832_v60, %s5102_s2  ;;  %v4834_v61 = vpop.eup %4833 }
0x2db5   :  { %v2414_v16 = vadd.f32 1.0, %v4834_v61 }
0x2db7   :  { %4835 = vrcp.f32 %v2414_v16  ;;  %v564_v57 = vpop.permute.xlu0 %563 }
0x2db8   :  { %571 = vperm.xlu1 %4556, %v4343_v13   ;;  %v567_v31 = vmul.f32 %v564_v57, %v5247_v17  ;;  %v566_v19 = vmul.f32 %v564_v57, %v5265_v33 }
0x2dc1   :  { %v4836_v63 = vpop.eup %4835 }
0x2e26   :  { %v2434_v11 = vpop.permute.xlu1 %2433 }
0x2e27   :  { %v2436_v20 = vmul.f32 %v4836_v63, %v2434_v11 }
0x2e29   :  { %v2437_v6 = vadd.f32 %v2436_v20, %v2357_v28  ;;  %v2440_v21 = vpack.c.bf16 %v2436_v20, %v2436_v20 }
0x2e2b   :  { %4428 = vmatmul.mubr.msk.bf16.vlgmr.msra.gmra.mrb[44].mxu0 %vm840_vm0, %v2440_v21 }
0x2e2c   :  { %2605 = vmatpush1.bf16.msra.mxu0 %v5744_v29  ;;  %2636 = vmatprep.mubr.bf16.mxu0 %v5101_v1 }
0x2e2d   :  { %2606 = vmatprep.subr.bf16.mxu0 %v5751_v23 }
0x2e30   :  { %2607 = vmatpush1.bf16.msra.mxu0 %v5757_v52 }
0x2e31   :  { %2608 = vmatprep.subr.bf16.mxu0 %v5789_v58 }
0x2e34   :  { %2609 = vmatpush1.bf16.msra.mxu0 %v5795_v42 }
0x2e35   :  { %2610 = vmatprep.subr.bf16.mxu0 %v5801_v9 }
0x2e37   :  { %v572_v30 = vpop.permute.xlu1 %571 }
0x2e38   :  { %2611 = vmatpush1.bf16.msra.mxu0 %v5807_v10  ;;  %v575_v22 = vmul.f32 %v572_v30, %v5250_v18  ;;  %v574_v8 = vmul.f32 %v572_v30, %v5268_v34 }
0x2e39   :  { %2764 = vmatprep.subr.bf16.mxu0 %v5767_v53 }
0x2e3a   :  { %v577_v35 = vadd.f32 %v575_v22, %v567_v31  ;;  %v576_v27 = vadd.f32 %v574_v8, %v566_v19  ;;  %v4346_v19 = vld [vmem:[%s6427_s0 + $0xb0] sm:$0xff] }
0x2e3c   :  { %v579_v26 = vadd.f32 %v577_v35, %v5258_v24  ;;  %v578_v37 = vadd.f32 %v576_v27, %v5273_v38 }
0x2efe   :  { %v2478_v25 = vpop.f32.mrb[44].mxu0 }
0x2eff   :  { %v2480_v50 = vpop.f32.mrb[45].mxu0  ;;  %v2485_v39 = vadd.f32 %v2478_v25, %v578_v37 }
0x2f00   :  { %v2486_v28 = vadd.f32 %v2480_v50, %v579_v26  ;;  %v2482_v59 = vpop.f32.mrb[46].mxu0 }
0x2f01   :  { %v2483_v62 = vpop.f32.mrb[47].mxu0  ;;  %v4429_v40 = vmul.f32 -1.442695, %v2485_v39 }
0x2f02   :  { %4837 = vtanh.f32 %v2486_v28  ;;  %v4430_v3 = vmul.f32 -1.442695, %v2486_v28 }
0x2f03   :  { %4839 = vpow2.f32 %v4429_v40 }
0x2f0c   :  { %v4838_v36 = vpop.eup %4837 }
0x2f0d   :  { %2502 = vrot.lane.b32.xlu0 %v4838_v36, %s5102_s2  ;;  %v4840_v5 = vpop.eup %4839 }
0x2f0e   :  { %v2493_v41 = vadd.f32 1.0, %v4840_v5  ;;  %v4347_v5 = vld [vmem:[%s6427_s0 + $0x38] sm:$0xff] }
0x2f10   :  { %4841 = vrcp.f32 %v2493_v41 }
0x2f1a   :  { %v4842_v7 = vpop.eup %4841 }
0x2f1b   :  { %v2500_v46 = vmul.f32 %v4842_v7, %v2430_v12 }
0x2f7f   :  { %v2503_v43 = vpop.permute.xlu0 %2502 }
0x2f80   :  { %v2505_v44 = vmul.f32 %v4842_v7, %v2503_v43 }
0x2f82   :  { %2507 = vrot.lane.b32.xlu1 %v2505_v44, %s5102_s2 }
0x2f86   :  { %586 = vperm.xlu1 %4556, %v4344_v45  }
0x2ff4   :  { %v2508_v47 = vpop.permute.xlu1 %2507 }
0x2ff5   :  { %v2510_v48 = vadd.f32 %v2508_v47, %v2500_v46 }
0x2ff7   :  { %4843 = vtanh.f32 %v2510_v48 }
0x2ff8   :  { %4845 = vpow2.f32 %v4430_v3 }
0x3001   :  { %v4844_v2 = vpop.eup %4843 }
0x3002   :  { %2513 = vrot.lane.b32.xlu0 %v4844_v2, %s5102_s2  ;;  %v4846_v4 = vpop.eup %4845 }
0x3003   :  { %v2494_v51 = vadd.f32 1.0, %v4846_v4 }
0x3005   :  { %4847 = vrcp.f32 %v2494_v51  ;;  %v587_v13 = vpop.permute.xlu1 %586 }
0x3006   :  { %594 = vperm.xlu0 %4555, %v4345_v49   ;;  %v590_v61 = vmul.f32 %v587_v13, %v5247_v17  ;;  %v589_v31 = vmul.f32 %v587_v13, %v5265_v33 }
0x300f   :  { %v4848_v54 = vpop.eup %4847 }
0x3074   :  { %v2514_v55 = vpop.permute.xlu0 %2513 }
0x3075   :  { %v2516_v0 = vmul.f32 %v4848_v54, %v2514_v55 }
0x3077   :  { %v2517_v56 = vadd.f32 %v2516_v0, %v2437_v6  ;;  %v2520_v12 = vpack.c.bf16 %v2516_v0, %v2516_v0 }
0x3079   :  { %4431 = vmatmul.mubr.msk.bf16.vlgmr.msra.gmra.mrb[36].mxu1 %vm840_vm0, %v2520_v12 }
0x307a   :  { %2685 = vmatpush1.bf16.msra.mxu1 %v5744_v29  ;;  %2716 = vmatprep.mubr.bf16.mxu1 %v5101_v1 }
0x307b   :  { %2686 = vmatprep.subr.bf16.mxu1 %v5751_v23 }
0x307e   :  { %2687 = vmatpush1.bf16.msra.mxu1 %v5757_v52 }
0x307f   :  { %2688 = vmatprep.subr.bf16.mxu1 %v5789_v58 }
0x3082   :  { %2689 = vmatpush1.bf16.msra.mxu1 %v5795_v42 }
0x3083   :  { %2690 = vmatprep.subr.bf16.mxu1 %v5801_v9 }
0x3085   :  { %v595_v60 = vpop.permute.xlu0 %594 }
0x3086   :  { %2691 = vmatpush1.bf16.msra.mxu1 %v5807_v10  ;;  %v598_v15 = vmul.f32 %v595_v60, %v5250_v18  ;;  %v597_v22 = vmul.f32 %v595_v60, %v5268_v34 }
0x3087   :  { %2844 = vmatprep.subr.bf16.mxu1 %v5767_v53 }
0x3088   :  { %v600_v16 = vadd.f32 %v598_v15, %v590_v61  ;;  %v599_v35 = vadd.f32 %v597_v22, %v589_v31  ;;  %v4348_v31 = vld [vmem:[%s6427_s0 + $0xb8] sm:$0xff] }
0x308a   :  { %v602_v11 = vadd.f32 %v600_v16, %v5258_v24  ;;  %v601_v25 = vadd.f32 %v599_v35, %v5273_v38 }
0x314c   :  { %v2558_v63 = vpop.f32.mrb[36].mxu1 }
0x314d   :  { %v2560_v20 = vpop.f32.mrb[37].mxu1  ;;  %v2565_v26 = vadd.f32 %v2558_v63, %v601_v25 }
0x314e   :  { %v2566_v6 = vadd.f32 %v2560_v20, %v602_v11  ;;  %v2562_v21 = vpop.f32.mrb[38].mxu1 }
0x314f   :  { %v2563_v30 = vpop.f32.mrb[39].mxu1  ;;  %v4432_v50 = vmul.f32 -1.442695, %v2565_v26 }
0x3150   :  { %4849 = vtanh.f32 %v2566_v6  ;;  %v4433_v41 = vmul.f32 -1.442695, %v2566_v6 }
0x3151   :  { %4851 = vpow2.f32 %v4432_v50 }
0x315a   :  { %v4850_v57 = vpop.eup %4849 }
0x315b   :  { %2582 = vrot.lane.b32.xlu1 %v4850_v57, %s5102_s2  ;;  %v4852_v28 = vpop.eup %4851 }
0x315c   :  { %v2573_v59 = vadd.f32 1.0, %v4852_v28  ;;  %v4349_v28 = vld [vmem:[%s6427_s0 + $0x30] sm:$0xff] }
0x315e   :  { %4853 = vrcp.f32 %v2573_v59 }
0x3168   :  { %v4854_v62 = vpop.eup %4853 }
0x3169   :  { %v2580_v27 = vmul.f32 %v4854_v62, %v2510_v48 }
0x31cd   :  { %v2583_v36 = vpop.permute.xlu1 %2582 }
0x31ce   :  { %v2585_v8 = vmul.f32 %v4854_v62, %v2583_v36 }
0x31d0   :  { %2587 = vrot.lane.b32.xlu0 %v2585_v8, %s5102_s2 }
0x31d4   :  { %609 = vperm.xlu0 %4555, %v4346_v19  }
0x3242   :  { %v2588_v37 = vpop.permute.xlu0 %2587 }
0x3243   :  { %v2590_v39 = vadd.f32 %v2588_v37, %v2580_v27 }
0x3245   :  { %4855 = vtanh.f32 %v2590_v39 }
0x3246   :  { %4857 = vpow2.f32 %v4433_v41 }
0x324f   :  { %v4856_v40 = vpop.eup %4855 }
0x3250   :  { %2593 = vrot.lane.b32.xlu1 %v4856_v40, %s5102_s2  ;;  %v4858_v7 = vpop.eup %4857 }
0x3251   :  { %v2574_v43 = vadd.f32 1.0, %v4858_v7 }
0x3253   :  { %4859 = vrcp.f32 %v2574_v43  ;;  %v610_v49 = vpop.permute.xlu0 %609 }
0x3254   :  { %617 = vperm.xlu1 %4556, %v4347_v5   ;;  %v613_v4 = vmul.f32 %v610_v49, %v5247_v17  ;;  %v612_v61 = vmul.f32 %v610_v49, %v5265_v33 }
0x325d   :  { %v4860_v44 = vpop.eup %4859 }
0x32c2   :  { %v2594_v45 = vpop.permute.xlu1 %2593 }
0x32c3   :  { %v2596_v46 = vmul.f32 %v4860_v44, %v2594_v45 }
0x32c5   :  { %v2597_v47 = vadd.f32 %v2596_v46, %v2517_v56  ;;  %v2600_v48 = vpack.c.bf16 %v2596_v46, %v2596_v46 }
0x32c7   :  { %4434 = vmatmul.mubr.msk.bf16.vlgmr.msra.gmra.mrb[48].mxu0 %vm840_vm0, %v2600_v48 }
0x32c8   :  { %2765 = vmatpush1.bf16.msra.mxu0 %v5744_v29  ;;  %2796 = vmatprep.mubr.bf16.mxu0 %v5101_v1 }
0x32c9   :  { %2766 = vmatprep.subr.bf16.mxu0 %v5751_v23 }
0x32cc   :  { %2767 = vmatpush1.bf16.msra.mxu0 %v5757_v52 }
0x32cd   :  { %2768 = vmatprep.subr.bf16.mxu0 %v5789_v58 }
0x32d0   :  { %2769 = vmatpush1.bf16.msra.mxu0 %v5795_v42 }
0x32d1   :  { %2770 = vmatprep.subr.bf16.mxu0 %v5801_v9 }
0x32d3   :  { %v618_v2 = vpop.permute.xlu1 %617 }
0x32d4   :  { %2771 = vmatpush1.bf16.msra.mxu0 %v5807_v10  ;;  %v621_v3 = vmul.f32 %v618_v2, %v5250_v18  ;;  %v620_v15 = vmul.f32 %v618_v2, %v5268_v34 }
0x32d5   :  { %2924 = vmatprep.subr.bf16.mxu0 %v5767_v53 }
0x32d6   :  { %v623_v51 = vadd.f32 %v621_v3, %v613_v4  ;;  %v622_v16 = vadd.f32 %v620_v15, %v612_v61  ;;  %v4350_v61 = vld [vmem:[%s6427_s0 + $0xc0] sm:$0xff] }
0x32d8   :  { %v625_v55 = vadd.f32 %v623_v51, %v5258_v24  ;;  %v624_v63 = vadd.f32 %v622_v16, %v5273_v38 }
0x339a   :  { %v2638_v54 = vpop.f32.mrb[48].mxu0 }
0x339b   :  { %v2640_v0 = vpop.f32.mrb[49].mxu0  ;;  %v2645_v11 = vadd.f32 %v2638_v54, %v624_v63 }
0x339c   :  { %v2646_v56 = vadd.f32 %v2640_v0, %v625_v55  ;;  %v2642_v12 = vpop.f32.mrb[50].mxu0 }
0x339d   :  { %v2643_v60 = vpop.f32.mrb[51].mxu0  ;;  %v4435_v20 = vmul.f32 -1.442695, %v2645_v11 }
0x339e   :  { %4861 = vtanh.f32 %v2646_v56  ;;  %v4436_v59 = vmul.f32 -1.442695, %v2646_v56 }
0x339f   :  { %4863 = vpow2.f32 %v4435_v20 }
0x33a8   :  { %v4862_v13 = vpop.eup %4861 }
0x33a9   :  { %2662 = vrot.lane.b32.xlu0 %v4862_v13, %s5102_s2  ;;  %v4864_v6 = vpop.eup %4863 }
0x33aa   :  { %v2653_v21 = vadd.f32 1.0, %v4864_v6  ;;  %v4351_v6 = vld [vmem:[%s6427_s0 + $0x28] sm:$0xff] }
0x33ac   :  { %4865 = vrcp.f32 %v2653_v21 }
0x33b6   :  { %v4866_v30 = vpop.eup %4865 }
0x33b7   :  { %v2660_v35 = vmul.f32 %v4866_v30, %v2590_v39 }
0x341b   :  { %v2663_v57 = vpop.permute.xlu0 %2662 }
0x341c   :  { %v2665_v22 = vmul.f32 %v4866_v30, %v2663_v57 }
0x341e   :  { %2667 = vrot.lane.b32.xlu1 %v2665_v22, %s5102_s2 }
0x3422   :  { %632 = vperm.xlu1 %4556, %v4348_v31  }
0x3490   :  { %v2668_v25 = vpop.permute.xlu1 %2667 }
0x3491   :  { %v2670_v26 = vadd.f32 %v2668_v25, %v2660_v35 }
0x3493   :  { %4867 = vtanh.f32 %v2670_v26 }
0x3494   :  { %4869 = vpow2.f32 %v4436_v59 }
0x349d   :  { %v4868_v50 = vpop.eup %4867 }
0x349e   :  { %2673 = vrot.lane.b32.xlu0 %v4868_v50, %s5102_s2  ;;  %v4870_v62 = vpop.eup %4869 }
0x349f   :  { %v2654_v36 = vadd.f32 1.0, %v4870_v62 }
0x34a1   :  { %4871 = vrcp.f32 %v2654_v36  ;;  %v633_v5 = vpop.permute.xlu1 %632 }
0x34a2   :  { %640 = vperm.xlu0 %4555, %v4349_v28   ;;  %v636_v7 = vmul.f32 %v633_v5, %v5247_v17  ;;  %v635_v4 = vmul.f32 %v633_v5, %v5265_v33 }
0x34ab   :  { %v4872_v8 = vpop.eup %4871 }
0x3510   :  { %v2674_v19 = vpop.permute.xlu0 %2673 }
0x3511   :  { %v2676_v27 = vmul.f32 %v4872_v8, %v2674_v19 }
0x3513   :  { %v2677_v37 = vadd.f32 %v2676_v27, %v2597_v47  ;;  %v2680_v39 = vpack.c.bf16 %v2676_v27, %v2676_v27 }
0x3515   :  { %4437 = vmatmul.mubr.msk.bf16.vlgmr.msra.gmra.mrb[40].mxu1 %vm840_vm0, %v2680_v39 }
0x3516   :  { %2845 = vmatpush1.bf16.msra.mxu1 %v5744_v29  ;;  %2876 = vmatprep.mubr.bf16.mxu1 %v5101_v1 }
0x3517   :  { %2846 = vmatprep.subr.bf16.mxu1 %v5751_v23 }
0x351a   :  { %2847 = vmatpush1.bf16.msra.mxu1 %v5757_v52 }
0x351b   :  { %2848 = vmatprep.subr.bf16.mxu1 %v5789_v58 }
0x351e   :  { %2849 = vmatpush1.bf16.msra.mxu1 %v5795_v42 }
0x351f   :  { %2850 = vmatprep.subr.bf16.mxu1 %v5801_v9 }
0x3521   :  { %v641_v40 = vpop.permute.xlu0 %640 }
0x3522   :  { %2851 = vmatpush1.bf16.msra.mxu1 %v5807_v10  ;;  %v644_v41 = vmul.f32 %v641_v40, %v5250_v18  ;;  %v643_v3 = vmul.f32 %v641_v40, %v5268_v34 }
0x3523   :  { %3004 = vmatprep.subr.bf16.mxu1 %v5767_v53 }
0x3524   :  { %v646_v43 = vadd.f32 %v644_v41, %v636_v7  ;;  %v645_v51 = vadd.f32 %v643_v3, %v635_v4  ;;  %v4352_v4 = vld [vmem:[%s6427_s0 + $0xc8] sm:$0xff] }
0x3526   :  { %v648_v45 = vadd.f32 %v646_v43, %v5258_v24  ;;  %v647_v54 = vadd.f32 %v645_v51, %v5273_v38 }
0x35e8   :  { %v2718_v44 = vpop.f32.mrb[40].mxu1 }
0x35e9   :  { %v2720_v46 = vpop.f32.mrb[41].mxu1  ;;  %v2725_v55 = vadd.f32 %v2718_v44, %v647_v54 }
0x35ea   :  { %v2726_v47 = vadd.f32 %v2720_v46, %v648_v45  ;;  %v2722_v48 = vpop.f32.mrb[42].mxu1 }
0x35eb   :  { %v2723_v2 = vpop.f32.mrb[43].mxu1  ;;  %v4438_v0 = vmul.f32 -1.442695, %v2725_v55 }
0x35ec   :  { %4873 = vtanh.f32 %v2726_v47  ;;  %v4439_v21 = vmul.f32 -1.442695, %v2726_v47 }
0x35ed   :  { %4875 = vpow2.f32 %v4438_v0 }
0x35f6   :  { %v4874_v49 = vpop.eup %4873 }
0x35f7   :  { %2742 = vrot.lane.b32.xlu1 %v4874_v49, %s5102_s2  ;;  %v4876_v56 = vpop.eup %4875 }
0x35f8   :  { %v2733_v12 = vadd.f32 1.0, %v4876_v56  ;;  %v4353_v56 = vld [vmem:[%s6427_s0 + $0x20] sm:$0xff] }
0x35fa   :  { %4877 = vrcp.f32 %v2733_v12 }
0x3604   :  { %v4878_v60 = vpop.eup %4877 }
0x3605   :  { %v2740_v16 = vmul.f32 %v4878_v60, %v2670_v26 }
0x3669   :  { %v2743_v13 = vpop.permute.xlu1 %2742 }
0x366a   :  { %v2745_v15 = vmul.f32 %v4878_v60, %v2743_v13 }
0x366c   :  { %2747 = vrot.lane.b32.xlu0 %v2745_v15, %s5102_s2 }
0x3670   :  { %655 = vperm.xlu0 %4555, %v4350_v61  }
0x36de   :  { %v2748_v63 = vpop.permute.xlu0 %2747 }
0x36df   :  { %v2750_v11 = vadd.f32 %v2748_v63, %v2740_v16 }
0x36e1   :  { %4879 = vtanh.f32 %v2750_v11 }
0x36e2   :  { %4881 = vpow2.f32 %v4439_v21 }
0x36eb   :  { %v4880_v20 = vpop.eup %4879 }
0x36ec   :  { %2753 = vrot.lane.b32.xlu1 %v4880_v20, %s5102_s2  ;;  %v4882_v30 = vpop.eup %4881 }
0x36ed   :  { %v2734_v57 = vadd.f32 1.0, %v4882_v30 }
0x36ef   :  { %4883 = vrcp.f32 %v2734_v57  ;;  %v656_v28 = vpop.permute.xlu0 %655 }
0x36f0   :  { %663 = vperm.xlu1 %4556, %v4351_v6   ;;  %v659_v62 = vmul.f32 %v656_v28, %v5247_v17  ;;  %v658_v7 = vmul.f32 %v656_v28, %v5265_v33 }
0x36f9   :  { %v4884_v22 = vpop.eup %4883 }
0x375e   :  { %v2754_v31 = vpop.permute.xlu1 %2753 }
0x375f   :  { %v2756_v35 = vmul.f32 %v4884_v22, %v2754_v31 }
0x3761   :  { %v2757_v25 = vadd.f32 %v2756_v35, %v2677_v37  ;;  %v2760_v26 = vpack.c.bf16 %v2756_v35, %v2756_v35 }
0x3763   :  { %4440 = vmatmul.mubr.msk.bf16.vlgmr.msra.gmra.mrb[52].mxu0 %vm840_vm0, %v2760_v26 }
0x3764   :  { %2925 = vmatpush1.bf16.msra.mxu0 %v5744_v29  ;;  %2956 = vmatprep.mubr.bf16.mxu0 %v5101_v1 }
0x3765   :  { %2926 = vmatprep.subr.bf16.mxu0 %v5751_v23 }
0x3768   :  { %2927 = vmatpush1.bf16.msra.mxu0 %v5757_v52 }
0x3769   :  { %2928 = vmatprep.subr.bf16.mxu0 %v5789_v58 }
0x376c   :  { %2929 = vmatpush1.bf16.msra.mxu0 %v5795_v42 }
0x376d   :  { %2930 = vmatprep.subr.bf16.mxu0 %v5801_v9 }
0x376f   :  { %v664_v50 = vpop.permute.xlu1 %663 }
0x3770   :  { %2931 = vmatpush1.bf16.msra.mxu0 %v5807_v10  ;;  %v667_v59 = vmul.f32 %v664_v50, %v5250_v18  ;;  %v666_v41 = vmul.f32 %v664_v50, %v5268_v34 }
0x3771   :  { %3084 = vmatprep.subr.bf16.mxu0 %v5767_v53 }
0x3772   :  { %v669_v36 = vadd.f32 %v667_v59, %v659_v62  ;;  %v668_v43 = vadd.f32 %v666_v41, %v658_v7 }
0x3774   :  { %v671_v19 = vadd.f32 %v669_v36, %v5258_v24  ;;  %v670_v44 = vadd.f32 %v668_v43, %v5273_v38  ;;  %v4355_v43 = vld [vmem:[%s6427_s0 + $0x18] sm:$0xff] }
0x3836   :  { %v2798_v8 = vpop.f32.mrb[52].mxu0 }
0x3837   :  { %v2800_v27 = vpop.f32.mrb[53].mxu0  ;;  %v2805_v45 = vadd.f32 %v2798_v8, %v670_v44 }
0x3838   :  { %v2806_v37 = vadd.f32 %v2800_v27, %v671_v19  ;;  %v2802_v39 = vpop.f32.mrb[54].mxu0 }
0x3839   :  { %v2803_v40 = vpop.f32.mrb[55].mxu0  ;;  %v4441_v46 = vmul.f32 -1.442695, %v2805_v45  ;;  %v4354_v39 = vld [vmem:[%s6427_s0 + $0xd0] sm:$0xff] }
0x383a   :  { %4885 = vtanh.f32 %v2806_v37  ;;  %v4442_v12 = vmul.f32 -1.442695, %v2806_v37 }
0x383b   :  { %4887 = vpow2.f32 %v4441_v46 }
0x3844   :  { %v4886_v5 = vpop.eup %4885 }
0x3845   :  { %2822 = vrot.lane.b32.xlu0 %v4886_v5, %s5102_s2  ;;  %v4888_v47 = vpop.eup %4887 }
0x3846   :  { %v2813_v48 = vadd.f32 1.0, %v4888_v47 }
0x3848   :  { %4889 = vrcp.f32 %v2813_v48 }
0x3852   :  { %v4890_v2 = vpop.eup %4889 }
0x3853   :  { %v2820_v51 = vmul.f32 %v4890_v2, %v2750_v11 }
0x38b7   :  { %v2823_v49 = vpop.permute.xlu0 %2822 }
0x38b8   :  { %v2825_v3 = vmul.f32 %v4890_v2, %v2823_v49 }
0x38ba   :  { %2827 = vrot.lane.b32.xlu1 %v2825_v3, %s5102_s2 }
0x38be   :  { %678 = vperm.xlu1 %4556, %v4352_v4   ;;  %v5094_v4 = vld [vmem:[%s6426_s1] ss:$8 sps:$4 sm:$0xff]  }
0x392c   :  { %v2828_v54 = vpop.permute.xlu1 %2827 }
0x392d   :  { %v2830_v55 = vadd.f32 %v2828_v54, %v2820_v51  ;;  %v5095_v51 = vld [vmem:[%s6426_s1 + $0x14] ss:$8 sps:$4 sm:$0xff]   ;;  %v5096_v54 = vld [vmem:[%s6426_s1 + $0x10] ss:$8 sps:$4 sm:$0xff]  }
0x392f   :  { %4891 = vtanh.f32 %v2830_v55 }
0x3930   :  { %4893 = vpow2.f32 %v4442_v12 }
0x3939   :  { %v4892_v0 = vpop.eup %4891 }
0x393a   :  { %2833 = vrot.lane.b32.xlu0 %v4892_v0, %s5102_s2  ;;  %v4894_v60 = vpop.eup %4893 }
0x393b   :  { %v2814_v13 = vadd.f32 1.0, %v4894_v60 }
0x393d   :  { %4895 = vrcp.f32 %v2814_v13  ;;  %v679_v6 = vpop.permute.xlu1 %678 }
0x393e   :  { %686 = vperm.xlu0 %4555, %v4353_v56   ;;  %v682_v21 = vmul.f32 %v679_v6, %v5247_v17  ;;  %v681_v26 = vmul.f32 %v679_v6, %v5265_v33 }
0x3947   :  { %v4896_v15 = vpop.eup %4895 }
0x39ac   :  { %v2834_v61 = vpop.permute.xlu0 %2833 }
0x39ad   :  { %v2836_v16 = vmul.f32 %v4896_v15, %v2834_v61 }
0x39af   :  { %v2837_v63 = vadd.f32 %v2836_v16, %v2757_v25  ;;  %v2840_v11 = vpack.c.bf16 %v2836_v16, %v2836_v16 }
0x39b1   :  { %4443 = vmatmul.mubr.msk.bf16.vlgmr.msra.gmra.mrb[44].mxu1 %vm840_vm0, %v2840_v11 }
0x39b2   :  { %3005 = vmatpush1.bf16.msra.mxu1 %v5744_v29  ;;  %3036 = vmatprep.mubr.bf16.mxu1 %v5101_v1 }
0x39b3   :  { %3006 = vmatprep.subr.bf16.mxu1 %v5751_v23 }
0x39b6   :  { %3007 = vmatpush1.bf16.msra.mxu1 %v5757_v52 }
0x39b7   :  { %3008 = vmatprep.subr.bf16.mxu1 %v5789_v58 }
0x39ba   :  { %3009 = vmatpush1.bf16.msra.mxu1 %v5795_v42 }
0x39bb   :  { %3010 = vmatprep.subr.bf16.mxu1 %v5801_v9 }
0x39bd   :  { %v687_v20 = vpop.permute.xlu0 %686 }
0x39be   :  { %3011 = vmatpush1.bf16.msra.mxu1 %v5807_v10  ;;  %v690_v29 = vmul.f32 %v687_v20, %v5250_v18 }
0x39bf   :  { %3164 = vmatprep.subr.bf16.mxu1 %v5767_v53  ;;  %v689_v53 = vmul.f32 %v687_v20, %v5268_v34 }
0x39c0   :  { %v692_v30 = vadd.f32 %v690_v29, %v682_v21 }
0x39c1   :  { %v691_v50 = vadd.f32 %v689_v53, %v681_v26  ;;  %v4357_v26 = vld [vmem:[%s6427_s0 + $0x10] sm:$0xff] }
0x39c2   :  { %v694_v52 = vadd.f32 %v692_v30, %v5258_v24 }
0x39c3   :  { %v693_v28 = vadd.f32 %v691_v50, %v5273_v38 }
0x3a84   :  { %v2878_v23 = vpop.f32.mrb[44].mxu1 }
0x3a85   :  { %v2880_v57 = vpop.f32.mrb[45].mxu1  ;;  %v2885_v59 = vadd.f32 %v2878_v23, %v693_v28 }
0x3a86   :  { %v2886_v22 = vadd.f32 %v2880_v57, %v694_v52  ;;  %v2882_v31 = vpop.f32.mrb[46].mxu1 }
0x3a87   :  { %v2883_v35 = vpop.f32.mrb[47].mxu1  ;;  %v4444_v62 = vmul.f32 -1.442695, %v2885_v59 }
0x3a88   :  { %4897 = vtanh.f32 %v2886_v22  ;;  %v4445_v44 = vmul.f32 -1.442695, %v2886_v22  ;;  %v4356_v22 = vld [vmem:[%s6427_s0 + $0xd8] sm:$0xff] }
0x3a89   :  { %4899 = vpow2.f32 %v4444_v62 }
0x3a92   :  { %v4898_v25 = vpop.eup %4897 }
0x3a93   :  { %2902 = vrot.lane.b32.xlu1 %v4898_v25, %s5102_s2  ;;  %v4900_v36 = vpop.eup %4899 }
0x3a94   :  { %v2893_v8 = vadd.f32 1.0, %v4900_v36 }
0x3a96   :  { %4901 = vrcp.f32 %v2893_v8 }
0x3aa0   :  { %v4902_v19 = vpop.eup %4901 }
0x3aa1   :  { %v2900_v40 = vmul.f32 %v4902_v19, %v2830_v55 }
0x3b05   :  { %v2903_v27 = vpop.permute.xlu1 %2902 }
0x3b06   :  { %v2905_v37 = vmul.f32 %v4902_v19, %v2903_v27 }
0x3b08   :  { %2907 = vrot.lane.b32.xlu0 %v2905_v37, %s5102_s2  ;;  %v5097_v37 = vld [vmem:[%s6426_s1 + $0x24] ss:$8 sps:$4 sm:$0xff]  }
0x3b0c   :  { %701 = vperm.xlu0 %4555, %v4354_v39   ;;  %v5098_v39 = vld [vmem:[%s6426_s1 + $0x20] ss:$8 sps:$4 sm:$0xff]  }
0x3b7a   :  { %v2908_v5 = vpop.permute.xlu0 %2907 }
0x3b7b   :  { %v2910_v41 = vadd.f32 %v2908_v5, %v2900_v40  ;;  %v5099_v40 = vld [vmem:[%s6426_s1 + $0x34] ss:$8 sps:$4 sm:$0xff]   ;;  %v5100_v5 = vld [vmem:[%s6426_s1 + $0x30] ss:$8 sps:$4 sm:$0xff]  }
0x3b7d   :  { %4903 = vtanh.f32 %v2910_v41 }
0x3b7e   :  { %4905 = vpow2.f32 %v4445_v44 }
0x3b87   :  { %v4904_v7 = vpop.eup %4903 }
0x3b88   :  { %2913 = vrot.lane.b32.xlu1 %v4904_v7, %s5102_s2  ;;  %v4906_v45 = vpop.eup %4905 }
0x3b89   :  { %v2894_v46 = vadd.f32 1.0, %v4906_v45 }
0x3b8b   :  { %4907 = vrcp.f32 %v2894_v46  ;;  %v702_v0 = vpop.permute.xlu0 %701 }
0x3b8c   :  { %709 = vperm.xlu1 %4556, %v4355_v43   ;;  %v705_v12 = vmul.f32 %v702_v0, %v5247_v17 }
0x3b95   :  { %v4908_v47 = vpop.eup %4907 }
0x3bfa   :  { %v2914_v48 = vpop.permute.xlu1 %2913 }
0x3bfb   :  { %v2916_v2 = vmul.f32 %v4908_v47, %v2914_v48 }
0x3bfd   :  { %v2917_v49 = vadd.f32 %v2916_v2, %v2837_v63  ;;  %v2920_v3 = vpack.c.bf16 %v2916_v2, %v2916_v2 }
0x3bff   :  { %4446 = vmatmul.mubr.msk.bf16.vlgmr.msra.gmra.mrb[56].mxu0 %vm840_vm0, %v2920_v3 }
0x3c00   :  { %3085 = vmatpush1.bf16.msra.mxu0 %v5094_v4  ;;  %3116 = vmatprep.mubr.bf16.mxu0 %v5101_v1 }
0x3c01   :  { %3086 = vmatprep.subr.bf16.mxu0 %v5095_v51 }
0x3c04   :  { %3087 = vmatpush1.bf16.msra.mxu0 %v5096_v54 }
0x3c05   :  { %3088 = vmatprep.subr.bf16.mxu0 %v5789_v58 }
0x3c08   :  { %3089 = vmatpush1.bf16.msra.mxu0 %v5795_v42 }
0x3c09   :  { %3090 = vmatprep.subr.bf16.mxu0 %v5801_v9 }
0x3c0b   :  { %v710_v55 = vpop.permute.xlu1 %709 }
0x3c0c   :  { %3091 = vmatpush1.bf16.msra.mxu0 %v5807_v10  ;;  %v713_v56 = vmul.f32 %v710_v55, %v5250_v18  ;;  %v712_v9 = vmul.f32 %v710_v55, %v5268_v34  ;;  %v704_v10 = vmul.f32 %v702_v0, %v5265_v33 }
0x3c0e   :  { %v715_v60 = vadd.f32 %v713_v56, %v705_v12  ;;  %v714_v11 = vadd.f32 %v712_v9, %v704_v10 }
0x3c10   :  { %v717_v15 = vadd.f32 %v715_v60, %v5258_v24  ;;  %v716_v20 = vadd.f32 %v714_v11, %v5273_v38  ;;  %v4359_v11 = vld [vmem:[%s6427_s0 + $0x8] sm:$0xff] }
0x3cd2   :  { %v2958_v13 = vpop.f32.mrb[56].mxu0 }
0x3cd3   :  { %v2960_v61 = vpop.f32.mrb[57].mxu0  ;;  %v2965_v6 = vadd.f32 %v2958_v13, %v716_v20 }
0x3cd4   :  { %v2966_v16 = vadd.f32 %v2960_v61, %v717_v15  ;;  %v2962_v63 = vpop.f32.mrb[58].mxu0 }
0x3cd5   :  { %v2963_v58 = vpop.f32.mrb[59].mxu0  ;;  %v4447_v29 = vmul.f32 -1.442695, %v2965_v6  ;;  %v4358_v63 = vld [vmem:[%s6427_s0 + $0xe0] sm:$0xff] }
0x3cd6   :  { %4909 = vtanh.f32 %v2966_v16  ;;  %v4448_v50 = vmul.f32 -1.442695, %v2966_v16 }
0x3cd7   :  { %4911 = vpow2.f32 %v4447_v29 }
0x3ce0   :  { %v4910_v42 = vpop.eup %4909 }
0x3ce1   :  { %2982 = vrot.lane.b32.xlu0 %v4910_v42, %s5102_s2  ;;  %v4912_v21 = vpop.eup %4911 }
0x3ce2   :  { %v2973_v30 = vadd.f32 1.0, %v4912_v21 }
0x3ce4   :  { %4913 = vrcp.f32 %v2973_v30 }
0x3cee   :  { %v4914_v23 = vpop.eup %4913 }
0x3cef   :  { %v2980_v31 = vmul.f32 %v4914_v23, %v2910_v41 }
0x3d53   :  { %v2983_v52 = vpop.permute.xlu0 %2982 }
0x3d54   :  { %v2985_v57 = vmul.f32 %v4914_v23, %v2983_v52 }
0x3d56   :  { %2987 = vrot.lane.b32.xlu1 %v2985_v57, %s5102_s2 }
0x3d5a   :  { %724 = vperm.xlu1 %4556, %v4356_v22  }
0x3dc8   :  { %v2988_v35 = vpop.permute.xlu1 %2987 }
0x3dc9   :  { %v2990_v25 = vadd.f32 %v2988_v35, %v2980_v31 }
0x3dcb   :  { %4915 = vtanh.f32 %v2990_v25 }
0x3dcc   :  { %4917 = vpow2.f32 %v4448_v50 }
0x3dd5   :  { %v4916_v53 = vpop.eup %4915 }
0x3dd6   :  { %2993 = vrot.lane.b32.xlu0 %v4916_v53, %s5102_s2  ;;  %v4918_v28 = vpop.eup %4917 }
0x3dd7   :  { %v2974_v59 = vadd.f32 1.0, %v4918_v28 }
0x3dd9   :  { %4919 = vrcp.f32 %v2974_v59  ;;  %v725_v7 = vpop.permute.xlu1 %724 }
0x3dda   :  { %732 = vperm.xlu0 %4555, %v4357_v26   ;;  %v728_v44 = vmul.f32 %v725_v7, %v5247_v17 }
0x3de3   :  { %v4920_v62 = vpop.eup %4919 }
0x3e48   :  { %v2994_v36 = vpop.permute.xlu0 %2993 }
0x3e49   :  { %v2996_v8 = vmul.f32 %v4920_v62, %v2994_v36 }
0x3e4b   :  { %v2997_v19 = vadd.f32 %v2996_v8, %v2917_v49  ;;  %v3000_v27 = vpack.c.bf16 %v2996_v8, %v2996_v8 }
0x3e4d   :  { %4449 = vmatmul.mubr.msk.bf16.vlgmr.msra.gmra.mrb[48].mxu1 %vm840_vm0, %v3000_v27 }
0x3e4e   :  { %3165 = vmatpush1.bf16.msra.mxu1 %v5094_v4  ;;  %3196 = vmatprep.mubr.bf16.mxu1 %v5101_v1 }
0x3e4f   :  { %3166 = vmatprep.subr.bf16.mxu1 %v5095_v51 }
0x3e52   :  { %3167 = vmatpush1.bf16.msra.mxu1 %v5096_v54  ;;  %v727_v54 = vmul.f32 %v725_v7, %v5265_v33 }
0x3e53   :  { %3168 = vmatprep.subr.bf16.mxu1 %v5097_v37 }
0x3e56   :  { %3169 = vmatpush1.bf16.msra.mxu1 %v5098_v39 }
0x3e57   :  { %3170 = vmatprep.subr.bf16.mxu1 %v5099_v40 }
0x3e59   :  { %v733_v41 = vpop.permute.xlu0 %732 }
0x3e5a   :  { %3171 = vmatpush1.bf16.msra.mxu1 %v5100_v5  ;;  %v736_v43 = vmul.f32 %v733_v41, %v5250_v18  ;;  %v735_v51 = vmul.f32 %v733_v41, %v5268_v34 }
0x3e5c   :  { %v738_v45 = vadd.f32 %v736_v43, %v728_v44  ;;  %v737_v55 = vadd.f32 %v735_v51, %v727_v54 }
0x3e5e   :  { %v740_v47 = vadd.f32 %v738_v45, %v5258_v24  ;;  %v739_v0 = vadd.f32 %v737_v55, %v5273_v38 }
0x3f20   :  { %v3038_v46 = vpop.f32.mrb[48].mxu1 }
0x3f21   :  { %v3040_v48 = vpop.f32.mrb[49].mxu1  ;;  %v3045_v56 = vadd.f32 %v3038_v46, %v739_v0  ;;  %v4360_v46 = vld [vmem:[%s6427_s0 + $0xe8] sm:$0xff] }
0x3f22   :  { %v3046_v2 = vadd.f32 %v3040_v48, %v740_v47  ;;  %v3042_v49 = vpop.f32.mrb[50].mxu1 }
0x3f23   :  { %v3043_v3 = vpop.f32.mrb[51].mxu1  ;;  %v4450_v12 = vmul.f32 -1.442695, %v3045_v56 }
0x3f24   :  { %4921 = vtanh.f32 %v3046_v2  ;;  %v4451_v20 = vmul.f32 -1.442695, %v3046_v2  ;;  %v775_v3 = vld [vmem:[%s6427_s0] sm:$0xff] }
0x3f25   :  { %4923 = vpow2.f32 %v4450_v12 }
0x3f2e   :  { %v4922_v4 = vpop.eup %4921 }
0x3f2f   :  { %3062 = vrot.lane.b32.xlu1 %v4922_v4, %s5102_s2  ;;  %v4924_v60 = vpop.eup %4923 }
0x3f30   :  { %v3053_v13 = vadd.f32 1.0, %v4924_v60 }
0x3f32   :  { %4925 = vrcp.f32 %v3053_v13 }
0x3f3c   :  { %v4926_v15 = vpop.eup %4925 }
0x3f3d   :  { %v3060_v58 = vmul.f32 %v4926_v15, %v2990_v25 }
0x3fa1   :  { %v3063_v61 = vpop.permute.xlu1 %3062 }
0x3fa2   :  { %v3065_v16 = vmul.f32 %v4926_v15, %v3063_v61 }
0x3fa4   :  { %3067 = vrot.lane.b32.xlu0 %v3065_v16, %s5102_s2 }
0x3fa8   :  { %747 = vperm.xlu0 %4555, %v4358_v63  }
0x4016   :  { %v3068_v42 = vpop.permute.xlu0 %3067 }
0x4017   :  { %v3070_v9 = vadd.f32 %v3068_v42, %v3060_v58 }
0x4019   :  { %4927 = vtanh.f32 %v3070_v9 }
0x401a   :  { %4929 = vpow2.f32 %v4451_v20 }
0x4023   :  { %v4928_v10 = vpop.eup %4927 }
0x4024   :  { %3073 = vrot.lane.b32.xlu1 %v4928_v10, %s5102_s2  ;;  %v4930_v6 = vpop.eup %4929 }
0x4025   :  { %v3054_v29 = vadd.f32 1.0, %v4930_v6 }
0x4027   :  { %4931 = vrcp.f32 %v3054_v29  ;;  %v748_v31 = vpop.permute.xlu0 %747 }
0x4028   :  { %755 = vperm.xlu1 %4556, %v4359_v11   ;;  %v751_v25 = vmul.f32 %v748_v31, %v5247_v17  ;;  %v750_v27 = vmul.f32 %v748_v31, %v5265_v33 }
0x4031   :  { %v4932_v21 = vpop.eup %4931 }
0x4096   :  { %v3074_v30 = vpop.permute.xlu1 %3073 }
0x4097   :  { %v3076_v23 = vmul.f32 %v4932_v21, %v3074_v30 }
0x4099   :  { %v3077_v52 = vadd.f32 %v3076_v23, %v2997_v19  ;;  %v3080_v57 = vpack.c.bf16 %v3076_v23, %v3076_v23 }
0x409b   :  { %4452 = vmatmul.mubr.msk.bf16.vlgmr.msra.gmra.mrb[60].mxu0 %vm840_vm0, %v3080_v57 }
0x409c   :  { %3342 = vmatprep.mubr.bf16.mxu0 %v5101_v1 }
0x40a7   :  { %v756_v22 = vpop.permute.xlu1 %755 }
0x40a8   :  { %v759_v35 = vmul.f32 %v756_v22, %v5250_v18  ;;  %v758_v19 = vmul.f32 %v756_v22, %v5268_v34 }
0x40aa   :  { %v761_v53 = vadd.f32 %v759_v35, %v751_v25  ;;  %v760_v37 = vadd.f32 %v758_v19, %v750_v27  ;;  %v6108_v35 = vld [vmem:[%s6431_s6] ss:$8 sps:$4 sm:$0xff]   ;;  %v6113_v25 = vld [vmem:[%s6431_s6 + $0x14] ss:$8 sps:$4 sm:$0xff]  }
0x40ab   :  { %v6151_v27 = vld [vmem:[%s6431_s6 + $0x34] ss:$8 sps:$4 sm:$0xff]  }
0x40ac   :  { %v763_v50 = vadd.f32 %v761_v53, %v5258_v24  ;;  %v762_v39 = vadd.f32 %v760_v37, %v5273_v38  ;;  %v4577_v53 = vld [vmem:[%s6432_s5 + $0x10] ss:$8 sps:$4 sm:$0xff]  }
0x416e   :  { %v3118_v26 = vpop.f32.mrb[60].mxu0 }
0x416f   :  { %v3120_v28 = vpop.f32.mrb[61].mxu0  ;;  %v3125_v40 = vadd.f32 %v3118_v26, %v762_v39  ;;  %v4579_v26 = vld [vmem:[%s6432_s5 + $0x14] ss:$8 sps:$4 sm:$0xff]  }
0x4170   :  { %v3126_v59 = vadd.f32 %v3120_v28, %v763_v50  ;;  %v3122_v62 = vpop.f32.mrb[62].mxu0  ;;  %v6126_v50 = vld [vmem:[%s6431_s6 + $0x10] ss:$8 sps:$4 sm:$0xff]   ;;  %v6131_v28 = vld [vmem:[%s6431_s6 + $0x24] ss:$8 sps:$4 sm:$0xff]  }
0x4171   :  { %v3123_v36 = vpop.f32.mrb[63].mxu0  ;;  %v4453_v5 = vmul.f32 -1.442695, %v3125_v40  ;;  %v6139_v62 = vld [vmem:[%s6431_s6 + $0x20] ss:$8 sps:$4 sm:$0xff]  }
0x4172   :  { %4933 = vtanh.f32 %v3126_v59  ;;  %v4454_v4 = vmul.f32 -1.442695, %v3126_v59  ;;  %v4585_v59 = vld [vmem:[%s6432_s5 + $0x24] ss:$8 sps:$4 sm:$0xff]   ;;  %v4583_v36 = vld [vmem:[%s6432_s5 + $0x20] ss:$8 sps:$4 sm:$0xff]  }
0x4173   :  { %4935 = vpow2.f32 %v4453_v5  ;;  %v4591_v39 = vld [vmem:[%s6432_s5 + $0x34] ss:$8 sps:$4 sm:$0xff]   ;;  %v6159_v40 = vld [vmem:[%s6431_s6 + $0x30] ss:$8 sps:$4 sm:$0xff]  }
0x4174   :  { %v4589_v5 = vld [vmem:[%s6432_s5 + $0x30] ss:$8 sps:$4 sm:$0xff]  }
0x417c   :  { %v4934_v8 = vpop.eup %4933 }
0x417d   :  { %3142 = vrot.lane.b32.xlu0 %v4934_v8, %s5102_s2  ;;  %v4936_v41 = vpop.eup %4935 }
0x417e   :  { %v3133_v7 = vadd.f32 1.0, %v4936_v41 }
0x4180   :  { %4937 = vrcp.f32 %v3133_v7 }
0x418a   :  { %v4938_v43 = vpop.eup %4937 }
0x418b   :  { %v3140_v47 = vmul.f32 %v4938_v43, %v3070_v9 }
0x41ef   :  { %v3143_v44 = vpop.permute.xlu0 %3142 }
0x41f0   :  { %v3145_v45 = vmul.f32 %v4938_v43, %v3143_v44 }
0x41f2   :  { %3147 = vrot.lane.b32.xlu1 %v3145_v45, %s5102_s2 }
0x41f6   :  { %770 = vperm.xlu1 %4556, %v4360_v46  }
0x4264   :  { %v3148_v48 = vpop.permute.xlu1 %3147 }
0x4265   :  { %v6071_v2 = vadd.f32 %v3148_v48, %v3140_v47 }
0x4267   :  { %4939 = vtanh.f32 %v6071_v2 }
0x4268   :  { %4941 = vpow2.f32 %v4454_v4 }
0x4271   :  { %v4940_v49 = vpop.eup %4939 }
0x4272   :  { %3153 = vrot.lane.b32.xlu0 %v4940_v49, %s5102_s2  ;;  %v4942_v51 = vpop.eup %4941 }
0x4273   :  { %v3134_v54 = vadd.f32 1.0, %v4942_v51 }
0x4275   :  { %4943 = vrcp.f32 %v3134_v54  ;;  %v771_v15 = vpop.permute.xlu1 %770  ;;  %v3255_v54 = vld [vmem:[%s6433_s7] sm:$0x3] }
0x4276   :  { %778 = vperm.xlu0 %4555, %v775_v3   ;;  %v774_v16 = vmul.f32 %v771_v15, %v5247_v17 }
0x427f   :  { %v4944_v55 = vpop.eup %4943 }
0x42e4   :  { %v3154_v0 = vpop.permute.xlu0 %3153 }
0x42e5   :  { %v3156_v56 = vmul.f32 %v4944_v55, %v3154_v0  ;;  %v3264_v55 = vrot.slane %v3255_v54, %v5238_v14 }
0x42e7   :  { %v6078_v12 = vadd.f32 %v3156_v56, %v3077_v52  ;;  %v3160_v60 = vpack.c.bf16 %v3156_v56, %v3156_v56 }
0x42e9   :  { %4455 = vmatmul.mubr.msk.bf16.vlgmr.msra.gmra.mrb[52].mxu1 %vm840_vm0, %v3160_v60 }
0x42ea   :  { %3423 = vmatprep.mubr.bf16.mxu1 %v5101_v1 }
0x42f5   :  { %v779_v13 = vpop.permute.xlu0 %778 }
0x42f6   :  { %v782_v61 = vmul.f32 %v779_v13, %v5250_v18  ;;  %v781_v29 = vmul.f32 %v779_v13, %v5268_v34  ;;  %v773_v18 = vmul.f32 %v771_v15, %v5265_v33  ;;  %v6096_v34 = vld [vmem:[%s6431_s6 + $0x4] ss:$8 sps:$4 sm:$0xff]   ;;  %v4571_v33 = vld [vmem:[%s6432_s5] ss:$8 sps:$4 sm:$0xff]  }
0x42f7   :  { %3391 = vmatprep.subr.bf16.mxu1 %v6096_v34 }
0x42f8   :  { %v784_v63 = vadd.f32 %v782_v61, %v774_v16  ;;  %v783_v21 = vadd.f32 %v781_v29, %v773_v18  ;;  %3392 = vmatpush1.bf16.msra.mxu1 %v6108_v35  ;;  %v3260_v16 = vrot.slane %v3255_v54, %v5262_v32 }
0x42f9   :  { %3393 = vmatprep.subr.bf16.mxu1 %v6113_v25 }
0x42fa   :  { %v786_v42 = vadd.f32 %v784_v63, %v5258_v24  ;;  %v785_v17 = vadd.f32 %v783_v21, %v5273_v38  ;;  %v4573_v38 = vld [vmem:[%s6432_s5 + $0x4] ss:$8 sps:$4 sm:$0xff]  }
0x42fb   :  { %3310 = vmatprep.subr.bf16.mxu0 %v4573_v38 }
0x42fc   :  { %3311 = vmatpush1.bf16.msra.mxu0 %v4571_v33  ;;  %3394 = vmatpush1.bf16.msra.mxu1 %v6126_v50 }
0x42fd   :  { %3312 = vmatprep.subr.bf16.mxu0 %v4579_v26  ;;  %3395 = vmatprep.subr.bf16.mxu1 %v6131_v28 }
0x4300   :  { %3313 = vmatpush1.bf16.msra.mxu0 %v4577_v53  ;;  %3396 = vmatpush1.bf16.msra.mxu1 %v6139_v62 }
0x4301   :  { %3314 = vmatprep.subr.bf16.mxu0 %v4585_v59  ;;  %3397 = vmatprep.subr.bf16.mxu1 %v6151_v27 }
0x4304   :  { %3315 = vmatpush1.bf16.msra.mxu0 %v4583_v36  ;;  %3398 = vmatpush1.bf16.msra.mxu1 %v6159_v40 }
0x4305   :  { %3316 = vmatprep.subr.bf16.mxu0 %v4591_v39  ;;  %3545 = vmatprep.subr.bf16.mxu1 %v6096_v34 }
0x4307   :  { %3424 = vmatmul.mubr.bf16.vlgmr.msra.gmra.mrb[56].mxu1 %v5101_v1 }
0x4308   :  { %3317 = vmatpush1.bf16.msra.mxu0 %v4589_v5  ;;  %3546 = vmatpush1.bf16.msra.mxu1 %v6108_v35 }
0x4309   :  { %3468 = vmatprep.subr.bf16.mxu0 %v6096_v34  ;;  %3577 = vmatprep.mubr.bf16.mxu1 %v5101_v1 }
0x430a   :  { %3547 = vmatprep.subr.bf16.mxu1 %v6113_v25 }
0x430c   :  { %3548 = vmatpush1.bf16.msra.mxu1 %v6126_v50 }
0x430d   :  { %3549 = vmatprep.subr.bf16.mxu1 %v6131_v28 }
0x4310   :  { %3550 = vmatpush1.bf16.msra.mxu1 %v6139_v62 }
0x4311   :  { %3551 = vmatprep.subr.bf16.mxu1 %v6151_v27 }
0x4314   :  { %3552 = vmatpush1.bf16.msra.mxu1 %v6159_v40 }
0x4315   :  { %3699 = vmatprep.subr.bf16.mxu1 %v6096_v34 }
0x43bc   :  { %v3198_v58 = vpop.f32.mrb[52].mxu1 }
0x43bd   :  { %v3200_v9 = vpop.f32.mrb[53].mxu1  ;;  %v3205_v30 = vadd.f32 %v3198_v58, %v785_v17 }
0x43be   :  { %v6085_v10 = vadd.f32 %v3200_v9, %v786_v42  ;;  %v3202_v11 = vpop.f32.mrb[54].mxu1 }
0x43bf   :  { %v3203_v20 = vpop.f32.mrb[55].mxu1  ;;  %v4456_v23 = vmul.f32 -1.442695, %v3205_v30 }
0x43c0   :  { %4945 = vtanh.f32 %v6085_v10  ;;  %v4457_v7 = vmul.f32 -1.442695, %v6085_v10 }
0x43c1   :  { %4947 = vpow2.f32 %v4456_v23 }
0x43ca   :  { %v4946_v6 = vpop.eup %4945 }
0x43cb   :  { %3222 = vrot.lane.b32.xlu1 %v4946_v6, %s5102_s2  ;;  %v4948_v24 = vpop.eup %4947 }
0x43cc   :  { %v3213_v52 = vadd.f32 1.0, %v4948_v24 }
0x43ce   :  { %4949 = vrcp.f32 %v3213_v52 }
0x43d8   :  { %v4950_v57 = vpop.eup %4949 }
0x43d9   :  { %v3220_v8 = vmul.f32 %v4950_v57, %v6071_v2 }
0x43da   :  { %v3425_v49 = vpop.f32.mrb[56].mxu1 }
0x43db   :  { %v3427_v3 = vpop.f32.mrb[57].mxu1 }
0x43dc   :  { %v3429_v4 = vpop.f32.mrb[58].mxu1 }
0x43dd   :  { %v3430_v51 = vpop.f32.mrb[59].mxu1 }
0x443d   :  { %v3223_v22 = vpop.permute.xlu1 %3222 }
0x443e   :  { %v3225_v31 = vmul.f32 %v4950_v57, %v3223_v22 }
0x4440   :  { %3227 = vrot.lane.b32.xlu0 %v3225_v31, %s5102_s2 }
0x44b2   :  { %v3228_v19 = vpop.permute.xlu0 %3227 }
0x44b3   :  { %v3230_v37 = vadd.f32 %v3228_v19, %v3220_v8 }
0x44b5   :  { %4951 = vtanh.f32 %v3230_v37 }
0x44b6   :  { %4953 = vpow2.f32 %v4457_v7 }
0x44bf   :  { %v4952_v41 = vpop.eup %4951 }
0x44c0   :  { %3233 = vrot.lane.b32.xlu1 %v4952_v41, %s5102_s2  ;;  %v4954_v43 = vpop.eup %4953 }
0x44c1   :  { %v3214_v44 = vadd.f32 1.0, %v4954_v43 }
0x44c3   :  { %4955 = vrcp.f32 %v3214_v44 }
0x44cd   :  { %v4956_v45 = vpop.eup %4955 }
0x4532   :  { %v3234_v46 = vpop.permute.xlu1 %3233 }
0x4533   :  { %v3236_v47 = vmul.f32 %v4956_v45, %v3234_v46 }
0x4535   :  { %v3237_v48 = vadd.f32 %v3236_v47, %v6078_v12 }
0x4537   :  { %v3246_v2 = vpack.c.bf16 %v3237_v48, %v3237_v48 }
0x4539   :  { %4466 = vmatmul.mubr.msk.bf16.vlgmr.msra.gmra.mrb[64].mxu0 %vm840_vm0, %v3246_v2 }
0x453a   :  { %3469 = vmatpush1.bf16.msra.mxu0 %v6108_v35  ;;  %3500 = vmatprep.mubr.bf16.mxu0 %v5101_v1 }
0x453b   :  { %3470 = vmatprep.subr.bf16.mxu0 %v6113_v25 }
0x453e   :  { %3471 = vmatpush1.bf16.msra.mxu0 %v6126_v50 }
0x453f   :  { %3472 = vmatprep.subr.bf16.mxu0 %v6131_v28 }
0x4542   :  { %3473 = vmatpush1.bf16.msra.mxu0 %v6139_v62 }
0x4543   :  { %3474 = vmatprep.subr.bf16.mxu0 %v6151_v27 }
0x4546   :  { %3475 = vmatpush1.bf16.msra.mxu0 %v6159_v40 }
0x4547   :  { %3622 = vmatprep.subr.bf16.mxu0 %v6096_v34 }
0x460c   :  { %v3344_v0 = vpop.f32.mrb[64].mxu0 }
0x460d   :  { %v3346_v56 = vpop.f32.mrb[65].mxu0  ;;  %v6200_v63 = vadd.f32 %v3344_v0, %v3260_v16 }
0x460e   :  { %v6195_v12 = vadd.f32 %v3346_v56, %v3264_v55  ;;  %v3348_v60 = vpop.f32.mrb[66].mxu0 }
0x460f   :  { %v3349_v13 = vpop.f32.mrb[67].mxu0  ;;  %v3432_v58 = vadd.f32 %v3425_v49, %v6200_v63 }
0x4610   :  { %v3433_v15 = vadd.f32 %v3427_v3, %v6195_v12 }
0x4611   :  { %v4475_v42 = vmul.f32 -1.442695, %v3432_v58 }
0x4612   :  { %4957 = vtanh.f32 %v3433_v15  ;;  %v4476_v32 = vmul.f32 -1.442695, %v3433_v15 }
0x4613   :  { %4959 = vpow2.f32 %v4475_v42 }
0x461c   :  { %v4958_v61 = vpop.eup %4957 }
0x461d   :  { %3449 = vrot.lane.b32.xlu0 %v4958_v61, %s5102_s2  ;;  %v4960_v14 = vpop.eup %4959 }
0x461e   :  { %v3440_v9 = vadd.f32 1.0, %v4960_v14 }
0x4620   :  { %4961 = vrcp.f32 %v3440_v9 }
0x462a   :  { %v4962_v10 = vpop.eup %4961 }
0x462b   :  { %v3447_v6 = vmul.f32 0.0, %v4962_v10 }
0x468f   :  { %v3450_v11 = vpop.permute.xlu0 %3449 }
0x4690   :  { %v3452_v20 = vmul.f32 %v4962_v10, %v3450_v11 }
0x4692   :  { %3454 = vrot.lane.b32.xlu1 %v3452_v20, %s5102_s2 }
0x4704   :  { %v3455_v29 = vpop.permute.xlu1 %3454 }
0x4705   :  { %v3457_v18 = vadd.f32 %v3455_v29, %v3447_v6 }
0x4707   :  { %4963 = vtanh.f32 %v3457_v18 }
0x4708   :  { %4965 = vpow2.f32 %v4476_v32 }
0x4711   :  { %v4964_v21 = vpop.eup %4963 }
0x4712   :  { %3460 = vrot.lane.b32.xlu0 %v4964_v21, %s5102_s2  ;;  %v4966_v17 = vpop.eup %4965 }
0x4713   :  { %v3441_v30 = vadd.f32 1.0, %v4966_v17 }
0x4715   :  { %4967 = vrcp.f32 %v3441_v30 }
0x471f   :  { %v4968_v23 = vpop.eup %4967 }
0x4784   :  { %v3461_v24 = vpop.permute.xlu0 %3460 }
0x4785   :  { %v6205_v52 = vmul.f32 %v4968_v23, %v3461_v24 }
0x4787   :  { %v3464_v57 = vpack.c.bf16 %v6205_v52, %v6205_v52 }
0x4789   :  { %4477 = vmatmul.mubr.msk.bf16.vlgmr.msra.gmra.mrb[68].mxu0 %vm840_vm0, %v3464_v57 }
0x478a   :  { %3623 = vmatpush1.bf16.msra.mxu0 %v6108_v35  ;;  %3654 = vmatprep.mubr.bf16.mxu0 %v5101_v1 }
0x478b   :  { %3624 = vmatprep.subr.bf16.mxu0 %v6113_v25 }
0x478e   :  { %3625 = vmatpush1.bf16.msra.mxu0 %v6126_v50 }
0x478f   :  { %3626 = vmatprep.subr.bf16.mxu0 %v6131_v28 }
0x4792   :  { %3627 = vmatpush1.bf16.msra.mxu0 %v6139_v62 }
0x4793   :  { %3628 = vmatprep.subr.bf16.mxu0 %v6151_v27 }
0x4796   :  { %3629 = vmatpush1.bf16.msra.mxu0 %v6159_v40 }
0x4797   :  { %3776 = vmatprep.subr.bf16.mxu0 %v6096_v34 }
0x485c   :  { %v3502_v22 = vpop.f32.mrb[68].mxu0 }
0x485d   :  { %v3504_v31 = vpop.f32.mrb[69].mxu0  ;;  %v3509_v59 = vadd.f32 %v3502_v22, %v6200_v63 }
0x485e   :  { %v3510_v33 = vadd.f32 %v3504_v31, %v6195_v12  ;;  %v3506_v38 = vpop.f32.mrb[70].mxu0 }
0x485f   :  { %v3507_v53 = vpop.f32.mrb[71].mxu0  ;;  %v4478_v36 = vmul.f32 -1.442695, %v3509_v59 }
0x4860   :  { %4969 = vtanh.f32 %v3510_v33  ;;  %v4479_v45 = vmul.f32 -1.442695, %v3510_v33 }
0x4861   :  { %4971 = vpow2.f32 %v4478_v36 }
0x486a   :  { %v4970_v26 = vpop.eup %4969 }
0x486b   :  { %3526 = vrot.lane.b32.xlu1 %v4970_v26, %s5102_s2  ;;  %v4972_v8 = vpop.eup %4971 }
0x486c   :  { %v3517_v19 = vadd.f32 1.0, %v4972_v8 }
0x486e   :  { %4973 = vrcp.f32 %v3517_v19 }
0x4878   :  { %v4974_v37 = vpop.eup %4973 }
0x4879   :  { %v3524_v41 = vmul.f32 %v4974_v37, %v3457_v18 }
0x48dd   :  { %v3527_v39 = vpop.permute.xlu1 %3526 }
0x48de   :  { %v3529_v5 = vmul.f32 %v4974_v37, %v3527_v39 }
0x48e0   :  { %3531 = vrot.lane.b32.xlu0 %v3529_v5, %s5102_s2 }
0x4952   :  { %v3532_v7 = vpop.permute.xlu0 %3531 }
0x4953   :  { %v3534_v43 = vadd.f32 %v3532_v7, %v3524_v41 }
0x4955   :  { %4975 = vtanh.f32 %v3534_v43 }
0x4956   :  { %4977 = vpow2.f32 %v4479_v45 }
0x495f   :  { %v4976_v44 = vpop.eup %4975 }
0x4960   :  { %3537 = vrot.lane.b32.xlu1 %v4976_v44, %s5102_s2  ;;  %v4978_v46 = vpop.eup %4977 }
0x4961   :  { %v3518_v47 = vadd.f32 1.0, %v4978_v46 }
0x4963   :  { %4979 = vrcp.f32 %v3518_v47 }
0x496d   :  { %v4980_v48 = vpop.eup %4979 }
0x49d2   :  { %v3538_v2 = vpop.permute.xlu1 %3537 }
0x49d3   :  { %v6224_v49 = vmul.f32 %v4980_v48, %v3538_v2 }
0x49d5   :  { %v3541_v3 = vpack.c.bf16 %v6224_v49, %v6224_v49 }
0x49d7   :  { %4480 = vmatmul.mubr.msk.bf16.vlgmr.msra.gmra.mrb[60].mxu1 %vm840_vm0, %v3541_v3 }
0x49d8   :  { %3700 = vmatpush1.bf16.msra.mxu1 %v6108_v35  ;;  %3731 = vmatprep.mubr.bf16.mxu1 %v5101_v1 }
0x49d9   :  { %3701 = vmatprep.subr.bf16.mxu1 %v6113_v25 }
0x49dc   :  { %3702 = vmatpush1.bf16.msra.mxu1 %v6126_v50 }
0x49dd   :  { %3703 = vmatprep.subr.bf16.mxu1 %v6131_v28 }
0x49e0   :  { %3704 = vmatpush1.bf16.msra.mxu1 %v6139_v62 }
0x49e1   :  { %3705 = vmatprep.subr.bf16.mxu1 %v6151_v27 }
0x49e4   :  { %3706 = vmatpush1.bf16.msra.mxu1 %v6159_v40 }
0x49e5   :  { %3853 = vmatprep.subr.bf16.mxu1 %v6096_v34 }
0x4aaa   :  { %v3579_v4 = vpop.f32.mrb[60].mxu1 }
0x4aab   :  { %v3581_v51 = vpop.f32.mrb[61].mxu1  ;;  %v3586_v60 = vadd.f32 %v3579_v4, %v6200_v63 }
0x4aac   :  { %v3587_v54 = vadd.f32 %v3581_v51, %v6195_v12  ;;  %v3583_v55 = vpop.f32.mrb[62].mxu1 }
0x4aad   :  { %v3584_v0 = vpop.f32.mrb[63].mxu1  ;;  %v4481_v13 = vmul.f32 -1.442695, %v3586_v60 }
0x4aae   :  { %4981 = vtanh.f32 %v3587_v54  ;;  %v4482_v20 = vmul.f32 -1.442695, %v3587_v54 }
0x4aaf   :  { %4983 = vpow2.f32 %v4481_v13 }
0x4ab8   :  { %v4982_v56 = vpop.eup %4981 }
0x4ab9   :  { %3603 = vrot.lane.b32.xlu0 %v4982_v56, %s5102_s2  ;;  %v4984_v15 = vpop.eup %4983 }
0x4aba   :  { %v3594_v61 = vadd.f32 1.0, %v4984_v15 }
0x4abc   :  { %4985 = vrcp.f32 %v3594_v61 }
0x4ac6   :  { %v4986_v16 = vpop.eup %4985 }
0x4ac7   :  { %v3601_v14 = vmul.f32 %v4986_v16, %v3534_v43 }
0x4b2b   :  { %v3604_v58 = vpop.permute.xlu0 %3603 }
0x4b2c   :  { %v3606_v42 = vmul.f32 %v4986_v16, %v3604_v58 }
0x4b2e   :  { %3608 = vrot.lane.b32.xlu1 %v3606_v42, %s5102_s2 }
0x4ba0   :  { %v3609_v9 = vpop.permute.xlu1 %3608 }
0x4ba1   :  { %v3611_v10 = vadd.f32 %v3609_v9, %v3601_v14 }
0x4ba3   :  { %4987 = vtanh.f32 %v3611_v10 }
0x4ba4   :  { %4989 = vpow2.f32 %v4482_v20 }
0x4bad   :  { %v4988_v11 = vpop.eup %4987 }
0x4bae   :  { %3614 = vrot.lane.b32.xlu0 %v4988_v11, %s5102_s2  ;;  %v4990_v6 = vpop.eup %4989 }
0x4baf   :  { %v3595_v29 = vadd.f32 1.0, %v4990_v6 }
0x4bb1   :  { %4991 = vrcp.f32 %v3595_v29 }
0x4bbb   :  { %v4992_v18 = vpop.eup %4991 }
0x4c20   :  { %v3615_v21 = vpop.permute.xlu0 %3614 }
0x4c21   :  { %v6243_v32 = vmul.f32 %v4992_v18, %v3615_v21 }
0x4c23   :  { %v3618_v17 = vpack.c.bf16 %v6243_v32, %v6243_v32 }
0x4c25   :  { %4483 = vmatmul.mubr.msk.bf16.vlgmr.msra.gmra.mrb[72].mxu0 %vm840_vm0, %v3618_v17 }
0x4c26   :  { %3777 = vmatpush1.bf16.msra.mxu0 %v6108_v35  ;;  %3808 = vmatprep.mubr.bf16.mxu0 %v5101_v1 }
0x4c27   :  { %3778 = vmatprep.subr.bf16.mxu0 %v6113_v25 }
0x4c2a   :  { %3779 = vmatpush1.bf16.msra.mxu0 %v6126_v50 }
0x4c2b   :  { %3780 = vmatprep.subr.bf16.mxu0 %v6131_v28 }
0x4c2e   :  { %3781 = vmatpush1.bf16.msra.mxu0 %v6139_v62 }
0x4c2f   :  { %3782 = vmatprep.subr.bf16.mxu0 %v6151_v27 }
0x4c32   :  { %3783 = vmatpush1.bf16.msra.mxu0 %v6159_v40 }
0x4c33   :  { %3930 = vmatprep.subr.bf16.mxu0 %v6096_v34 }
0x4cf8   :  { %v3656_v30 = vpop.f32.mrb[72].mxu0 }
0x4cf9   :  { %v3658_v23 = vpop.f32.mrb[73].mxu0  ;;  %v3663_v33 = vadd.f32 %v3656_v30, %v6200_v63 }
0x4cfa   :  { %v3664_v24 = vadd.f32 %v3658_v23, %v6195_v12  ;;  %v3660_v57 = vpop.f32.mrb[74].mxu0 }
0x4cfb   :  { %v3661_v22 = vpop.f32.mrb[75].mxu0  ;;  %v4484_v38 = vmul.f32 -1.442695, %v3663_v33 }
0x4cfc   :  { %4993 = vtanh.f32 %v3664_v24  ;;  %v4485_v41 = vmul.f32 -1.442695, %v3664_v24 }
0x4cfd   :  { %4995 = vpow2.f32 %v4484_v38 }
0x4d06   :  { %v4994_v31 = vpop.eup %4993 }
0x4d07   :  { %3680 = vrot.lane.b32.xlu1 %v4994_v31, %s5102_s2  ;;  %v4996_v53 = vpop.eup %4995 }
0x4d08   :  { %v3671_v26 = vadd.f32 1.0, %v4996_v53 }
0x4d0a   :  { %4997 = vrcp.f32 %v3671_v26 }
0x4d14   :  { %v4998_v59 = vpop.eup %4997 }
0x4d15   :  { %v3678_v19 = vmul.f32 %v4998_v59, %v3611_v10 }
0x4d79   :  { %v3681_v36 = vpop.permute.xlu1 %3680 }
0x4d7a   :  { %v3683_v8 = vmul.f32 %v4998_v59, %v3681_v36 }
0x4d7c   :  { %3685 = vrot.lane.b32.xlu0 %v3683_v8, %s5102_s2 }
0x4dee   :  { %v3686_v37 = vpop.permute.xlu0 %3685 }
0x4def   :  { %v3688_v39 = vadd.f32 %v3686_v37, %v3678_v19 }
0x4df1   :  { %4999 = vtanh.f32 %v3688_v39 }
0x4df2   :  { %5001 = vpow2.f32 %v4485_v41 }
0x4dfb   :  { %v5000_v5 = vpop.eup %4999 }
0x4dfc   :  { %3691 = vrot.lane.b32.xlu1 %v5000_v5, %s5102_s2  ;;  %v5002_v7 = vpop.eup %5001 }
0x4dfd   :  { %v3672_v43 = vadd.f32 1.0, %v5002_v7 }
0x4dff   :  { %5003 = vrcp.f32 %v3672_v43 }
0x4e09   :  { %v5004_v44 = vpop.eup %5003 }
0x4e6e   :  { %v3692_v45 = vpop.permute.xlu1 %3691 }
0x4e6f   :  { %v6262_v46 = vmul.f32 %v5004_v44, %v3692_v45 }
0x4e71   :  { %v3695_v47 = vpack.c.bf16 %v6262_v46, %v6262_v46 }
0x4e73   :  { %4486 = vmatmul.mubr.msk.bf16.vlgmr.msra.gmra.mrb[64].mxu1 %vm840_vm0, %v3695_v47 }
0x4e74   :  { %3854 = vmatpush1.bf16.msra.mxu1 %v6108_v35  ;;  %3885 = vmatprep.mubr.bf16.mxu1 %v5101_v1 }
0x4e75   :  { %3855 = vmatprep.subr.bf16.mxu1 %v6113_v25 }
0x4e78   :  { %3856 = vmatpush1.bf16.msra.mxu1 %v6126_v50 }
0x4e79   :  { %3857 = vmatprep.subr.bf16.mxu1 %v6131_v28 }
0x4e7c   :  { %3858 = vmatpush1.bf16.msra.mxu1 %v6139_v62 }
0x4e7d   :  { %3859 = vmatprep.subr.bf16.mxu1 %v6151_v27 }
0x4e80   :  { %3860 = vmatpush1.bf16.msra.mxu1 %v6159_v40 }
0x4e81   :  { %4007 = vmatprep.subr.bf16.mxu1 %v6096_v34 }
0x4f46   :  { %v3733_v48 = vpop.f32.mrb[64].mxu1 }
0x4f47   :  { %v3735_v2 = vpop.f32.mrb[65].mxu1  ;;  %v3740_v55 = vadd.f32 %v3733_v48, %v6200_v63 }
0x4f48   :  { %v3741_v3 = vadd.f32 %v3735_v2, %v6195_v12  ;;  %v3737_v4 = vpop.f32.mrb[66].mxu1 }
0x4f49   :  { %v3738_v51 = vpop.f32.mrb[67].mxu1  ;;  %v4487_v0 = vmul.f32 -1.442695, %v3740_v55 }
0x4f4a   :  { %5005 = vtanh.f32 %v3741_v3  ;;  %v4488_v9 = vmul.f32 -1.442695, %v3741_v3 }
0x4f4b   :  { %5007 = vpow2.f32 %v4487_v0 }
0x4f54   :  { %v5006_v54 = vpop.eup %5005 }
0x4f55   :  { %3757 = vrot.lane.b32.xlu0 %v5006_v54, %s5102_s2  ;;  %v5008_v56 = vpop.eup %5007 }
0x4f56   :  { %v3748_v60 = vadd.f32 1.0, %v5008_v56 }
0x4f58   :  { %5009 = vrcp.f32 %v3748_v60 }
0x4f62   :  { %v5010_v13 = vpop.eup %5009 }
0x4f63   :  { %v3755_v16 = vmul.f32 %v5010_v13, %v3688_v39 }
0x4fc7   :  { %v3758_v15 = vpop.permute.xlu0 %3757 }
0x4fc8   :  { %v3760_v61 = vmul.f32 %v5010_v13, %v3758_v15 }
0x4fca   :  { %3762 = vrot.lane.b32.xlu1 %v3760_v61, %s5102_s2 }
0x503c   :  { %v3763_v58 = vpop.permute.xlu1 %3762 }
0x503d   :  { %v3765_v42 = vadd.f32 %v3763_v58, %v3755_v16 }
0x503f   :  { %5011 = vtanh.f32 %v3765_v42 }
0x5040   :  { %5013 = vpow2.f32 %v4488_v9 }
0x5049   :  { %v5012_v14 = vpop.eup %5011 }
0x504a   :  { %3768 = vrot.lane.b32.xlu0 %v5012_v14, %s5102_s2  ;;  %v5014_v10 = vpop.eup %5013 }
0x504b   :  { %v3749_v11 = vadd.f32 1.0, %v5014_v10 }
0x504d   :  { %5015 = vrcp.f32 %v3749_v11 }
0x5057   :  { %v5016_v20 = vpop.eup %5015 }
0x50bc   :  { %v3769_v6 = vpop.permute.xlu0 %3768 }
0x50bd   :  { %v6281_v29 = vmul.f32 %v5016_v20, %v3769_v6 }
0x50bf   :  { %v3772_v18 = vpack.c.bf16 %v6281_v29, %v6281_v29 }
0x50c1   :  { %4489 = vmatmul.mubr.msk.bf16.vlgmr.msra.gmra.mrb[76].mxu0 %vm840_vm0, %v3772_v18 }
0x50c2   :  { %3931 = vmatpush1.bf16.msra.mxu0 %v6108_v35  ;;  %3962 = vmatprep.mubr.bf16.mxu0 %v5101_v1 }
0x50c3   :  { %3932 = vmatprep.subr.bf16.mxu0 %v6113_v25 }
0x50c6   :  { %3933 = vmatpush1.bf16.msra.mxu0 %v6126_v50 }
0x50c7   :  { %3934 = vmatprep.subr.bf16.mxu0 %v6131_v28 }
0x50ca   :  { %3935 = vmatpush1.bf16.msra.mxu0 %v6139_v62 }
0x50cb   :  { %3936 = vmatprep.subr.bf16.mxu0 %v6151_v27 }
0x50ce   :  { %3937 = vmatpush1.bf16.msra.mxu0 %v6159_v40 }
0x50cf   :  { %4084 = vmatprep.subr.bf16.mxu0 %v6096_v34 }
0x5194   :  { %v3810_v21 = vpop.f32.mrb[76].mxu0 }
0x5195   :  { %v3812_v17 = vpop.f32.mrb[77].mxu0  ;;  %v3817_v22 = vadd.f32 %v3810_v21, %v6200_v63 }
0x5196   :  { %v3818_v30 = vadd.f32 %v3812_v17, %v6195_v12  ;;  %v3814_v23 = vpop.f32.mrb[78].mxu0 }
0x5197   :  { %v3815_v24 = vpop.f32.mrb[79].mxu0  ;;  %v4490_v31 = vmul.f32 -1.442695, %v3817_v22 }
0x5198   :  { %5017 = vtanh.f32 %v3818_v30  ;;  %v4491_v37 = vmul.f32 -1.442695, %v3818_v30 }
0x5199   :  { %5019 = vpow2.f32 %v4490_v31  ;;  %v5103_v31 = vmov 0.0  }
0x51a2   :  { %v5018_v57 = vpop.eup %5017 }
0x51a3   :  { %3834 = vrot.lane.b32.xlu1 %v5018_v57, %s5102_s2  ;;  %v5020_v33 = vpop.eup %5019 }
0x51a4   :  { %v3825_v38 = vadd.f32 1.0, %v5020_v33 }
0x51a6   :  { %5021 = vrcp.f32 %v3825_v38 }
0x51b0   :  { %v5022_v53 = vpop.eup %5021 }
0x51b1   :  { %v3832_v59 = vmul.f32 %v5022_v53, %v3765_v42 }
0x5215   :  { %v3835_v26 = vpop.permute.xlu1 %3834 }
0x5216   :  { %v3837_v34 = vmul.f32 %v5022_v53, %v3835_v26 }
0x5218   :  { %3839 = vrot.lane.b32.xlu0 %v3837_v34, %s5102_s2 }
0x528a   :  { %v3840_v36 = vpop.permute.xlu0 %3839 }
0x528b   :  { %v3842_v8 = vadd.f32 %v3840_v36, %v3832_v59 }
0x528d   :  { %5023 = vtanh.f32 %v3842_v8 }
0x528e   :  { %5025 = vpow2.f32 %v4491_v37  ;;  %v4594_v37 = vld [vmem:[%s6434_s8 + $0x8] sm:$0xff]  }
0x5297   :  { %v5024_v19 = vpop.eup %5023 }
0x5298   :  { %3845 = vrot.lane.b32.xlu1 %v5024_v19, %s5102_s2  ;;  %v5026_v39 = vpop.eup %5025 }
0x5299   :  { %v3826_v5 = vadd.f32 1.0, %v5026_v39  ;;  %v4595_v39 = vld [vmem:[%s6434_s8 + $0x10] sm:$0xff]  }
0x529b   :  { %5027 = vrcp.f32 %v3826_v5  ;;  %v4596_v5 = vld [vmem:[%s6434_s8 + $0x18] sm:$0xff]  }
0x52a5   :  { %v5028_v41 = vpop.eup %5027 }
0x530a   :  { %v3846_v7 = vpop.permute.xlu1 %3845 }
0x530b   :  { %v6300_v43 = vmul.f32 %v5028_v41, %v3846_v7  ;;  %v4157_v41 = vpack.c.bf16 %v6224_v49, %v6205_v52  ;;  %v4158_v7 = vpack.c.bf16 %v6262_v46, %v6243_v32 }
0x530d   :  { %v3849_v44 = vpack.c.bf16 %v6300_v43, %v6300_v43 }
0x530f   :  { %4492 = vmatmul.mubr.msk.bf16.vlgmr.msra.gmra.mrb[68].mxu1 %vm840_vm0, %v3849_v44  ;;  %v4159_v44 = vpack.c.bf16 %v6300_v43, %v6281_v29  ;;  %v6372_v29 = vld [vmem:[%s6435_s9] ss:$0 sm:$0xff] }
0x5310   :  { %4008 = vmatpush1.bf16.msra.mxu1 %v6108_v35  ;;  %4039 = vmatprep.mubr.bf16.mxu1 %v5101_v1 }
0x5311   :  { %4009 = vmatprep.subr.bf16.mxu1 %v6113_v25 }
0x5314   :  { %4010 = vmatpush1.bf16.msra.mxu1 %v6126_v50 }
0x5315   :  { %4011 = vmatprep.subr.bf16.mxu1 %v6131_v28 }
0x5318   :  { %4012 = vmatpush1.bf16.msra.mxu1 %v6139_v62 }
0x5319   :  { %4013 = vmatprep.subr.bf16.mxu1 %v6151_v27 }
0x531c   :  { %4014 = vmatpush1.bf16.msra.mxu1 %v6159_v40 }
0x531d   :  { %4523 = vmatprep.subr.bf16.mxu1 %v5103_v31 }
0x53e2   :  { %v3887_v45 = vpop.f32.mrb[68].mxu1 }
0x53e3   :  { %v3889_v47 = vpop.f32.mrb[69].mxu1  ;;  %v3894_v51 = vadd.f32 %v3887_v45, %v6200_v63 }
0x53e4   :  { %v3895_v48 = vadd.f32 %v3889_v47, %v6195_v12  ;;  %v3891_v2 = vpop.f32.mrb[70].mxu1 }
0x53e5   :  { %v3892_v3 = vpop.f32.mrb[71].mxu1  ;;  %v4493_v54 = vmul.f32 -1.442695, %v3894_v51 }
0x53e6   :  { %5029 = vtanh.f32 %v3895_v48  ;;  %v4494_v42 = vmul.f32 -1.442695, %v3895_v48 }
0x53e7   :  { %5031 = vpow2.f32 %v4493_v54 }
0x53f0   :  { %v5030_v4 = vpop.eup %5029 }
0x53f1   :  { %3911 = vrot.lane.b32.xlu0 %v5030_v4, %s5102_s2  ;;  %v5032_v55 = vpop.eup %5031 }
0x53f2   :  { %v3902_v0 = vadd.f32 1.0, %v5032_v55 }
0x53f4   :  { %5033 = vrcp.f32 %v3902_v0 }
0x53fe   :  { %v5034_v56 = vpop.eup %5033 }
0x53ff   :  { %v3909_v15 = vmul.f32 %v5034_v56, %v3842_v8  ;;  %v4593_v8 = vld [vmem:[%s6434_s8] sm:$0xff]  }
0x5463   :  { %v3912_v60 = vpop.permute.xlu0 %3911 }
0x5464   :  { %v3914_v13 = vmul.f32 %v5034_v56, %v3912_v60 }
0x5466   :  { %3916 = vrot.lane.b32.xlu1 %v3914_v13, %s5102_s2 }
0x54d8   :  { %v3917_v61 = vpop.permute.xlu1 %3916 }
0x54d9   :  { %v3919_v16 = vadd.f32 %v3917_v61, %v3909_v15 }
0x54db   :  { %5035 = vtanh.f32 %v3919_v16 }
0x54dc   :  { %5037 = vpow2.f32 %v4494_v42 }
0x54e5   :  { %v5036_v58 = vpop.eup %5035 }
0x54e6   :  { %3922 = vrot.lane.b32.xlu0 %v5036_v58, %s5102_s2  ;;  %v5038_v14 = vpop.eup %5037 }
0x54e7   :  { %v3903_v9 = vadd.f32 1.0, %v5038_v14 }
0x54e9   :  { %5039 = vrcp.f32 %v3903_v9 }
0x54f3   :  { %v5040_v10 = vpop.eup %5039 }
0x5558   :  { %v3923_v11 = vpop.permute.xlu0 %3922 }
0x5559   :  { %v6318_v20 = vmul.f32 %v5040_v10, %v3923_v11 }
0x555b   :  { %v3926_v6 = vpack.c.bf16 %v6318_v20, %v6318_v20 }
0x555d   :  { %4495 = vmatmul.mubr.msk.bf16.vlgmr.msra.gmra.mrb[80].mxu0 %vm840_vm0, %v3926_v6 }
0x555e   :  { %4085 = vmatpush1.bf16.msra.mxu0 %v6108_v35  ;;  %4116 = vmatprep.mubr.bf16.mxu0 %v5101_v1 }
0x555f   :  { %4086 = vmatprep.subr.bf16.mxu0 %v6113_v25 }
0x5562   :  { %4087 = vmatpush1.bf16.msra.mxu0 %v6126_v50 }
0x5563   :  { %4088 = vmatprep.subr.bf16.mxu0 %v6131_v28 }
0x5566   :  { %4089 = vmatpush1.bf16.msra.mxu0 %v6139_v62 }
0x5567   :  { %4090 = vmatprep.subr.bf16.mxu0 %v6151_v27 }
0x556a   :  { %4091 = vmatpush1.bf16.msra.mxu0 %v6159_v40 }
0x5630   :  { %v3964_v18 = vpop.f32.mrb[80].mxu0 }
0x5631   :  { %v3966_v21 = vpop.f32.mrb[81].mxu0  ;;  %v3971_v25 = vadd.f32 %v3964_v18, %v6200_v63 }
0x5632   :  { %v3972_v17 = vadd.f32 %v3966_v21, %v6195_v12  ;;  %v3968_v30 = vpop.f32.mrb[82].mxu0 }
0x5633   :  { %v3969_v35 = vpop.f32.mrb[83].mxu0  ;;  %v4496_v50 = vmul.f32 -1.442695, %v3971_v25 }
0x5634   :  { %5041 = vtanh.f32 %v3972_v17  ;;  %v4497_v38 = vmul.f32 -1.442695, %v3972_v17 }
0x5635   :  { %5043 = vpow2.f32 %v4496_v50 }
0x563e   :  { %v5042_v1 = vpop.eup %5041 }
0x563f   :  { %3988 = vrot.lane.b32.xlu1 %v5042_v1, %s5102_s2  ;;  %v5044_v28 = vpop.eup %5043 }
0x5640   :  { %v3979_v62 = vadd.f32 1.0, %v5044_v28 }
0x5642   :  { %5045 = vrcp.f32 %v3979_v62 }
0x564c   :  { %v5046_v27 = vpop.eup %5045 }
0x564d   :  { %v3986_v24 = vmul.f32 %v5046_v27, %v3919_v16 }
0x56b1   :  { %v3989_v23 = vpop.permute.xlu1 %3988 }
0x56b2   :  { %v3991_v40 = vmul.f32 %v5046_v27, %v3989_v23 }
0x56b4   :  { %3993 = vrot.lane.b32.xlu0 %v3991_v40, %s5102_s2 }
0x5726   :  { %v3994_v57 = vpop.permute.xlu0 %3993 }
0x5727   :  { %v6335_v22 = vadd.f32 %v3994_v57, %v3986_v24 }
0x5729   :  { %5047 = vtanh.f32 %v6335_v22 }
0x572a   :  { %5049 = vpow2.f32 %v4497_v38 }
0x5733   :  { %v5048_v33 = vpop.eup %5047 }
0x5734   :  { %3999 = vrot.lane.b32.xlu1 %v5048_v33, %s5102_s2  ;;  %v5050_v53 = vpop.eup %5049 }
0x5735   :  { %v3980_v26 = vadd.f32 1.0, %v5050_v53 }
0x5737   :  { %5051 = vrcp.f32 %v3980_v26 }
0x5741   :  { %v5052_v34 = vpop.eup %5051 }
0x57a6   :  { %v4000_v59 = vpop.permute.xlu1 %3999 }
0x57a7   :  { %v4002_v36 = vmul.f32 %v5052_v34, %v4000_v59 }
0x57a9   :  { %v4003_v19 = vpack.c.bf16 %v4002_v36, %v4002_v36  ;;  %v4160_v52 = vpack.c.bf16 %v4002_v36, %v6318_v20 }
0x57ab   :  { %4498 = vmatmul.mubr.msk.bf16.vlgmr.msra.gmra.mrb[72].mxu1 %vm840_vm0, %v4003_v19 }
0x57ac   :  { %4524 = vmatpush3.bf16.msra.mxu1 %v4593_v8  ;;  %4531 = vmatprep.mubr.msk.bf16.mxu1 %vm5104_vm1, %v5103_v31 }
0x57ad   :  { %4525 = vmatprep.subr.bf16.mxu1 %v5103_v31 }
0x57b0   :  { %4526 = vmatpush3.bf16.msra.mxu1 %v4594_v37 }
0x57b1   :  { %4527 = vmatprep.subr.bf16.mxu1 %v5103_v31 }
0x57b4   :  { %4528 = vmatpush3.bf16.msra.mxu1 %v4595_v39 }
0x57b5   :  { %4529 = vmatprep.subr.bf16.mxu1 %v5103_v31 }
0x57b8   :  { %4530 = vmatpush3.bf16.msra.mxu1 %v4596_v5 }
0x57bb   :  { %4532 = vmatmul.mubr.msk.bf16.vlgmr.msra.gmra.mrb[76].mxu1 %vm840_vm0, %v4157_v41 }
0x57bc   :  { %4535 = vmatprep.mubr.msk.bf16.mxu1 %vm5104_vm1, %v5103_v31 }
0x57c3   :  { %4536 = vmatmul.mubr.msk.bf16.gmra.mrb[80].mxu1 %vm840_vm0, %v4158_v7 }
0x57c4   :  { %4539 = vmatprep.mubr.msk.bf16.mxu1 %vm5104_vm1, %v5103_v31 }
0x57cb   :  { %4540 = vmatmul.mubr.msk.bf16.gmra.mrb[84].mxu1 %vm840_vm0, %v4159_v44 }
0x57cc   :  { %4543 = vmatprep.mubr.msk.bf16.mxu1 %vm5104_vm1, %v5103_v31 }
0x57d3   :  { %4544 = vmatmul.mubr.msk.bf16.gmra.mrb[88].mxu1 %vm840_vm0, %v4160_v52 }
0x57d4   :  { %4547 = vmatprep.mubr.msk.bf16.mxu1 %vm5104_vm1, %v5103_v31 }
0x587e   :  { %v4041_v49 = vpop.f32.mrb[72].mxu1 }
0x587f   :  { %v4043_v45 = vpop.f32.mrb[73].mxu1  ;;  %v4048_v17 = vadd.f32 %v4041_v49, %v6200_v63 }
0x5880   :  { %v4049_v32 = vadd.f32 %v4043_v45, %v6195_v12  ;;  %v4045_v46 = vpop.f32.mrb[74].mxu1 }
0x5881   :  { %v4046_v47 = vpop.f32.mrb[75].mxu1  ;;  %v4499_v30 = vmul.f32 -1.442695, %v4048_v17 }
0x5882   :  { %5053 = vtanh.f32 %v4049_v32  ;;  %v4500_v24 = vmul.f32 -1.442695, %v4049_v32 }
0x5883   :  { %5055 = vpow2.f32 %v4499_v30 }
0x588c   :  { %v5054_v48 = vpop.eup %5053 }
0x588d   :  { %4065 = vrot.lane.b32.xlu0 %v5054_v48, %s5102_s2  ;;  %v5056_v35 = vpop.eup %5055 }
0x588e   :  { %v4250_v43 = vpop.f32.mrb[76].mxu1  ;;  %v4056_v1 = vadd.f32 1.0, %v5056_v35 }
0x588f   :  { %v4251_v2 = vadd.f32 %v6372_v29, %v4250_v43  ;;  %v4533_v3 = vpop.f32.mrb[77].mxu1 }
0x5890   :  { %v4253_v4 = vpop.f32.mrb[78].mxu1  ;;  %5057 = vrcp.f32 %v4056_v1 }
0x5891   :  { %4289 = vst [vmem:[%s6436_s10] sm:$0xff] %v4251_v2  ;;  %v4254_v51 = vadd.f32 %v6372_v29, %v4253_v4  ;;  %v4534_v54 = vpop.f32.mrb[79].mxu1 }
0x5893   :  { %4290 = vst [vmem:[%s6436_s10 + $0x8] sm:$0xff] %v4254_v51 }
0x5896   :  { %v4258_v55 = vpop.f32.mrb[80].mxu1 }
0x5897   :  { %v4259_v0 = vadd.f32 %v6372_v29, %v4258_v55  ;;  %v4537_v56 = vpop.f32.mrb[81].mxu1 }
0x5898   :  { %v4261_v60 = vpop.f32.mrb[82].mxu1 }
0x5899   :  { %4291 = vst [vmem:[%s6436_s10 + $0x10] sm:$0xff] %v4259_v0  ;;  %v4262_v13 = vadd.f32 %v6372_v29, %v4261_v60  ;;  %v4538_v15 = vpop.f32.mrb[83].mxu1 }
0x589a   :  { %v5058_v25 = vpop.eup %5057 }
0x589b   :  { %4292 = vst [vmem:[%s6436_s10 + $0x18] sm:$0xff] %v4262_v13  ;;  %v4063_v62 = vmul.f32 %v5058_v25, %v6335_v22 }
0x589e   :  { %v4266_v61 = vpop.f32.mrb[84].mxu1 }
0x589f   :  { %v4267_v16 = vadd.f32 %v6372_v29, %v4266_v61  ;;  %v4541_v58 = vpop.f32.mrb[85].mxu1 }
0x58a0   :  { %v4269_v42 = vpop.f32.mrb[86].mxu1 }
0x58a1   :  { %4293 = vst [vmem:[%s6436_s10 + $0x20] sm:$0xff] %v4267_v16  ;;  %v4270_v14 = vadd.f32 %v6372_v29, %v4269_v42  ;;  %v4542_v9 = vpop.f32.mrb[87].mxu1 }
0x58a3   :  { %4294 = vst [vmem:[%s6436_s10 + $0x28] sm:$0xff] %v4270_v14 }
0x58a6   :  { %v4274_v10 = vpop.f32.mrb[88].mxu1 }
0x58a7   :  { %v4275_v11 = vadd.f32 %v6372_v29, %v4274_v10  ;;  %v4545_v20 = vpop.f32.mrb[89].mxu1 }
0x58a8   :  { %v4277_v6 = vpop.f32.mrb[90].mxu1 }
0x58a9   :  { %4295 = vst [vmem:[%s6436_s10 + $0x30] sm:$0xff] %v4275_v11  ;;  %v4278_v18 = vadd.f32 %v6372_v29, %v4277_v6  ;;  %v4546_v21 = vpop.f32.mrb[91].mxu1 }
0x58ab   :  { %4296 = vst [vmem:[%s6436_s10 + $0x38] sm:$0xff] %v4278_v18 }
0x58ff   :  { %v4066_v50 = vpop.permute.xlu0 %4065 }
0x5900   :  { %v4068_v28 = vmul.f32 %v5058_v25, %v4066_v50 }
0x5902   :  { %4070 = vrot.lane.b32.xlu1 %v4068_v28, %s5102_s2 }
0x5974   :  { %v4071_v27 = vpop.permute.xlu1 %4070 }
0x5975   :  { %v4073_v23 = vadd.f32 %v4071_v27, %v4063_v62 }
0x5977   :  { %5059 = vtanh.f32 %v4073_v23 }
0x5978   :  { %5061 = vpow2.f32 %v4500_v24 }
0x5981   :  { %v5060_v40 = vpop.eup %5059 }
0x5982   :  { %4076 = vrot.lane.b32.xlu0 %v5060_v40, %s5102_s2  ;;  %v5062_v57 = vpop.eup %5061 }
0x5983   :  { %v4057_v31 = vadd.f32 1.0, %v5062_v57 }
0x5985   :  { %5063 = vrcp.f32 %v4057_v31 }
0x598f   :  { %v5064_v33 = vpop.eup %5063 }
0x59f4   :  { %v4077_v38 = vpop.permute.xlu0 %4076 }
0x59f5   :  { %v4079_v53 = vmul.f32 %v5064_v33, %v4077_v38 }
0x59f7   :  { %v4080_v26 = vpack.c.bf16 %v4079_v53, %v4079_v53 }
0x59f9   :  { %4501 = vmatmul.mubr.msk.bf16.vlgmr.msra.gmra.mrb[84].mxu0 %vm840_vm0, %v4080_v26 }
0x5acc   :  { %v4118_v34 = vpop.f32.mrb[84].mxu0 }
0x5acd   :  { %v4120_v59 = vpop.f32.mrb[85].mxu0  ;;  %v4125_v37 = vadd.f32 %v4118_v34, %v6200_v63 }
0x5ace   :  { %v4126_v22 = vadd.f32 %v4120_v59, %v6195_v12  ;;  %v4122_v36 = vpop.f32.mrb[86].mxu0 }
0x5acf   :  { %v4123_v8 = vpop.f32.mrb[87].mxu0  ;;  %v4502_v39 = vmul.f32 -1.442695, %v4125_v37 }
0x5ad0   :  { %5065 = vtanh.f32 %v4126_v22  ;;  %v4503_v46 = vmul.f32 -1.442695, %v4126_v22 }
0x5ad1   :  { %5067 = vpow2.f32 %v4502_v39 }
0x5ada   :  { %v5066_v19 = vpop.eup %5065 }
0x5adb   :  { %4142 = vrot.lane.b32.xlu1 %v5066_v19, %s5102_s2  ;;  %v5068_v5 = vpop.eup %5067 }
0x5adc   :  { %v4133_v41 = vadd.f32 1.0, %v5068_v5 }
0x5ade   :  { %5069 = vrcp.f32 %v4133_v41 }
0x5ae8   :  { %v5070_v7 = vpop.eup %5069 }
0x5ae9   :  { %v4140_v49 = vmul.f32 %v5070_v7, %v4073_v23 }
0x5b4d   :  { %v4143_v44 = vpop.permute.xlu1 %4142 }
0x5b4e   :  { %v4145_v52 = vmul.f32 %v5070_v7, %v4143_v44 }
0x5b50   :  { %4147 = vrot.lane.b32.xlu0 %v4145_v52, %s5102_s2 }
0x5bc2   :  { %v4148_v12 = vpop.permute.xlu0 %4147 }
0x5bc3   :  { %v4150_v45 = vadd.f32 %v4148_v12, %v4140_v49 }
0x5bc5   :  { %5071 = vtanh.f32 %v4150_v45 }
0x5bc6   :  { %5073 = vpow2.f32 %v4503_v46 }
0x5bcf   :  { %v5072_v32 = vpop.eup %5071 }
0x5bd0   :  { %4153 = vrot.lane.b32.xlu1 %v5072_v32, %s5102_s2  ;;  %v5074_v63 = vpop.eup %5073 }
0x5bd1   :  { %v4134_v47 = vadd.f32 1.0, %v5074_v63 }
0x5bd3   :  { %5075 = vrcp.f32 %v4134_v47 }
0x5bdd   :  { %v5076_v48 = vpop.eup %5075 }
0x5c42   :  { %v4154_v43 = vpop.permute.xlu1 %4153 }
0x5c43   :  { %v4156_v2 = vmul.f32 %v5076_v48, %v4154_v43 }
0x5c45   :  { %v4161_v3 = vpack.c.bf16 %v4156_v2, %v4079_v53 }
0x5c47   :  { %4548 = vmatmul.mubr.msk.bf16.gmra.mrb[92].mxu1 %vm840_vm0, %v4161_v3 }
0x5d1a   :  { %v4282_v4 = vpop.f32.mrb[92].mxu1 }
0x5d1b   :  { %v4283_v51 = vadd.f32 %v6372_v29, %v4282_v4  ;;  %v4549_v54 = vpop.f32.mrb[93].mxu1 }
0x5d1c   :  { %v4285_v55 = vpop.f32.mrb[94].mxu1 }
0x5d1d   :  { %4297 = vst [vmem:[%s6436_s10 + $0x40] sm:$0xff] %v4283_v51  ;;  %v4286_v0 = vadd.f32 %v6372_v29, %v4285_v55  ;;  %v4550_v56 = vpop.f32.mrb[95].mxu1 }
0x5d1f   :  { %4298 = vst [vmem:[%s6436_s10 + $0x48] sm:$0xff] %v4286_v0 }

</bundles_post_ra>
